<compile_context>
chip_gen: v7x
topology: tpu7x:2x2x1
jax: 0.10.0
libtpu: 0.0.40
codegen_flags: <defaults>
</compile_context>

<pallas_src>
import numpy as np
import jax
import jax.numpy as jnp
from jax import lax
from jax.experimental import pallas as pl
from jax.experimental.pallas import tpu as pltpu

# Problem sizes: ReUploadingPQCLayer(n_observations=4, n_actions=2, c_depth=2, ...)
NQ = 4                            # n_qubits = n_observations
DEPTH = 2                         # c_depth
DIM = 1 << NQ                     # statevector length per sample (16)
LANES = 128                       # TPU lane width
SPG = LANES // DIM                # samples packed per 128-lane row (8)
NPARAMS = 2 * NQ * (DEPTH + 1)    # (Ry, Rz) per qubit per layer + final layer = 24
CS_COLS = SPG * 2 * NQ            # compact cos/sin columns per packed row (64)
B = 16                            # batch used in __main__


def _dot_f32(a, b):
    return jnp.dot(a, b, precision=lax.Precision.HIGHEST,
                   preferred_element_type=jnp.float32)


# --------------------------------- kernel ---------------------------------
def _pqc_kernel(cs_ref, spread_ref, init_ref, m_ref, mz_ref, out_ref):
    rt = cs_ref.shape[0]

    # Only per-lane constants kept resident: the bit-q masks.
    lane = jax.lax.broadcasted_iota(jnp.int32, (rt, LANES), 1)
    amp = lane & (DIM - 1)
    bit = [((amp >> q) & 1) == 1 for q in range(NQ)]

    # Expand compact per-sample cos/sin to per-lane planes with one MXU matmul
    # against a constant 0/1 spread matrix:
    #   planes[:, p*128 + s*16 + a] = cs[:, s*8 + p]   (p = 2q cos, 2q+1 sin)
    planes = _dot_f32(cs_ref[...], spread_ref[...])
    cx = [planes[:, (2 * q) * LANES:(2 * q + 1) * LANES] for q in range(NQ)]
    sx = [planes[:, (2 * q + 1) * LANES:(2 * q + 2) * LANES] for q in range(NQ)]

    def partner(v, q):
        # value at lane XOR 2**q: two XLU lane-rolls + one select; the kept
        # direction never crosses a 16-amplitude sample group.
        d = 1 << q
        up = pltpu.roll(v, LANES - d, 1)   # out[i] = v[(i + d) % 128]
        dn = pltpu.roll(v, d, 1)           # out[i] = v[(i - d) % 128]
        return jnp.where(bit[q], dn, up)

    def rx_layer(sr, si):
        # data re-uploading layer: Rx(x_q) on every qubit.
        # Rx: new = c*cur - i*s*partner  ->  re: c*sr + s*pi ; im: c*si - s*pr
        for q in range(NQ):
            pr = partner(sr, q)
            pi_ = partner(si, q)
            sr, si = cx[q] * sr + sx[q] * pi_, cx[q] * si - sx[q] * pr
        return sr, si

    def cmatmul(sr, si, br, bi):
        # psi_row <- psi_row @ (br + i*bi): 4 MXU matmuls + 2 adds.
        return (_dot_f32(sr, br) - _dot_f32(si, bi),
                _dot_f32(sr, bi) + _dot_f32(si, br))

    # Initial state = CZ . U_var(d=0) |0..0>, precomputed in the wrapper,
    # replicated across the 8 packed samples (first var layer hoisted).
    sr = jnp.broadcast_to(init_ref[0:1, :], (rt, LANES))
    si = jnp.broadcast_to(init_ref[1:2, :], (rt, LANES))

    sr, si = rx_layer(sr, si)                        # data layer (d=0)
    sr, si = cmatmul(sr, si, m_ref[0], m_ref[1])     # CZ . U_var(d=1)  (MXU)
    sr, si = rx_layer(sr, si)                        # data layer (d=1)
    sr, si = cmatmul(sr, si, m_ref[2], m_ref[3])     # U_var(final)     (MXU)

    # Fused readout: <Z_q> for all qubits / packed samples in one matmul.
    prob = sr * sr + si * si
    ez = _dot_f32(prob, mz_ref[...])
    # TODO(synk): for very large batches, pack 4 row-groups into a lane-dense
    # (rt//4, 128) output block to avoid 32/128-lane masked stores.
    out_ref[...] = 0.5 * (1.0 + ez)


# ----------------------- static constant matrices (numpy) -----------------------
def _readout_matrix_np():
    # Block-diagonal per-sample Z-sign matrix:
    #   Mz[s*16 + a, s*NQ + q] = (-1)**bit_q(a), zero across samples.
    mz = np.zeros((SPG * DIM, SPG * NQ), np.float32)
    for s in range(SPG):
        for a in range(DIM):
            for q in range(NQ):
                mz[s * DIM + a, s * NQ + q] = 1.0 - 2.0 * ((a >> q) & 1)
    return mz


def _spread_matrix_np():
    # 0/1 spread matrix taking compact cos/sin lanes (s*8 + 2q + t) to 8 full
    # 128-lane planes (plane p = 2q+t, lanes s*16..s*16+15).
    sp = np.zeros((LANES, 2 * NQ * LANES), np.float32)
    for s in range(SPG):
        for q in range(NQ):
            for t in range(2):
                col0 = (2 * q + t) * LANES + s * DIM
                sp[s * 2 * NQ + 2 * q + t, col0:col0 + DIM] = 1.0
    return sp


def _cz_diag_np():
    pairs = [(q, q + 1) for q in range(NQ - 1)] + ([(NQ - 1, 0)] if NQ > 2 else [])
    d = np.ones(DIM, np.complex64)
    for qa, qb in pairs:
        for a in range(DIM):
            if ((a >> qa) & 1) and ((a >> qb) & 1):
                d[a] = -d[a]
    return d


# -------------------- traced circuit constants (from thetas) --------------------
def _var_layer_unitary(thetas, d):
    # 16x16 complex unitary of one variational layer: Rz(th) . Ry(th) per qubit,
    # qubit 0 on the least-significant amplitude bit.
    u = None
    for q in range(NQ):
        p = 2 * (d * NQ + q)
        hc = jnp.cos(0.5 * thetas[p])
        hs = jnp.sin(0.5 * thetas[p])
        ry = jnp.stack([jnp.stack([hc, -hs]),
                        jnp.stack([hs, hc])]).astype(jnp.complex64)
        e = jnp.exp(-0.5j * thetas[p + 1].astype(jnp.complex64))
        rz = jnp.diag(jnp.stack([e, jnp.conj(e)]))
        g = rz @ ry
        u = g if u is None else jnp.kron(g, u)
    return u


def _block_diag_rt(m16):
    # Row-vector application psi' = psi @ m16.T, tiled block-diagonally over
    # the 8 packed samples -> real/imag (128,128) f32 matrices.
    big = jnp.kron(jnp.eye(SPG, dtype=jnp.complex64), m16.T)
    return jnp.real(big).astype(jnp.float32), jnp.imag(big).astype(jnp.float32)


def _pick_row_tile(rows: int) -> int:
    if rows <= 8:
        return rows
    # >= 2 grid steps so dimension_semantics=("parallel",) shards across both
    # v7x TensorCores; tile capped at 256 rows (VMEM stays far below limits).
    tile = max(8, min(256, (rows // 2 // 8) * 8))
    while rows % tile:
        tile -= 8
    return tile


@jax.jit
def reuploading_pqc_forward(xs, thetas):
    batch = xs.shape[0]
    # Pad the batch so packed rows fill whole vregs (8 samples/row, 8 rows/vreg).
    bpad = ((batch + SPG * 8 - 1) // (SPG * 8)) * (SPG * 8)
    rows = bpad // SPG
    xp = jnp.pad(xs.astype(jnp.float32), ((0, bpad - batch), (0, 0)))

    # --- data-dependent part: compact half-angle trig in the wrapper (tiny) ---
    c = jnp.cos(0.5 * xp)
    s = jnp.sin(0.5 * xp)
    cs = jnp.stack([c, s], axis=-1).reshape(bpad, 2 * NQ)      # col = 2q + t
    cs = cs.reshape(rows, CS_COLS)                             # col = s*8 + 2q + t
    cs = jnp.pad(cs, ((0, 0), (0, LANES - CS_COLS)))           # lane-align to 128

    # --- sample-independent circuit pieces, hoisted out of the kernel ---
    thetas = thetas.astype(jnp.float32)
    czd = jnp.asarray(_cz_diag_np())
    u0 = _var_layer_unitary(thetas, 0)
    u1 = _var_layer_unitary(thetas, 1)
    u2 = _var_layer_unitary(thetas, DEPTH)
    psi0 = czd * u0[:, 0]                                      # CZ.U_var(0)|0..0>
    init = jnp.stack([jnp.tile(jnp.real(psi0), SPG),
                      jnp.tile(jnp.imag(psi0), SPG)]).astype(jnp.float32)  # (2,128)
    m1r, m1i = _block_diag_rt(czd[:, None] * u1)               # CZ . U_var(1)
    m2r, m2i = _block_diag_rt(u2)                              # U_var(final)
    mstack = jnp.stack([m1r, m1i, m2r, m2i])                   # (4,128,128)

    spread = jnp.asarray(_spread_matrix_np())
    mz = jnp.asarray(_readout_matrix_np())

    row_tile = _pick_row_tile(rows)
    grid = (rows // row_tile,)

    out = pl.pallas_call(
        _pqc_kernel,
        out_shape=jax.ShapeDtypeStruct((rows, SPG * NQ), jnp.float32),
        grid=grid,
        in_specs=[
            pl.BlockSpec((row_tile, LANES), lambda i: (i, 0)),          # cos/sin slab
            pl.BlockSpec((LANES, 2 * NQ * LANES), lambda i: (0, 0)),    # spread 0/1
            pl.BlockSpec((2, LANES), lambda i: (0, 0)),                 # initial state
            pl.BlockSpec((4, LANES, LANES), lambda i: (0, 0, 0)),       # M1r,M1i,M2r,M2i
            pl.BlockSpec((SPG * DIM, SPG * NQ), lambda i: (0, 0)),      # readout Z
        ],
        out_specs=pl.BlockSpec((row_tile, SPG * NQ), lambda i: (i, 0)),
        compiler_params=pltpu.CompilerParams(
            dimension_semantics=("parallel",)),
    )(cs, spread, init, mstack, mz)

    # Unpack: (rows, SPG*NQ) -> (bpad, NQ) -> drop batch padding.
    return out.reshape(bpad, NQ)[:batch]


# ---------------- plain NumPy reference (independent statevector sim) ----------------
def _ref_forward(xs, thetas):
    xs = np.asarray(xs, np.float64)
    th = np.asarray(thetas, np.float64)

    def ry(a):
        c, s = np.cos(a / 2), np.sin(a / 2)
        return np.array([[c, -s], [s, c]], complex)

    def rz(a):
        return np.array([[np.exp(-1j * a / 2), 0], [0, np.exp(1j * a / 2)]], complex)

    def rx(a):
        c, s = np.cos(a / 2), np.sin(a / 2)
        return np.array([[c, -1j * s], [-1j * s, c]], complex)

    def apply1(state, q, U):
        new = state.copy()
        s = 1 << q
        for i in range(DIM):
            if not (i & s):
                a0, a1 = state[i], state[i | s]
                new[i] = U[0, 0] * a0 + U[0, 1] * a1
                new[i | s] = U[1, 0] * a0 + U[1, 1] * a1
        return new

    def cz(state, qa, qb):
        new = state.copy()
        for i in range(DIM):
            if ((i >> qa) & 1) and ((i >> qb) & 1):
                new[i] = -new[i]
        return new

    out = np.zeros((xs.shape[0], NQ), np.float64)
    for b in range(xs.shape[0]):
        psi = np.zeros(DIM, complex)
        psi[0] = 1.0

        def var_layer(psi, d):
            for q in range(NQ):
                p = 2 * (d * NQ + q)
                psi = apply1(psi, q, ry(th[p]))
                psi = apply1(psi, q, rz(th[p + 1]))
            return psi

        for d in range(DEPTH):
            psi = var_layer(psi, d)
            for q in range(NQ - 1):
                psi = cz(psi, q, q + 1)
            if NQ > 2:
                psi = cz(psi, NQ - 1, 0)
            for q in range(NQ):
                psi = apply1(psi, q, rx(xs[b, q]))
        psi = var_layer(psi, DEPTH)

        prob = np.abs(psi) ** 2
        for q in range(NQ):
            zs = np.array([1.0 if not ((i >> q) & 1) else -1.0 for i in range(DIM)])
            out[b, q] = 0.5 * (1.0 + np.sum(prob * zs))
    return out


if __name__ == "__main__":
    key = jax.random.PRNGKey(0)
    kx, kt = jax.random.split(key)
    xs = jax.random.uniform(kx, (B, NQ), jnp.float32, minval=-1.0, maxval=1.0)
    # matches: nn.Parameter(torch.rand(num_parameters) * pi), deterministic init
    thetas = jax.random.uniform(kt, (NPARAMS,), jnp.float32) * np.pi

    out = jax.block_until_ready(reuploading_pqc_forward(xs, thetas))

    assert out.shape == (B, NQ) and out.dtype == jnp.float32
    ref = _ref_forward(np.asarray(xs), np.asarray(thetas))
    np.testing.assert_allclose(np.asarray(out), ref, rtol=2e-4, atol=2e-4)
    print("KERNEL_OK")
</pallas_src>

<mosaic_0001>
module attributes {stable_mosaic.version = 11 : i64} {
  func.func @_pqc_kernel(%arg0: i32, %arg1: memref<8x128xf32, #tpu.memory_space<vmem>>, %arg2: memref<128x1024xf32, #tpu.memory_space<vmem>>, %arg3: memref<2x128xf32, #tpu.memory_space<vmem>>, %arg4: memref<4x128x128xf32, #tpu.memory_space<vmem>>, %arg5: memref<128x32xf32, #tpu.memory_space<vmem>>, %arg6: memref<8x32xf32, #tpu.memory_space<vmem>>) attributes {dimension_semantics = [#tpu.dimension_semantics<parallel>], iteration_bounds = array<i64: 1>, scalar_prefetch = 0 : i64, scratch_operands = 0 : i64, tpu.core_type = #tpu.core_type<tc>, window_params = [{transform_indices = @transform_0, window_bounds = array<i64: 8, 128>}, {pipeline_mode = #tpu.pipeline_mode<synchronous>, transform_indices = @transform_1, window_bounds = array<i64: 128, 1024>}, {pipeline_mode = #tpu.pipeline_mode<synchronous>, transform_indices = @transform_2, window_bounds = array<i64: 2, 128>}, {pipeline_mode = #tpu.pipeline_mode<synchronous>, transform_indices = @transform_3, window_bounds = array<i64: 4, 128, 128>}, {pipeline_mode = #tpu.pipeline_mode<synchronous>, transform_indices = @transform_4, window_bounds = array<i64: 128, 32>}, {transform_indices = @transform_5, window_bounds = array<i64: 8, 32>}]} {
    %0 = tpu.iota {dimensions = array<i32: 1>} : vector<8x128xi32>
    %c15_i32 = arith.constant 15 : i32
    %1 = vector.broadcast %c15_i32 : i32 to vector<8x128xi32>
    %2 = arith.andi %0, %1 : vector<8x128xi32>
    %c0_i32 = arith.constant 0 : i32
    %3 = vector.broadcast %c0_i32 : i32 to vector<8x128xi32>
    %4 = arith.shrsi %2, %3 : vector<8x128xi32>
    %c1_i32 = arith.constant 1 : i32
    %5 = vector.broadcast %c1_i32 : i32 to vector<8x128xi32>
    %6 = arith.andi %4, %5 : vector<8x128xi32>
    %c1_i32_0 = arith.constant 1 : i32
    %7 = vector.broadcast %c1_i32_0 : i32 to vector<8x128xi32>
    %8 = arith.cmpi eq, %6, %7 : vector<8x128xi32>
    %c1_i32_1 = arith.constant 1 : i32
    %9 = vector.broadcast %c1_i32_1 : i32 to vector<8x128xi32>
    %10 = arith.shrsi %2, %9 : vector<8x128xi32>
    %c1_i32_2 = arith.constant 1 : i32
    %11 = vector.broadcast %c1_i32_2 : i32 to vector<8x128xi32>
    %12 = arith.andi %10, %11 : vector<8x128xi32>
    %c1_i32_3 = arith.constant 1 : i32
    %13 = vector.broadcast %c1_i32_3 : i32 to vector<8x128xi32>
    %14 = arith.cmpi eq, %12, %13 : vector<8x128xi32>
    %c2_i32 = arith.constant 2 : i32
    %15 = vector.broadcast %c2_i32 : i32 to vector<8x128xi32>
    %16 = arith.shrsi %2, %15 : vector<8x128xi32>
    %c1_i32_4 = arith.constant 1 : i32
    %17 = vector.broadcast %c1_i32_4 : i32 to vector<8x128xi32>
    %18 = arith.andi %16, %17 : vector<8x128xi32>
    %c1_i32_5 = arith.constant 1 : i32
    %19 = vector.broadcast %c1_i32_5 : i32 to vector<8x128xi32>
    %20 = arith.cmpi eq, %18, %19 : vector<8x128xi32>
    %c3_i32 = arith.constant 3 : i32
    %21 = vector.broadcast %c3_i32 : i32 to vector<8x128xi32>
    %22 = arith.shrsi %2, %21 : vector<8x128xi32>
    %c1_i32_6 = arith.constant 1 : i32
    %23 = vector.broadcast %c1_i32_6 : i32 to vector<8x128xi32>
    %24 = arith.andi %22, %23 : vector<8x128xi32>
    %c1_i32_7 = arith.constant 1 : i32
    %25 = vector.broadcast %c1_i32_7 : i32 to vector<8x128xi32>
    %26 = arith.cmpi eq, %24, %25 : vector<8x128xi32>
    %c0 = arith.constant 0 : index
    %c0_8 = arith.constant 0 : index
    %27 = vector.load %arg1[%c0, %c0_8] : memref<8x128xf32, #tpu.memory_space<vmem>>, vector<8x128xf32>
    %c0_9 = arith.constant 0 : index
    %c0_10 = arith.constant 0 : index
    %28 = vector.load %arg2[%c0_9, %c0_10] : memref<128x1024xf32, #tpu.memory_space<vmem>>, vector<128x1024xf32>
    %cst = arith.constant dense<0.000000e+00> : vector<8x1024xf32>
    %29 = tpu.matmul %27, %28, %cst {dimension_numbers = #tpu.dot_dimension_numbers<[1], [0], [0], [1], [0, 0, 1, 1], [], []>, precision = #tpu.contract_precision<fp32>} : vector<8x128xf32>, vector<128x1024xf32>, vector<8x1024xf32> -> vector<8x1024xf32>
    %30 = vector.extract_strided_slice %29 {offsets = [0, 0], sizes = [8, 128], strides = [1, 1]} : vector<8x1024xf32> to vector<8x128xf32>
    %31 = vector.extract_strided_slice %29 {offsets = [0, 256], sizes = [8, 128], strides = [1, 1]} : vector<8x1024xf32> to vector<8x128xf32>
    %32 = vector.extract_strided_slice %29 {offsets = [0, 512], sizes = [8, 128], strides = [1, 1]} : vector<8x1024xf32> to vector<8x128xf32>
    %33 = vector.extract_strided_slice %29 {offsets = [0, 768], sizes = [8, 128], strides = [1, 1]} : vector<8x1024xf32> to vector<8x128xf32>
    %34 = vector.extract_strided_slice %29 {offsets = [0, 128], sizes = [8, 128], strides = [1, 1]} : vector<8x1024xf32> to vector<8x128xf32>
    %35 = vector.extract_strided_slice %29 {offsets = [0, 384], sizes = [8, 128], strides = [1, 1]} : vector<8x1024xf32> to vector<8x128xf32>
    %36 = vector.extract_strided_slice %29 {offsets = [0, 640], sizes = [8, 128], strides = [1, 1]} : vector<8x1024xf32> to vector<8x128xf32>
    %37 = vector.extract_strided_slice %29 {offsets = [0, 896], sizes = [8, 128], strides = [1, 1]} : vector<8x1024xf32> to vector<8x128xf32>
    %c0_11 = arith.constant 0 : index
    %c0_12 = arith.constant 0 : index
    %38 = vector.load %arg3[%c0_11, %c0_12] : memref<2x128xf32, #tpu.memory_space<vmem>>, vector<1x128xf32>
    %39 = vector.shape_cast %38 : vector<1x128xf32> to vector<1x128xf32>
    %40 = vector.broadcast %39 : vector<1x128xf32> to vector<8x128xf32>
    %c1 = arith.constant 1 : index
    %c0_13 = arith.constant 0 : index
    %41 = vector.load %arg3[%c1, %c0_13] : memref<2x128xf32, #tpu.memory_space<vmem>>, vector<1x128xf32>
    %42 = vector.shape_cast %41 : vector<1x128xf32> to vector<1x128xf32>
    %43 = vector.broadcast %42 : vector<1x128xf32> to vector<8x128xf32>
    %c127_i32 = arith.constant 127 : i32
    %44 = tpu.dynamic_rotate %40 by %c127_i32 dim 1 : vector<8x128xf32>, i32 -> vector<8x128xf32>
    %c1_i32_14 = arith.constant 1 : i32
    %45 = tpu.dynamic_rotate %40 by %c1_i32_14 dim 1 : vector<8x128xf32>, i32 -> vector<8x128xf32>
    %46 = arith.select %8, %45, %44 : vector<8x128xi1>, vector<8x128xf32>
    %c127_i32_15 = arith.constant 127 : i32
    %47 = tpu.dynamic_rotate %43 by %c127_i32_15 dim 1 : vector<8x128xf32>, i32 -> vector<8x128xf32>
    %c1_i32_16 = arith.constant 1 : i32
    %48 = tpu.dynamic_rotate %43 by %c1_i32_16 dim 1 : vector<8x128xf32>, i32 -> vector<8x128xf32>
    %49 = arith.select %8, %48, %47 : vector<8x128xi1>, vector<8x128xf32>
    %50 = arith.mulf %30, %40 : vector<8x128xf32>
    %51 = arith.mulf %34, %49 : vector<8x128xf32>
    %52 = arith.addf %50, %51 : vector<8x128xf32>
    %53 = arith.mulf %30, %43 : vector<8x128xf32>
    %54 = arith.mulf %34, %46 : vector<8x128xf32>
    %55 = arith.subf %53, %54 : vector<8x128xf32>
    %c126_i32 = arith.constant 126 : i32
    %56 = tpu.dynamic_rotate %52 by %c126_i32 dim 1 : vector<8x128xf32>, i32 -> vector<8x128xf32>
    %c2_i32_17 = arith.constant 2 : i32
    %57 = tpu.dynamic_rotate %52 by %c2_i32_17 dim 1 : vector<8x128xf32>, i32 -> vector<8x128xf32>
    %58 = arith.select %14, %57, %56 : vector<8x128xi1>, vector<8x128xf32>
    %c126_i32_18 = arith.constant 126 : i32
    %59 = tpu.dynamic_rotate %55 by %c126_i32_18 dim 1 : vector<8x128xf32>, i32 -> vector<8x128xf32>
    %c2_i32_19 = arith.constant 2 : i32
    %60 = tpu.dynamic_rotate %55 by %c2_i32_19 dim 1 : vector<8x128xf32>, i32 -> vector<8x128xf32>
    %61 = arith.select %14, %60, %59 : vector<8x128xi1>, vector<8x128xf32>
    %62 = arith.mulf %31, %52 : vector<8x128xf32>
    %63 = arith.mulf %35, %61 : vector<8x128xf32>
    %64 = arith.addf %62, %63 : vector<8x128xf32>
    %65 = arith.mulf %31, %55 : vector<8x128xf32>
    %66 = arith.mulf %35, %58 : vector<8x128xf32>
    %67 = arith.subf %65, %66 : vector<8x128xf32>
    %c124_i32 = arith.constant 124 : i32
    %68 = tpu.dynamic_rotate %64 by %c124_i32 dim 1 : vector<8x128xf32>, i32 -> vector<8x128xf32>
    %c4_i32 = arith.constant 4 : i32
    %69 = tpu.dynamic_rotate %64 by %c4_i32 dim 1 : vector<8x128xf32>, i32 -> vector<8x128xf32>
    %70 = arith.select %20, %69, %68 : vector<8x128xi1>, vector<8x128xf32>
    %c124_i32_20 = arith.constant 124 : i32
    %71 = tpu.dynamic_rotate %67 by %c124_i32_20 dim 1 : vector<8x128xf32>, i32 -> vector<8x128xf32>
    %c4_i32_21 = arith.constant 4 : i32
    %72 = tpu.dynamic_rotate %67 by %c4_i32_21 dim 1 : vector<8x128xf32>, i32 -> vector<8x128xf32>
    %73 = arith.select %20, %72, %71 : vector<8x128xi1>, vector<8x128xf32>
    %74 = arith.mulf %32, %64 : vector<8x128xf32>
    %75 = arith.mulf %36, %73 : vector<8x128xf32>
    %76 = arith.addf %74, %75 : vector<8x128xf32>
    %77 = arith.mulf %32, %67 : vector<8x128xf32>
    %78 = arith.mulf %36, %70 : vector<8x128xf32>
    %79 = arith.subf %77, %78 : vector<8x128xf32>
    %c120_i32 = arith.constant 120 : i32
    %80 = tpu.dynamic_rotate %76 by %c120_i32 dim 1 : vector<8x128xf32>, i32 -> vector<8x128xf32>
    %c8_i32 = arith.constant 8 : i32
    %81 = tpu.dynamic_rotate %76 by %c8_i32 dim 1 : vector<8x128xf32>, i32 -> vector<8x128xf32>
    %82 = arith.select %26, %81, %80 : vector<8x128xi1>, vector<8x128xf32>
    %c120_i32_22 = arith.constant 120 : i32
    %83 = tpu.dynamic_rotate %79 by %c120_i32_22 dim 1 : vector<8x128xf32>, i32 -> vector<8x128xf32>
    %c8_i32_23 = arith.constant 8 : i32
    %84 = tpu.dynamic_rotate %79 by %c8_i32_23 dim 1 : vector<8x128xf32>, i32 -> vector<8x128xf32>
    %85 = arith.select %26, %84, %83 : vector<8x128xi1>, vector<8x128xf32>
    %86 = arith.mulf %33, %76 : vector<8x128xf32>
    %87 = arith.mulf %37, %85 : vector<8x128xf32>
    %88 = arith.addf %86, %87 : vector<8x128xf32>
    %89 = arith.mulf %33, %79 : vector<8x128xf32>
    %90 = arith.mulf %37, %82 : vector<8x128xf32>
    %91 = arith.subf %89, %90 : vector<8x128xf32>
    %c0_24 = arith.constant 0 : index
    %c0_25 = arith.constant 0 : index
    %c0_26 = arith.constant 0 : index
    %92 = vector.load %arg4[%c0_24, %c0_25, %c0_26] : memref<4x128x128xf32, #tpu.memory_space<vmem>>, vector<1x128x128xf32>
    %93 = vector.shape_cast %92 : vector<1x128x128xf32> to vector<128x128xf32>
    %c1_27 = arith.constant 1 : index
    %c0_28 = arith.constant 0 : index
    %c0_29 = arith.constant 0 : index
    %94 = vector.load %arg4[%c1_27, %c0_28, %c0_29] : memref<4x128x128xf32, #tpu.memory_space<vmem>>, vector<1x128x128xf32>
    %95 = vector.shape_cast %94 : vector<1x128x128xf32> to vector<128x128xf32>
    %cst_30 = arith.constant dense<0.000000e+00> : vector<8x128xf32>
    %96 = tpu.matmul %88, %93, %cst_30 {dimension_numbers = #tpu.dot_dimension_numbers<[1], [0], [0], [1], [0, 0, 1, 1], [], []>, precision = #tpu.contract_precision<fp32>} : vector<8x128xf32>, vector<128x128xf32>, vector<8x128xf32> -> vector<8x128xf32>
    %cst_31 = arith.constant dense<0.000000e+00> : vector<8x128xf32>
    %97 = tpu.matmul %91, %95, %cst_31 {dimension_numbers = #tpu.dot_dimension_numbers<[1], [0], [0], [1], [0, 0, 1, 1], [], []>, precision = #tpu.contract_precision<fp32>} : vector<8x128xf32>, vector<128x128xf32>, vector<8x128xf32> -> vector<8x128xf32>
    %98 = arith.subf %96, %97 : vector<8x128xf32>
    %cst_32 = arith.constant dense<0.000000e+00> : vector<8x128xf32>
    %99 = tpu.matmul %88, %95, %cst_32 {dimension_numbers = #tpu.dot_dimension_numbers<[1], [0], [0], [1], [0, 0, 1, 1], [], []>, precision = #tpu.contract_precision<fp32>} : vector<8x128xf32>, vector<128x128xf32>, vector<8x128xf32> -> vector<8x128xf32>
    %cst_33 = arith.constant dense<0.000000e+00> : vector<8x128xf32>
    %100 = tpu.matmul %91, %93, %cst_33 {dimension_numbers = #tpu.dot_dimension_numbers<[1], [0], [0], [1], [0, 0, 1, 1], [], []>, precision = #tpu.contract_precision<fp32>} : vector<8x128xf32>, vector<128x128xf32>, vector<8x128xf32> -> vector<8x128xf32>
    %101 = arith.addf %99, %100 : vector<8x128xf32>
    %c127_i32_34 = arith.constant 127 : i32
    %102 = tpu.dynamic_rotate %98 by %c127_i32_34 dim 1 : vector<8x128xf32>, i32 -> vector<8x128xf32>
    %c1_i32_35 = arith.constant 1 : i32
    %103 = tpu.dynamic_rotate %98 by %c1_i32_35 dim 1 : vector<8x128xf32>, i32 -> vector<8x128xf32>
    %104 = arith.select %8, %103, %102 : vector<8x128xi1>, vector<8x128xf32>
    %c127_i32_36 = arith.constant 127 : i32
    %105 = tpu.dynamic_rotate %101 by %c127_i32_36 dim 1 : vector<8x128xf32>, i32 -> vector<8x128xf32>
    %c1_i32_37 = arith.constant 1 : i32
    %106 = tpu.dynamic_rotate %101 by %c1_i32_37 dim 1 : vector<8x128xf32>, i32 -> vector<8x128xf32>
    %107 = arith.select %8, %106, %105 : vector<8x128xi1>, vector<8x128xf32>
    %108 = arith.mulf %30, %98 : vector<8x128xf32>
    %109 = arith.mulf %34, %107 : vector<8x128xf32>
    %110 = arith.addf %108, %109 : vector<8x128xf32>
    %111 = arith.mulf %30, %101 : vector<8x128xf32>
    %112 = arith.mulf %34, %104 : vector<8x128xf32>
    %113 = arith.subf %111, %112 : vector<8x128xf32>
    %c126_i32_38 = arith.constant 126 : i32
    %114 = tpu.dynamic_rotate %110 by %c126_i32_38 dim 1 : vector<8x128xf32>, i32 -> vector<8x128xf32>
    %c2_i32_39 = arith.constant 2 : i32
    %115 = tpu.dynamic_rotate %110 by %c2_i32_39 dim 1 : vector<8x128xf32>, i32 -> vector<8x128xf32>
    %116 = arith.select %14, %115, %114 : vector<8x128xi1>, vector<8x128xf32>
    %c126_i32_40 = arith.constant 126 : i32
    %117 = tpu.dynamic_rotate %113 by %c126_i32_40 dim 1 : vector<8x128xf32>, i32 -> vector<8x128xf32>
    %c2_i32_41 = arith.constant 2 : i32
    %118 = tpu.dynamic_rotate %113 by %c2_i32_41 dim 1 : vector<8x128xf32>, i32 -> vector<8x128xf32>
    %119 = arith.select %14, %118, %117 : vector<8x128xi1>, vector<8x128xf32>
    %120 = arith.mulf %31, %110 : vector<8x128xf32>
    %121 = arith.mulf %35, %119 : vector<8x128xf32>
    %122 = arith.addf %120, %121 : vector<8x128xf32>
    %123 = arith.mulf %31, %113 : vector<8x128xf32>
    %124 = arith.mulf %35, %116 : vector<8x128xf32>
    %125 = arith.subf %123, %124 : vector<8x128xf32>
    %c124_i32_42 = arith.constant 124 : i32
    %126 = tpu.dynamic_rotate %122 by %c124_i32_42 dim 1 : vector<8x128xf32>, i32 -> vector<8x128xf32>
    %c4_i32_43 = arith.constant 4 : i32
    %127 = tpu.dynamic_rotate %122 by %c4_i32_43 dim 1 : vector<8x128xf32>, i32 -> vector<8x128xf32>
    %128 = arith.select %20, %127, %126 : vector<8x128xi1>, vector<8x128xf32>
    %c124_i32_44 = arith.constant 124 : i32
    %129 = tpu.dynamic_rotate %125 by %c124_i32_44 dim 1 : vector<8x128xf32>, i32 -> vector<8x128xf32>
    %c4_i32_45 = arith.constant 4 : i32
    %130 = tpu.dynamic_rotate %125 by %c4_i32_45 dim 1 : vector<8x128xf32>, i32 -> vector<8x128xf32>
    %131 = arith.select %20, %130, %129 : vector<8x128xi1>, vector<8x128xf32>
    %132 = arith.mulf %32, %122 : vector<8x128xf32>
    %133 = arith.mulf %36, %131 : vector<8x128xf32>
    %134 = arith.addf %132, %133 : vector<8x128xf32>
    %135 = arith.mulf %32, %125 : vector<8x128xf32>
    %136 = arith.mulf %36, %128 : vector<8x128xf32>
    %137 = arith.subf %135, %136 : vector<8x128xf32>
    %c120_i32_46 = arith.constant 120 : i32
    %138 = tpu.dynamic_rotate %134 by %c120_i32_46 dim 1 : vector<8x128xf32>, i32 -> vector<8x128xf32>
    %c8_i32_47 = arith.constant 8 : i32
    %139 = tpu.dynamic_rotate %134 by %c8_i32_47 dim 1 : vector<8x128xf32>, i32 -> vector<8x128xf32>
    %140 = arith.select %26, %139, %138 : vector<8x128xi1>, vector<8x128xf32>
    %c120_i32_48 = arith.constant 120 : i32
    %141 = tpu.dynamic_rotate %137 by %c120_i32_48 dim 1 : vector<8x128xf32>, i32 -> vector<8x128xf32>
    %c8_i32_49 = arith.constant 8 : i32
    %142 = tpu.dynamic_rotate %137 by %c8_i32_49 dim 1 : vector<8x128xf32>, i32 -> vector<8x128xf32>
    %143 = arith.select %26, %142, %141 : vector<8x128xi1>, vector<8x128xf32>
    %144 = arith.mulf %33, %134 : vector<8x128xf32>
    %145 = arith.mulf %37, %143 : vector<8x128xf32>
    %146 = arith.addf %144, %145 : vector<8x128xf32>
    %147 = arith.mulf %33, %137 : vector<8x128xf32>
    %148 = arith.mulf %37, %140 : vector<8x128xf32>
    %149 = arith.subf %147, %148 : vector<8x128xf32>
    %c2 = arith.constant 2 : index
    %c0_50 = arith.constant 0 : index
    %c0_51 = arith.constant 0 : index
    %150 = vector.load %arg4[%c2, %c0_50, %c0_51] : memref<4x128x128xf32, #tpu.memory_space<vmem>>, vector<1x128x128xf32>
    %151 = vector.shape_cast %150 : vector<1x128x128xf32> to vector<128x128xf32>
    %c3 = arith.constant 3 : index
    %c0_52 = arith.constant 0 : index
    %c0_53 = arith.constant 0 : index
    %152 = vector.load %arg4[%c3, %c0_52, %c0_53] : memref<4x128x128xf32, #tpu.memory_space<vmem>>, vector<1x128x128xf32>
    %153 = vector.shape_cast %152 : vector<1x128x128xf32> to vector<128x128xf32>
    %cst_54 = arith.constant dense<0.000000e+00> : vector<8x128xf32>
    %154 = tpu.matmul %146, %151, %cst_54 {dimension_numbers = #tpu.dot_dimension_numbers<[1], [0], [0], [1], [0, 0, 1, 1], [], []>, precision = #tpu.contract_precision<fp32>} : vector<8x128xf32>, vector<128x128xf32>, vector<8x128xf32> -> vector<8x128xf32>
    %cst_55 = arith.constant dense<0.000000e+00> : vector<8x128xf32>
    %155 = tpu.matmul %149, %153, %cst_55 {dimension_numbers = #tpu.dot_dimension_numbers<[1], [0], [0], [1], [0, 0, 1, 1], [], []>, precision = #tpu.contract_precision<fp32>} : vector<8x128xf32>, vector<128x128xf32>, vector<8x128xf32> -> vector<8x128xf32>
    %156 = arith.subf %154, %155 : vector<8x128xf32>
    %cst_56 = arith.constant dense<0.000000e+00> : vector<8x128xf32>
    %157 = tpu.matmul %146, %153, %cst_56 {dimension_numbers = #tpu.dot_dimension_numbers<[1], [0], [0], [1], [0, 0, 1, 1], [], []>, precision = #tpu.contract_precision<fp32>} : vector<8x128xf32>, vector<128x128xf32>, vector<8x128xf32> -> vector<8x128xf32>
    %cst_57 = arith.constant dense<0.000000e+00> : vector<8x128xf32>
    %158 = tpu.matmul %149, %151, %cst_57 {dimension_numbers = #tpu.dot_dimension_numbers<[1], [0], [0], [1], [0, 0, 1, 1], [], []>, precision = #tpu.contract_precision<fp32>} : vector<8x128xf32>, vector<128x128xf32>, vector<8x128xf32> -> vector<8x128xf32>
    %159 = arith.addf %157, %158 : vector<8x128xf32>
    %160 = arith.mulf %156, %156 : vector<8x128xf32>
    %161 = arith.mulf %159, %159 : vector<8x128xf32>
    %162 = arith.addf %160, %161 : vector<8x128xf32>
    %c0_58 = arith.constant 0 : index
    %c0_59 = arith.constant 0 : index
    %163 = vector.load %arg5[%c0_58, %c0_59] : memref<128x32xf32, #tpu.memory_space<vmem>>, vector<128x32xf32>
    %cst_60 = arith.constant dense<0.000000e+00> : vector<8x32xf32>
    %164 = tpu.matmul %162, %163, %cst_60 {dimension_numbers = #tpu.dot_dimension_numbers<[1], [0], [0], [1], [0, 0, 1, 1], [], []>, precision = #tpu.contract_precision<fp32>} : vector<8x128xf32>, vector<128x32xf32>, vector<8x32xf32> -> vector<8x32xf32>
    %cst_61 = arith.constant 1.000000e+00 : f32
    %165 = vector.broadcast %cst_61 : f32 to vector<8x32xf32>
    %166 = arith.addf %165, %164 : vector<8x32xf32>
    %cst_62 = arith.constant 5.000000e-01 : f32
    %167 = vector.broadcast %cst_62 : f32 to vector<8x32xf32>
    %168 = arith.mulf %167, %166 : vector<8x32xf32>
    %c0_63 = arith.constant 0 : index
    %c0_64 = arith.constant 0 : index
    %169 = vector.load %arg6[%c0_63, %c0_64] : memref<8x32xf32, #tpu.memory_space<vmem>>, vector<8x32xf32>
    tpu.vector_store %arg6[%c0_63, %c0_64], %168 {strides = array<i32>} : memref<8x32xf32, #tpu.memory_space<vmem>>, vector<8x32xf32>,
    return
  }
  func.func @transform_0(%arg0: i32) -> (i32, i32) {
    %c0_i32 = arith.constant 0 : i32
    %c0_i32_0 = arith.constant 0 : i32
    return %arg0, %c0_i32 : i32, i32
  }
  func.func @transform_1(%arg0: i32) -> (i32, i32) {
    %c0_i32 = arith.constant 0 : i32
    %c0_i32_0 = arith.constant 0 : i32
    %c0_i32_1 = arith.constant 0 : i32
    return %c0_i32, %c0_i32_0 : i32, i32
  }
  func.func @transform_2(%arg0: i32) -> (i32, i32) {
    %c0_i32 = arith.constant 0 : i32
    %c0_i32_0 = arith.constant 0 : i32
    %c0_i32_1 = arith.constant 0 : i32
    return %c0_i32, %c0_i32_0 : i32, i32
  }
  func.func @transform_3(%arg0: i32) -> (i32, i32, i32) {
    %c0_i32 = arith.constant 0 : i32
    %c0_i32_0 = arith.constant 0 : i32
    %c0_i32_1 = arith.constant 0 : i32
    %c0_i32_2 = arith.constant 0 : i32
    return %c0_i32, %c0_i32_0, %c0_i32_1 : i32, i32, i32
  }
  func.func @transform_4(%arg0: i32) -> (i32, i32) {
    %c0_i32 = arith.constant 0 : i32
    %c0_i32_0 = arith.constant 0 : i32
    %c0_i32_1 = arith.constant 0 : i32
    return %c0_i32, %c0_i32_0 : i32, i32
  }
  func.func @transform_5(%arg0: i32) -> (i32, i32) {
    %c0_i32 = arith.constant 0 : i32
    %c0_i32_0 = arith.constant 0 : i32
    return %arg0, %c0_i32 : i32, i32
  }
}

</mosaic_0001>

<bundles_post_ra>
// kernel: tile.13
= control target key start
LH: loop header
LB: loop body
LE: loop exit
PB: predicated region body
PF: predicated region fallthrough
CT: control target
= control target key end

     0   :  { %s22_s0 = inlined_call_operand.vmem [shape: f32[16], index: 0, kind: input, shape index: {}]   ;;  %s23_s1 = inlined_call_operand.vmem [shape: f32[8,16], index: 1, kind: output, shape index: {}]  }
   0x1   :  { %v4_v0 = vld [vmem:[%s22_s0] ss:$0 sm:$0xff] }
   0x2   :  { %5 = vst [vmem:[%s23_s1] sm:$0xff] %v4_v0 }

// kernel: tile.18
= control target key start
LH: loop header
LB: loop body
LE: loop exit
PB: predicated region body
PF: predicated region fallthrough
CT: control target
= control target key end

     0   :  { %s67_s10 = smov 112   ;;  %s68_s11 = smov 80   ;;  %vm3_vm0 = vcmask 130048   ;;  %vm9_vm1 = vcmask 1048448   ;;  %vm15_vm2 = vcmask 917248   ;;  %vm21_vm3 = vcmask 786048   ;;  %s111_s0 = inlined_call_operand.vmem [shape: f32[8,16], index: 0, kind: input, shape index: {}]   ;;  %s112_s1 = inlined_call_operand.vmem [shape: f32[1,128], index: 1, kind: output, shape index: {}]  }
   0x1   :  { %v53_v0 = vld [vmem:[%s111_s0 + $0x7] sm:$0x1]   ;;  %v55_v1 = vld [vmem:[%s111_s0 + $0x5] sm:$0x1]   ;;  %v54_v2 = vld [vmem:[%s111_s0 + $0x6] sm:$0x1]  }
   0x2   :  { %7 = vrot.lane.b32.xlu0 %v53_v0, %s67_s10  ;;  %19 = vrot.lane.b32.xlu1 %v55_v1, %s68_s11  ;;  %v56_v3 = vld [vmem:[%s111_s0 + $0x4] sm:$0x1]   ;;  %v2_v4 = vld [vmem:[%s111_s0] sm:$0x1]   ;;  %s69_s18 = smov 96   ;;  %s70_s19 = smov 64  }
   0x3   :  { %4 = vst.msk [vmem:[#allocation0] sm:$0x1] %vm3_vm0, %v2_v4   ;;  %v57_v5 = vld [vmem:[%s111_s0 + $0x3] sm:$0x1]   ;;  %v58_v6 = vld [vmem:[%s111_s0 + $0x2] sm:$0x1]  }
   0x4   :  { %s71_s24 = smov 48   ;;  %s72_s25 = smov 32   ;;  %v59_v7 = vld [vmem:[%s111_s0 + $0x1] sm:$0x1]   ;;  %vm27_vm4 = vcmask 654848   ;;  %vm33_vm5 = vcmask 523648  }
   0x5   :  { %s73_s0 = smov 16   ;;  %vm39_vm6 = vcmask 392448   ;;  %vm45_vm7 = vcmask 261248  }
   0x6   :  { %13 = vrot.lane.b32.xlu0 %v54_v2, %s69_s18  ;;  %25 = vrot.lane.b32.xlu1 %v56_v3, %s70_s19 }
   0xa   :  { %31 = vrot.lane.b32.xlu0 %v57_v5, %s71_s24  ;;  %37 = vrot.lane.b32.xlu1 %v58_v6, %s72_s25 }
   0xe   :  { %43 = vrot.lane.b32.xlu0 %v59_v7, %s73_s0 }
  0x74   :  { %v8_v8 = vpop.permute.xlu0 %7   ;;  %v20_v9 = vpop.permute.xlu1 %19  }
  0x75   :  { %10 = vst.msk [vmem:[#allocation0] sm:$0x1] %vm9_vm1, %v8_v8  }
  0x78   :  { %v14_v10 = vpop.permute.xlu0 %13   ;;  %v26_v11 = vpop.permute.xlu1 %25  }
  0x79   :  { %16 = vst.msk [vmem:[#allocation0] sm:$0x1] %vm15_vm2, %v14_v10  }
  0x7a   :  { %22 = vst.msk [vmem:[#allocation0] sm:$0x1] %vm21_vm3, %v20_v9  }
  0x7b   :  { %28 = vst.msk [vmem:[#allocation0] sm:$0x1] %vm27_vm4, %v26_v11  }
  0x7c   :  { %v32_v12 = vpop.permute.xlu0 %31   ;;  %v38_v13 = vpop.permute.xlu1 %37  }
  0x7d   :  { %34 = vst.msk [vmem:[#allocation0] sm:$0x1] %vm33_vm5, %v32_v12  }
  0x7e   :  { %40 = vst.msk [vmem:[#allocation0] sm:$0x1] %vm39_vm6, %v38_v13  }
  0x80   :  { %v44_v14 = vpop.permute.xlu0 %43  }
  0x81   :  { %46 = vst.msk [vmem:[#allocation0] sm:$0x1] %vm45_vm7, %v44_v14  }
  0x88   :  { %v50_v15 = vld [vmem:[#allocation0] sm:$0x1] }
  0x89   :  { %52 = vst [vmem:[%s112_s1] sm:$0x1] %v50_v15 }

// kernel: reuploading_pqc_forward.1
= control target key start
LH: loop header
LB: loop body
LE: loop exit
PB: predicated region body
PF: predicated region fallthrough
CT: control target
= control target key end

     0   :  { %v19601_v3 = vmov 0.0   ;;  %s14656_s7 = smov 127   ;;  %s14657_s21 = smov 1   ;;  %vm14663_vm3 = vmmov 0   ;;  %vm9579_vm5 = vcmask 261120   ;;  %s19595_s1 = inlined_call_operand.vmem [shape: f32[128,1024], index: 1, kind: input, shape index: {}]   ;;  %s19596_s0 = inlined_call_operand.vmem [shape: f32[8,128], index: 0, kind: input, shape index: {}]   ;;  %s19597_s2 = inlined_call_operand.vmem [shape: f32[2,128], index: 2, kind: input, shape index: {}]   ;;  %s19598_s3 = inlined_call_operand.vmem [shape: f32[4,128,128], index: 3, kind: input, shape index: {}]   ;;  %s19599_s4 = inlined_call_operand.vmem [shape: f32[128,32], index: 4, kind: input, shape index: {}]   ;;  %s19600_s5 = inlined_call_operand.vmem [shape: f32[8,32], index: 5, kind: output, shape index: {}]  }
   0x1   :  { %v36_v0 = vld [vmem:[%s19595_s1 + $0x8] sm:$0xff]  ;;  %v35_v2 = vld [vmem:[%s19595_s1] sm:$0xff]  ;;  %259 = vmatprep.mubr.f32.mxu1 %v19601_v3  ;;  %736 = vmatprep.mubr.f32.mxu0 %v19601_v3  ;;  %s14658_s12 = smov 2   ;;  %s14660_s13 = smov 4  }
   0x2   :  { %v44_v1 = vld [vmem:[%s19595_s1 + $0x48] sm:$0xff]  ;;  %v163_v4 = vand.u32 4294901760, %v36_v0  ;;  %v43_v6 = vld [vmem:[%s19595_s1 + $0x40] sm:$0xff]  ;;  %v165_v7 = vand.u32 4294901760, %v35_v2  ;;  %s14661_s14 = smov 124   ;;  %s14664_s10 = smov 8  }
   0x3   :  { %v167_v5 = vand.u32 4294901760, %v44_v1  ;;  %v52_v8 = vld [vmem:[%s19595_s1 + $0x88] sm:$0xff]  ;;  %v169_v10 = vand.u32 4294901760, %v43_v6  ;;  %v51_v13 = vld [vmem:[%s19595_s1 + $0x80] sm:$0xff]  ;;  %s14665_s11 = smov 120  }
   0x4   :  { %v60_v9 = vld [vmem:[%s19595_s1 + $0xc8] sm:$0xff]  ;;  %v171_v11 = vand.u32 4294901760, %v52_v8  ;;  %v59_v14 = vld [vmem:[%s19595_s1 + $0xc0] sm:$0xff]  ;;  %v14727_v17 = vsub.f32 %v36_v0, %v163_v4  ;;  %v14742_v23 = vsub.f32 %v35_v2, %v165_v7  ;;  %v173_v29 = vand.u32 4294901760, %v51_v13 }
   0x5   :  { %v175_v12 = vand.u32 4294901760, %v60_v9  ;;  %v68_v15 = vld [vmem:[%s19595_s1 + $0x108] sm:$0xff]  ;;  %v14725_v16 = vpack.c.bf16 %v167_v5, %v163_v4  ;;  %v14729_v18 = vsub.f32 %v44_v1, %v167_v5  ;;  %v67_v20 = vld [vmem:[%s19595_s1 + $0x100] sm:$0xff]  ;;  %v14740_v22 = vpack.c.bf16 %v169_v10, %v165_v7 }
   0x6   :  { %v76_v19 = vld [vmem:[%s19595_s1 + $0x148] sm:$0xff]  ;;  %v75_v21 = vld [vmem:[%s19595_s1 + $0x140] sm:$0xff]  ;;  %v14744_v24 = vsub.f32 %v43_v6, %v169_v10  ;;  %v14756_v28 = vsub.f32 %v52_v8, %v171_v11  ;;  %v177_v30 = vand.u32 4294901760, %v59_v14  ;;  %v179_v31 = vand.u32 4294901760, %v68_v15 }
   0x7   :  { %20047 = vst [vmem:[#allocation2_spill] sm:$0xff] %v14725_v16  ;;  %20048 = vst [vmem:[#allocation3_spill] sm:$0xff] %v14740_v22  ;;  %v14746_v25 = vpack.c.bf16 %v175_v12, %v171_v11  ;;  %v84_v26 = vld [vmem:[%s19595_s1 + $0x188] sm:$0xff]  ;;  %12444 = vmatprep.subr.bf16.mxu1 %v14725_v16  ;;  %12540 = vmatprep.subr.bf16.mxu0 %v14725_v16  ;;  %v183_v32 = vand.u32 4294901760, %v76_v19  ;;  %v181_v33 = vand.u32 4294901760, %v67_v20  ;;  %v185_v34 = vand.u32 4294901760, %v75_v21 }
   0x8   :  { %v92_v27 = vld [vmem:[%s19595_s1 + $0x1c8] sm:$0xff]  ;;  %12446 = vmatpush1.bf16.msra.mxu1 %v14740_v22  ;;  %12542 = vmatpush1.bf16.msra.mxu0 %v14740_v22  ;;  %v187_v35 = vand.u32 4294901760, %v84_v26  ;;  %v14761_v36 = vsub.f32 %v60_v9, %v175_v12  ;;  %v14764_v37 = vpack.c.bf16 %v177_v30, %v173_v29  ;;  %v14766_v38 = vsub.f32 %v51_v13, %v173_v29  ;;  %v83_v40 = vld [vmem:[%s19595_s1 + $0x180] sm:$0xff] }
   0x9   :  { %20049 = vst [vmem:[#allocation4_spill] sm:$0xff] %v14746_v25  ;;  %12448 = vmatprep.subr.bf16.mxu1 %v14746_v25  ;;  %12544 = vmatprep.subr.bf16.mxu0 %v14746_v25  ;;  %v191_v39 = vand.u32 4294901760, %v92_v27  ;;  %v91_v41 = vld [vmem:[%s19595_s1 + $0x1c0] sm:$0xff]  ;;  %v100_v42 = vld [vmem:[%s19595_s1 + $0x208] sm:$0xff]  ;;  %v14777_v43 = vsub.f32 %v59_v14, %v177_v30  ;;  %v14779_v44 = vpack.c.bf16 %v183_v32, %v179_v31  ;;  %v189_v56 = vand.u32 4294901760, %v83_v40 }
   0xa   :  { %20050 = vst [vmem:[#allocation5_spill] sm:$0xff] %v14764_v37  ;;  %v14781_v45 = vsub.f32 %v68_v15, %v179_v31  ;;  %v14783_v46 = vsub.f32 %v76_v19, %v183_v32  ;;  %v108_v47 = vld [vmem:[%s19595_s1 + $0x248] sm:$0xff]  ;;  %v99_v48 = vld [vmem:[%s19595_s1 + $0x200] sm:$0xff]  ;;  %v14794_v50 = vpack.c.bf16 %v185_v34, %v181_v33  ;;  %v14796_v51 = vsub.f32 %v67_v20, %v181_v33 }
   0xb   :  { %20051 = vst [vmem:[#allocation6_spill] sm:$0xff] %v14779_v44  ;;  %v107_v49 = vld [vmem:[%s19595_s1 + $0x240] sm:$0xff]  ;;  %v14798_v52 = vsub.f32 %v75_v21, %v185_v34  ;;  %v14800_v53 = vpack.c.bf16 %v191_v39, %v187_v35  ;;  %v116_v54 = vld [vmem:[%s19595_s1 + $0x288] sm:$0xff]  ;;  %v14807_v55 = vsub.f32 %v84_v26, %v187_v35  ;;  %v193_v57 = vand.u32 4294901760, %v91_v41 }
   0xc   :  { %20052 = vst [vmem:[#allocation7_spill] sm:$0xff] %v14794_v50  ;;  %12450 = vmatpush1.bf16.msra.mxu1 %v14764_v37  ;;  %12546 = vmatpush1.bf16.msra.mxu0 %v14764_v37  ;;  %v195_v58 = vand.u32 4294901760, %v100_v42  ;;  %v14811_v59 = vsub.f32 %v92_v27, %v191_v39  ;;  %v199_v60 = vand.u32 4294901760, %v108_v47  ;;  %v197_v61 = vand.u32 4294901760, %v99_v48  ;;  %v124_v63 = vld [vmem:[%s19595_s1 + $0x2c8] sm:$0xff]  ;;  %v115_v0 = vld [vmem:[%s19595_s1 + $0x280] sm:$0xff] }
   0xd   :  { %20053 = vst [vmem:[#allocation8_spill] sm:$0xff] %v14800_v53  ;;  %12452 = vmatprep.subr.bf16.mxu1 %v14779_v44  ;;  %12548 = vmatprep.subr.bf16.mxu0 %v14779_v44  ;;  %v201_v62 = vand.u32 4294901760, %v107_v49  ;;  %v123_v1 = vld [vmem:[%s19595_s1 + $0x2c0] sm:$0xff]  ;;  %v14822_v2 = vpack.c.bf16 %v193_v57, %v189_v56  ;;  %v14824_v4 = vsub.f32 %v83_v40, %v189_v56  ;;  %v203_v6 = vand.u32 4294901760, %v116_v54  ;;  %v132_v7 = vld [vmem:[%s19595_s1 + $0x308] sm:$0xff] }
   0xe   :  { %v14826_v5 = vsub.f32 %v91_v41, %v193_v57  ;;  %v140_v8 = vld [vmem:[%s19595_s1 + $0x348] sm:$0xff]  ;;  %v131_v9 = vld [vmem:[%s19595_s1 + $0x300] sm:$0xff]  ;;  %v14837_v10 = vpack.c.bf16 %v199_v60, %v195_v58  ;;  %v14839_v11 = vsub.f32 %v100_v42, %v195_v58  ;;  %v14841_v12 = vsub.f32 %v108_v47, %v199_v60 }
   0xf   :  { %20054 = vst [vmem:[#allocation9_spill] sm:$0xff] %v14822_v2  ;;  %v14843_v13 = vpack.c.bf16 %v201_v62, %v197_v61  ;;  %v139_v14 = vld [vmem:[%s19595_s1 + $0x340] sm:$0xff]  ;;  %v14850_v15 = vsub.f32 %v99_v48, %v197_v61  ;;  %v14852_v19 = vsub.f32 %v107_v49, %v201_v62  ;;  %v207_v20 = vand.u32 4294901760, %v124_v63  ;;  %v148_v31 = vld [vmem:[%s19595_s1 + $0x388] sm:$0xff] }
  0x10   :  { %20055 = vst [vmem:[#allocation10_spill] sm:$0xff] %v14837_v10  ;;  %12454 = vmatpush1.bf16.msra.mxu1 %v14794_v50  ;;  %12550 = vmatpush1.bf16.msra.mxu0 %v14794_v50  ;;  %v205_v21 = vand.u32 4294901760, %v115_v0  ;;  %v209_v26 = vand.u32 4294901760, %v123_v1  ;;  %v211_v27 = vand.u32 4294901760, %v132_v7  ;;  %v215_v29 = vand.u32 4294901760, %v140_v8  ;;  %v156_v39 = vld [vmem:[%s19595_s1 + $0x3c8] sm:$0xff] }
  0x11   :  { %20056 = vst [vmem:[#allocation11_spill] sm:$0xff] %v14843_v13  ;;  %12456 = vmatprep.subr.bf16.mxu1 %v14800_v53  ;;  %12552 = vmatprep.subr.bf16.mxu0 %v14800_v53  ;;  %v213_v30 = vand.u32 4294901760, %v131_v9  ;;  %v14859_v32 = vpack.c.bf16 %v207_v20, %v203_v6  ;;  %v14861_v33 = vsub.f32 %v116_v54, %v203_v6  ;;  %v217_v35 = vand.u32 4294901760, %v139_v14  ;;  %v147_v40 = vld [vmem:[%s19595_s1 + $0x380] sm:$0xff] }
  0x12   :  { %v14863_v34 = vsub.f32 %v124_v63, %v207_v20  ;;  %v155_v41 = vld [vmem:[%s19595_s1 + $0x3c0] sm:$0xff]  ;;  %v14874_v42 = vpack.c.bf16 %v209_v26, %v205_v21  ;;  %v14876_v47 = vsub.f32 %v115_v0, %v205_v21  ;;  %v14878_v48 = vsub.f32 %v123_v1, %v209_v26 }
  0x13   :  { %20057 = vst [vmem:[#allocation12_spill] sm:$0xff] %v14859_v32  ;;  %v14880_v49 = vpack.c.bf16 %v215_v29, %v211_v27  ;;  %v34_v54 = vld [vmem:[%s19596_s0] sm:$0xff]  ;;  %v14887_v56 = vsub.f32 %v132_v7, %v211_v27  ;;  %v14889_v57 = vsub.f32 %v140_v8, %v215_v29  ;;  %v14891_v58 = vpack.c.bf16 %v217_v35, %v213_v30 }
  0x14   :  { %20058 = vst [vmem:[#allocation13_spill] sm:$0xff] %v14874_v42  ;;  %12458 = vmatpush1.bf16.msra.mxu1 %v14822_v2  ;;  %12554 = vmatpush1.bf16.msra.mxu0 %v14822_v2  ;;  %v219_v60 = vand.u32 4294901760, %v148_v31  ;;  %v14895_v61 = vsub.f32 %v131_v9, %v213_v30  ;;  %v223_v62 = vand.u32 4294901760, %v156_v39  ;;  %v221_v63 = vand.u32 4294901760, %v147_v40 }
  0x15   :  { %20059 = vst [vmem:[#allocation14_spill] sm:$0xff] %v14880_v49  ;;  %20060 = vst [vmem:[#allocation15_spill] sm:$0xff] %v14891_v58  ;;  %12460 = vmatprep.subr.bf16.mxu1 %v14837_v10  ;;  %12556 = vmatprep.subr.bf16.mxu0 %v14837_v10  ;;  %v225_v0 = vand.u32 4294901760, %v155_v41  ;;  %v14897_v1 = vsub.f32 %v139_v14, %v217_v35  ;;  %v273_v6 = vand.u32 4294901760, %v14727_v17  ;;  %v285_v7 = vand.u32 4294901760, %v14729_v18 }
  0x16   :  { %v14901_v8 = vand.u32 4294901760, %v34_v54  ;;  %v14903_v20 = vpack.c.bf16 %v223_v62, %v219_v60  ;;  %v14905_v21 = vsub.f32 %v148_v31, %v219_v60  ;;  %v14907_v26 = vsub.f32 %v156_v39, %v223_v62 }
  0x17   :  { %v14909_v27 = vpack.c.bf16 %v225_v0, %v221_v63  ;;  %v14913_v9 = vsub.f32 %v147_v40, %v221_v63  ;;  %v274_v14 = vsub.f32 %v14727_v17, %v273_v6  ;;  %v286_v29 = vsub.f32 %v14729_v18, %v285_v7 }
  0x18   :  { %20061 = vst [vmem:[#allocation16_spill] sm:$0xff] %v14901_v8  ;;  %20062 = vst [vmem:[#allocation17_spill] sm:$0xff] %v14903_v20  ;;  %12462 = vmatpush1.bf16.msra.mxu1 %v14843_v13  ;;  %12558 = vmatpush1.bf16.msra.mxu0 %v14843_v13  ;;  %v279_v30 = vand.u32 4294901760, %v14742_v23  ;;  %v14920_v31 = vsub.f32 %v155_v41, %v225_v0  ;;  %v14923_v35 = vsub.f32 %v34_v54, %v14901_v8 }
  0x19   :  { %20063 = vst [vmem:[#allocation18_spill] sm:$0xff] %v14909_v27  ;;  %12464 = vmatprep.subr.bf16.mxu1 %v14859_v32  ;;  %12560 = vmatprep.subr.bf16.mxu0 %v14859_v32  ;;  %v291_v39 = vand.u32 4294901760, %v14744_v24  ;;  %v297_v40 = vand.u32 4294901760, %v14756_v28  ;;  %v275_v60 = vand.u32 4294901760, %v274_v14  ;;  %v287_v62 = vand.u32 4294901760, %v286_v29 }
  0x1a   :  { %20064 = vst [vmem:[#allocation19_spill] sm:$0xff] %v14923_v35  ;;  %v280_v63 = vsub.f32 %v14742_v23, %v279_v30  ;;  %v309_v3 = vand.u32 4294901760, %v14761_v36  ;;  %v12571_v13 = vpack.c.bf16 %v285_v7, %v273_v6  ;;  %v14930_v10 = vand.u32 4294901760, %v14923_v35 }
  0x1b   :  { %v292_v41 = vsub.f32 %v14744_v24, %v291_v39  ;;  %v298_v0 = vsub.f32 %v14756_v28, %v297_v40  ;;  %v12475_v54 = vpack.c.bf16 %v287_v62, %v275_v60  ;;  %v12573_v14 = vpack.c.bf16 %v291_v39, %v279_v30 }
  0x1c   :  { %20065 = vst [vmem:[#allocation20_spill] sm:$0xff] %v14930_v10  ;;  %12466 = vmatpush1.bf16.msra.mxu1 %v14874_v42  ;;  %12562 = vmatpush1.bf16.msra.mxu0 %v14874_v42  ;;  %v281_v32 = vand.u32 4294901760, %v280_v63  ;;  %v310_v29 = vsub.f32 %v14761_v36, %v309_v3  ;;  %v263_v6 = vsub.f32 %v14923_v35, %v14930_v10  ;;  %v303_v53 = vand.u32 4294901760, %v14766_v38 }
  0x1d   :  { %12468 = vmatprep.subr.bf16.mxu1 %v14880_v49  ;;  %12564 = vmatprep.subr.bf16.mxu0 %v14880_v49  ;;  %v293_v7 = vand.u32 4294901760, %v292_v41  ;;  %v299_v2 = vand.u32 4294901760, %v298_v0  ;;  %v315_v44 = vand.u32 4294901760, %v14777_v43  ;;  %v321_v60 = vand.u32 4294901760, %v14781_v45 }
  0x1e   :  { %v311_v50 = vand.u32 4294901760, %v310_v29  ;;  %v333_v30 = vand.u32 4294901760, %v14783_v46  ;;  %v14945_v39 = vand.u32 4294901760, %v263_v6  ;;  %v12575_v62 = vpack.c.bf16 %v309_v3, %v297_v40 }
  0x1f   :  { %v304_v63 = vsub.f32 %v14766_v38, %v303_v53  ;;  %v327_v49 = vand.u32 4294901760, %v14796_v51  ;;  %v12477_v41 = vpack.c.bf16 %v293_v7, %v281_v32  ;;  %v316_v29 = vsub.f32 %v14777_v43, %v315_v44 }
  0x20   :  { %20066 = vst [vmem:[#allocation21_spill] sm:$0xff] %v14945_v39  ;;  %12470 = vmatpush1.bf16.msra.mxu1 %v14891_v58  ;;  %12566 = vmatpush1.bf16.msra.mxu0 %v14891_v58  ;;  %v12479_v0 = vpack.c.bf16 %v311_v50, %v299_v2  ;;  %v339_v35 = vand.u32 4294901760, %v14798_v52  ;;  %v12577_v3 = vpack.c.bf16 %v315_v44, %v303_v53  ;;  %v345_v7 = vand.u32 4294901760, %v14807_v55 }
  0x21   :  { %12472 = vmatprep.subr.bf16.mxu1 %v14903_v20  ;;  %12568 = vmatprep.subr.bf16.mxu0 %v14903_v20  ;;  %v305_v6 = vand.u32 4294901760, %v304_v63  ;;  %v322_v40 = vsub.f32 %v14781_v45, %v321_v60  ;;  %v334_v42 = vsub.f32 %v14783_v46, %v333_v30  ;;  %v317_v37 = vand.u32 4294901760, %v316_v29 }
  0x22   :  { %v12579_v25 = vpack.c.bf16 %v333_v30, %v321_v60  ;;  %v328_v58 = vsub.f32 %v14796_v51, %v327_v49  ;;  %v340_v50 = vsub.f32 %v14798_v52, %v339_v35  ;;  %v357_v22 = vand.u32 4294901760, %v14811_v59 }
  0x23   :  { %v323_v2 = vand.u32 4294901760, %v322_v40  ;;  %v335_v32 = vand.u32 4294901760, %v334_v42  ;;  %v12581_v63 = vpack.c.bf16 %v339_v35, %v327_v49  ;;  %v351_v29 = vand.u32 4294901760, %v14824_v4 }
  0x24   :  { %12474 = vmatpush1.bf16.msra.mxu1 %v14909_v27  ;;  %12570 = vmatpush1.bf16.msra.mxu0 %v14909_v27  ;;  %v329_v44 = vand.u32 4294901760, %v328_v58  ;;  %v341_v53 = vand.u32 4294901760, %v340_v50  ;;  %v12481_v60 = vpack.c.bf16 %v317_v37, %v305_v6  ;;  %v346_v30 = vsub.f32 %v14807_v55, %v345_v7 }
  0x25   :  { %12476 = vmatprep.subr.bf16.mxu1 %v12475_v54  ;;  %12572 = vmatprep.subr.bf16.mxu0 %v12571_v13  ;;  %v358_v42 = vsub.f32 %v14811_v59, %v357_v22  ;;  %v363_v40 = vand.u32 4294901760, %v14826_v5  ;;  %v12483_v20 = vpack.c.bf16 %v335_v32, %v323_v2  ;;  %v352_v16 = vsub.f32 %v14824_v4, %v351_v29 }
  0x26   :  { %v12485_v8 = vpack.c.bf16 %v341_v53, %v329_v44  ;;  %v369_v27 = vand.u32 4294901760, %v14839_v11  ;;  %v347_v49 = vand.u32 4294901760, %v346_v30  ;;  %v12583_v13 = vpack.c.bf16 %v357_v22, %v345_v7 }
  0x27   :  { %265 = vmatmul.mubr.f32.vlgmr.msra.gmra.mrb[0].mxu1 %v14945_v39  ;;  %740 = vmatmul.mubr.f32.vlgmr.msra.gmra.mrb[0].mxu0 %v14930_v10  ;;  %v359_v58 = vand.u32 4294901760, %v358_v42  ;;  %v364_v37 = vsub.f32 %v14826_v5, %v363_v40  ;;  %v353_v35 = vand.u32 4294901760, %v352_v16  ;;  %v381_v6 = vand.u32 4294901760, %v14841_v12 }
  0x28   :  { %12478 = vmatpush1.bf16.msra.mxu1 %v12477_v41  ;;  %12574 = vmatpush1.bf16.msra.mxu0 %v12573_v14  ;;  %v370_v54 = vsub.f32 %v14839_v11, %v369_v27  ;;  %v375_v50 = vand.u32 4294901760, %v14850_v15  ;;  %v12585_v32 = vpack.c.bf16 %v363_v40, %v351_v29  ;;  %v387_v44 = vand.u32 4294901760, %v14852_v19 }
  0x29   :  { %12480 = vmatprep.subr.bf16.mxu1 %v12479_v0  ;;  %12576 = vmatprep.subr.bf16.mxu0 %v12575_v62  ;;  %v365_v2 = vand.u32 4294901760, %v364_v37  ;;  %v393_v53 = vand.u32 4294901760, %v14861_v33  ;;  %v12487_v22 = vpack.c.bf16 %v359_v58, %v347_v49  ;;  %v382_v41 = vsub.f32 %v14841_v12, %v381_v6 }
  0x2a   :  { %v371_v7 = vand.u32 4294901760, %v370_v54  ;;  %v376_v16 = vsub.f32 %v14850_v15, %v375_v50  ;;  %v20067_v14 = vmov 0.0   ;;  %v12587_v42 = vpack.c.bf16 %v381_v6, %v369_v27 }
  0x2b   :  { %495 = vmatprep.mubr.f32.mxu1 %v20067_v14  ;;  %906 = vmatprep.mubr.f32.mxu0 %v20067_v14  ;;  %v12489_v30 = vpack.c.bf16 %v365_v2, %v353_v35  ;;  %v388_v62 = vsub.f32 %v14852_v19, %v387_v44  ;;  %v394_v0 = vsub.f32 %v14861_v33, %v393_v53  ;;  %v383_v29 = vand.u32 4294901760, %v382_v41 }
  0x2c   :  { %12482 = vmatpush1.bf16.msra.mxu1 %v12481_v60  ;;  %12578 = vmatpush1.bf16.msra.mxu0 %v12577_v3  ;;  %v377_v40 = vand.u32 4294901760, %v376_v16  ;;  %v405_v49 = vand.u32 4294901760, %v14863_v34  ;;  %v399_v58 = vand.u32 4294901760, %v14876_v47  ;;  %v12589_v54 = vpack.c.bf16 %v387_v44, %v375_v50 }
  0x2d   :  { %12484 = vmatprep.subr.bf16.mxu1 %v12483_v20  ;;  %12580 = vmatprep.subr.bf16.mxu0 %v12579_v25  ;;  %v389_v37 = vand.u32 4294901760, %v388_v62  ;;  %v411_v10 = vand.u32 4294901760, %v14878_v48  ;;  %v417_v27 = vand.u32 4294901760, %v14887_v56  ;;  %v12491_v35 = vpack.c.bf16 %v383_v29, %v371_v7 }
  0x2e   :  { %v395_v6 = vand.u32 4294901760, %v394_v0  ;;  %v406_v2 = vsub.f32 %v14863_v34, %v405_v49  ;;  %v400_v3 = vsub.f32 %v14876_v47, %v399_v58  ;;  %v12591_v41 = vpack.c.bf16 %v405_v49, %v393_v53 }
  0x2f   :  { %v12493_v60 = vpack.c.bf16 %v389_v37, %v377_v40  ;;  %v412_v16 = vsub.f32 %v14878_v48, %v411_v10  ;;  %v418_v39 = vsub.f32 %v14887_v56, %v417_v27  ;;  %v429_v50 = vand.u32 4294901760, %v14889_v57 }
  0x30   :  { %12486 = vmatpush1.bf16.msra.mxu1 %v12485_v8  ;;  %12582 = vmatpush1.bf16.msra.mxu0 %v12581_v63  ;;  %v407_v25 = vand.u32 4294901760, %v406_v2  ;;  %v401_v20 = vand.u32 4294901760, %v400_v3  ;;  %v423_v44 = vand.u32 4294901760, %v14895_v61  ;;  %v12593_v62 = vpack.c.bf16 %v411_v10, %v399_v58 }
  0x31   :  { %12488 = vmatprep.subr.bf16.mxu1 %v12487_v22  ;;  %12584 = vmatprep.subr.bf16.mxu0 %v12583_v13  ;;  %v413_v7 = vand.u32 4294901760, %v412_v16  ;;  %v435_v0 = vand.u32 4294901760, %v14897_v1  ;;  %v441_v53 = vand.u32 4294901760, %v14905_v21  ;;  %v419_v40 = vand.u32 4294901760, %v418_v39 }
  0x32   :  { %v12495_v29 = vpack.c.bf16 %v407_v25, %v395_v6  ;;  %v430_v49 = vsub.f32 %v14889_v57, %v429_v50  ;;  %v424_v8 = vsub.f32 %v14895_v61, %v423_v44  ;;  %v12595_v37 = vpack.c.bf16 %v429_v50, %v417_v27 }
  0x33   :  { %v12497_v63 = vpack.c.bf16 %v413_v7, %v401_v20  ;;  %v436_v2 = vsub.f32 %v14897_v1, %v435_v0  ;;  %v442_v3 = vsub.f32 %v14905_v21, %v441_v53  ;;  %v453_v22 = vand.u32 4294901760, %v14907_v26 }
  0x34   :  { %12490 = vmatpush1.bf16.msra.mxu1 %v12489_v30  ;;  %12586 = vmatpush1.bf16.msra.mxu0 %v12585_v32  ;;  %v431_v13 = vand.u32 4294901760, %v430_v49  ;;  %v425_v10 = vand.u32 4294901760, %v424_v8  ;;  %v447_v58 = vand.u32 4294901760, %v14913_v9  ;;  %v15001_v6 = vpack.c.bf16 %v435_v0, %v423_v44 }
  0x35   :  { %12492 = vmatprep.subr.bf16.mxu1 %v12491_v35  ;;  %12588 = vmatprep.subr.bf16.mxu0 %v12587_v42  ;;  %v437_v39 = vand.u32 4294901760, %v436_v2  ;;  %v443_v16 = vand.u32 4294901760, %v442_v3  ;;  %v459_v27 = vand.u32 4294901760, %v14920_v31  ;;  %v454_v20 = vsub.f32 %v14907_v26, %v453_v22  ;;  %v46_v3 = vld [vmem:[%s19595_s1 + $0x58] sm:$0xff] }
  0x36   :  { %v12499_v25 = vpack.c.bf16 %v431_v13, %v419_v40  ;;  %v448_v30 = vsub.f32 %v14913_v9, %v447_v58  ;;  %v15008_v7 = vpack.c.bf16 %v453_v22, %v441_v53  ;;  %v40_v22 = vld [vmem:[%s19595_s1 + $0x28] sm:$0xff] }
  0x37   :  { %v12501_v50 = vpack.c.bf16 %v437_v39, %v425_v10  ;;  %v460_v35 = vsub.f32 %v14920_v31, %v459_v27  ;;  %v15011_v42 = vpack.c.bf16 %v459_v27, %v447_v58  ;;  %v455_v44 = vand.u32 4294901760, %v454_v20  ;;  %v48_v58 = vld [vmem:[%s19595_s1 + $0x68] sm:$0xff]  ;;  %v37_v39 = vld [vmem:[%s19595_s1 + $0x10] sm:$0xff]  ;;  %v62_v20 = vld [vmem:[%s19595_s1 + $0xd8] sm:$0xff] }
  0x38   :  { %12494 = vmatpush1.bf16.msra.mxu1 %v12493_v60  ;;  %12590 = vmatpush1.bf16.msra.mxu0 %v12589_v54  ;;  %v449_v0 = vand.u32 4294901760, %v448_v30  ;;  %v38_v60 = vld [vmem:[%s19595_s1 + $0x18] sm:$0xff]  ;;  %v1022_v10 = vand.u32 4294901760, %v46_v3  ;;  %v1873_v13 = vand.u32 4294901760, %v40_v22  ;;  %v1020_v54 = vand.u32 4294901760, %v37_v39  ;;  %v56_v40 = vld [vmem:[%s19595_s1 + $0xa8] sm:$0xff] }
  0x39   :  { %12496 = vmatprep.subr.bf16.mxu1 %v12495_v29  ;;  %12592 = vmatprep.subr.bf16.mxu0 %v12591_v41  ;;  %v461_v8 = vand.u32 4294901760, %v460_v35  ;;  %v12503_v29 = vpack.c.bf16 %v455_v44, %v443_v16  ;;  %v45_v35 = vld [vmem:[%s19595_s1 + $0x50] sm:$0xff]  ;;  %v39_v44 = vld [vmem:[%s19595_s1 + $0x20] sm:$0xff]  ;;  %v1018_v27 = vand.u32 4294901760, %v38_v60  ;;  %v1877_v41 = vand.u32 4294901760, %v48_v58 }
  0x3a   :  { %v1875_v2 = vand.u32 4294901760, %v39_v44  ;;  %v15077_v53 = vsub.f32 %v46_v3, %v1022_v10  ;;  %v15088_v32 = vsub.f32 %v40_v22, %v1873_v13  ;;  %v55_v22 = vld [vmem:[%s19595_s1 + $0xa0] sm:$0xff] }
  0x3b   :  { %v12505_v16 = vpack.c.bf16 %v461_v8, %v449_v0  ;;  %v47_v0 = vld [vmem:[%s19595_s1 + $0x60] sm:$0xff]  ;;  %v1024_v8 = vand.u32 4294901760, %v45_v35  ;;  %v15079_v49 = vpack.c.bf16 %v1877_v41, %v1873_v13  ;;  %v1030_v13 = vand.u32 4294901760, %v62_v20 }
  0x3c   :  { %12498 = vmatpush1.bf16.msra.mxu1 %v12497_v63  ;;  %12594 = vmatpush1.bf16.msra.mxu0 %v12593_v62  ;;  %v54_v62 = vld [vmem:[%s19595_s1 + $0x98] sm:$0xff]  ;;  %v1879_v30 = vand.u32 4294901760, %v47_v0  ;;  %20070 = vst [vmem:[#allocation24_spill] sm:$0xff] %v15077_v53  ;;  %v64_v63 = vld [vmem:[%s19595_s1 + $0xe8] sm:$0xff]  ;;  %20072 = vst [vmem:[#allocation26_spill] sm:$0xff] %v15088_v32 }
  0x3d   :  { %12500 = vmatprep.subr.bf16.mxu1 %v12499_v25  ;;  %12596 = vmatprep.subr.bf16.mxu0 %v12595_v37  ;;  %v15073_v25 = vpack.c.bf16 %v1022_v10, %v1018_v27  ;;  %v15075_v37 = vsub.f32 %v38_v60, %v1018_v27  ;;  %20071 = vst [vmem:[#allocation25_spill] sm:$0xff] %v15079_v49  ;;  %v1026_v3 = vand.u32 4294901760, %v54_v62  ;;  %v53_v10 = vld [vmem:[%s19595_s1 + $0x90] sm:$0xff]  ;;  %v1885_v32 = vand.u32 4294901760, %v64_v63 }
  0x3e   :  { %v15092_v60 = vpack.c.bf16 %v1024_v8, %v1020_v54  ;;  %v61_v27 = vld [vmem:[%s19595_s1 + $0xd0] sm:$0xff] }
  0x3f   :  { %20068 = vst [vmem:[#allocation22_spill] sm:$0xff] %v15073_v25  ;;  %20069 = vst [vmem:[#allocation23_spill] sm:$0xff] %v15075_v37  ;;  %v15090_v25 = vsub.f32 %v48_v58, %v1877_v41  ;;  %v15105_v41 = vpack.c.bf16 %v1879_v30, %v1875_v2  ;;  %v15110_v58 = vsub.f32 %v39_v44, %v1875_v2  ;;  %v78_v2 = vld [vmem:[%s19595_s1 + $0x158] sm:$0xff] }
  0x40   :  { %12502 = vmatpush1.bf16.msra.mxu1 %v12501_v50  ;;  %12598 = vmatpush1.bf16.msra.mxu0 %v15001_v6  ;;  %20074 = vst [vmem:[#allocation28_spill] sm:$0xff] %v15092_v60  ;;  %v15101_v50 = vsub.f32 %v37_v39, %v1020_v54  ;;  %v15103_v6 = vsub.f32 %v45_v35, %v1024_v8  ;;  %v1028_v39 = vand.u32 4294901760, %v53_v10  ;;  %v1032_v35 = vand.u32 4294901760, %v61_v27  ;;  %v70_v8 = vld [vmem:[%s19595_s1 + $0x118] sm:$0xff] }
  0x41   :  { %20073 = vst [vmem:[#allocation27_spill] sm:$0xff] %v15090_v25  ;;  %12504 = vmatprep.subr.bf16.mxu1 %v12503_v29  ;;  %12600 = vmatprep.subr.bf16.mxu0 %v15008_v7  ;;  %20076 = vst [vmem:[#allocation30_spill] sm:$0xff] %v15105_v41  ;;  %v15112_v60 = vsub.f32 %v47_v0, %v1879_v30  ;;  %v1881_v25 = vand.u32 4294901760, %v56_v40  ;;  %v63_v7 = vld [vmem:[%s19595_s1 + $0xe0] sm:$0xff]  ;;  %v15117_v54 = vpack.c.bf16 %v1030_v13, %v1026_v3  ;;  %v72_v30 = vld [vmem:[%s19595_s1 + $0x128] sm:$0xff] }
  0x42   :  { %20075 = vst [vmem:[#allocation29_spill] sm:$0xff] %v15101_v50  ;;  %20077 = vst [vmem:[#allocation31_spill] sm:$0xff] %v15110_v58  ;;  %v15119_v29 = vsub.f32 %v54_v62, %v1026_v3  ;;  %v15131_v44 = vsub.f32 %v62_v20, %v1030_v13  ;;  %v1883_v3 = vand.u32 4294901760, %v55_v22  ;;  %v15147_v20 = vsub.f32 %v64_v63, %v1885_v32 }
  0x43   :  { %20078 = vst [vmem:[#allocation32_spill] sm:$0xff] %v15112_v60  ;;  %20079 = vst [vmem:[#allocation33_spill] sm:$0xff] %v15117_v54  ;;  %v15133_v0 = vpack.c.bf16 %v1885_v32, %v1881_v25  ;;  %v15135_v62 = vsub.f32 %v56_v40, %v1881_v25  ;;  %v69_v54 = vld [vmem:[%s19595_s1 + $0x110] sm:$0xff]  ;;  %v15149_v13 = vpack.c.bf16 %v1032_v35, %v1028_v39  ;;  %v1887_v25 = vand.u32 4294901760, %v63_v7 }
  0x44   :  { %20080 = vst [vmem:[#allocation34_spill] sm:$0xff] %v15119_v29  ;;  %12506 = vmatpush1.bf16.msra.mxu1 %v12505_v16  ;;  %12602 = vmatpush1.bf16.msra.mxu0 %v15011_v42  ;;  %20081 = vst [vmem:[#allocation35_spill] sm:$0xff] %v15131_v44  ;;  %v80_v29 = vld [vmem:[%s19595_s1 + $0x168] sm:$0xff]  ;;  %v20084_v16 = vpack.c.bf16 %v14729_v18, %v14727_v17  ;;  %v20085_v42 = vld [vmem:[#allocation2_spill] sm:$0xff]  ;;  %v15151_v40 = vsub.f32 %v53_v10, %v1028_v39  ;;  %v1034_v32 = vand.u32 4294901760, %v70_v8 }
  0x45   :  { %20082 = vst [vmem:[#allocation36_spill] sm:$0xff] %v15133_v0  ;;  %20083 = vst [vmem:[#allocation37_spill] sm:$0xff] %v15135_v62  ;;  %12604 = vmatprep.subr.bf16.mxu0 %v20085_v42  ;;  %v77_v62 = vld [vmem:[%s19595_s1 + $0x150] sm:$0xff]  ;;  %v9586_v44 = vld [vmem:[%s19597_s2 + $0x1] ss:$0 sm:$0xff]  ;;  %v15162_v18 = vsub.f32 %v61_v27, %v1032_v35  ;;  %v1038_v63 = vand.u32 4294901760, %v78_v2  ;;  %v15171_v42 = vpack.c.bf16 %v1887_v25, %v1883_v3 }
  0x46   :  { %12508 = vmatprep.subr.bf16.mxu1 %v20084_v16  ;;  %20086 = vst [vmem:[#allocation2_spill] sm:$0xff] %v15147_v20  ;;  %20087 = vst [vmem:[#allocation38_spill] sm:$0xff] %v15149_v13  ;;  %v9585_v17 = vld [vmem:[%s19597_s2] ss:$0 sm:$0xff]  ;;  %v1889_v16 = vand.u32 4294901760, %v72_v30  ;;  %3598 = vrot.lane.b32.xlu1 %v9586_v44, %s14656_s7  ;;  %v20090_v39 = vld [vmem:[#allocation16_spill] sm:$0xff]  ;;  %v15173_v27 = vsub.f32 %v55_v22, %v1883_v3  ;;  %v20093_v20 = vpack.c.bf16 %v14744_v24, %v14742_v23 }
  0x47   :  { %20088 = vst [vmem:[#allocation39_spill] sm:$0xff] %v15151_v40  ;;  %20089 = vst [vmem:[#allocation40_spill] sm:$0xff] %v15162_v18  ;;  %v71_v10 = vld [vmem:[%s19595_s1 + $0x120] sm:$0xff]  ;;  %3593 = vrot.lane.b32.xlu0 %v9585_v17, %s14656_s7  ;;  %497 = vmatmul.mubr.f32.vlgmr.msra.gmra.mrb[0].mxu1 %v20090_v39  ;;  %v1893_v35 = vand.u32 4294901760, %v80_v29  ;;  %v1036_v18 = vand.u32 4294901760, %v69_v54  ;;  %v20094_v13 = vld [vmem:[#allocation3_spill] sm:$0xff]  ;;  %v15182_v0 = vsub.f32 %v63_v7, %v1887_v25 }
  0x48   :  { %908 = vmatmul.mubr.f32.vlgmr.msra.gmra.mrb[0].mxu0 %v20090_v39  ;;  %20091 = vst [vmem:[#allocation41_spill] sm:$0xff] %v15171_v42  ;;  %20092 = vst [vmem:[#allocation42_spill] sm:$0xff] %v15173_v27  ;;  %v79_v40 = vld [vmem:[%s19595_s1 + $0x160] sm:$0xff]  ;;  %12510 = vmatpush1.bf16.msra.mxu1 %v20093_v20  ;;  %v15184_v41 = vpack.c.bf16 %v1038_v63, %v1034_v32  ;;  %v15186_v60 = vsub.f32 %v70_v8, %v1034_v32  ;;  %v1040_v22 = vand.u32 4294901760, %v77_v62  ;;  %v86_v3 = vld [vmem:[%s19595_s1 + $0x198] sm:$0xff] }
  0x49   :  { %12606 = vmatpush1.bf16.msra.mxu0 %v20094_v13  ;;  %v94_v27 = vld [vmem:[%s19595_s1 + $0x1d8] sm:$0xff]  ;;  %v88_v23 = vld [vmem:[%s19595_s1 + $0x1a8] sm:$0xff]  ;;  %v20097_v24 = vpack.c.bf16 %v14761_v36, %v14756_v28  ;;  %v20098_v7 = vld [vmem:[#allocation4_spill] sm:$0xff]  ;;  %v15201_v8 = vsub.f32 %v78_v2, %v1038_v63  ;;  %v15203_v20 = vpack.c.bf16 %v1893_v35, %v1889_v16  ;;  %v15205_v13 = vsub.f32 %v72_v30, %v1889_v16 }
  0x4a   :  { %20095 = vst [vmem:[#allocation3_spill] sm:$0xff] %v15184_v41  ;;  %20096 = vst [vmem:[#allocation43_spill] sm:$0xff] %v15186_v60  ;;  %12608 = vmatprep.subr.bf16.mxu0 %v20098_v7  ;;  %v1891_v25 = vand.u32 4294901760, %v71_v10  ;;  %v96_v32 = vld [vmem:[%s19595_s1 + $0x1e8] sm:$0xff]  ;;  %v85_v60 = vld [vmem:[%s19595_s1 + $0x190] sm:$0xff]  ;;  %631 = vmatprep.mubr.f32.mxu1 %v20067_v14  ;;  %v15215_v28 = vsub.f32 %v80_v29, %v1893_v35  ;;  %v15217_v36 = vpack.c.bf16 %v1040_v22, %v1036_v18 }
  0x4b   :  { %12512 = vmatprep.subr.bf16.mxu1 %v20097_v24  ;;  %20099 = vst [vmem:[#allocation4_spill] sm:$0xff] %v15201_v8  ;;  %20100 = vst [vmem:[#allocation44_spill] sm:$0xff] %v15203_v20  ;;  %1010 = vmatprep.mubr.f32.mxu0 %v20067_v14  ;;  %v15219_v2 = vsub.f32 %v69_v54, %v1036_v18  ;;  %v1895_v30 = vand.u32 4294901760, %v79_v40  ;;  %v93_v63 = vld [vmem:[%s19595_s1 + $0x1d0] sm:$0xff]  ;;  %v15224_v16 = vsub.f32 %v77_v62, %v1040_v22  ;;  %v20107_v54 = vld [vmem:[#allocation5_spill] sm:$0xff] }
  0x4c   :  { %20101 = vst [vmem:[#allocation45_spill] sm:$0xff] %v15205_v13  ;;  %20102 = vst [vmem:[#allocation46_spill] sm:$0xff] %v15215_v28  ;;  %v1042_v24 = vand.u32 4294901760, %v86_v3  ;;  %v1046_v7 = vand.u32 4294901760, %v94_v27  ;;  %v1897_v13 = vand.u32 4294901760, %v88_v23  ;;  %3600 = vrot.lane.b32.xlu1 %v9586_v44, %s14657_s21  ;;  %3595 = vrot.lane.b32.xlu0 %v9585_v17, %s14657_s21  ;;  %v20106_v29 = vpack.c.bf16 %v14777_v43, %v14766_v38  ;;  %v95_v44 = vld [vmem:[%s19595_s1 + $0x1e0] sm:$0xff] }
  0x4d   :  { %20103 = vst [vmem:[#allocation47_spill] sm:$0xff] %v15217_v36  ;;  %20104 = vst [vmem:[#allocation48_spill] sm:$0xff] %v15219_v2  ;;  %12610 = vmatpush1.bf16.msra.mxu0 %v20107_v54  ;;  %v15232_v18 = vpack.c.bf16 %v1895_v30, %v1891_v25  ;;  %v15234_v35 = vsub.f32 %v71_v10, %v1891_v25  ;;  %v1901_v62 = vand.u32 4294901760, %v96_v32  ;;  %v1044_v22 = vand.u32 4294901760, %v85_v60  ;;  %v102_v38 = vld [vmem:[%s19595_s1 + $0x218] sm:$0xff]  ;;  %v20111_v17 = vld [vmem:[#allocation6_spill] sm:$0xff] }
  0x4e   :  { %20105 = vst [vmem:[#allocation49_spill] sm:$0xff] %v15224_v16  ;;  %12514 = vmatpush1.bf16.msra.mxu1 %v20106_v29  ;;  %v87_v16 = vld [vmem:[%s19595_s1 + $0x1a0] sm:$0xff]  ;;  %v20110_v43 = vpack.c.bf16 %v14783_v46, %v14781_v45  ;;  %12612 = vmatprep.subr.bf16.mxu0 %v20111_v17  ;;  %v15249_v10 = vsub.f32 %v79_v40, %v1895_v30  ;;  %v1048_v54 = vand.u32 4294901760, %v93_v63  ;;  %v104_v2 = vld [vmem:[%s19595_s1 + $0x228] sm:$0xff] }
  0x4f   :  { %20108 = vst [vmem:[#allocation5_spill] sm:$0xff] %v15232_v18  ;;  %20109 = vst [vmem:[#allocation50_spill] sm:$0xff] %v15234_v35  ;;  %v15251_v25 = vpack.c.bf16 %v1046_v7, %v1042_v24  ;;  %v15253_v29 = vsub.f32 %v86_v3, %v1042_v24  ;;  %v110_v35 = vld [vmem:[%s19595_s1 + $0x258] sm:$0xff]  ;;  %v112_v45 = vld [vmem:[%s19595_s1 + $0x268] sm:$0xff]  ;;  %v15264_v46 = vsub.f32 %v94_v27, %v1046_v7  ;;  %v1899_v17 = vand.u32 4294901760, %v87_v16 }
  0x50   :  { %12516 = vmatprep.subr.bf16.mxu1 %v20110_v43  ;;  %20112 = vst [vmem:[#allocation6_spill] sm:$0xff] %v15249_v10  ;;  %v15266_v40 = vpack.c.bf16 %v1901_v62, %v1897_v13  ;;  %v15268_v30 = vsub.f32 %v88_v23, %v1897_v13  ;;  %v15270_v3 = vsub.f32 %v96_v32, %v1901_v62  ;;  %v101_v10 = vld [vmem:[%s19595_s1 + $0x210] sm:$0xff]  ;;  %v20122_v7 = vld [vmem:[#allocation7_spill] sm:$0xff]  ;;  %v1050_v23 = vand.u32 4294901760, %v102_v38 }
  0x51   :  { %20113 = vst [vmem:[#allocation51_spill] sm:$0xff] %v15251_v25  ;;  %20114 = vst [vmem:[#allocation52_spill] sm:$0xff] %v15253_v29  ;;  %v15272_v24 = vpack.c.bf16 %v1048_v54, %v1044_v22  ;;  %v15274_v43 = vsub.f32 %v85_v60, %v1044_v22  ;;  %v1903_v29 = vand.u32 4294901760, %v95_v44  ;;  %v20121_v27 = vpack.c.bf16 %v14798_v52, %v14796_v51  ;;  %v109_v60 = vld [vmem:[%s19595_s1 + $0x250] sm:$0xff]  ;;  %v103_v22 = vld [vmem:[%s19595_s1 + $0x220] sm:$0xff] }
  0x52   :  { %20115 = vst [vmem:[#allocation53_spill] sm:$0xff] %v15264_v46  ;;  %20116 = vst [vmem:[#allocation54_spill] sm:$0xff] %v15266_v40  ;;  %12614 = vmatpush1.bf16.msra.mxu0 %v20122_v7  ;;  %v1054_v13 = vand.u32 4294901760, %v110_v35  ;;  %v1905_v32 = vand.u32 4294901760, %v104_v2  ;;  %v1909_v62 = vand.u32 4294901760, %v112_v45  ;;  %v20124_v51 = vld [vmem:[#allocation8_spill] sm:$0xff]  ;;  %v15293_v52 = vsub.f32 %v93_v63, %v1048_v54 }
  0x53   :  { %20117 = vst [vmem:[#allocation55_spill] sm:$0xff] %v15268_v30  ;;  %20118 = vst [vmem:[#allocation56_spill] sm:$0xff] %v15270_v3  ;;  %12518 = vmatpush1.bf16.msra.mxu1 %v20121_v27  ;;  %12616 = vmatprep.subr.bf16.mxu0 %v20124_v51  ;;  %v15295_v27 = vpack.c.bf16 %v1903_v29, %v1899_v17  ;;  %v15297_v7 = vsub.f32 %v87_v16, %v1899_v17  ;;  %v111_v3 = vld [vmem:[%s19595_s1 + $0x260] sm:$0xff]  ;;  %v118_v30 = vld [vmem:[%s19595_s1 + $0x298] sm:$0xff]  ;;  %v1052_v16 = vand.u32 4294901760, %v101_v10 }
  0x54   :  { %20119 = vst [vmem:[#allocation57_spill] sm:$0xff] %v15272_v24  ;;  %20120 = vst [vmem:[#allocation58_spill] sm:$0xff] %v15274_v43  ;;  %v20123_v43 = vpack.c.bf16 %v14811_v59, %v14807_v55  ;;  %v126_v55 = vld [vmem:[%s19595_s1 + $0x2d8] sm:$0xff]  ;;  %v15308_v59 = vsub.f32 %v95_v44, %v1903_v29  ;;  %v15310_v63 = vpack.c.bf16 %v1054_v13, %v1050_v23  ;;  %v128_v17 = vld [vmem:[%s19595_s1 + $0x2e8] sm:$0xff]  ;;  %v1056_v44 = vand.u32 4294901760, %v109_v60 }
  0x55   :  { %20125 = vst [vmem:[#allocation7_spill] sm:$0xff] %v15293_v52  ;;  %20126 = vst [vmem:[#allocation8_spill] sm:$0xff] %v15295_v27  ;;  %v15312_v54 = vsub.f32 %v102_v38, %v1050_v23  ;;  %v15320_v51 = vsub.f32 %v110_v35, %v1054_v13  ;;  %v15324_v52 = vsub.f32 %v104_v2, %v1905_v32  ;;  %v20134_v29 = vld [vmem:[#allocation9_spill] sm:$0xff]  ;;  %v1907_v23 = vand.u32 4294901760, %v103_v22  ;;  %v20136_v35 = vld [vmem:[#allocation10_spill] sm:$0xff] }
  0x56   :  { %12520 = vmatprep.subr.bf16.mxu1 %v20123_v43  ;;  %20127 = vst [vmem:[#allocation59_spill] sm:$0xff] %v15297_v7  ;;  %20128 = vst [vmem:[#allocation60_spill] sm:$0xff] %v15308_v59  ;;  %v120_v43 = vld [vmem:[%s19595_s1 + $0x2a8] sm:$0xff]  ;;  %v15322_v7 = vpack.c.bf16 %v1909_v62, %v1905_v32  ;;  %v20133_v38 = vpack.c.bf16 %v14826_v5, %v14824_v4  ;;  %12618 = vmatpush1.bf16.msra.mxu0 %v20134_v29  ;;  %v1058_v59 = vand.u32 4294901760, %v118_v30  ;;  %v117_v4 = vld [vmem:[%s19595_s1 + $0x290] sm:$0xff] }
  0x57   :  { %20129 = vst [vmem:[#allocation61_spill] sm:$0xff] %v15310_v63  ;;  %20130 = vst [vmem:[#allocation62_spill] sm:$0xff] %v15312_v54  ;;  %v1911_v54 = vand.u32 4294901760, %v111_v3  ;;  %v1062_v46 = vand.u32 4294901760, %v126_v55  ;;  %v20135_v63 = vpack.c.bf16 %v14841_v12, %v14839_v11  ;;  %12620 = vmatprep.subr.bf16.mxu0 %v20136_v35  ;;  %v15334_v13 = vsub.f32 %v112_v45, %v1909_v62  ;;  %v125_v5 = vld [vmem:[%s19595_s1 + $0x2d0] sm:$0xff]  ;;  %v119_v11 = vld [vmem:[%s19595_s1 + $0x2a0] sm:$0xff] }
  0x58   :  { %20131 = vst [vmem:[#allocation63_spill] sm:$0xff] %v15322_v7  ;;  %20132 = vst [vmem:[#allocation64_spill] sm:$0xff] %v15324_v52  ;;  %12522 = vmatpush1.bf16.msra.mxu1 %v20133_v38  ;;  %v15336_v2 = vsub.f32 %v101_v10, %v1052_v16  ;;  %v1913_v32 = vand.u32 4294901760, %v120_v43  ;;  %v1917_v52 = vand.u32 4294901760, %v128_v17  ;;  %v15347_v12 = vpack.c.bf16 %v1056_v44, %v1052_v16  ;;  %v134_v38 = vld [vmem:[%s19595_s1 + $0x318] sm:$0xff] }
  0x59   :  { %12524 = vmatprep.subr.bf16.mxu1 %v20135_v63  ;;  %v15349_v45 = vsub.f32 %v109_v60, %v1056_v44  ;;  %v15351_v10 = vpack.c.bf16 %v1911_v54, %v1907_v23  ;;  %v15353_v62 = vsub.f32 %v103_v22, %v1907_v23  ;;  %v127_v63 = vld [vmem:[%s19595_s1 + $0x2e0] sm:$0xff]  ;;  %v142_v29 = vld [vmem:[%s19595_s1 + $0x358] sm:$0xff]  ;;  %v15364_v16 = vsub.f32 %v111_v3, %v1911_v54  ;;  %v136_v23 = vld [vmem:[%s19595_s1 + $0x328] sm:$0xff] }
  0x5a   :  { %20137 = vst [vmem:[#allocation9_spill] sm:$0xff] %v15336_v2  ;;  %20138 = vst [vmem:[#allocation10_spill] sm:$0xff] %v15347_v12  ;;  %v15366_v60 = vpack.c.bf16 %v1062_v46, %v1058_v59  ;;  %v15368_v44 = vsub.f32 %v118_v30, %v1058_v59  ;;  %v15370_v22 = vsub.f32 %v126_v55, %v1062_v46  ;;  %v1060_v3 = vand.u32 4294901760, %v117_v4  ;;  %v20150_v46 = vld [vmem:[#allocation12_spill] sm:$0xff] }
  0x5b   :  { %20139 = vst [vmem:[#allocation65_spill] sm:$0xff] %v15349_v45  ;;  %20140 = vst [vmem:[#allocation66_spill] sm:$0xff] %v15351_v10  ;;  %v20146_v35 = vpack.c.bf16 %v14852_v19, %v14850_v15  ;;  %v15379_v45 = vpack.c.bf16 %v1917_v52, %v1913_v32  ;;  %v1064_v54 = vand.u32 4294901760, %v125_v5  ;;  %v20149_v30 = vpack.c.bf16 %v14863_v34, %v14861_v33  ;;  %v144_v15 = vld [vmem:[%s19595_s1 + $0x368] sm:$0xff]  ;;  %v133_v19 = vld [vmem:[%s19595_s1 + $0x310] sm:$0xff] }
  0x5c   :  { %20141 = vst [vmem:[#allocation67_spill] sm:$0xff] %v15353_v62  ;;  %20142 = vst [vmem:[#allocation68_spill] sm:$0xff] %v15364_v16  ;;  %v20147_v62 = vld [vmem:[#allocation11_spill] sm:$0xff]  ;;  %v1915_v16 = vand.u32 4294901760, %v119_v11  ;;  %v15385_v55 = vsub.f32 %v120_v43, %v1913_v32  ;;  %v1919_v59 = vand.u32 4294901760, %v127_v63  ;;  %v141_v33 = vld [vmem:[%s19595_s1 + $0x350] sm:$0xff]  ;;  %v15396_v34 = vsub.f32 %v128_v17, %v1917_v52 }
  0x5d   :  { %20143 = vst [vmem:[#allocation69_spill] sm:$0xff] %v15366_v60  ;;  %20144 = vst [vmem:[#allocation70_spill] sm:$0xff] %v15368_v44  ;;  %12526 = vmatpush1.bf16.msra.mxu1 %v20146_v35  ;;  %12622 = vmatpush1.bf16.msra.mxu0 %v20147_v62  ;;  %v1070_v44 = vand.u32 4294901760, %v142_v29  ;;  %v15398_v62 = vpack.c.bf16 %v1064_v54, %v1060_v3  ;;  %v15400_v43 = vsub.f32 %v117_v4, %v1060_v3  ;;  %v135_v35 = vld [vmem:[%s19595_s1 + $0x320] sm:$0xff]  ;;  %v158_v3 = vld [vmem:[%s19595_s1 + $0x3d8] sm:$0xff] }
  0x5e   :  { %20145 = vst [vmem:[#allocation71_spill] sm:$0xff] %v15370_v22  ;;  %20148 = vst [vmem:[#allocation11_spill] sm:$0xff] %v15379_v45  ;;  %12528 = vmatprep.subr.bf16.mxu1 %v20149_v30  ;;  %12624 = vmatprep.subr.bf16.mxu0 %v20150_v46  ;;  %v1066_v22 = vand.u32 4294901760, %v134_v38  ;;  %v1921_v32 = vand.u32 4294901760, %v136_v23  ;;  %v143_v30 = vld [vmem:[%s19595_s1 + $0x360] sm:$0xff]  ;;  %v150_v46 = vld [vmem:[%s19595_s1 + $0x398] sm:$0xff]  ;;  %v15413_v52 = vpack.c.bf16 %v1919_v59, %v1915_v16 }
  0x5f   :  { %20151 = vst [vmem:[#allocation12_spill] sm:$0xff] %v15385_v55  ;;  %20152 = vst [vmem:[#allocation72_spill] sm:$0xff] %v15396_v34  ;;  %v15411_v55 = vsub.f32 %v125_v5, %v1064_v54  ;;  %v15415_v17 = vsub.f32 %v119_v11, %v1915_v16  ;;  %v15417_v4 = vsub.f32 %v127_v63, %v1919_v59  ;;  %v20160_v34 = vld [vmem:[#allocation13_spill] sm:$0xff]  ;;  %v1925_v54 = vand.u32 4294901760, %v144_v15  ;;  %v20163_v63 = vld [vmem:[#allocation14_spill] sm:$0xff] }
  0x60   :  { %20153 = vst [vmem:[#allocation73_spill] sm:$0xff] %v15398_v62  ;;  %20154 = vst [vmem:[#allocation74_spill] sm:$0xff] %v15400_v43  ;;  %v20159_v43 = vpack.c.bf16 %v14878_v48, %v14876_v47  ;;  %v15426_v2 = vpack.c.bf16 %v1070_v44, %v1066_v22  ;;  %v15428_v5 = vsub.f32 %v134_v38, %v1066_v22  ;;  %v1072_v16 = vand.u32 4294901760, %v141_v33  ;;  %v152_v47 = vld [vmem:[%s19595_s1 + $0x3a8] sm:$0xff] }
  0x61   :  { %20155 = vst [vmem:[#allocation75_spill] sm:$0xff] %v15411_v55  ;;  %20156 = vst [vmem:[#allocation76_spill] sm:$0xff] %v15413_v52  ;;  %12626 = vmatpush1.bf16.msra.mxu0 %v20160_v34  ;;  %v1068_v55 = vand.u32 4294901760, %v133_v19  ;;  %v20162_v11 = vpack.c.bf16 %v14889_v57, %v14887_v56  ;;  %v1923_v59 = vand.u32 4294901760, %v135_v35  ;;  %v15437_v48 = vsub.f32 %v142_v29, %v1070_v44  ;;  %v160_v56 = vld [vmem:[%s19595_s1 + $0x3e8] sm:$0xff]  ;;  %v149_v57 = vld [vmem:[%s19595_s1 + $0x390] sm:$0xff] }
  0x62   :  { %20157 = vst [vmem:[#allocation77_spill] sm:$0xff] %v15415_v17  ;;  %20158 = vst [vmem:[#allocation78_spill] sm:$0xff] %v15417_v4  ;;  %12530 = vmatpush1.bf16.msra.mxu1 %v20159_v43  ;;  %12628 = vmatprep.subr.bf16.mxu0 %v20163_v63  ;;  %v1927_v4 = vand.u32 4294901760, %v143_v30  ;;  %v1074_v17 = vand.u32 4294901760, %v150_v46  ;;  %v15439_v38 = vpack.c.bf16 %v1925_v54, %v1921_v32  ;;  %v1078_v34 = vand.u32 4294901760, %v158_v3  ;;  %v157_v43 = vld [vmem:[%s19595_s1 + $0x3d0] sm:$0xff] }
  0x63   :  { %20161 = vst [vmem:[#allocation13_spill] sm:$0xff] %v15426_v2  ;;  %12532 = vmatprep.subr.bf16.mxu1 %v20162_v11  ;;  %20164 = vst [vmem:[#allocation14_spill] sm:$0xff] %v15437_v48  ;;  %v15441_v22 = vsub.f32 %v136_v23, %v1921_v32  ;;  %v15452_v11 = vsub.f32 %v144_v15, %v1925_v54  ;;  %v15454_v29 = vpack.c.bf16 %v1072_v16, %v1068_v55  ;;  %v151_v32 = vld [vmem:[%s19595_s1 + $0x3a0] sm:$0xff]  ;;  %v20172_v15 = vld [vmem:[#allocation15_spill] sm:$0xff] }
  0x64   :  { %20165 = vst [vmem:[#allocation79_spill] sm:$0xff] %v15439_v38  ;;  %v15456_v44 = vsub.f32 %v133_v19, %v1068_v55  ;;  %v15458_v23 = vsub.f32 %v141_v33, %v1072_v16  ;;  %v159_v63 = vld [vmem:[%s19595_s1 + $0x3e0] sm:$0xff]  ;;  %v15470_v54 = vpack.c.bf16 %v1927_v4, %v1923_v59  ;;  %v15472_v55 = vsub.f32 %v135_v35, %v1923_v59 }
  0x65   :  { %20166 = vst [vmem:[#allocation80_spill] sm:$0xff] %v15441_v22  ;;  %20167 = vst [vmem:[#allocation81_spill] sm:$0xff] %v15452_v11  ;;  %v20171_v22 = vpack.c.bf16 %v14897_v1, %v14895_v61  ;;  %12630 = vmatpush1.bf16.msra.mxu0 %v20172_v15  ;;  %v15474_v19 = vsub.f32 %v143_v30, %v1927_v4  ;;  %v1929_v33 = vand.u32 4294901760, %v152_v47  ;;  %v1933_v11 = vand.u32 4294901760, %v160_v56 }
  0x66   :  { %20168 = vst [vmem:[#allocation82_spill] sm:$0xff] %v15454_v29  ;;  %20169 = vst [vmem:[#allocation83_spill] sm:$0xff] %v15456_v44  ;;  %v20176_v16 = vpack.c.bf16 %v14907_v26, %v14905_v21  ;;  %v15480_v44 = vpack.c.bf16 %v1078_v34, %v1074_v17  ;;  %v1076_v61 = vand.u32 4294901760, %v149_v57  ;;  %v1080_v1 = vand.u32 4294901760, %v157_v43 }
  0x67   :  { %20170 = vst [vmem:[#allocation84_spill] sm:$0xff] %v15458_v23  ;;  %12534 = vmatpush1.bf16.msra.mxu1 %v20171_v22  ;;  %20173 = vst [vmem:[#allocation15_spill] sm:$0xff] %v15470_v54  ;;  %v20177_v23 = vld [vmem:[#allocation17_spill] sm:$0xff]  ;;  %v15482_v22 = vsub.f32 %v150_v46, %v1074_v17  ;;  %v1931_v15 = vand.u32 4294901760, %v151_v32  ;;  %v1935_v48 = vand.u32 4294901760, %v159_v63  ;;  %v19677_v35 = vand.u32 4294901760, %v15075_v37 }
  0x68   :  { %20174 = vst [vmem:[#allocation85_spill] sm:$0xff] %v15472_v55  ;;  %20175 = vst [vmem:[#allocation86_spill] sm:$0xff] %v15474_v19  ;;  %12536 = vmatprep.subr.bf16.mxu1 %v20176_v16  ;;  %12632 = vmatprep.subr.bf16.mxu0 %v20177_v23  ;;  %v15485_v30 = vsub.f32 %v158_v3, %v1078_v34  ;;  %v15487_v4 = vpack.c.bf16 %v1933_v11, %v1929_v33  ;;  %v20185_v23 = vld [vmem:[#allocation18_spill] sm:$0xff]  ;;  %v19680_v3 = vand.u32 4294901760, %v15077_v53 }
  0x69   :  { %20178 = vst [vmem:[#allocation17_spill] sm:$0xff] %v15480_v44  ;;  %20179 = vst [vmem:[#allocation87_spill] sm:$0xff] %v15482_v22  ;;  %v15489_v59 = vsub.f32 %v152_v47, %v1929_v33  ;;  %v15491_v21 = vsub.f32 %v160_v56, %v1933_v11  ;;  %v20184_v26 = vpack.c.bf16 %v14920_v31, %v14913_v9  ;;  %12634 = vmatpush1.bf16.msra.mxu0 %v20185_v23  ;;  %v20189_v34 = vld [vmem:[#allocation22_spill] sm:$0xff]  ;;  %v20192_v11 = vld [vmem:[#allocation27_spill] sm:$0xff] }
  0x6a   :  { %20180 = vst [vmem:[#allocation88_spill] sm:$0xff] %v15485_v30  ;;  %20181 = vst [vmem:[#allocation89_spill] sm:$0xff] %v15487_v4  ;;  %v15497_v46 = vpack.c.bf16 %v1080_v1, %v1076_v61  ;;  %v15499_v17 = vsub.f32 %v149_v57, %v1076_v61  ;;  %v15501_v16 = vsub.f32 %v157_v43, %v1080_v1  ;;  %12828 = vmatprep.subr.bf16.mxu0 %v15079_v49  ;;  %v20191_v31 = vld [vmem:[#allocation26_spill] sm:$0xff]  ;;  %v20195_v43 = vld [vmem:[#allocation28_spill] sm:$0xff] }
  0x6b   :  { %20182 = vst [vmem:[#allocation90_spill] sm:$0xff] %v15489_v59  ;;  %20183 = vst [vmem:[#allocation91_spill] sm:$0xff] %v15491_v21  ;;  %12538 = vmatpush1.bf16.msra.mxu1 %v20184_v26  ;;  %v15506_v47 = vpack.c.bf16 %v1935_v48, %v1931_v15  ;;  %v1129_v9 = vsub.f32 %v15075_v37, %v19677_v35  ;;  %v19684_v56 = vand.u32 4294901760, %v20191_v31  ;;  %v19686_v33 = vand.u32 4294901760, %v20192_v11  ;;  %v20193_v26 = vld [vmem:[#allocation19_spill] sm:$0xff]  ;;  %v20196_v61 = vld [vmem:[#allocation30_spill] sm:$0xff] }
  0x6c   :  { %20186 = vst [vmem:[#allocation18_spill] sm:$0xff] %v15497_v46  ;;  %20187 = vst [vmem:[#allocation92_spill] sm:$0xff] %v15499_v17  ;;  %12636 = vmatprep.subr.bf16.mxu1 %v20189_v34  ;;  %v1141_v57 = vsub.f32 %v15077_v53, %v19680_v3  ;;  %1012 = vmatmul.mubr.f32.vlgmr.msra.gmra.mrb[0].mxu0 %v20090_v39  ;;  %v20194_v3 = vld [vmem:[#allocation32_spill] sm:$0xff]  ;;  %v20203_v37 = vld [vmem:[#allocation34_spill] sm:$0xff] }
  0x6d   :  { %20188 = vst [vmem:[#allocation93_spill] sm:$0xff] %v15501_v16  ;;  %20190 = vst [vmem:[#allocation94_spill] sm:$0xff] %v15506_v47  ;;  %v1130_v23 = vand.u32 4294901760, %v1129_v9  ;;  %v1984_v35 = vsub.f32 %v20191_v31, %v19684_v56  ;;  %v1996_v49 = vsub.f32 %v20192_v11, %v19686_v33  ;;  %12830 = vmatpush1.bf16.msra.mxu0 %v20196_v61  ;;  %v20198_v9 = vand.u32 4294901760, %v15103_v6  ;;  %v20200_v33 = vld [vmem:[#allocation33_spill] sm:$0xff]  ;;  %v20201_v34 = vld [vmem:[#allocation36_spill] sm:$0xff] }
  0x6e   :  { %634 = vmatmul.mubr.f32.vlgmr.msra.gmra.mrb[0].mxu1 %v20193_v26  ;;  %v1142_v1 = vand.u32 4294901760, %v1141_v57  ;;  %v20197_v26 = vand.u32 4294901760, %v15101_v50  ;;  %v20199_v56 = vand.u32 4294901760, %v15110_v58  ;;  %12832 = vmatprep.subr.bf16.mxu0 %v20201_v34  ;;  %v20202_v57 = vand.u32 4294901760, %v20194_v3 }
  0x6f   :  { %12638 = vmatpush1.bf16.msra.mxu1 %v20195_v43  ;;  %v1147_v53 = vsub.f32 %v15103_v6, %v20198_v9  ;;  %v1985_v43 = vand.u32 4294901760, %v1984_v35  ;;  %v1997_v11 = vand.u32 4294901760, %v1996_v49  ;;  %v15547_v16 = vsub.f32 %v159_v63, %v1935_v48  ;;  %1114 = vmatprep.mubr.f32.mxu1 %v20067_v14 }
  0x70   :  { %v1135_v39 = vsub.f32 %v15101_v50, %v20197_v26  ;;  %v1990_v31 = vsub.f32 %v15110_v58, %v20199_v56  ;;  %12640 = vmatprep.subr.bf16.mxu1 %v20200_v33  ;;  %v2002_v61 = vsub.f32 %v20194_v3, %v20202_v57  ;;  %v19696_v26 = vand.u32 4294901760, %v20203_v37  ;;  %1969 = vmatprep.mubr.f32.mxu0 %v20067_v14  ;;  %v20206_v57 = vld [vmem:[#allocation35_spill] sm:$0xff]  ;;  %v20207_v3 = vld [vmem:[#allocation38_spill] sm:$0xff] }
  0x71   :  { %v15545_v50 = vsub.f32 %v151_v32, %v1931_v15  ;;  %20205 = vst [vmem:[#allocation96_spill] sm:$0xff] %v15547_v16  ;;  %v15550_v9 = vpack.c.bf16 %v1142_v1, %v1130_v23  ;;  %v1148_v34 = vand.u32 4294901760, %v1147_v53  ;;  %v19703_v33 = vand.u32 4294901760, %v20206_v57  ;;  %12834 = vmatpush1.bf16.msra.mxu0 %v15171_v42  ;;  %v20208_v32 = vld [vmem:[#allocation37_spill] sm:$0xff]  ;;  %v20209_v15 = vld [vmem:[#allocation2_spill] sm:$0xff]  ;;  %v20210_v23 = vld [vmem:[#allocation39_spill] sm:$0xff] }
  0x72   :  { %v1136_v56 = vand.u32 4294901760, %v1135_v39  ;;  %v1991_v35 = vand.u32 4294901760, %v1990_v31  ;;  %v1153_v49 = vsub.f32 %v20203_v37, %v19696_v26  ;;  %v2003_v48 = vand.u32 4294901760, %v2002_v61  ;;  %12836 = vmatprep.subr.bf16.mxu0 %v15203_v20  ;;  %v20211_v26 = vld [vmem:[#allocation40_spill] sm:$0xff] }
  0x73   :  { %20204 = vst [vmem:[#allocation95_spill] sm:$0xff] %v15545_v50  ;;  %12642 = vmatpush1.bf16.msra.mxu1 %v20207_v3  ;;  %v19707_v63 = vand.u32 4294901760, %v20208_v32  ;;  %v19706_v1 = vand.u32 4294901760, %v20209_v15  ;;  %v15564_v53 = vpack.c.bf16 %v1997_v11, %v1985_v43  ;;  %v1165_v31 = vsub.f32 %v20206_v57, %v19703_v33  ;;  %v20213_v43 = vld [vmem:[#allocation42_spill] sm:$0xff]  ;;  %v20214_v57 = vld [vmem:[#allocation43_spill] sm:$0xff] }
  0x74   :  { %12644 = vmatprep.subr.bf16.mxu1 %v15184_v41  ;;  %v1154_v39 = vand.u32 4294901760, %v1153_v49  ;;  %v19708_v42 = vand.u32 4294901760, %v20211_v26  ;;  %v20212_v41 = vand.u32 4294901760, %v20210_v23  ;;  %v19711_v49 = vand.u32 4294901760, %v20213_v43 }
  0x75   :  { %v2008_v61 = vsub.f32 %v20208_v32, %v19707_v63  ;;  %v2020_v58 = vsub.f32 %v20209_v15, %v19706_v1  ;;  %v1166_v20 = vand.u32 4294901760, %v1165_v31  ;;  %12838 = vmatpush1.bf16.msra.mxu0 %v15232_v18  ;;  %v15587_v1 = vpack.c.bf16 %v1148_v34, %v1136_v56 }
  0x76   :  { %v1159_v11 = vsub.f32 %v20210_v23, %v20212_v41  ;;  %v1171_v33 = vsub.f32 %v20211_v26, %v19708_v42  ;;  %v15589_v63 = vpack.c.bf16 %v2003_v48, %v1991_v35  ;;  %v2014_v31 = vsub.f32 %v20213_v43, %v19711_v49  ;;  %12840 = vmatprep.subr.bf16.mxu0 %v15266_v40  ;;  %v20217_v49 = vld [vmem:[#allocation45_spill] sm:$0xff] }
  0x77   :  { %12646 = vmatpush1.bf16.msra.mxu1 %v15217_v36  ;;  %v2009_v41 = vand.u32 4294901760, %v2008_v61  ;;  %v2021_v42 = vand.u32 4294901760, %v2020_v58  ;;  %v20215_v37 = vand.u32 4294901760, %v15182_v0  ;;  %v20216_v34 = vand.u32 4294901760, %v20214_v57 }
  0x78   :  { %12648 = vmatprep.subr.bf16.mxu1 %v15251_v25  ;;  %v1160_v3 = vand.u32 4294901760, %v1159_v11  ;;  %v15602_v35 = vpack.c.bf16 %v1166_v20, %v1154_v39  ;;  %v1172_v48 = vand.u32 4294901760, %v1171_v33  ;;  %v19721_v61 = vand.u32 4294901760, %v15201_v8  ;;  %v20218_v33 = vld [vmem:[#allocation48_spill] sm:$0xff]  ;;  %v20219_v11 = vld [vmem:[#allocation49_spill] sm:$0xff] }
  0x79   :  { %v2026_v36 = vsub.f32 %v15182_v0, %v20215_v37  ;;  %v1177_v56 = vsub.f32 %v20214_v57, %v20216_v34  ;;  %v19727_v18 = vand.u32 4294901760, %v20217_v49  ;;  %v2015_v25 = vand.u32 4294901760, %v2014_v31  ;;  %12842 = vmatpush1.bf16.msra.mxu0 %v15295_v27  ;;  %v20221_v27 = vld [vmem:[#allocation50_spill] sm:$0xff] }
  0x7a   :  { %v19730_v58 = vand.u32 4294901760, %v15215_v28  ;;  %v1189_v37 = vsub.f32 %v15201_v8, %v19721_v61  ;;  %v19733_v39 = vand.u32 4294901760, %v20218_v33  ;;  %12844 = vmatprep.subr.bf16.mxu0 %v15322_v7  ;;  %v15619_v34 = vpack.c.bf16 %v2021_v42, %v2009_v41 }
  0x7b   :  { %v2027_v43 = vand.u32 4294901760, %v2026_v36  ;;  %v1178_v40 = vand.u32 4294901760, %v1177_v56  ;;  %12650 = vmatpush1.bf16.msra.mxu1 %v15272_v24  ;;  %v2032_v20 = vsub.f32 %v20217_v49, %v19727_v18  ;;  %v20220_v36 = vld [vmem:[#allocation61_spill] sm:$0xff]  ;;  %v19735_v61 = vand.u32 4294901760, %v20221_v27  ;;  %v20222_v24 = vld [vmem:[#allocation6_spill] sm:$0xff] }
  0x7c   :  { %12652 = vmatprep.subr.bf16.mxu1 %v20220_v36  ;;  %v2044_v56 = vsub.f32 %v15215_v28, %v19730_v58  ;;  %v19736_v8 = vand.u32 4294901760, %v20222_v24  ;;  %v1190_v57 = vand.u32 4294901760, %v1189_v37  ;;  %v1183_v31 = vsub.f32 %v20218_v33, %v19733_v39  ;;  %v20224_v28 = vld [vmem:[#allocation52_spill] sm:$0xff] }
  0x7d   :  { %v2033_v18 = vand.u32 4294901760, %v2032_v20  ;;  %v20223_v36 = vand.u32 4294901760, %v20219_v11  ;;  %v2038_v41 = vsub.f32 %v20221_v27, %v19735_v61  ;;  %v19747_v37 = vand.u32 4294901760, %v20224_v28  ;;  %12846 = vmatpush1.bf16.msra.mxu0 %v15351_v10 }
  0x7e   :  { %v2045_v42 = vand.u32 4294901760, %v2044_v56  ;;  %v2050_v58 = vsub.f32 %v20222_v24, %v19736_v8  ;;  %v15641_v20 = vpack.c.bf16 %v1172_v48, %v1160_v3  ;;  %v15643_v39 = vpack.c.bf16 %v2027_v43, %v2015_v25  ;;  %v20225_v56 = vld [vmem:[#allocation53_spill] sm:$0xff]  ;;  %12848 = vmatprep.subr.bf16.mxu0 %v15379_v45  ;;  %v20228_v45 = vld [vmem:[#allocation58_spill] sm:$0xff] }
  0x7f   :  { %v1195_v7 = vsub.f32 %v20219_v11, %v20223_v36  ;;  %12654 = vmatpush1.bf16.msra.mxu1 %v15347_v12  ;;  %v15645_v36 = vpack.c.bf16 %v1190_v57, %v1178_v40  ;;  %v19746_v11 = vand.u32 4294901760, %v20225_v56  ;;  %v1184_v61 = vand.u32 4294901760, %v1183_v31  ;;  %v20226_v40 = vld [vmem:[#allocation55_spill] sm:$0xff]  ;;  %v20227_v57 = vld [vmem:[#allocation56_spill] sm:$0xff] }
  0x80   :  { %12656 = vmatprep.subr.bf16.mxu1 %v15366_v60  ;;  %v2039_v24 = vand.u32 4294901760, %v2038_v41  ;;  %v1201_v12 = vsub.f32 %v20224_v28, %v19747_v37  ;;  %v2051_v10 = vand.u32 4294901760, %v2050_v58  ;;  %v19750_v3 = vand.u32 4294901760, %v20226_v40 }
  0x81   :  { %v1196_v8 = vand.u32 4294901760, %v1195_v7  ;;  %v1213_v25 = vsub.f32 %v20225_v56, %v19746_v11  ;;  %v19755_v43 = vand.u32 4294901760, %v20227_v57  ;;  %v15658_v48 = vpack.c.bf16 %v2045_v42, %v2033_v18  ;;  %v20229_v7 = vld [vmem:[#allocation7_spill] sm:$0xff]  ;;  %12850 = vmatpush1.bf16.msra.mxu0 %v15413_v52  ;;  %v20231_v52 = vld [vmem:[#allocation60_spill] sm:$0xff] }
  0x82   :  { %v1202_v60 = vand.u32 4294901760, %v1201_v12  ;;  %v19761_v31 = vand.u32 4294901760, %v20228_v45  ;;  %v19762_v41 = vand.u32 4294901760, %v20229_v7  ;;  %v2056_v11 = vsub.f32 %v20226_v40, %v19750_v3  ;;  %v20230_v18 = vld [vmem:[#allocation59_spill] sm:$0xff]  ;;  %12852 = vmatprep.subr.bf16.mxu0 %v15439_v38 }
  0x83   :  { %12658 = vmatpush1.bf16.msra.mxu1 %v15398_v62  ;;  %v1214_v58 = vand.u32 4294901760, %v1213_v25  ;;  %v2068_v37 = vsub.f32 %v20227_v57, %v19755_v43  ;;  %v19765_v3 = vand.u32 4294901760, %v20231_v52  ;;  %v20232_v62 = vld [vmem:[#allocation62_spill] sm:$0xff]  ;;  %v15681_v56 = vpack.c.bf16 %v1196_v8, %v1184_v61 }
  0x84   :  { %12660 = vmatprep.subr.bf16.mxu1 %v15426_v2  ;;  %v1207_v12 = vsub.f32 %v20228_v45, %v19761_v31  ;;  %v1219_v25 = vsub.f32 %v20229_v7, %v19762_v41  ;;  %v19764_v40 = vand.u32 4294901760, %v20232_v62  ;;  %v15683_v43 = vpack.c.bf16 %v2051_v10, %v2039_v24 }
  0x85   :  { %v15685_v42 = vpack.c.bf16 %v1214_v58, %v1202_v60  ;;  %v20233_v38 = vand.u32 4294901760, %v20230_v18  ;;  %v2057_v57 = vand.u32 4294901760, %v2056_v11  ;;  %v2069_v31 = vand.u32 4294901760, %v2068_v37  ;;  %12854 = vmatpush1.bf16.msra.mxu0 %v15470_v54  ;;  %v20234_v60 = vld [vmem:[#allocation64_spill] sm:$0xff]  ;;  %v20236_v54 = vld [vmem:[#allocation65_spill] sm:$0xff] }
  0x86   :  { %v2074_v41 = vsub.f32 %v20231_v52, %v19765_v3  ;;  %v1225_v7 = vsub.f32 %v20232_v62, %v19764_v40  ;;  %v1208_v8 = vand.u32 4294901760, %v1207_v12  ;;  %v1220_v24 = vand.u32 4294901760, %v1219_v25  ;;  %12856 = vmatprep.subr.bf16.mxu0 %v15487_v4  ;;  %v20235_v25 = vld [vmem:[#allocation9_spill] sm:$0xff]  ;;  %v20238_v4 = vld [vmem:[#allocation68_spill] sm:$0xff] }
  0x87   :  { %v2062_v2 = vsub.f32 %v20230_v18, %v20233_v38  ;;  %12662 = vmatpush1.bf16.msra.mxu1 %v15454_v29  ;;  %v19775_v10 = vand.u32 4294901760, %v15320_v51  ;;  %v19776_v38 = vand.u32 4294901760, %v20234_v60  ;;  %v19777_v58 = vand.u32 4294901760, %v15334_v13 }
  0x88   :  { %12664 = vmatprep.subr.bf16.mxu1 %v15480_v44  ;;  %v2075_v11 = vand.u32 4294901760, %v2074_v41  ;;  %v1226_v37 = vand.u32 4294901760, %v1225_v7  ;;  %v19782_v3 = vand.u32 4294901760, %v20235_v25  ;;  %v15711_v44 = vpack.c.bf16 %v2069_v31, %v2057_v57  ;;  %v20237_v7 = vld [vmem:[#allocation67_spill] sm:$0xff] }
  0x89   :  { %v2063_v61 = vand.u32 4294901760, %v2062_v2  ;;  %v1237_v40 = vsub.f32 %v15320_v51, %v19775_v10  ;;  %v2080_v12 = vsub.f32 %v20234_v60, %v19776_v38  ;;  %v2092_v2 = vsub.f32 %v15334_v13, %v19777_v58  ;;  %12858 = vmatpush1.bf16.msra.mxu0 %v15506_v47  ;;  %v20241_v47 = vld [vmem:[#allocation70_spill] sm:$0xff] }
  0x8a   :  { %v19785_v41 = vand.u32 4294901760, %v20237_v7  ;;  %v1231_v29 = vsub.f32 %v20235_v25, %v19782_v3  ;;  %v20239_v57 = vand.u32 4294901760, %v20236_v54  ;;  %12860 = vmatprep.subr.bf16.mxu0 %v15564_v53  ;;  %v15735_v3 = vpack.c.bf16 %v1220_v24, %v1208_v8  ;;  %v20243_v53 = vld [vmem:[#allocation21_spill] sm:$0xff] }
  0x8b   :  { %12666 = vmatpush1.bf16.msra.mxu1 %v15497_v46  ;;  %v1238_v10 = vand.u32 4294901760, %v1237_v40  ;;  %v2081_v38 = vand.u32 4294901760, %v2080_v12  ;;  %v2093_v58 = vand.u32 4294901760, %v2092_v2  ;;  %v20240_v40 = vand.u32 4294901760, %v20238_v4 }
  0x8c   :  { %v1243_v31 = vsub.f32 %v20236_v54, %v20239_v57  ;;  %12668 = vmatprep.subr.bf16.mxu1 %v15550_v9  ;;  %v2086_v62 = vsub.f32 %v20237_v7, %v19785_v41  ;;  %v19787_v46 = vand.u32 4294901760, %v20241_v47  ;;  %v15737_v25 = vpack.c.bf16 %v2075_v11, %v2063_v61  ;;  %v20242_v9 = vld [vmem:[#allocation71_spill] sm:$0xff]  ;;  %1975 = vmatmul.mubr.f32.vlgmr.msra.gmra.mrb[2].mxu0 %v20243_v53  ;;  %v20245_v11 = vld [vmem:[#allocation72_spill] sm:$0xff] }
  0x8d   :  { %v2098_v12 = vsub.f32 %v20238_v4, %v20240_v40  ;;  %v15739_v57 = vpack.c.bf16 %v1238_v10, %v1226_v37  ;;  %v19789_v54 = vand.u32 4294901760, %v20242_v9  ;;  %v1232_v2 = vand.u32 4294901760, %v1231_v29  ;;  %12862 = vmatpush1.bf16.msra.mxu0 %v15589_v63  ;;  %v20244_v10 = vld [vmem:[#allocation12_spill] sm:$0xff]  ;;  %2205 = vmatprep.mubr.f32.mxu0 %v20067_v14 }
  0x8e   :  { %1120 = vmatmul.mubr.f32.vlgmr.msra.gmra.mrb[2].mxu1 %v20243_v53  ;;  %v1244_v41 = vand.u32 4294901760, %v1243_v31  ;;  %v2087_v7 = vand.u32 4294901760, %v2086_v62  ;;  %v1249_v40 = vsub.f32 %v20241_v47, %v19787_v46  ;;  %v19793_v61 = vand.u32 4294901760, %v20244_v10  ;;  %12864 = vmatprep.subr.bf16.mxu0 %v15619_v34  ;;  %v20246_v31 = vld [vmem:[#allocation74_spill] sm:$0xff] }
  0x8f   :  { %12670 = vmatpush1.bf16.msra.mxu1 %v15587_v1  ;;  %v2099_v8 = vand.u32 4294901760, %v2098_v12  ;;  %v1261_v24 = vsub.f32 %v20242_v9, %v19789_v54  ;;  %v19792_v37 = vand.u32 4294901760, %v20245_v11  ;;  %v12875_v62 = vpack.c.bf16 %v2093_v58, %v2081_v38  ;;  %v20247_v1 = vld [vmem:[#allocation75_spill] sm:$0xff]  ;;  %v20248_v9 = vld [vmem:[#allocation77_spill] sm:$0xff]  ;;  %1350 = vmatprep.mubr.f32.mxu1 %v20067_v14  ;;  %v20249_v38 = vld [vmem:[#allocation78_spill] sm:$0xff] }
  0x90   :  { %12672 = vmatprep.subr.bf16.mxu1 %v15602_v35  ;;  %v1250_v29 = vand.u32 4294901760, %v1249_v40  ;;  %v19794_v46 = vand.u32 4294901760, %v20246_v31  ;;  %v19795_v53 = vand.u32 4294901760, %v20247_v1  ;;  %v2104_v12 = vsub.f32 %v20244_v10, %v19793_v61 }
  0x91   :  { %v1262_v63 = vand.u32 4294901760, %v1261_v24  ;;  %v2116_v54 = vsub.f32 %v20245_v11, %v19792_v37  ;;  %v19797_v47 = vand.u32 4294901760, %v20248_v9  ;;  %v19801_v58 = vand.u32 4294901760, %v20249_v38  ;;  %12866 = vmatpush1.bf16.msra.mxu0 %v15643_v39 }
  0x92   :  { %v1255_v35 = vsub.f32 %v20246_v31, %v19794_v46  ;;  %v1267_v34 = vsub.f32 %v20247_v1, %v19795_v53  ;;  %v12685_v24 = vpack.c.bf16 %v1244_v41, %v1232_v2  ;;  %v12877_v37 = vpack.c.bf16 %v2099_v8, %v2087_v7  ;;  %12868 = vmatprep.subr.bf16.mxu0 %v15658_v48  ;;  %v20251_v2 = vld [vmem:[#allocation14_spill] sm:$0xff]  ;;  %v20252_v1 = vld [vmem:[#allocation80_spill] sm:$0xff]  ;;  %v20253_v48 = vld [vmem:[#allocation81_spill] sm:$0xff] }
  0x93   :  { %12674 = vmatpush1.bf16.msra.mxu1 %v15641_v20  ;;  %v2110_v61 = vsub.f32 %v20248_v9, %v19797_v47  ;;  %v12687_v46 = vpack.c.bf16 %v1262_v63, %v1250_v29  ;;  %v2105_v53 = vand.u32 4294901760, %v2104_v12  ;;  %v2122_v40 = vsub.f32 %v20249_v38, %v19801_v58  ;;  %v20254_v12 = vld [vmem:[#allocation83_spill] sm:$0xff] }
  0x94   :  { %12676 = vmatprep.subr.bf16.mxu1 %v15645_v36  ;;  %v20250_v20 = vand.u32 4294901760, %v15428_v5  ;;  %v2117_v41 = vand.u32 4294901760, %v2116_v54  ;;  %v1256_v7 = vand.u32 4294901760, %v1255_v35  ;;  %v19800_v8 = vand.u32 4294901760, %v20251_v2 }
  0x95   :  { %v19802_v47 = vand.u32 4294901760, %v20252_v1  ;;  %v1268_v9 = vand.u32 4294901760, %v1267_v34  ;;  %v2111_v36 = vand.u32 4294901760, %v2110_v61  ;;  %v2123_v31 = vand.u32 4294901760, %v2122_v40  ;;  %12870 = vmatpush1.bf16.msra.mxu0 %v15683_v43 }
  0x96   :  { %v1273_v39 = vsub.f32 %v15428_v5, %v20250_v20  ;;  %v19803_v29 = vand.u32 4294901760, %v20253_v48  ;;  %v1285_v63 = vsub.f32 %v20251_v2, %v19800_v8  ;;  %v19804_v35 = vand.u32 4294901760, %v20254_v12  ;;  %v20255_v20 = vld [vmem:[#allocation84_spill] sm:$0xff]  ;;  %12872 = vmatprep.subr.bf16.mxu0 %v15711_v44 }
  0x97   :  { %12678 = vmatpush1.bf16.msra.mxu1 %v15681_v56  ;;  %v2128_v54 = vsub.f32 %v20252_v1, %v19802_v47  ;;  %v19806_v34 = vand.u32 4294901760, %v20255_v20  ;;  %v19807_v43 = vand.u32 4294901760, %v15472_v55  ;;  %v19810_v40 = vand.u32 4294901760, %v15474_v19 }
  0x98   :  { %12680 = vmatprep.subr.bf16.mxu1 %v15685_v42  ;;  %v1274_v61 = vand.u32 4294901760, %v1273_v39  ;;  %v2140_v56 = vsub.f32 %v20253_v48, %v19803_v29  ;;  %v1286_v8 = vand.u32 4294901760, %v1285_v63  ;;  %v1279_v47 = vsub.f32 %v20254_v12, %v19804_v35 }
  0x99   :  { %v2129_v58 = vand.u32 4294901760, %v2128_v54  ;;  %v1291_v42 = vsub.f32 %v20255_v20, %v19806_v34  ;;  %v2134_v39 = vsub.f32 %v15472_v55, %v19807_v43  ;;  %v2146_v29 = vsub.f32 %v15474_v19, %v19810_v40  ;;  %12874 = vmatpush1.bf16.msra.mxu0 %v15737_v25 }
  0x9a   :  { %v2141_v44 = vand.u32 4294901760, %v2140_v56  ;;  %v19820_v63 = vand.u32 4294901760, %v15482_v22  ;;  %v12879_v54 = vpack.c.bf16 %v2117_v41, %v2105_v53  ;;  %v12689_v35 = vpack.c.bf16 %v1268_v9, %v1256_v7  ;;  %12876 = vmatprep.subr.bf16.mxu0 %v12875_v62  ;;  %v20256_v62 = vld [vmem:[#allocation93_spill] sm:$0xff] }
  0x9b   :  { %12682 = vmatpush1.bf16.msra.mxu1 %v15735_v3  ;;  %v12881_v12 = vpack.c.bf16 %v2123_v31, %v2111_v36  ;;  %v19819_v34 = vand.u32 4294901760, %v15485_v30  ;;  %v12691_v56 = vpack.c.bf16 %v1286_v8, %v1274_v61  ;;  %v1280_v43 = vand.u32 4294901760, %v1279_v47 }
  0x9c   :  { %12684 = vmatprep.subr.bf16.mxu1 %v15739_v57  ;;  %v1292_v55 = vand.u32 4294901760, %v1291_v42  ;;  %v1297_v40 = vsub.f32 %v15482_v22, %v19820_v63  ;;  %v12883_v19 = vpack.c.bf16 %v2141_v44, %v2129_v58  ;;  %v19818_v25 = vand.u32 4294901760, %v15489_v59  ;;  %v20272_v63 = vld [vmem:[#allocation53_spill] sm:$0xff] }
  0x9d   :  { %v1309_v3 = vsub.f32 %v15485_v30, %v19819_v34  ;;  %v19815_v9 = vand.u32 4294901760, %v15491_v21  ;;  %v2135_v53 = vand.u32 4294901760, %v2134_v39  ;;  %v2147_v31 = vand.u32 4294901760, %v2146_v29  ;;  %12878 = vmatpush1.bf16.msra.mxu0 %v12877_v37 }
  0x9e   :  { %v19813_v57 = vand.u32 4294901760, %v15499_v17  ;;  %v19814_v47 = vand.u32 4294901760, %v20256_v62  ;;  %v1298_v41 = vand.u32 4294901760, %v1297_v40  ;;  %v2152_v58 = vsub.f32 %v15489_v59, %v19818_v25  ;;  %12880 = vmatprep.subr.bf16.mxu0 %v12879_v54  ;;  %v20271_v25 = vld [vmem:[#allocation6_spill] sm:$0xff] }
  0x9f   :  { %12686 = vmatpush1.bf16.msra.mxu1 %v12685_v24  ;;  %v2164_v7 = vsub.f32 %v15491_v21, %v19815_v9  ;;  %v19816_v8 = vand.u32 4294901760, %v15545_v50  ;;  %v1310_v36 = vand.u32 4294901760, %v1309_v3  ;;  %v19817_v24 = vand.u32 4294901760, %v15547_v16 }
  0xa0   :  { %12688 = vmatprep.subr.bf16.mxu1 %v12687_v46  ;;  %v1303_v29 = vsub.f32 %v15499_v17, %v19813_v57  ;;  %v1315_v37 = vsub.f32 %v20256_v62, %v19814_v47  ;;  %v2153_v61 = vand.u32 4294901760, %v2152_v58  ;;  %v12693_v44 = vpack.c.bf16 %v1292_v55, %v1280_v43  ;;  %v20257_v55 = vld [vmem:[#allocation23_spill] sm:$0xff]  ;;  %v20258_v43 = vld [vmem:[#allocation24_spill] sm:$0xff] }
  0xa1   :  { %v2165_v40 = vand.u32 4294901760, %v2164_v7  ;;  %v2158_v42 = vsub.f32 %v15545_v50, %v19816_v8  ;;  %v2170_v46 = vsub.f32 %v15547_v16, %v19817_v24  ;;  %12882 = vmatpush1.bf16.msra.mxu0 %v12881_v12  ;;  %v12885_v39 = vpack.c.bf16 %v2147_v31, %v2135_v53  ;;  %v20260_v12 = vld [vmem:[#allocation27_spill] sm:$0xff]  ;;  %v20261_v31 = vld [vmem:[#allocation29_spill] sm:$0xff]  ;;  %v20274_v62 = vld [vmem:[#allocation56_spill] sm:$0xff] }
  0xa2   :  { %v1304_v54 = vand.u32 4294901760, %v1303_v29  ;;  %v1316_v3 = vand.u32 4294901760, %v1315_v37  ;;  %12884 = vmatprep.subr.bf16.mxu0 %v12883_v19  ;;  %v12695_v47 = vpack.c.bf16 %v1310_v36, %v1298_v41  ;;  %v12699_v24 = vpack.c.bf16 %v20258_v43, %v20257_v55  ;;  %v20263_v19 = vld [vmem:[#allocation32_spill] sm:$0xff]  ;;  %v20264_v36 = vld [vmem:[#allocation34_spill] sm:$0xff]  ;;  %v20265_v37 = vld [vmem:[#allocation35_spill] sm:$0xff] }
  0xa3   :  { %12690 = vmatpush1.bf16.msra.mxu1 %v12689_v35  ;;  %v2159_v57 = vand.u32 4294901760, %v2158_v42  ;;  %v12887_v58 = vpack.c.bf16 %v2165_v40, %v2153_v61  ;;  %v2171_v7 = vand.u32 4294901760, %v2170_v46  ;;  %v20259_v35 = vld [vmem:[#allocation26_spill] sm:$0xff]  ;;  %v12701_v29 = vpack.c.bf16 %v15103_v6, %v20261_v31  ;;  %v20268_v46 = vld [vmem:[#allocation4_spill] sm:$0xff]  ;;  %v20273_v50 = vld [vmem:[#allocation55_spill] sm:$0xff] }
  0xa4   :  { %12692 = vmatprep.subr.bf16.mxu1 %v12691_v56  ;;  %v12697_v9 = vpack.c.bf16 %v1316_v3, %v1304_v54  ;;  %v12891_v53 = vpack.c.bf16 %v20260_v12, %v20259_v35  ;;  %v20262_v56 = vld [vmem:[#allocation31_spill] sm:$0xff]  ;;  %v12703_v61 = vpack.c.bf16 %v20265_v37, %v20264_v36  ;;  %v20266_v40 = vld [vmem:[#allocation42_spill] sm:$0xff]  ;;  %v12901_v34 = vpack.c.bf16 %v20271_v25, %v20221_v27 }
  0xa5   :  { %12886 = vmatpush1.bf16.msra.mxu0 %v12885_v39  ;;  %v12889_v8 = vpack.c.bf16 %v2171_v7, %v2159_v57  ;;  %v12893_v41 = vpack.c.bf16 %v20263_v19, %v20262_v56  ;;  %v12895_v57 = vpack.c.bf16 %v20209_v15, %v20208_v32  ;;  %v12897_v42 = vpack.c.bf16 %v15182_v0, %v20266_v40  ;;  %v20269_v54 = vld [vmem:[#allocation46_spill] sm:$0xff] }
  0xa6   :  { %12888 = vmatprep.subr.bf16.mxu0 %v12887_v58  ;;  %v12899_v3 = vpack.c.bf16 %v20269_v54, %v20217_v49  ;;  %v20270_v58 = vld [vmem:[#allocation49_spill] sm:$0xff]  ;;  %v12711_v16 = vpack.c.bf16 %v20272_v63, %v20224_v28  ;;  %v12903_v17 = vpack.c.bf16 %v20274_v62, %v20273_v50  ;;  %v20277_v59 = vand.u32 4294901760, %v20259_v35 }
  0xa7   :  { %12694 = vmatpush1.bf16.msra.mxu1 %v12693_v44  ;;  %v20267_v44 = vld [vmem:[#allocation43_spill] sm:$0xff]  ;;  %v12709_v7 = vpack.c.bf16 %v20270_v58, %v20218_v33  ;;  %v20278_v30 = vand.u32 4294901760, %v20260_v12  ;;  %v20281_v48 = vand.u32 4294901760, %v20262_v56  ;;  %v20284_v35 = vand.u32 4294901760, %v20265_v37 }
  0xa8   :  { %12696 = vmatprep.subr.bf16.mxu1 %v12695_v47  ;;  %v12705_v47 = vpack.c.bf16 %v20211_v26, %v20210_v23  ;;  %v12707_v39 = vpack.c.bf16 %v20268_v46, %v20267_v44 }
  0xa9   :  { %12890 = vmatpush1.bf16.msra.mxu0 %v12889_v8  ;;  %v20276_v8 = vand.u32 4294901760, %v20258_v43  ;;  %v15893_v22 = vpack.c.bf16 %v20278_v30, %v20277_v59  ;;  %v20283_v43 = vand.u32 4294901760, %v20264_v36  ;;  %v20285_v30 = vld [vmem:[#allocation16_spill] sm:$0xff]  ;;  %v20287_v59 = vand.u32 4294901760, %v20209_v15 }
  0xaa   :  { %12892 = vmatprep.subr.bf16.mxu0 %v12891_v53  ;;  %v20280_v53 = vand.u32 4294901760, %v15103_v6  ;;  %v20286_v6 = vand.u32 4294901760, %v20208_v32  ;;  %v20291_v36 = vand.u32 4294901760, %v15182_v0  ;;  %v20292_v32 = vand.u32 4294901760, %v20267_v44 }
  0xab   :  { %12698 = vmatpush1.bf16.msra.mxu1 %v12697_v9  ;;  %v20275_v9 = vand.u32 4294901760, %v20257_v55  ;;  %v20282_v55 = vand.u32 4294901760, %v20263_v19  ;;  %v20290_v19 = vand.u32 4294901760, %v20266_v40  ;;  %v20293_v15 = vand.u32 4294901760, %v20268_v46 }
  0xac   :  { %12700 = vmatprep.subr.bf16.mxu1 %v12699_v24  ;;  %v20279_v24 = vand.u32 4294901760, %v20261_v31  ;;  %2207 = vmatmul.mubr.f32.vlgmr.msra.gmra.mrb[2].mxu0 %v20285_v30  ;;  %v15919_v12 = vpack.c.bf16 %v20287_v59, %v20286_v6  ;;  %v20288_v31 = vand.u32 4294901760, %v20210_v23  ;;  %v20294_v23 = vand.u32 4294901760, %v20217_v49 }
  0xad   :  { %v15887_v21 = vpack.c.bf16 %v20276_v8, %v20275_v9  ;;  %v15905_v1 = vpack.c.bf16 %v20282_v55, %v20281_v48  ;;  %v15911_v9 = vpack.c.bf16 %v20284_v35, %v20283_v43  ;;  %v20289_v48 = vand.u32 4294901760, %v20211_v26  ;;  %12894 = vmatpush1.bf16.msra.mxu0 %v12893_v41  ;;  %2341 = vmatprep.mubr.f32.mxu0 %v20067_v14 }
  0xae   :  { %v15899_v20 = vpack.c.bf16 %v20280_v53, %v20279_v24  ;;  %1352 = vmatmul.mubr.f32.vlgmr.msra.gmra.mrb[2].mxu1 %v20285_v30  ;;  %v15931_v37 = vpack.c.bf16 %v20291_v36, %v20290_v19  ;;  %v15937_v8 = vpack.c.bf16 %v20293_v15, %v20292_v32  ;;  %v20295_v26 = vand.u32 4294901760, %v20269_v54  ;;  %12896 = vmatprep.subr.bf16.mxu0 %v12895_v57  ;;  %v20321_v19 = vld [vmem:[#allocation9_spill] sm:$0xff] }
  0xaf   :  { %v15925_v56 = vpack.c.bf16 %v20289_v48, %v20288_v31  ;;  %12702 = vmatpush1.bf16.msra.mxu1 %v12701_v29  ;;  %v20296_v40 = vand.u32 4294901760, %v20218_v33  ;;  %v20297_v0 = vand.u32 4294901760, %v20270_v58  ;;  %v20298_v29 = vand.u32 4294901760, %v20221_v27  ;;  %1486 = vmatprep.mubr.f32.mxu1 %v20067_v14  ;;  %v20323_v32 = vld [vmem:[#allocation65_spill] sm:$0xff] }
  0xb0   :  { %v15943_v24 = vpack.c.bf16 %v20295_v26, %v20294_v23  ;;  %12704 = vmatprep.subr.bf16.mxu1 %v12703_v61  ;;  %v20299_v41 = vand.u32 4294901760, %v20271_v25  ;;  %v20301_v49 = vand.u32 4294901760, %v20224_v28  ;;  %v20302_v46 = vand.u32 4294901760, %v20272_v63  ;;  %v20308_v25 = vld [vmem:[#allocation7_spill] sm:$0xff] }
  0xb1   :  { %v15949_v53 = vpack.c.bf16 %v20297_v0, %v20296_v40  ;;  %v20304_v33 = vand.u32 4294901760, %v20273_v50  ;;  %v20305_v58 = vand.u32 4294901760, %v20274_v62  ;;  %v20307_v27 = vand.u32 4294901760, %v20228_v45  ;;  %v20314_v50 = vld [vmem:[#allocation62_spill] sm:$0xff]  ;;  %v20326_v26 = vld [vmem:[#allocation67_spill] sm:$0xff]  ;;  %12898 = vmatpush1.bf16.msra.mxu0 %v12897_v42 }
  0xb2   :  { %v15955_v44 = vpack.c.bf16 %v20299_v41, %v20298_v29  ;;  %v15961_v54 = vpack.c.bf16 %v20302_v46, %v20301_v49  ;;  %v20309_v61 = vand.u32 4294901760, %v20308_v25  ;;  %v20311_v28 = vand.u32 4294901760, %v20230_v18  ;;  %v20330_v41 = vld [vmem:[#allocation70_spill] sm:$0xff]  ;;  %v20332_v46 = vld [vmem:[#allocation71_spill] sm:$0xff]  ;;  %12900 = vmatprep.subr.bf16.mxu0 %v12899_v3 }
  0xb3   :  { %v15967_v55 = vpack.c.bf16 %v20305_v58, %v20304_v33  ;;  %v20312_v63 = vand.u32 4294901760, %v20231_v52  ;;  %v20315_v62 = vand.u32 4294901760, %v20314_v50  ;;  %v20316_v35 = vand.u32 4294901760, %v15320_v51  ;;  %12706 = vmatpush1.bf16.msra.mxu1 %v12705_v47 }
  0xb4   :  { %20300 = vst [vmem:[#allocation37_spill] sm:$0xff] %v15955_v44  ;;  %20303 = vst [vmem:[#allocation2_spill] sm:$0xff] %v15961_v54  ;;  %v15975_v57 = vpack.c.bf16 %v20309_v61, %v20307_v27  ;;  %v20318_v59 = vand.u32 4294901760, %v20234_v60  ;;  %v20319_v31 = vand.u32 4294901760, %v15334_v13  ;;  %v20322_v36 = vand.u32 4294901760, %v20321_v19  ;;  %12708 = vmatprep.subr.bf16.mxu1 %v12707_v39  ;;  %v20360_v39 = vld [vmem:[#allocation85_spill] sm:$0xff] }
  0xb5   :  { %20306 = vst [vmem:[#allocation39_spill] sm:$0xff] %v15967_v55  ;;  %v15981_v43 = vpack.c.bf16 %v20312_v63, %v20311_v28  ;;  %v15987_v6 = vpack.c.bf16 %v20316_v35, %v20315_v62  ;;  %v20324_v15 = vand.u32 4294901760, %v20323_v32  ;;  %v20327_v40 = vand.u32 4294901760, %v20326_v26  ;;  %v20338_v63 = vld [vmem:[#allocation74_spill] sm:$0xff]  ;;  %v20340_v35 = vld [vmem:[#allocation75_spill] sm:$0xff]  ;;  %12902 = vmatpush1.bf16.msra.mxu0 %v12901_v34 }
  0xb6   :  { %20310 = vst [vmem:[#allocation40_spill] sm:$0xff] %v15975_v57  ;;  %v15993_v48 = vpack.c.bf16 %v20319_v31, %v20318_v59  ;;  %v20328_v0 = vand.u32 4294901760, %v20238_v4  ;;  %v20331_v49 = vand.u32 4294901760, %v20330_v41  ;;  %v20333_v33 = vand.u32 4294901760, %v20332_v46  ;;  %12904 = vmatprep.subr.bf16.mxu0 %v12903_v17 }
  0xb7   :  { %20313 = vst [vmem:[#allocation45_spill] sm:$0xff] %v15981_v43  ;;  %20317 = vst [vmem:[#allocation48_spill] sm:$0xff] %v15987_v6  ;;  %v15999_v23 = vpack.c.bf16 %v20324_v15, %v20322_v36  ;;  %v20335_v27 = vand.u32 4294901760, %v20244_v10  ;;  %v20336_v61 = vand.u32 4294901760, %v20245_v11  ;;  %v20339_v62 = vand.u32 4294901760, %v20338_v63  ;;  %v20343_v36 = vld [vmem:[#allocation77_spill] sm:$0xff]  ;;  %12710 = vmatpush1.bf16.msra.mxu1 %v12709_v7 }
  0xb8   :  { %20320 = vst [vmem:[#allocation50_spill] sm:$0xff] %v15993_v48  ;;  %v16005_v29 = vpack.c.bf16 %v20328_v0, %v20327_v40  ;;  %v16011_v58 = vpack.c.bf16 %v20333_v33, %v20331_v49  ;;  %v20341_v59 = vand.u32 4294901760, %v20340_v35  ;;  %v20344_v15 = vand.u32 4294901760, %v20343_v36  ;;  %v20350_v33 = vld [vmem:[#allocation80_spill] sm:$0xff]  ;;  %12712 = vmatprep.subr.bf16.mxu1 %v12711_v16 }
  0xb9   :  { %20325 = vst [vmem:[#allocation52_spill] sm:$0xff] %v15999_v23  ;;  %v16017_v28 = vpack.c.bf16 %v20336_v61, %v20335_v27  ;;  %v20345_v40 = vand.u32 4294901760, %v20249_v38  ;;  %v20347_v47 = vand.u32 4294901760, %v15428_v5  ;;  %v20348_v42 = vand.u32 4294901760, %v20251_v2  ;;  %v20352_v61 = vld [vmem:[#allocation81_spill] sm:$0xff] }
  0xba   :  { %20329 = vst [vmem:[#allocation58_spill] sm:$0xff] %v16005_v29  ;;  %20334 = vst [vmem:[#allocation59_spill] sm:$0xff] %v16011_v58  ;;  %v16023_v31 = vpack.c.bf16 %v20341_v59, %v20339_v62  ;;  %v20351_v27 = vand.u32 4294901760, %v20350_v33  ;;  %v20353_v30 = vand.u32 4294901760, %v20352_v61  ;;  %v20355_v59 = vld [vmem:[#allocation83_spill] sm:$0xff]  ;;  %v20361_v3 = vand.u32 4294901760, %v20360_v39 }
  0xbb   :  { %20337 = vst [vmem:[#allocation60_spill] sm:$0xff] %v16017_v28  ;;  %v16029_v0 = vpack.c.bf16 %v20345_v40, %v20344_v15  ;;  %v16035_v49 = vpack.c.bf16 %v20348_v42, %v20347_v47  ;;  %v20357_v28 = vld [vmem:[#allocation84_spill] sm:$0xff]  ;;  %v20362_v40 = vld [vmem:[#allocation86_spill] sm:$0xff]  ;;  %v20365_v47 = vld [vmem:[#allocation87_spill] sm:$0xff]  ;;  %v12717_v7 = vpack.c.bf16 %v20323_v32, %v20321_v19  ;;  %v12909_v34 = vpack.c.bf16 %v20238_v4, %v20326_v26 }
  0xbc   :  { %20342 = vst [vmem:[#allocation64_spill] sm:$0xff] %v16023_v31  ;;  %v16041_v62 = vpack.c.bf16 %v20353_v30, %v20351_v27  ;;  %v20356_v31 = vand.u32 4294901760, %v20355_v59  ;;  %v20358_v58 = vand.u32 4294901760, %v20357_v28  ;;  %v20366_v42 = vand.u32 4294901760, %v20365_v47  ;;  %v20369_v30 = vld [vmem:[#allocation90_spill] sm:$0xff]  ;;  %v20386_v19 = vld [vmem:[#allocation33_spill] sm:$0xff] }
  0xbd   :  { %20346 = vst [vmem:[#allocation68_spill] sm:$0xff] %v16029_v0  ;;  %20349 = vst [vmem:[#allocation12_spill] sm:$0xff] %v16035_v49  ;;  %v20363_v0 = vand.u32 4294901760, %v20362_v40  ;;  %v20367_v49 = vld [vmem:[#allocation88_spill] sm:$0xff]  ;;  %v20370_v27 = vand.u32 4294901760, %v20369_v30  ;;  %v12723_v4 = vpack.c.bf16 %v20251_v2, %v15428_v5  ;;  %v12915_v17 = vpack.c.bf16 %v20352_v61, %v20350_v33  ;;  %v20382_v2 = vld [vmem:[#allocation25_spill] sm:$0xff] }
  0xbe   :  { %20354 = vst [vmem:[#allocation72_spill] sm:$0xff] %v16041_v62  ;;  %v16047_v15 = vpack.c.bf16 %v20358_v58, %v20356_v31  ;;  %v20368_v23 = vand.u32 4294901760, %v20367_v49  ;;  %v20371_v62 = vld [vmem:[#allocation91_spill] sm:$0xff]  ;;  %v20373_v58 = vld [vmem:[#allocation92_spill] sm:$0xff]  ;;  %v12725_v16 = vpack.c.bf16 %v20357_v28, %v20355_v59  ;;  %v20388_v26 = vld [vmem:[#allocation38_spill] sm:$0xff] }
  0xbf   :  { %v16053_v29 = vpack.c.bf16 %v20363_v0, %v20361_v3  ;;  %v20372_v6 = vand.u32 4294901760, %v20371_v62  ;;  %v20374_v31 = vand.u32 4294901760, %v20373_v58  ;;  %v20377_v0 = vld [vmem:[#allocation95_spill] sm:$0xff]  ;;  %v20387_v32 = vld [vmem:[#allocation36_spill] sm:$0xff]  ;;  %v20398_v61 = vld [vmem:[#allocation61_spill] sm:$0xff] }
  0xc0   :  { %20359 = vst [vmem:[#allocation78_spill] sm:$0xff] %v16047_v15  ;;  %v16059_v48 = vpack.c.bf16 %v20368_v23, %v20366_v42  ;;  %v20375_v15 = vld [vmem:[#allocation93_spill] sm:$0xff]  ;;  %v20378_v3 = vand.u32 4294901760, %v20377_v0  ;;  %v12713_v23 = vpack.c.bf16 %v20308_v25, %v20228_v45  ;;  %v12907_v42 = vpack.c.bf16 %v15334_v13, %v20234_v60  ;;  %v20384_v25 = vld [vmem:[#allocation28_spill] sm:$0xff]  ;;  %v20392_v28 = vld [vmem:[#allocation47_spill] sm:$0xff] }
  0xc1   :  { %20364 = vst [vmem:[#allocation14_spill] sm:$0xff] %v16053_v29  ;;  %v16065_v43 = vpack.c.bf16 %v20372_v6, %v20370_v27  ;;  %v20376_v57 = vand.u32 4294901760, %v20375_v15  ;;  %v20379_v29 = vld [vmem:[#allocation96_spill] sm:$0xff]  ;;  %v12905_v6 = vpack.c.bf16 %v20231_v52, %v20230_v18  ;;  %v12719_v45 = vpack.c.bf16 %v20332_v46, %v20330_v41  ;;  %v20390_v41 = vld [vmem:[#allocation3_spill] sm:$0xff]  ;;  %v20400_v59 = vld [vmem:[#allocation10_spill] sm:$0xff] }
  0xc2   :  { %v20380_v54 = vand.u32 4294901760, %v20379_v29  ;;  %12714 = vmatpush1.bf16.msra.mxu1 %v12713_v23  ;;  %v12911_v52 = vpack.c.bf16 %v20245_v11, %v20244_v10  ;;  %v12913_v13 = vpack.c.bf16 %v20249_v38, %v20343_v36  ;;  %v12917_v18 = vpack.c.bf16 %v20362_v40, %v20360_v39  ;;  %v20381_v38 = vld [vmem:[#allocation22_spill] sm:$0xff]  ;;  %v20391_v46 = vld [vmem:[#allocation44_spill] sm:$0xff]  ;;  %v20402_v39 = vld [vmem:[#allocation69_spill] sm:$0xff] }
  0xc3   :  { %v16071_v55 = vpack.c.bf16 %v20376_v57, %v20374_v31  ;;  %v12715_v57 = vpack.c.bf16 %v15320_v51, %v20314_v50  ;;  %12906 = vmatpush1.bf16.msra.mxu0 %v12905_v6  ;;  %v12721_v51 = vpack.c.bf16 %v20340_v35, %v20338_v63  ;;  %v12727_v60 = vpack.c.bf16 %v20367_v49, %v20365_v47  ;;  %v20385_v50 = vld [vmem:[#allocation30_spill] sm:$0xff]  ;;  %v20393_v63 = vld [vmem:[#allocation5_spill] sm:$0xff]  ;;  %v20394_v35 = vld [vmem:[#allocation51_spill] sm:$0xff] }
  0xc4   :  { %v16077_v44 = vpack.c.bf16 %v20380_v54, %v20378_v3  ;;  %12908 = vmatprep.subr.bf16.mxu0 %v12907_v42  ;;  %v12919_v10 = vpack.c.bf16 %v20371_v62, %v20369_v30  ;;  %v12729_v5 = vpack.c.bf16 %v20375_v15, %v20373_v58  ;;  %v12921_v11 = vpack.c.bf16 %v20379_v29, %v20377_v0  ;;  %v20383_v54 = vld [vmem:[#allocation19_spill] sm:$0xff]  ;;  %v20389_v29 = vld [vmem:[#allocation41_spill] sm:$0xff]  ;;  %v20395_v36 = vld [vmem:[#allocation54_spill] sm:$0xff] }
  0xc5   :  { %12716 = vmatprep.subr.bf16.mxu1 %v12715_v57  ;;  %v20396_v49 = vld [vmem:[#allocation57_spill] sm:$0xff]  ;;  %v20397_v33 = vld [vmem:[#allocation8_spill] sm:$0xff]  ;;  %v20399_v62 = vld [vmem:[#allocation63_spill] sm:$0xff] }
  0xc6   :  { %12718 = vmatpush1.bf16.msra.mxu1 %v12717_v7  ;;  %v20401_v15 = vld [vmem:[#allocation66_spill] sm:$0xff]  ;;  %v20403_v40 = vld [vmem:[#allocation11_spill] sm:$0xff]  ;;  %v20404_v47 = vld [vmem:[#allocation73_spill] sm:$0xff] }
  0xc7   :  { %12910 = vmatpush1.bf16.msra.mxu0 %v12909_v34  ;;  %12720 = vmatprep.subr.bf16.mxu1 %v12719_v45  ;;  %v20405_v30 = vld [vmem:[#allocation76_spill] sm:$0xff]  ;;  %v20406_v27 = vld [vmem:[#allocation13_spill] sm:$0xff]  ;;  %v20407_v58 = vld [vmem:[#allocation79_spill] sm:$0xff] }
  0xc8   :  { %12912 = vmatprep.subr.bf16.mxu0 %v12911_v52  ;;  %v20408_v31 = vld [vmem:[#allocation82_spill] sm:$0xff]  ;;  %v20409_v0 = vld [vmem:[#allocation15_spill] sm:$0xff]  ;;  %v20410_v3 = vld [vmem:[#allocation17_spill] sm:$0xff] }
  0xc9   :  { %v20411_v23 = vld [vmem:[#allocation89_spill] sm:$0xff]  ;;  %v20412_v6 = vld [vmem:[#allocation18_spill] sm:$0xff]  ;;  %v20414_v42 = vld [vmem:[#allocation20_spill] sm:$0xff] }
  0xca   :  { %12722 = vmatpush1.bf16.msra.mxu1 %v12721_v51  ;;  %v20413_v57 = vld [vmem:[#allocation94_spill] sm:$0xff]  ;;  %v20426_v7 = vld [vmem:[#allocation64_spill] sm:$0xff] }
  0xcb   :  { %12914 = vmatpush1.bf16.msra.mxu0 %v12913_v13  ;;  %12724 = vmatprep.subr.bf16.mxu1 %v12723_v4  ;;  %v20427_v34 = vld [vmem:[#allocation68_spill] sm:$0xff]  ;;  %v20430_v51 = vld [vmem:[#allocation78_spill] sm:$0xff] }
  0xcc   :  { %12916 = vmatprep.subr.bf16.mxu0 %v12915_v17  ;;  %v20428_v45 = vld [vmem:[#allocation12_spill] sm:$0xff]  ;;  %v20431_v13 = vld [vmem:[#allocation14_spill] sm:$0xff] }
  0xcd   :  { %v20429_v52 = vld [vmem:[#allocation72_spill] sm:$0xff] }
  0xce   :  { %12726 = vmatpush1.bf16.msra.mxu1 %v12725_v16  ;;  %v20432_v4 = vld [vmem:[#allocation16_spill] sm:$0xff] }
  0xcf   :  { %12918 = vmatpush1.bf16.msra.mxu0 %v12917_v18  ;;  %12728 = vmatprep.subr.bf16.mxu1 %v12727_v60  ;;  %v41_v17 = vld [vmem:[%s19595_s1 + $0x30] sm:$0xff]  ;;  %v58_v18 = vld [vmem:[%s19595_s1 + $0xb8] sm:$0xff] }
  0xd0   :  { %12920 = vmatprep.subr.bf16.mxu0 %v12919_v10  ;;  %v49_v16 = vld [vmem:[%s19595_s1 + $0x70] sm:$0xff]  ;;  %v66_v60 = vld [vmem:[%s19595_s1 + $0xf8] sm:$0xff]  ;;  %v2730_v10 = vand.u32 4294901760, %v41_v17 }
  0xd2   :  { %12730 = vmatpush1.bf16.msra.mxu1 %v12729_v5  ;;  %v2734_v5 = vand.u32 4294901760, %v49_v16 }
  0xd3   :  { %12922 = vmatpush1.bf16.msra.mxu0 %v12921_v11  ;;  %12732 = vmatprep.subr.bf16.mxu1 %v20381_v38 }
  0xd4   :  { %12924 = vmatprep.subr.bf16.mxu0 %v20382_v2 }
  0xd5   :  { %1489 = vmatmul.mubr.f32.vlgmr.msra.gmra.mrb[2].mxu1 %v20383_v54 }
  0xd6   :  { %2344 = vmatmul.mubr.f32.vlgmr.msra.gmra.mrb[2].mxu0 %v20383_v54  ;;  %12734 = vmatpush1.bf16.msra.mxu1 %v20384_v25 }
  0xd7   :  { %12926 = vmatpush1.bf16.msra.mxu0 %v20385_v50  ;;  %12736 = vmatprep.subr.bf16.mxu1 %v20386_v19 }
  0xd8   :  { %12928 = vmatprep.subr.bf16.mxu0 %v20387_v32  ;;  %1591 = vmatprep.mubr.f32.mxu1 %v20067_v14 }
  0xd9   :  { %2446 = vmatprep.mubr.f32.mxu0 %v20067_v14 }
  0xda   :  { %12738 = vmatpush1.bf16.msra.mxu1 %v20388_v26 }
  0xdb   :  { %12930 = vmatpush1.bf16.msra.mxu0 %v20389_v29  ;;  %12740 = vmatprep.subr.bf16.mxu1 %v20390_v41 }
  0xdc   :  { %12932 = vmatprep.subr.bf16.mxu0 %v20391_v46 }
  0xde   :  { %12742 = vmatpush1.bf16.msra.mxu1 %v20392_v28 }
  0xdf   :  { %12934 = vmatpush1.bf16.msra.mxu0 %v20393_v63  ;;  %12744 = vmatprep.subr.bf16.mxu1 %v20394_v35 }
  0xe0   :  { %12936 = vmatprep.subr.bf16.mxu0 %v20395_v36 }
  0xe2   :  { %12746 = vmatpush1.bf16.msra.mxu1 %v20396_v49 }
  0xe3   :  { %12938 = vmatpush1.bf16.msra.mxu0 %v20397_v33  ;;  %12748 = vmatprep.subr.bf16.mxu1 %v20398_v61 }
  0xe4   :  { %12940 = vmatprep.subr.bf16.mxu0 %v20399_v62 }
  0xe6   :  { %12750 = vmatpush1.bf16.msra.mxu1 %v20400_v59 }
  0xe7   :  { %12942 = vmatpush1.bf16.msra.mxu0 %v20401_v15  ;;  %12752 = vmatprep.subr.bf16.mxu1 %v20402_v39 }
  0xe8   :  { %12944 = vmatprep.subr.bf16.mxu0 %v20403_v40 }
  0xea   :  { %12754 = vmatpush1.bf16.msra.mxu1 %v20404_v47 }
  0xeb   :  { %12946 = vmatpush1.bf16.msra.mxu0 %v20405_v30  ;;  %12756 = vmatprep.subr.bf16.mxu1 %v20406_v27 }
  0xec   :  { %12948 = vmatprep.subr.bf16.mxu0 %v20407_v58 }
  0xee   :  { %12758 = vmatpush1.bf16.msra.mxu1 %v20408_v31 }
  0xef   :  { %12950 = vmatpush1.bf16.msra.mxu0 %v20409_v0  ;;  %12760 = vmatprep.subr.bf16.mxu1 %v20410_v3 }
  0xf0   :  { %12952 = vmatprep.subr.bf16.mxu0 %v20411_v23 }
  0xf2   :  { %12762 = vmatpush1.bf16.msra.mxu1 %v20412_v6 }
  0xf3   :  { %12954 = vmatpush1.bf16.msra.mxu0 %v20413_v57  ;;  %12764 = vmatprep.subr.bf16.mxu1 %v15887_v21  ;;  %v20416_v21 = vld [vmem:[#allocation2_spill] sm:$0xff] }
  0xf4   :  { %12956 = vmatprep.subr.bf16.mxu0 %v15893_v22  ;;  %v20415_v22 = vld [vmem:[#allocation37_spill] sm:$0xff] }
  0xf5   :  { %1595 = vmatmul.mubr.f32.vlgmr.msra.gmra.mrb[2].mxu1 %v20414_v42 }
  0xf6   :  { %2450 = vmatmul.mubr.f32.vlgmr.msra.gmra.mrb[2].mxu0 %v20414_v42  ;;  %12766 = vmatpush1.bf16.msra.mxu1 %v15899_v20  ;;  %v20418_v20 = vld [vmem:[#allocation40_spill] sm:$0xff] }
  0xf7   :  { %12958 = vmatpush1.bf16.msra.mxu0 %v15905_v1  ;;  %12768 = vmatprep.subr.bf16.mxu1 %v15911_v9  ;;  %v20417_v1 = vld [vmem:[#allocation39_spill] sm:$0xff]  ;;  %v20419_v9 = vld [vmem:[#allocation45_spill] sm:$0xff] }
  0xf8   :  { %12960 = vmatprep.subr.bf16.mxu0 %v15919_v12  ;;  %1761 = vmatprep.mubr.f32.mxu1 %v20067_v14  ;;  %v20420_v12 = vld [vmem:[#allocation48_spill] sm:$0xff] }
  0xf9   :  { %2616 = vmatprep.mubr.f32.mxu0 %v20067_v14 }
  0xfa   :  { %12770 = vmatpush1.bf16.msra.mxu1 %v15925_v56  ;;  %v20421_v56 = vld [vmem:[#allocation50_spill] sm:$0xff] }
  0xfb   :  { %12962 = vmatpush1.bf16.msra.mxu0 %v15931_v37  ;;  %12772 = vmatprep.subr.bf16.mxu1 %v15937_v8  ;;  %v20422_v37 = vld [vmem:[#allocation52_spill] sm:$0xff]  ;;  %v20423_v8 = vld [vmem:[#allocation58_spill] sm:$0xff] }
  0xfc   :  { %12964 = vmatprep.subr.bf16.mxu0 %v15943_v24  ;;  %v20424_v24 = vld [vmem:[#allocation59_spill] sm:$0xff] }
  0xfe   :  { %12774 = vmatpush1.bf16.msra.mxu1 %v15949_v53  ;;  %v20425_v53 = vld [vmem:[#allocation60_spill] sm:$0xff] }
  0xff   :  { %12966 = vmatpush1.bf16.msra.mxu0 %v20415_v22  ;;  %12776 = vmatprep.subr.bf16.mxu1 %v20416_v21  ;;  %v106_v21 = vld [vmem:[%s19595_s1 + $0x238] sm:$0xff] }
 0x100   :  { %12968 = vmatprep.subr.bf16.mxu0 %v20417_v1  ;;  %v114_v1 = vld [vmem:[%s19595_s1 + $0x278] sm:$0xff] }
 0x102   :  { %12778 = vmatpush1.bf16.msra.mxu1 %v20418_v20  ;;  %v105_v20 = vld [vmem:[%s19595_s1 + $0x230] sm:$0xff] }
 0x103   :  { %12970 = vmatpush1.bf16.msra.mxu0 %v20419_v9  ;;  %12780 = vmatprep.subr.bf16.mxu1 %v20420_v12 }
 0x104   :  { %12972 = vmatprep.subr.bf16.mxu0 %v20421_v56 }
 0x106   :  { %12782 = vmatpush1.bf16.msra.mxu1 %v20422_v37  ;;  %v113_v37 = vld [vmem:[%s19595_s1 + $0x270] sm:$0xff] }
 0x107   :  { %12974 = vmatpush1.bf16.msra.mxu0 %v20423_v8  ;;  %12784 = vmatprep.subr.bf16.mxu1 %v20424_v24  ;;  %v122_v8 = vld [vmem:[%s19595_s1 + $0x2b8] sm:$0xff] }
 0x108   :  { %12976 = vmatprep.subr.bf16.mxu0 %v20425_v53  ;;  %v130_v24 = vld [vmem:[%s19595_s1 + $0x2f8] sm:$0xff] }
 0x10a   :  { %12786 = vmatpush1.bf16.msra.mxu1 %v20426_v7 }
 0x10b   :  { %12978 = vmatpush1.bf16.msra.mxu0 %v20427_v34  ;;  %12788 = vmatprep.subr.bf16.mxu1 %v20428_v45 }
 0x10c   :  { %12980 = vmatprep.subr.bf16.mxu0 %v20429_v52 }
 0x10e   :  { %12790 = vmatpush1.bf16.msra.mxu1 %v20430_v51 }
 0x10f   :  { %12982 = vmatpush1.bf16.msra.mxu0 %v20431_v13  ;;  %12792 = vmatprep.subr.bf16.mxu1 %v16059_v48 }
 0x110   :  { %12984 = vmatprep.subr.bf16.mxu0 %v16065_v43 }
 0x112   :  { %12794 = vmatpush1.bf16.msra.mxu1 %v16071_v55  ;;  %v50_v55 = vld [vmem:[%s19595_s1 + $0x78] sm:$0xff] }
 0x113   :  { %12986 = vmatpush1.bf16.msra.mxu0 %v16077_v44  ;;  %12796 = vmatprep.subr.bf16.mxu1 %v20381_v38  ;;  %v42_v44 = vld [vmem:[%s19595_s1 + $0x38] sm:$0xff]  ;;  %v2732_v48 = vand.u32 4294901760, %v50_v55  ;;  %v2736_v38 = vand.u32 4294901760, %v58_v18 }
 0x114   :  { %12988 = vmatprep.subr.bf16.mxu0 %v20382_v2  ;;  %v2728_v43 = vand.u32 4294901760, %v42_v44  ;;  %v2740_v2 = vand.u32 4294901760, %v66_v60 }
 0x115   :  { %1763 = vmatmul.mubr.f32.vlgmr.msra.gmra.mrb[2].mxu1 %v20432_v4 }
 0x116   :  { %2618 = vmatmul.mubr.f32.vlgmr.msra.gmra.mrb[2].mxu0 %v20432_v4  ;;  %12798 = vmatpush1.bf16.msra.mxu1 %v20384_v25  ;;  %v16239_v11 = vpack.c.bf16 %v2732_v48, %v2728_v43  ;;  %v57_v25 = vld [vmem:[%s19595_s1 + $0xb0] sm:$0xff] }
 0x117   :  { %12990 = vmatpush1.bf16.msra.mxu0 %v20385_v50  ;;  %12800 = vmatprep.subr.bf16.mxu1 %v20386_v19  ;;  %v65_v50 = vld [vmem:[%s19595_s1 + $0xf0] sm:$0xff]  ;;  %v74_v19 = vld [vmem:[%s19595_s1 + $0x138] sm:$0xff] }
 0x118   :  { %12992 = vmatprep.subr.bf16.mxu0 %v20387_v32  ;;  %1865 = vmatprep.mubr.f32.mxu1 %v20067_v14  ;;  %v82_v32 = vld [vmem:[%s19595_s1 + $0x178] sm:$0xff] }
 0x119   :  { %2720 = vmatprep.mubr.f32.mxu0 %v20067_v14 }
 0x11a   :  { %12802 = vmatpush1.bf16.msra.mxu1 %v20388_v26  ;;  %v16255_v26 = vpack.c.bf16 %v2734_v5, %v2730_v10 }
 0x11b   :  { %12994 = vmatpush1.bf16.msra.mxu0 %v20389_v29  ;;  %12804 = vmatprep.subr.bf16.mxu1 %v20390_v41  ;;  %v2738_v29 = vand.u32 4294901760, %v57_v25  ;;  %v2742_v41 = vand.u32 4294901760, %v65_v50 }
 0x11c   :  { %12996 = vmatprep.subr.bf16.mxu0 %v20391_v46  ;;  %v16258_v46 = vpack.c.bf16 %v2740_v2, %v2736_v38 }
 0x11d   :  { %v16301_v22 = vsub.f32 %v65_v50, %v2742_v41 }
 0x11e   :  { %12806 = vmatpush1.bf16.msra.mxu1 %v20392_v28  ;;  %v2744_v28 = vand.u32 4294901760, %v74_v19 }
 0x11f   :  { %12998 = vmatpush1.bf16.msra.mxu0 %v20393_v63  ;;  %12808 = vmatprep.subr.bf16.mxu1 %v20394_v35  ;;  %v2748_v63 = vand.u32 4294901760, %v82_v32  ;;  %v73_v35 = vld [vmem:[%s19595_s1 + $0x130] sm:$0xff] }
 0x120   :  { %13000 = vmatprep.subr.bf16.mxu0 %v20395_v36  ;;  %v81_v36 = vld [vmem:[%s19595_s1 + $0x170] sm:$0xff]  ;;  %v16312_v9 = vsub.f32 %v74_v19, %v2744_v28 }
 0x121   :  { %v16324_v7 = vsub.f32 %v82_v32, %v2748_v63 }
 0x122   :  { %12810 = vmatpush1.bf16.msra.mxu1 %v20396_v49  ;;  %v90_v49 = vld [vmem:[%s19595_s1 + $0x1b8] sm:$0xff] }
 0x123   :  { %13002 = vmatpush1.bf16.msra.mxu0 %v20397_v33  ;;  %12812 = vmatprep.subr.bf16.mxu1 %v20398_v61  ;;  %v98_v33 = vld [vmem:[%s19595_s1 + $0x1f8] sm:$0xff]  ;;  %v16274_v61 = vsub.f32 %v42_v44, %v2728_v43  ;;  %v2760_v44 = vand.u32 4294901760, %v106_v21  ;;  %v121_v43 = vld [vmem:[%s19595_s1 + $0x2b0] sm:$0xff] }
 0x124   :  { %13004 = vmatprep.subr.bf16.mxu0 %v20399_v62  ;;  %v16276_v62 = vsub.f32 %v50_v55, %v2732_v48  ;;  %v2764_v55 = vand.u32 4294901760, %v114_v1  ;;  %v129_v48 = vld [vmem:[%s19595_s1 + $0x2f0] sm:$0xff] }
 0x125   :  { %v16360_v32 = vsub.f32 %v106_v21, %v2760_v44  ;;  %v16395_v21 = vld [vmem:[%s19595_s1 + $0x3f8] sm:$0xff] }
 0x126   :  { %12814 = vmatpush1.bf16.msra.mxu1 %v20400_v59  ;;  %v20_v59 = vlaneseq }
 0x127   :  { %13006 = vmatpush1.bf16.msra.mxu0 %v20401_v15  ;;  %12816 = vmatprep.subr.bf16.mxu1 %v20402_v39  ;;  %v16279_v15 = vsub.f32 %v41_v17, %v2730_v10  ;;  %v16281_v39 = vpack.c.bf16 %v2742_v41, %v2738_v29  ;;  %v2762_v17 = vand.u32 4294901760, %v105_v20  ;;  %v138_v10 = vld [vmem:[%s19595_s1 + $0x338] sm:$0xff]  ;;  %v2774_v41 = vand.u32 4294901760, %v129_v48 }
 0x128   :  { %13008 = vmatprep.subr.bf16.mxu0 %v20403_v40  ;;  %v2746_v40 = vand.u32 4294901760, %v73_v35  ;;  %v21_v53 = vand.u32 127, %v20_v59 }
 0x129   :  { %20433 = vst [vmem:[#allocation23_spill] sm:$0xff] %v16281_v39 }
 0x12a   :  { %12818 = vmatpush1.bf16.msra.mxu1 %v20404_v47  ;;  %v2750_v47 = vand.u32 4294901760, %v81_v36  ;;  %v16328_v45 = vsub.f32 %v73_v35, %v2746_v40  ;;  %v16355_v50 = vand.u32 15, %v21_v53  ;;  %v16368_v35 = vsub.f32 %v114_v1, %v2764_v55 }
 0x12b   :  { %13010 = vmatpush1.bf16.msra.mxu0 %v20405_v30  ;;  %12820 = vmatprep.subr.bf16.mxu1 %v20406_v27  ;;  %v89_v30 = vld [vmem:[%s19595_s1 + $0x1b0] sm:$0xff] }
 0x12c   :  { %13012 = vmatprep.subr.bf16.mxu0 %v20407_v58  ;;  %v97_v27 = vld [vmem:[%s19595_s1 + $0x1f0] sm:$0xff]  ;;  %v16290_v58 = vsub.f32 %v49_v16, %v2734_v5  ;;  %v2754_v12 = vand.u32 4294901760, %v89_v30  ;;  %v16326_v34 = vpack.c.bf16 %v2750_v47, %v2746_v40  ;;  %v16330_v52 = vsub.f32 %v81_v36, %v2750_v47  ;;  %v146_v5 = vld [vmem:[%s19595_s1 + $0x378] sm:$0xff]  ;;  %20438 = vst [vmem:[#allocation31_spill] sm:$0xff] %v16355_v50  ;;  %v16370_v36 = vpop.permute.xlu1 %3598 }
 0x12d   :  { %v2758_v56 = vand.u32 4294901760, %v97_v27  ;;  %v2766_v16 = vand.u32 4294901760, %v113_v37  ;;  %v2780_v59 = vand.u32 4294901760, %v146_v5  ;;  %v16377_v40 = vld [vmem:[%s19595_s1 + $0x370] sm:$0xff] }
 0x12e   :  { %12822 = vmatpush1.bf16.msra.mxu1 %v20408_v31  ;;  %v16293_v31 = vpack.c.bf16 %v2748_v63, %v2744_v28  ;;  %20435 = vst [vmem:[#allocation26_spill] sm:$0xff] %v16326_v34  ;;  %v137_v28 = vld [vmem:[%s19595_s1 + $0x330] sm:$0xff]  ;;  %v16366_v63 = vpack.c.bf16 %v2764_v55, %v2760_v44  ;;  %v16426_v55 = vsub.f32 %v129_v48, %v2774_v41  ;;  %v20444_v44 = vmov 0 }
 0x12f   :  { %13014 = vmatpush1.bf16.msra.mxu0 %v20409_v0  ;;  %12824 = vmatprep.subr.bf16.mxu1 %v20410_v3  ;;  %v2752_v0 = vand.u32 4294901760, %v90_v49  ;;  %v2756_v3 = vand.u32 4294901760, %v98_v33  ;;  %v16358_v19 = vsub.f32 %v97_v27, %v2758_v56  ;;  %v16379_v47 = vpack.c.bf16 %v2766_v16, %v2762_v17 }
 0x130   :  { %13016 = vmatprep.subr.bf16.mxu0 %v20411_v23  ;;  %20434 = vst [vmem:[#allocation24_spill] sm:$0xff] %v16293_v31  ;;  %v16295_v23 = vsub.f32 %v58_v18, %v2736_v38  ;;  %v2768_v18 = vand.u32 4294901760, %v122_v8  ;;  %20439 = vst [vmem:[#allocation32_spill] sm:$0xff] %v16366_v63  ;;  %v16383_v27 = vsub.f32 %v113_v37, %v2766_v16  ;;  %v16416_v16 = vld [vmem:[%s19595_s1 + $0x3b0] sm:$0xff]  ;;  %v20451_v48 = vand.u32 4294901760, %v16395_v21 }
 0x131   :  { %v16333_v51 = vpack.c.bf16 %v2756_v3, %v2752_v0  ;;  %v16335_v13 = vsub.f32 %v90_v49, %v2752_v0  ;;  %v16349_v38 = vsub.f32 %v98_v33, %v2756_v3  ;;  %v16372_v49 = vpop.permute.xlu0 %3593  ;;  %v2776_v33 = vand.u32 4294901760, %v138_v10  ;;  %20440 = vst [vmem:[#allocation34_spill] sm:$0xff] %v16379_v47  ;;  %v16390_v3 = vld [vmem:[%s19595_s1 + $0x3b8] sm:$0xff] }
 0x132   :  { %12826 = vmatpush1.bf16.msra.mxu1 %v20412_v6  ;;  %v16297_v6 = vsub.f32 %v66_v60, %v2740_v2  ;;  %v2772_v60 = vand.u32 4294901760, %v130_v24  ;;  %v16351_v2 = vpack.c.bf16 %v2758_v56, %v2754_v12  ;;  %v16397_v1 = vsub.f32 %v122_v8, %v2768_v18 }
 0x133   :  { %13018 = vmatpush1.bf16.msra.mxu0 %v20413_v57  ;;  %13020 = vmatprep.subr.bf16.mxu1 %v16239_v11  ;;  %v16299_v57 = vsub.f32 %v57_v25, %v2738_v29  ;;  %20436 = vst [vmem:[#allocation27_spill] sm:$0xff] %v16333_v51  ;;  %v16353_v25 = vsub.f32 %v89_v30, %v2754_v12  ;;  %v2770_v29 = vand.u32 4294901760, %v121_v43  ;;  %v2778_v56 = vand.u32 4294901760, %v137_v28 }
 0x134   :  { %20437 = vst [vmem:[#allocation29_spill] sm:$0xff] %v16351_v2  ;;  %v16381_v30 = vsub.f32 %v105_v20, %v2762_v17  ;;  %v16385_v0 = vpack.c.bf16 %v2772_v60, %v2768_v18  ;;  %v16399_v12 = vsub.f32 %v130_v24, %v2772_v60  ;;  %v23_v20 = vand.u32 1, %v16355_v50  ;;  %v16421_v18 = vld [vmem:[%s19595_s1 + $0x3f0] sm:$0xff]  ;;  %v3601_v50 = vpop.permute.xlu1 %3600 }
 0x135   :  { %1867 = vmatmul.mubr.f32.vlgmr.msra.gmra.mrb[2].mxu1 %v20432_v4  ;;  %v16403_v37 = vpack.c.bf16 %v2774_v41, %v2770_v29  ;;  %v16409_v17 = vpack.c.bf16 %v2780_v59, %v2776_v33  ;;  %v16424_v53 = vsub.f32 %v121_v43, %v2770_v29  ;;  %v3596_v42 = vpop.permute.xlu0 %3595  ;;  %v20447_v29 = vand.u32 4294901760, %v16274_v61 }
 0x136   :  { %2722 = vmatmul.mubr.f32.vlgmr.msra.gmra.mrb[2].mxu0 %v20432_v4  ;;  %13022 = vmatpush1.bf16.msra.mxu1 %v16255_v26  ;;  %20441 = vst [vmem:[#allocation35_spill] sm:$0xff] %v16385_v0  ;;  %vm16430_vm0 = vcmp.eq.s32.totalorder %v23_v20, 1  ;;  %v20448_v20 = vand.u32 4294901760, %v16276_v62 }
 0x137   :  { %2824 = vmatprep.mubr.f32.mxu1 %v20067_v14  ;;  %13024 = vmatprep.subr.bf16.mxu1 %v16258_v46  ;;  %20442 = vst [vmem:[#allocation42_spill] sm:$0xff] %v16403_v37  ;;  %20443 = vst [vmem:[#allocation43_spill] sm:$0xff] %v16409_v17  ;;  %v20445_v44 = vsel %vm16430_vm0, 4294967295, %v20444_v44  ;;  %v2839_v41 = vsub.f32 %v16274_v61, %v20447_v29  ;;  %v20452_v29 = vand.u32 4294901760, %v16279_v15 }
 0x138   :  { %20446 = vst [vmem:[#allocation4_spill] sm:$0xff] %v20445_v44  ;;  %v2851_v24 = vsub.f32 %v16276_v62, %v20448_v20  ;;  %10585 = vmatprep.mubr.msk.f32.mxu0 %vm14663_vm3, %v20067_v14 }
 0x139   :  { %v2845_v60 = vsub.f32 %v16279_v15, %v20452_v29 }
 0x13a   :  { %13026 = vmatpush1.bf16.msra.mxu1 %v16281_v39  ;;  %v2852_v44 = vand.u32 4294901760, %v2851_v24 }
 0x13b   :  { %13028 = vmatprep.subr.bf16.mxu1 %v16293_v31 }
 0x13e   :  { %13030 = vmatpush1.bf16.msra.mxu1 %v16326_v34  ;;  %v20456_v34 = vand.u32 4294901760, %v16297_v6 }
 0x13f   :  { %13032 = vmatprep.subr.bf16.mxu1 %v16333_v51  ;;  %v1013_v20 = vpop.f32.mrb[0].mxu0 }
 0x140   :  { %v1015_v51 = vpop.f32.mrb[1].mxu0 }
 0x141   :  { %v635_v8 = vpop.f32.mrb[0].mxu1 }
 0x142   :  { %13034 = vmatpush1.bf16.msra.mxu1 %v16351_v2  ;;  %v16436_v2 = vsub.f32 %v146_v5, %v2780_v59  ;;  %v20450_v59 = vand.u32 4294901760, %v16390_v3  ;;  %v637_v29 = vpop.f32.mrb[1].mxu1 }
 0x143   :  { %13036 = vmatprep.subr.bf16.mxu1 %v16366_v63  ;;  %v16434_v63 = vsub.f32 %v138_v10, %v2776_v33  ;;  %v20449_v10 = vand.u32 4294901760, %v16377_v40  ;;  %v16453_v33 = vsub.f32 %v137_v28, %v2778_v56  ;;  %v3597_v28 = vsel %vm16430_vm0, %v3596_v42, %v16372_v49 }
 0x144   :  { %v16459_v43 = vpack.c.bf16 %v20451_v48, %v20450_v59  ;;  %v20454_v48 = vand.u32 4294901760, %v16295_v23  ;;  %v16483_v49 = vadd.f32 %v1015_v51, %v637_v29  ;;  %v2846_v51 = vand.u32 4294901760, %v2845_v60 }
 0x145   :  { %v16451_v5 = vpack.c.bf16 %v20449_v10, %v2778_v56  ;;  %v20453_v56 = vand.u32 4294901760, %v16290_v58 }
 0x146   :  { %13038 = vmatpush1.bf16.msra.mxu1 %v16379_v47  ;;  %v2863_v59 = vsub.f32 %v16295_v23, %v20454_v48  ;;  %v16476_v47 = vadd.f32 %v1013_v20, %v635_v8  ;;  %20457 = vst [vmem:[#allocation49_spill] sm:$0xff] %v16483_v49  ;;  %v20459_v48 = vand.u32 4294901760, %v16421_v18  ;;  %v2840_v20 = vand.u32 4294901760, %v2839_v41 }
 0x147   :  { %13040 = vmatprep.subr.bf16.mxu1 %v16385_v0  ;;  %v3602_v0 = vsel %vm16430_vm0, %v3601_v50, %v16370_v36  ;;  %v2857_v10 = vsub.f32 %v16290_v58, %v20453_v56  ;;  %v2875_v50 = vsub.f32 %v16297_v6, %v20456_v34  ;;  %v20458_v56 = vand.u32 4294901760, %v16416_v16  ;;  %v14653_v34 = vld [vmem:[%s19597_s2 + $0x1] ss:$0 sm:$0xff] }
 0x148   :  { %20455 = vst [vmem:[#allocation46_spill] sm:$0xff] %v16476_v47  ;;  %v3606_v42 = vmul.f32 %v14653_v34, %v16476_v47  ;;  %v19865_v36 = vand.u32 4294901760, %v16324_v7  ;;  %v2864_v41 = vand.u32 4294901760, %v2863_v59  ;;  %v20462_v34 = vand.u32 4294901760, %v16301_v22 }
 0x149   :  { %v16490_v8 = vpack.c.bf16 %v20459_v48, %v20458_v56  ;;  %v2858_v31 = vand.u32 4294901760, %v2857_v10  ;;  %v19870_v56 = vand.u32 4294901760, %v16328_v45  ;;  %v2876_v48 = vand.u32 4294901760, %v2875_v50  ;;  %v14654_v10 = vld [vmem:[%s19597_s2] ss:$0 sm:$0xff]  ;;  %s14659_s2 = smov 126  }
 0x14a   :  { %13042 = vmatpush1.bf16.msra.mxu1 %v16403_v37  ;;  %v3607_v37 = vmul.f32 %v16483_v49, %v3597_v28  ;;  %v2881_v60 = vsub.f32 %v16301_v22, %v20462_v34  ;;  %v3604_v29 = vmul.f32 %v16483_v49, %v3602_v0  ;;  %v3603_v59 = vmul.f32 %v14654_v10, %v16476_v47 }
 0x14b   :  { %20460 = vst [vmem:[#allocation6_spill] sm:$0xff] %v16490_v8  ;;  %13044 = vmatprep.subr.bf16.mxu1 %v16409_v17  ;;  %v20461_v17 = vand.u32 4294901760, %v16299_v57  ;;  %v13051_v50 = vpack.c.bf16 %v2852_v44, %v2840_v20  ;;  %v2899_v0 = vsub.f32 %v16324_v7, %v19865_v36  ;;  %v13053_v44 = vpack.c.bf16 %v2858_v31, %v2846_v51 }
 0x14c   :  { %v16510_v28 = vsub.f32 %v3606_v42, %v3607_v37  ;;  %v2893_v20 = vsub.f32 %v16328_v45, %v19870_v56  ;;  %v20465_v34 = vand.u32 4294901760, %v16330_v52  ;;  %v2882_v42 = vand.u32 4294901760, %v2881_v60 }
 0x14d   :  { %v2869_v39 = vsub.f32 %v16299_v57, %v20461_v17  ;;  %v20464_v17 = vand.u32 4294901760, %v16312_v9  ;;  %v19872_v37 = vand.u32 4294901760, %v16353_v25  ;;  %v16537_v47 = vadd.f32 %v3604_v29, %v3603_v59 }
 0x14e   :  { %13046 = vmatpush1.bf16.msra.mxu1 %v16451_v5  ;;  %20463 = vst [vmem:[#allocation53_spill] sm:$0xff] %v16510_v28  ;;  %3616 = vrot.lane.b32.xlu1 %v16510_v28, %s14658_s12  ;;  %v2905_v10 = vsub.f32 %v16330_v52, %v20465_v34  ;;  %v19873_v49 = vand.u32 4294901760, %v16358_v19  ;;  %v19874_v31 = vand.u32 4294901760, %v16360_v32  ;;  %v20467_v34 = vand.u32 4294901760, %v16335_v13 }
 0x14f   :  { %13048 = vmatprep.subr.bf16.mxu1 %v16459_v43  ;;  %v2887_v24 = vsub.f32 %v16312_v9, %v20464_v17  ;;  %3614 = vrot.lane.b32.xlu0 %v16510_v28, %s14659_s2  ;;  %v13055_v17 = vpack.c.bf16 %v2876_v48, %v2864_v41  ;;  %v2870_v36 = vand.u32 4294901760, %v2869_v39  ;;  %20466 = vst [vmem:[#allocation55_spill] sm:$0xff] %v16537_v47  ;;  %v2900_v28 = vand.u32 4294901760, %v2899_v0 }
 0x150   :  { %v2911_v39 = vsub.f32 %v16335_v13, %v20467_v34  ;;  %v20468_v41 = vand.u32 4294901760, %v16349_v38  ;;  %v2894_v29 = vand.u32 4294901760, %v2893_v20  ;;  %v2906_v60 = vand.u32 4294901760, %v2905_v10 }
 0x151   :  { %v2888_v56 = vand.u32 4294901760, %v2887_v24  ;;  %v19878_v59 = vand.u32 4294901760, %v16381_v30  ;;  %v13057_v0 = vpack.c.bf16 %v2882_v42, %v2870_v36  ;;  %v2917_v34 = vsub.f32 %v16353_v25, %v19872_v37 }
 0x152   :  { %13050 = vmatpush1.bf16.msra.mxu1 %v16490_v8  ;;  %v2923_v48 = vsub.f32 %v16349_v38, %v20468_v41  ;;  %3611 = vrot.lane.b32.xlu1 %v16537_v47, %s14658_s12  ;;  %v2929_v20 = vsub.f32 %v16358_v19, %v19873_v49  ;;  %v2935_v10 = vsub.f32 %v16360_v32, %v19874_v31  ;;  %v20471_v42 = vand.u32 4294901760, %v16377_v40 }
 0x153   :  { %13052 = vmatprep.subr.bf16.mxu1 %v13051_v50  ;;  %3609 = vrot.lane.b32.xlu0 %v16537_v47, %s14659_s2  ;;  %v20469_v50 = vld [vmem:[#allocation21_spill] sm:$0xff]  ;;  %v2912_v51 = vand.u32 4294901760, %v2911_v39  ;;  %v20472_v49 = vand.u32 4294901760, %v16390_v3  ;;  %v13061_v31 = vpack.c.bf16 %v2906_v60, %v2894_v29  ;;  %v20473_v47 = vand.u32 4294901760, %v16383_v27 }
 0x154   :  { %v16573_v37 = vsub.f32 %v16377_v40, %v20471_v42  ;;  %v2924_v41 = vand.u32 4294901760, %v2923_v48  ;;  %v20474_v40 = vand.u32 4294901760, %v16397_v1  ;;  %v2918_v39 = vand.u32 4294901760, %v2917_v34 }
 0x155   :  { %2830 = vmatmul.mubr.f32.vlgmr.msra.gmra.mrb[4].mxu1 %v20469_v50  ;;  %v20470_v50 = vand.u32 4294901760, %v16368_v35  ;;  %v16578_v24 = vsub.f32 %v16390_v3, %v20472_v49  ;;  %v2953_v8 = vsub.f32 %v16383_v27, %v20473_v47  ;;  %v2930_v48 = vand.u32 4294901760, %v2929_v20 }
 0x156   :  { %13054 = vmatpush1.bf16.msra.mxu1 %v13053_v44  ;;  %3060 = vmatprep.mubr.f32.mxu1 %v20067_v14  ;;  %v13059_v44 = vpack.c.bf16 %v2900_v28, %v2888_v56  ;;  %v2959_v56 = vsub.f32 %v16397_v1, %v20474_v40  ;;  %v20475_v28 = vand.u32 4294901760, %v16399_v12  ;;  %v2936_v29 = vand.u32 4294901760, %v2935_v10 }
 0x157   :  { %v2947_v36 = vsub.f32 %v16368_v35, %v20470_v50  ;;  %13056 = vmatprep.subr.bf16.mxu1 %v13055_v17  ;;  %v2941_v50 = vsub.f32 %v16381_v30, %v19878_v59  ;;  %v20476_v42 = vand.u32 4294901760, %v16395_v21  ;;  %v13063_v40 = vpack.c.bf16 %v2924_v41, %v2912_v51 }
 0x158   :  { %v2971_v17 = vsub.f32 %v16399_v12, %v20475_v28  ;;  %v19879_v59 = vand.u32 4294901760, %v16434_v63  ;;  %v20477_v3 = vand.u32 4294901760, %v16416_v16  ;;  %v2954_v10 = vand.u32 4294901760, %v2953_v8 }
 0x159   :  { %v2948_v60 = vand.u32 4294901760, %v2947_v36  ;;  %v16597_v47 = vsub.f32 %v16395_v21, %v20476_v42  ;;  %v2942_v20 = vand.u32 4294901760, %v2941_v50  ;;  %v2960_v21 = vand.u32 4294901760, %v2959_v56 }
 0x15a   :  { %13058 = vmatpush1.bf16.msra.mxu1 %v13057_v0  ;;  %v16604_v49 = vsub.f32 %v16416_v16, %v20477_v3  ;;  %v20478_v0 = vand.u32 4294901760, %v16421_v18  ;;  %v2972_v36 = vand.u32 4294901760, %v2971_v17  ;;  %v20479_v51 = vand.u32 4294901760, %v16424_v53 }
 0x15b   :  { %13060 = vmatprep.subr.bf16.mxu1 %v13059_v44  ;;  %v20480_v44 = vand.u32 4294901760, %v16426_v55  ;;  %v13065_v16 = vpack.c.bf16 %v2930_v48, %v2918_v39  ;;  %v13067_v3 = vpack.c.bf16 %v2948_v60, %v2936_v29  ;;  %v2988_v28 = vand.u32 4294901760, %v16453_v33 }
 0x15c   :  { %v16609_v34 = vsub.f32 %v16421_v18, %v20478_v0  ;;  %v2965_v41 = vsub.f32 %v16424_v53, %v20479_v51  ;;  %v19881_v18 = vand.u32 4294901760, %v16573_v37  ;;  %v2983_v8 = vsub.f32 %v16434_v63, %v19879_v59 }
 0x15d   :  { %v2977_v42 = vsub.f32 %v16426_v55, %v20480_v44  ;;  %v20481_v50 = vand.u32 4294901760, %v16436_v2  ;;  %v19880_v17 = vand.u32 4294901760, %v16578_v24  ;;  %v19882_v0 = vand.u32 4294901760, %v16597_v47 }
 0x15e   :  { %13062 = vmatpush1.bf16.msra.mxu1 %v13061_v31  ;;  %v13069_v31 = vpack.c.bf16 %v2954_v10, %v2942_v20  ;;  %v13071_v39 = vpack.c.bf16 %v2972_v36, %v2960_v21  ;;  %v2966_v48 = vand.u32 4294901760, %v2965_v41  ;;  %v2989_v60 = vsub.f32 %v16453_v33, %v2988_v28 }
 0x15f   :  { %13064 = vmatprep.subr.bf16.mxu1 %v13063_v40  ;;  %v2995_v56 = vsub.f32 %v16436_v2, %v20481_v50  ;;  %v2978_v29 = vand.u32 4294901760, %v2977_v42  ;;  %v3001_v40 = vsub.f32 %v16573_v37, %v19881_v18  ;;  %v3012_v51 = vand.u32 4294901760, %v16604_v49 }
 0x160   :  { %v3024_v44 = vand.u32 4294901760, %v16609_v34  ;;  %v2984_v50 = vand.u32 4294901760, %v2983_v8  ;;  %v3007_v20 = vsub.f32 %v16578_v24, %v19880_v17  ;;  %v3019_v10 = vsub.f32 %v16597_v47, %v19882_v0 }
 0x161   :  { %v2996_v59 = vand.u32 4294901760, %v2995_v56  ;;  %v13073_v21 = vpack.c.bf16 %v2978_v29, %v2966_v48  ;;  %v2990_v36 = vand.u32 4294901760, %v2989_v60  ;;  %v3002_v41 = vand.u32 4294901760, %v3001_v40 }
 0x162   :  { %13066 = vmatpush1.bf16.msra.mxu1 %v13065_v16  ;;  %v3013_v42 = vsub.f32 %v16604_v49, %v3012_v51  ;;  %v3025_v16 = vsub.f32 %v16609_v34, %v3024_v44  ;;  %v3008_v8 = vand.u32 4294901760, %v3007_v20  ;;  %v3020_v56 = vand.u32 4294901760, %v3019_v10 }
 0x163   :  { %13068 = vmatprep.subr.bf16.mxu1 %v13067_v3  ;;  %v13075_v3 = vpack.c.bf16 %v2996_v59, %v2984_v50  ;;  %v13077_v17 = vpack.c.bf16 %v3002_v41, %v2990_v36  ;;  %v13083_v29 = vpack.c.bf16 %v16276_v62, %v16274_v61  ;;  %v13085_v60 = vpack.c.bf16 %v16290_v58, %v16279_v15 }
 0x164   :  { %v3014_v18 = vand.u32 4294901760, %v3013_v42  ;;  %v3026_v0 = vand.u32 4294901760, %v3025_v16  ;;  %v13087_v59 = vpack.c.bf16 %v16297_v6, %v16295_v23  ;;  %v13097_v40 = vpack.c.bf16 %v16358_v19, %v16353_v25 }
 0x165   :  { %v13099_v50 = vpack.c.bf16 %v16368_v35, %v16360_v32  ;;  %v13101_v20 = vpack.c.bf16 %v16383_v27, %v16381_v30  ;;  %v13103_v10 = vpack.c.bf16 %v16399_v12, %v16397_v1  ;;  %v13107_v36 = vpack.c.bf16 %v16436_v2, %v16434_v63 }
 0x166   :  { %13070 = vmatpush1.bf16.msra.mxu1 %v13069_v31  ;;  %v13079_v31 = vpack.c.bf16 %v3020_v56, %v3008_v8  ;;  %v13081_v48 = vpack.c.bf16 %v3026_v0, %v3014_v18  ;;  %v13091_v18 = vpack.c.bf16 %v16324_v7, %v16312_v9  ;;  %v13095_v0 = vpack.c.bf16 %v16349_v38, %v16335_v13  ;;  %v20483_v8 = vld [vmem:[#allocation24_spill] sm:$0xff]  ;;  %v20484_v56 = vld [vmem:[#allocation26_spill] sm:$0xff] }
 0x167   :  { %13072 = vmatprep.subr.bf16.mxu1 %v13071_v39  ;;  %v13089_v39 = vpack.c.bf16 %v16301_v22, %v16299_v57  ;;  %v13109_v41 = vpack.c.bf16 %v16573_v37, %v16453_v33  ;;  %v13111_v42 = vpack.c.bf16 %v16597_v47, %v16578_v24  ;;  %v13113_v16 = vpack.c.bf16 %v16609_v34, %v16604_v49 }
 0x16a   :  { %13074 = vmatpush1.bf16.msra.mxu1 %v13073_v21  ;;  %v13105_v21 = vpack.c.bf16 %v16426_v55, %v16424_v53 }
 0x16b   :  { %13076 = vmatprep.subr.bf16.mxu1 %v13075_v3  ;;  %v20482_v3 = vld [vmem:[#allocation23_spill] sm:$0xff] }
 0x16e   :  { %13078 = vmatpush1.bf16.msra.mxu1 %v13077_v17  ;;  %v13093_v17 = vpack.c.bf16 %v16330_v52, %v16328_v45 }
 0x16f   :  { %13080 = vmatprep.subr.bf16.mxu1 %v13079_v31  ;;  %v20485_v31 = vld [vmem:[#allocation27_spill] sm:$0xff] }
 0x172   :  { %13082 = vmatpush1.bf16.msra.mxu1 %v13081_v48  ;;  %v20486_v48 = vld [vmem:[#allocation29_spill] sm:$0xff] }
 0x173   :  { %13084 = vmatprep.subr.bf16.mxu1 %v13083_v29  ;;  %v20487_v29 = vld [vmem:[#allocation32_spill] sm:$0xff] }
 0x175   :  { %3062 = vmatmul.mubr.f32.vlgmr.msra.gmra.mrb[4].mxu1 %v20432_v4 }
 0x176   :  { %13086 = vmatpush1.bf16.msra.mxu1 %v13085_v60  ;;  %3196 = vmatprep.mubr.f32.mxu1 %v20067_v14  ;;  %v20488_v60 = vld [vmem:[#allocation34_spill] sm:$0xff] }
 0x177   :  { %13088 = vmatprep.subr.bf16.mxu1 %v13087_v59  ;;  %v20490_v59 = vld [vmem:[#allocation42_spill] sm:$0xff] }
 0x17a   :  { %13090 = vmatpush1.bf16.msra.mxu1 %v13089_v39  ;;  %v20491_v39 = vld [vmem:[#allocation43_spill] sm:$0xff] }
 0x17b   :  { %13092 = vmatprep.subr.bf16.mxu1 %v13091_v18  ;;  %v20492_v18 = vand.u32 4294901760, %v16274_v61  ;;  %v20500_v61 = vand.u32 4294901760, %v16299_v57  ;;  %v20506_v57 = vand.u32 4294901760, %v16335_v13  ;;  %v20513_v13 = vand.u32 4294901760, %v16383_v27 }
 0x17c   :  { %v20520_v27 = vand.u32 4294901760, %v16573_v37 }
 0x17e   :  { %13094 = vmatpush1.bf16.msra.mxu1 %v13093_v17  ;;  %v20493_v17 = vand.u32 4294901760, %v16276_v62  ;;  %v20501_v62 = vand.u32 4294901760, %v16301_v22  ;;  %v20507_v22 = vand.u32 4294901760, %v16349_v38  ;;  %v20514_v38 = vand.u32 4294901760, %v16397_v1 }
 0x17f   :  { %13096 = vmatprep.subr.bf16.mxu1 %v13095_v0  ;;  %v13173_v1 = vpack.c.bf16 %v20520_v27, %v2988_v28  ;;  %v20528_v28 = vld [vmem:[#allocation53_spill] sm:$0xff] }
 0x180   :  { %v13147_v0 = vpack.c.bf16 %v20493_v17, %v20492_v18 }
 0x182   :  { %13098 = vmatpush1.bf16.msra.mxu1 %v13097_v40  ;;  %v20494_v40 = vld [vmem:[#allocation6_spill] sm:$0xff] }
 0x183   :  { %13100 = vmatprep.subr.bf16.mxu1 %v13099_v50  ;;  %v20495_v50 = vand.u32 4294901760, %v16279_v15  ;;  %v20502_v15 = vand.u32 4294901760, %v16312_v9  ;;  %v20509_v9 = vand.u32 4294901760, %v16358_v19  ;;  %v20516_v19 = vand.u32 4294901760, %v16424_v53 }
 0x184   :  { %v20522_v53 = vand.u32 4294901760, %v16597_v47 }
 0x186   :  { %13102 = vmatpush1.bf16.msra.mxu1 %v13101_v20  ;;  %v20496_v20 = vand.u32 4294901760, %v16290_v58  ;;  %v20503_v58 = vand.u32 4294901760, %v16324_v7  ;;  %v20510_v7 = vand.u32 4294901760, %v16360_v32  ;;  %v20517_v32 = vand.u32 4294901760, %v16426_v55 }
 0x187   :  { %13104 = vmatprep.subr.bf16.mxu1 %v13103_v10 }
 0x188   :  { %v13149_v10 = vpack.c.bf16 %v20496_v20, %v20495_v50  ;;  %v13155_v18 = vpack.c.bf16 %v20503_v58, %v20502_v15  ;;  %v20508_v50 = vand.u32 4294901760, %v16353_v25  ;;  %v20515_v25 = vand.u32 4294901760, %v16399_v12  ;;  %v16844_v58 = vld [vmem:[%s19598_s3 + $0x80] sm:$0xff] }
 0x189   :  { %v20521_v12 = vand.u32 4294901760, %v16578_v24 }
 0x18a   :  { %13106 = vmatpush1.bf16.msra.mxu1 %v13105_v21  ;;  %v20497_v21 = vand.u32 4294901760, %v16295_v23  ;;  %v20504_v23 = vand.u32 4294901760, %v16328_v45  ;;  %v13161_v20 = vpack.c.bf16 %v20509_v9, %v20508_v50  ;;  %v20511_v45 = vand.u32 4294901760, %v16368_v35  ;;  %v16878_v9 = vld [vmem:[%s19598_s3 + $0x98] sm:$0xff] }
 0x18b   :  { %13108 = vmatprep.subr.bf16.mxu1 %v13107_v36  ;;  %v20498_v36 = vand.u32 4294901760, %v16297_v6  ;;  %v20505_v6 = vand.u32 4294901760, %v16330_v52  ;;  %v20512_v52 = vand.u32 4294901760, %v16381_v30  ;;  %v20518_v35 = vand.u32 4294901760, %v16434_v63 }
 0x18c   :  { %v20519_v30 = vand.u32 4294901760, %v16436_v2  ;;  %v13177_v63 = vpack.c.bf16 %v3024_v44, %v3012_v51 }
 0x18d   :  { %v13157_v17 = vpack.c.bf16 %v20505_v6, %v20504_v23  ;;  %v19904_v6 = vand.u32 4294901760, %v16844_v58 }
 0x18e   :  { %13110 = vmatpush1.bf16.msra.mxu1 %v13109_v41  ;;  %v13151_v41 = vpack.c.bf16 %v20498_v36, %v20497_v21  ;;  %v13165_v21 = vpack.c.bf16 %v20513_v13, %v20512_v52  ;;  %v13167_v36 = vpack.c.bf16 %v20515_v25, %v20514_v38  ;;  %v16896_v52 = vld [vmem:[%s19598_s3 + $0xa8] sm:$0xff] }
 0x18f   :  { %13112 = vmatprep.subr.bf16.mxu1 %v13111_v42  ;;  %v20499_v42 = vld [vmem:[#allocation20_spill] sm:$0xff] }
 0x192   :  { %13114 = vmatpush1.bf16.msra.mxu1 %v13113_v16  ;;  %v13153_v16 = vpack.c.bf16 %v20501_v62, %v20500_v61  ;;  %v13175_v61 = vpack.c.bf16 %v20522_v53, %v20521_v12  ;;  %v16958_v53 = vld [vmem:[%s19598_s3 + $0x40] sm:$0xff] }
 0x193   :  { %13116 = vmatprep.subr.bf16.mxu1 %v16239_v11 }
 0x195   :  { %3199 = vmatmul.mubr.f32.vlgmr.msra.gmra.mrb[4].mxu1 %v20383_v54  ;;  %v20489_v54 = vld [vmem:[#allocation35_spill] sm:$0xff] }
 0x196   :  { %13118 = vmatpush1.bf16.msra.mxu1 %v16255_v26  ;;  %3301 = vmatprep.mubr.f32.mxu1 %v20067_v14 }
 0x197   :  { %13120 = vmatprep.subr.bf16.mxu1 %v16258_v46 }
 0x19a   :  { %13122 = vmatpush1.bf16.msra.mxu1 %v20482_v3 }
 0x19b   :  { %13124 = vmatprep.subr.bf16.mxu1 %v20483_v8 }
 0x19e   :  { %13126 = vmatpush1.bf16.msra.mxu1 %v20484_v56 }
 0x19f   :  { %13128 = vmatprep.subr.bf16.mxu1 %v20485_v31 }
 0x1a2   :  { %13130 = vmatpush1.bf16.msra.mxu1 %v20486_v48 }
 0x1a3   :  { %13132 = vmatprep.subr.bf16.mxu1 %v20487_v29 }
 0x1a6   :  { %13134 = vmatpush1.bf16.msra.mxu1 %v20488_v60 }
 0x1a7   :  { %13136 = vmatprep.subr.bf16.mxu1 %v20489_v54 }
 0x1aa   :  { %13138 = vmatpush1.bf16.msra.mxu1 %v20490_v59 }
 0x1ab   :  { %13140 = vmatprep.subr.bf16.mxu1 %v20491_v39 }
 0x1ae   :  { %13142 = vmatpush1.bf16.msra.mxu1 %v16451_v5 }
 0x1af   :  { %13144 = vmatprep.subr.bf16.mxu1 %v16459_v43 }
 0x1b2   :  { %13146 = vmatpush1.bf16.msra.mxu1 %v20494_v40 }
 0x1b3   :  { %13148 = vmatprep.subr.bf16.mxu1 %v13147_v0  ;;  %v13159_v0 = vpack.c.bf16 %v20507_v22, %v20506_v57  ;;  %v16857_v57 = vld [vmem:[%s19598_s3 + $0x20] sm:$0xff]  ;;  %v16862_v22 = vld [vmem:[%s19598_s3 + $0x28] sm:$0xff] }
 0x1b4   :  { %v19901_v38 = vand.u32 4294901760, %v16862_v22 }
 0x1b5   :  { %3305 = vmatmul.mubr.f32.vlgmr.msra.gmra.mrb[4].mxu1 %v20499_v42  ;;  %v13171_v42 = vpack.c.bf16 %v20519_v30, %v20518_v35  ;;  %v16931_v35 = vld [vmem:[%s19598_s3 + $0xb0] sm:$0xff]  ;;  %v16936_v30 = vld [vmem:[%s19598_s3 + $0xb8] sm:$0xff] }
 0x1b6   :  { %13150 = vmatpush1.bf16.msra.mxu1 %v13149_v10  ;;  %3471 = vmatprep.mubr.f32.mxu1 %v20067_v14  ;;  %v13163_v10 = vpack.c.bf16 %v20511_v45, %v20510_v7  ;;  %v19895_v45 = vand.u32 4294901760, %v16878_v9 }
 0x1b7   :  { %13152 = vmatprep.subr.bf16.mxu1 %v13151_v41  ;;  %v13169_v41 = vpack.c.bf16 %v20517_v32, %v20516_v19  ;;  %v16923_v19 = vld [vmem:[%s19598_s3 + $0x38] sm:$0xff] }
 0x1ba   :  { %13154 = vmatpush1.bf16.msra.mxu1 %v13153_v16  ;;  %v16838_v16 = vld [vmem:[%s19598_s3 + $0x18] sm:$0xff] }
 0x1bb   :  { %13156 = vmatprep.subr.bf16.mxu1 %v13155_v18  ;;  %v16849_v18 = vld [vmem:[%s19598_s3 + $0x88] sm:$0xff]  ;;  %v19905_v23 = vand.u32 4294901760, %v16838_v16 }
 0x1be   :  { %13158 = vmatpush1.bf16.msra.mxu1 %v13157_v17  ;;  %v19903_v17 = vand.u32 4294901760, %v16849_v18 }
 0x1bf   :  { %13160 = vmatprep.subr.bf16.mxu1 %v13159_v0  ;;  %v16867_v0 = vld [vmem:[%s19598_s3 + $0x90] sm:$0xff] }
 0x1c0   :  { %v16885_v7 = vpack.c.bf16 %v19903_v17, %v19904_v6 }
 0x1c1   :  { %v3615_v2 = vpop.permute.xlu0 %3614 }
 0x1c2   :  { %13162 = vmatpush1.bf16.msra.mxu1 %v13161_v20  ;;  %v19896_v20 = vand.u32 4294901760, %v16867_v0  ;;  %20532 = vst [vmem:[#allocation70_spill] sm:$0xff] %v16885_v7 }
 0x1c3   :  { %13164 = vmatprep.subr.bf16.mxu1 %v13163_v10  ;;  %v16891_v10 = vld [vmem:[%s19598_s3 + $0xa0] sm:$0xff] }
 0x1c4   :  { %v16913_v25 = vpack.c.bf16 %v19895_v45, %v19896_v20  ;;  %v19892_v32 = vand.u32 4294901760, %v16891_v10 }
 0x1c5   :  { %v3610_v37 = vpop.permute.xlu0 %3609 }
 0x1c6   :  { %13166 = vmatpush1.bf16.msra.mxu1 %v13165_v21  ;;  %v19902_v21 = vand.u32 4294901760, %v16857_v57  ;;  %20534 = vst [vmem:[#allocation74_spill] sm:$0xff] %v16913_v25 }
 0x1c7   :  { %13168 = vmatprep.subr.bf16.mxu1 %v13167_v36  ;;  %v16918_v36 = vld [vmem:[%s19598_s3 + $0x30] sm:$0xff] }
 0x1c8   :  { %v19894_v27 = vand.u32 4294901760, %v16918_v36 }
 0x1ca   :  { %13170 = vmatpush1.bf16.msra.mxu1 %v13169_v41  ;;  %v19891_v41 = vand.u32 4294901760, %v16896_v52 }
 0x1cb   :  { %13172 = vmatprep.subr.bf16.mxu1 %v13171_v42  ;;  %v16943_v42 = vpack.c.bf16 %v19901_v38, %v19902_v21 }
 0x1cc   :  { %v16953_v12 = vpack.c.bf16 %v19891_v41, %v19892_v32 }
 0x1cd   :  { %20535 = vst [vmem:[#allocation75_spill] sm:$0xff] %v16943_v42 }
 0x1ce   :  { %13174 = vmatpush1.bf16.msra.mxu1 %v13173_v1  ;;  %v19893_v1 = vand.u32 4294901760, %v16923_v19  ;;  %20536 = vst [vmem:[#allocation77_spill] sm:$0xff] %v16953_v12 }
 0x1cf   :  { %13176 = vmatprep.subr.bf16.mxu1 %v13175_v61  ;;  %v16963_v61 = vld [vmem:[%s19598_s3 + $0x48] sm:$0xff] }
 0x1d2   :  { %13178 = vmatpush1.bf16.msra.mxu1 %v13177_v63  ;;  %v19884_v63 = vand.u32 4294901760, %v16931_v35 }
 0x1d3   :  { %13180 = vmatprep.subr.bf16.mxu1 %v16239_v11  ;;  %v20523_v11 = vld [vmem:[#allocation31_spill] sm:$0xff] }
 0x1d5   :  { %3473 = vmatmul.mubr.f32.vlgmr.msra.gmra.mrb[4].mxu1 %v20432_v4 }
 0x1d6   :  { %13182 = vmatpush1.bf16.msra.mxu1 %v16255_v26  ;;  %3575 = vmatprep.mubr.f32.mxu1 %v20067_v14  ;;  %v25_v26 = vshra.s32 %v20523_v11, 1 }
 0x1d7   :  { %13184 = vmatprep.subr.bf16.mxu1 %v16258_v46  ;;  %v3617_v46 = vpop.permute.xlu1 %3616 }
 0x1d8   :  { %v16785_v55 = vand.u32 1, %v25_v26  ;;  %v19883_v26 = vand.u32 4294901760, %v16936_v30 }
 0x1da   :  { %13186 = vmatpush1.bf16.msra.mxu1 %v20482_v3  ;;  %20524 = vst [vmem:[#allocation56_spill] sm:$0xff] %v16785_v55  ;;  %vm27_vm1 = vcmp.eq.s32.totalorder %v16785_v55, 1 }
 0x1db   :  { %13188 = vmatprep.subr.bf16.mxu1 %v20483_v8  ;;  %v3612_v33 = vpop.permute.xlu1 %3611 }
 0x1de   :  { %13190 = vmatpush1.bf16.msra.mxu1 %v20484_v56 }
 0x1df   :  { %13192 = vmatprep.subr.bf16.mxu1 %v20485_v31 }
 0x1e2   :  { %13194 = vmatpush1.bf16.msra.mxu1 %v20486_v48 }
 0x1e3   :  { %13196 = vmatprep.subr.bf16.mxu1 %v20487_v29 }
 0x1e6   :  { %13198 = vmatpush1.bf16.msra.mxu1 %v20488_v60  ;;  %v19909_v60 = vmov 0.0|0.0  }
 0x1e7   :  { %13200 = vmatprep.subr.bf16.mxu1 %v20489_v54  ;;  %13211 = vmatprep.subr.bf16.mxu0 %v19909_v60  ;;  %v16820_v54 = vld [vmem:[%s19598_s3] sm:$0xff] }
 0x1ea   :  { %13202 = vmatpush1.bf16.msra.mxu1 %v20490_v59  ;;  %v16825_v59 = vld [vmem:[%s19598_s3 + $0x8] sm:$0xff] }
 0x1eb   :  { %13204 = vmatprep.subr.bf16.mxu1 %v20491_v39  ;;  %v16831_v39 = vld [vmem:[%s19598_s3 + $0x10] sm:$0xff]  ;;  %v3694_v62 = vand.u32 4294901760, %v16825_v59 }
 0x1ec   :  { %v19906_v15 = vand.u32 4294901760, %v16831_v39 }
 0x1ed   :  { %v17080_v45 = vsub.f32 %v16825_v59, %v3694_v62  ;;  %v17101_v59 = vld [vmem:[%s19598_s3 + $0xe0] sm:$0xff] }
 0x1ee   :  { %13206 = vmatpush1.bf16.msra.mxu1 %v16451_v5  ;;  %v20527_v5 = vld [vmem:[#allocation55_spill] sm:$0xff]  ;;  %v16903_v13 = vpack.c.bf16 %v19905_v23, %v19906_v15 }
 0x1ef   :  { %13208 = vmatprep.subr.bf16.mxu1 %v16459_v43  ;;  %v3618_v43 = vsel %vm27_vm1, %v3617_v46, %v3615_v2  ;;  %v16973_v46 = vpack.c.bf16 %v19893_v1, %v19894_v27  ;;  %v19886_v2 = vand.u32 4294901760, %v16958_v53  ;;  %v19920_v23 = vand.u32 4294901760, %v17080_v45 }
 0x1f0   :  { %20533 = vst [vmem:[#allocation71_spill] sm:$0xff] %v16903_v13 }
 0x1f1   :  { %20537 = vst [vmem:[#allocation80_spill] sm:$0xff] %v16973_v46 }
 0x1f2   :  { %13210 = vmatpush1.bf16.msra.mxu1 %v20494_v40  ;;  %v3691_v40 = vand.u32 4294901760, %v16820_v54 }
 0x1f3   :  { %13355 = vmatprep.subr.bf16.mxu1 %v19909_v60 }
 0x1f4   :  { %v16873_v50 = vpack.c.bf16 %v3694_v62, %v3691_v40  ;;  %v17075_v27 = vsub.f32 %v16820_v54, %v3691_v40  ;;  %v17096_v54 = vld [vmem:[%s19598_s3 + $0x78] sm:$0xff] }
 0x1f5   :  { %3577 = vmatmul.mubr.f32.vlgmr.msra.gmra.mrb[4].mxu1 %v20432_v4  ;;  %v3613_v4 = vsel %vm27_vm1, %v3612_v33, %v3610_v37  ;;  %v19885_v33 = vand.u32 4294901760, %v16963_v61  ;;  %v16983_v37 = vpack.c.bf16 %v19883_v26, %v19884_v63 }
 0x1f6   :  { %20531 = vst [vmem:[#allocation67_spill] sm:$0xff] %v16873_v50  ;;  %13213 = vmatpush3.bf16.msra.mxu0 %v16873_v50  ;;  %13357 = vmatpush3.bf16.msra.mxu1 %v16885_v7  ;;  %v19915_v21 = vand.u32 4294901760, %v17075_v27 }
 0x1f7   :  { %13214 = vmatprep.subr.bf16.mxu0 %v19909_v60  ;;  %13358 = vmatprep.subr.bf16.mxu1 %v19909_v60  ;;  %20538 = vst [vmem:[#allocation81_spill] sm:$0xff] %v16983_v37 }
 0x1f8   :  { %10795 = vmatprep.mubr.msk.f32.mxu1 %vm14663_vm3, %v20067_v14 }
 0x1fa   :  { %13216 = vmatpush3.bf16.msra.mxu0 %v16903_v13  ;;  %13360 = vmatpush3.bf16.msra.mxu1 %v16913_v25 }
 0x1fb   :  { %13217 = vmatprep.subr.bf16.mxu0 %v19909_v60  ;;  %13361 = vmatprep.subr.bf16.mxu1 %v19909_v60 }
 0x1fe   :  { %13219 = vmatpush3.bf16.msra.mxu0 %v16943_v42  ;;  %13363 = vmatpush3.bf16.msra.mxu1 %v16953_v12 }
 0x1ff   :  { %13220 = vmatprep.subr.bf16.mxu0 %v19909_v60  ;;  %13364 = vmatprep.subr.bf16.mxu1 %v19909_v60 }
 0x202   :  { %13222 = vmatpush3.bf16.msra.mxu0 %v16973_v46  ;;  %13366 = vmatpush3.bf16.msra.mxu1 %v16983_v37 }
 0x203   :  { %13223 = vmatprep.subr.bf16.mxu0 %v19909_v60  ;;  %13367 = vmatprep.subr.bf16.mxu1 %v19909_v60 }
 0x208   :  { %v16788_v24 = vpop.f32.mrb[2].mxu1 }
 0x209   :  { %20525 = vst [vmem:[#allocation7_spill] sm:$0xff] %v16788_v24  ;;  %v16790_v49 = vpop.f32.mrb[2].mxu0  ;;  %v3619_v47 = vmul.f32 %v20527_v5, %v16788_v24  ;;  %v3622_v34 = vmul.f32 %v20528_v28, %v16788_v24  ;;  %v16800_v51 = vpop.f32.mrb[3].mxu1  ;;  %v17002_v5 = vld [vmem:[%s19598_s3 + $0x50] sm:$0xff]  ;;  %v17012_v28 = vld [vmem:[%s19598_s3 + $0xc0] sm:$0xff] }
 0x20a   :  { %20526 = vst [vmem:[#allocation62_spill] sm:$0xff] %v16790_v49  ;;  %20529 = vst [vmem:[#allocation9_spill] sm:$0xff] %v16800_v51  ;;  %v16802_v44 = vpop.f32.mrb[3].mxu0  ;;  %v3620_v3 = vmul.f32 %v3618_v43, %v16800_v51  ;;  %v3623_v8 = vmul.f32 %v3613_v4, %v16800_v51  ;;  %v16991_v43 = vpack.c.bf16 %v19885_v33, %v19886_v2  ;;  %v28_v4 = vshra.s32 %v20523_v11, 2  ;;  %v17040_v2 = vld [vmem:[%s19598_s3 + $0x60] sm:$0xff] }
 0x20b   :  { %20530 = vst [vmem:[#allocation65_spill] sm:$0xff] %v16802_v44 }
 0x20c   :  { %v3621_v56 = vadd.f32 %v3620_v3, %v3619_v47  ;;  %v3624_v31 = vsub.f32 %v3622_v34, %v3623_v8  ;;  %20539 = vst [vmem:[#allocation83_spill] sm:$0xff] %v16991_v43  ;;  %13225 = vmatpush3.bf16.msra.mxu0 %v16991_v43  ;;  %v17007_v47 = vld [vmem:[%s19598_s3 + $0x58] sm:$0xff]  ;;  %v19890_v34 = vand.u32 4294901760, %v17002_v5  ;;  %v17019_v8 = vld [vmem:[%s19598_s3 + $0xc8] sm:$0xff]  ;;  %v17023_v26 = vand.u32 1, %v28_v4 }
 0x20d   :  { %13226 = vmatprep.subr.bf16.mxu0 %v19909_v60  ;;  %v19887_v3 = vand.u32 4294901760, %v17007_v47  ;;  %v17045_v4 = vld [vmem:[%s19598_s3 + $0x68] sm:$0xff] }
 0x20e   :  { %3627 = vrot.lane.b32.xlu1 %v3621_v56, %s14660_s13  ;;  %3625 = vrot.lane.b32.xlu0 %v3621_v56, %s14661_s14  ;;  %v16809_v48 = vmul.f32 %v3624_v31, %v16790_v49  ;;  %v16812_v29 = vmul.f32 %v3621_v56, %v16790_v49  ;;  %v19889_v56 = vand.u32 4294901760, %v17012_v28  ;;  %20540 = vst [vmem:[#allocation84_spill] sm:$0xff] %v17023_v26  ;;  %vm30_vm2 = vcmp.eq.s32.totalorder %v17023_v26, 1 }
 0x20f   :  { %v17029_v63 = vpack.c.bf16 %v19887_v3, %v19890_v34  ;;  %v17050_v3 = vld [vmem:[%s19598_s3 + $0xd0] sm:$0xff]  ;;  %v17058_v34 = vld [vmem:[%s19598_s3 + $0xd8] sm:$0xff] }
 0x210   :  { %v19899_v41 = vand.u32 4294901760, %v17050_v3  ;;  %v19898_v32 = vand.u32 4294901760, %v17058_v34 }
 0x211   :  { %20541 = vst [vmem:[#allocation85_spill] sm:$0xff] %v17029_v63  ;;  %13228 = vmatpush3.bf16.msra.mxu0 %v17029_v63 }
 0x212   :  { %3632 = vrot.lane.b32.xlu1 %v3624_v31, %s14660_s13  ;;  %3630 = vrot.lane.b32.xlu0 %v3624_v31, %s14661_s14  ;;  %v19888_v31 = vand.u32 4294901760, %v17019_v8  ;;  %v17086_v20 = vpack.c.bf16 %v19898_v32, %v19899_v41  ;;  %v19913_v41 = vand.u32 4294901760, %v17096_v54 }
 0x213   :  { %13229 = vmatprep.subr.bf16.mxu0 %v19909_v60 }
 0x214   :  { %v17035_v33 = vpack.c.bf16 %v19888_v31, %v19889_v56  ;;  %v19900_v31 = vand.u32 4294901760, %v17040_v2  ;;  %v19897_v56 = vand.u32 4294901760, %v17045_v4  ;;  %20544 = vst [vmem:[#allocation88_spill] sm:$0xff] %v17086_v20 }
 0x216   :  { %20542 = vst [vmem:[#allocation86_spill] sm:$0xff] %v17035_v33  ;;  %13369 = vmatpush3.bf16.msra.mxu1 %v17035_v33  ;;  %v17070_v1 = vpack.c.bf16 %v19897_v56, %v19900_v31  ;;  %v17091_v56 = vld [vmem:[%s19598_s3 + $0x70] sm:$0xff]  ;;  %v17109_v31 = vld [vmem:[%s19598_s3 + $0xe8] sm:$0xff] }
 0x217   :  { %13370 = vmatprep.subr.bf16.mxu1 %v19909_v60  ;;  %v19914_v32 = vand.u32 4294901760, %v17091_v56  ;;  %v19921_v6 = vand.u32 4294901760, %v17109_v31 }
 0x218   :  { %20543 = vst [vmem:[#allocation87_spill] sm:$0xff] %v17070_v1  ;;  %13231 = vmatpush3.bf16.msra.mxu0 %v17070_v1 }
 0x219   :  { %13232 = vmatprep.subr.bf16.mxu0 %v19909_v60  ;;  %v17125_v38 = vpack.c.bf16 %v19913_v41, %v19914_v32  ;;  %v20549_v41 = vand.u32 4294901760, %v16838_v16 }
 0x21a   :  { %13372 = vmatpush3.bf16.msra.mxu1 %v17086_v20 }
 0x21b   :  { %13373 = vmatprep.subr.bf16.mxu1 %v19909_v60  ;;  %20545 = vst [vmem:[#allocation90_spill] sm:$0xff] %v17125_v38  ;;  %v20548_v60 = vand.u32 4294901760, %v16831_v39  ;;  %v17147_v32 = vsub.f32 %v16838_v16, %v20549_v41 }
 0x21c   :  { %13234 = vmatpush3.bf16.msra.mxu0 %v17125_v38 }
 0x21d   :  { %v17142_v51 = vsub.f32 %v16831_v39, %v20548_v60  ;;  %v17161_v60 = vld [vmem:[%s19598_s3 + $0xf8] sm:$0xff]  ;;  %v20550_v39 = vand.u32 4294901760, %v16844_v58 }
 0x21f   :  { %v17166_v16 = vsub.f32 %v16844_v58, %v20550_v39 }
 0x280   :  { %v3628_v40 = vpop.permute.xlu1 %3627  ;;  %v3626_v62 = vpop.permute.xlu0 %3625 }
 0x281   :  { %v3629_v17 = vsel %vm30_vm2, %v3628_v40, %v3626_v62  ;;  %v3785_v40 = vsub.f32 %v17075_v27, %v19915_v21  ;;  %v20546_v62 = vand.u32 4294901760, %v17101_v59 }
 0x282   :  { %v3639_v15 = vmul.f32 %v3629_v17, %v16802_v44  ;;  %v3792_v17 = vsub.f32 %v17080_v45, %v19920_v23  ;;  %v17156_v23 = vld [vmem:[%s19598_s3 + $0xf0] sm:$0xff] }
 0x283   :  { %v17134_v49 = vpack.c.bf16 %v19921_v6, %v20546_v62  ;;  %v3786_v62 = vand.u32 4294901760, %v3785_v40  ;;  %v19925_v41 = vand.u32 4294901760, %v17156_v23  ;;  %v19924_v40 = vand.u32 4294901760, %v17161_v60 }
 0x284   :  { %v3633_v21 = vpop.permute.xlu1 %3632  ;;  %v3631_v55 = vpop.permute.xlu0 %3630  ;;  %v17150_v24 = vsub.f32 %v16809_v48, %v3639_v15  ;;  %v3793_v15 = vand.u32 4294901760, %v3792_v17  ;;  %v20551_v17 = vmov 0.0|0.0  }
 0x285   :  { %20547 = vst [vmem:[#allocation91_spill] sm:$0xff] %v17134_v49  ;;  %v3634_v48 = vsel %vm30_vm2, %v3633_v21, %v3631_v55  ;;  %13375 = vmatpush3.bf16.msra.mxu1 %v17134_v49  ;;  %13235 = vmatprep.subr.bf16.mxu0 %v20551_v17  ;;  %v20555_v21 = vand.u32 4294901760, %v17147_v32 }
 0x286   :  { %v3636_v6 = vmul.f32 %v3634_v48, %v16802_v44  ;;  %3648 = vrot.lane.b32.xlu1 %v17150_v24, %s14664_s10  ;;  %3646 = vrot.lane.b32.xlu0 %v17150_v24, %s14665_s11  ;;  %v17185_v39 = vpack.c.bf16 %v3793_v15, %v3786_v62  ;;  %v17191_v48 = vpack.c.bf16 %v19924_v40, %v19925_v41  ;;  %v20553_v44 = vand.u32 4294901760, %v16849_v18 }
 0x287   :  { %13376 = vmatprep.subr.bf16.mxu1 %v20551_v17  ;;  %v20554_v62 = vand.u32 4294901760, %v17142_v51  ;;  %v3806_v40 = vsub.f32 %v17147_v32, %v20555_v21  ;;  %v20556_v41 = vand.u32 4294901760, %v17166_v16  ;;  %v20559_v21 = vand.u32 4294901760, %v16867_v0 }
 0x288   :  { %20552 = vst [vmem:[#allocation92_spill] sm:$0xff] %v17191_v48  ;;  %v17196_v55 = vsub.f32 %v16849_v18, %v20553_v44  ;;  %v17199_v58 = vadd.f32 %v3636_v6, %v16812_v29  ;;  %v20557_v29 = vand.u32 4294901760, %v16857_v57  ;;  %v20558_v6 = vand.u32 4294901760, %v16862_v22 }
 0x289   :  { %v3799_v15 = vsub.f32 %v17142_v51, %v20554_v62  ;;  %v4426_v26 = vsub.f32 %v17166_v16, %v20556_v41  ;;  %13378 = vmatpush3.bf16.msra.mxu1 %v17191_v48  ;;  %v17227_v49 = vsub.f32 %v16867_v0, %v20559_v21  ;;  %v3807_v44 = vand.u32 4294901760, %v3806_v40 }
 0x28a   :  { %v17217_v18 = vsub.f32 %v16857_v57, %v20557_v29  ;;  %v17222_v62 = vsub.f32 %v16862_v22, %v20558_v6  ;;  %3643 = vrot.lane.b32.xlu1 %v17199_v58, %s14664_s10  ;;  %3641 = vrot.lane.b32.xlu0 %v17199_v58, %s14665_s11  ;;  %v20560_v29 = vand.u32 4294901760, %v16878_v9  ;;  %v20561_v22 = vand.u32 4294901760, %v17196_v55 }
 0x28b   :  { %v3800_v41 = vand.u32 4294901760, %v3799_v15  ;;  %v4427_v57 = vand.u32 4294901760, %v4426_v26  ;;  %13379 = vmatprep.subr.bf16.mxu1 %v20551_v17  ;;  %v19945_v38 = vand.u32 4294901760, %v17227_v49  ;;  %v20562_v40 = vand.u32 4294901760, %v16918_v36 }
 0x28c   :  { %v17236_v48 = vsub.f32 %v16878_v9, %v20560_v29  ;;  %v4433_v0 = vsub.f32 %v17196_v55, %v20561_v22  ;;  %v19936_v6 = vand.u32 4294901760, %v17217_v18  ;;  %v20563_v29 = vand.u32 4294901760, %v16923_v19 }
 0x28d   :  { %v17245_v15 = vpack.c.bf16 %v3807_v44, %v3800_v41  ;;  %v17251_v9 = vsub.f32 %v16918_v36, %v20562_v40  ;;  %v20564_v44 = vand.u32 4294901760, %v17222_v62  ;;  %v4440_v26 = vsub.f32 %v17227_v49, %v19945_v38 }
 0x28e   :  { %v17256_v20 = vsub.f32 %v16923_v19, %v20563_v29  ;;  %v4434_v22 = vand.u32 4294901760, %v4433_v0  ;;  %v3813_v21 = vsub.f32 %v17217_v18, %v19936_v6  ;;  %v20565_v36 = vand.u32 4294901760, %v17236_v48 }
 0x28f   :  { %v3820_v41 = vsub.f32 %v17222_v62, %v20564_v44  ;;  %v19955_v19 = vand.u32 4294901760, %v17251_v9  ;;  %v20566_v29 = vand.u32 4294901760, %v16891_v10  ;;  %v4441_v63 = vand.u32 4294901760, %v4440_v26 }
 0x290   :  { %v4447_v40 = vsub.f32 %v17236_v48, %v20565_v36  ;;  %v19950_v0 = vand.u32 4294901760, %v17256_v20  ;;  %v17277_v1 = vpack.c.bf16 %v4434_v22, %v4427_v57  ;;  %v3814_v44 = vand.u32 4294901760, %v3813_v21 }
 0x291   :  { %v17275_v6 = vsub.f32 %v16891_v10, %v20566_v29  ;;  %v3821_v33 = vand.u32 4294901760, %v3820_v41  ;;  %v3827_v38 = vsub.f32 %v17251_v9, %v19955_v19  ;;  %v20567_v10 = vand.u32 4294901760, %v16896_v52 }
 0x292   :  { %v4448_v37 = vand.u32 4294901760, %v4447_v40  ;;  %v3834_v36 = vsub.f32 %v17256_v20, %v19950_v0  ;;  %v20569_v21 = vand.u32 4294901760, %v16958_v53  ;;  %v20571_v22 = vand.u32 4294901760, %v16963_v61 }
 0x293   :  { %v19952_v43 = vand.u32 4294901760, %v17275_v6  ;;  %v17286_v12 = vpack.c.bf16 %v3821_v33, %v3814_v44  ;;  %v17291_v57 = vsub.f32 %v16896_v52, %v20567_v10  ;;  %v3828_v29 = vand.u32 4294901760, %v3827_v38 }
 0x294   :  { %v17296_v26 = vsub.f32 %v16958_v53, %v20569_v21  ;;  %v17301_v41 = vsub.f32 %v16963_v61, %v20571_v22  ;;  %v17303_v40 = vpack.c.bf16 %v4448_v37, %v4441_v63  ;;  %v3835_v33 = vand.u32 4294901760, %v3834_v36 }
 0x295   :  { %20568 = vst [vmem:[#allocation93_spill] sm:$0xff] %v17291_v57  ;;  %v4454_v44 = vsub.f32 %v17275_v6, %v19952_v43  ;;  %v19951_v52 = vand.u32 4294901760, %v17291_v57  ;;  %v20573_v0 = vand.u32 4294901760, %v17002_v5 }
 0x296   :  { %20570 = vst [vmem:[#allocation95_spill] sm:$0xff] %v17296_v26  ;;  %20572 = vst [vmem:[#allocation96_spill] sm:$0xff] %v17301_v41  ;;  %v19953_v10 = vand.u32 4294901760, %v17296_v26  ;;  %v19954_v53 = vand.u32 4294901760, %v17301_v41  ;;  %v17311_v21 = vpack.c.bf16 %v3835_v33, %v3828_v29  ;;  %v20575_v29 = vand.u32 4294901760, %v17007_v47 }
 0x297   :  { %v17316_v61 = vsub.f32 %v17002_v5, %v20573_v0  ;;  %v4455_v63 = vand.u32 4294901760, %v4454_v44  ;;  %v4461_v38 = vsub.f32 %v17291_v57, %v19951_v52  ;;  %v20577_v0 = vand.u32 4294901760, %v17012_v28 }
 0x298   :  { %v3841_v37 = vsub.f32 %v17296_v26, %v19953_v10  ;;  %v3848_v36 = vsub.f32 %v17301_v41, %v19954_v53  ;;  %v17331_v5 = vsub.f32 %v17007_v47, %v20575_v29  ;;  %v20580_v29 = vand.u32 4294901760, %v17019_v8 }
 0x299   :  { %20574 = vst [vmem:[#allocation22_spill] sm:$0xff] %v17316_v61  ;;  %v19960_v22 = vand.u32 4294901760, %v17316_v61  ;;  %v17336_v33 = vsub.f32 %v17012_v28, %v20577_v0  ;;  %v4462_v44 = vand.u32 4294901760, %v4461_v38 }
 0x29a   :  { %20576 = vst [vmem:[#allocation25_spill] sm:$0xff] %v17331_v5  ;;  %v3842_v52 = vand.u32 4294901760, %v3841_v37  ;;  %v3849_v43 = vand.u32 4294901760, %v3848_v36  ;;  %v19958_v53 = vand.u32 4294901760, %v17331_v5  ;;  %v17350_v28 = vsub.f32 %v17019_v8, %v20580_v29 }
 0x29b   :  { %20578 = vst [vmem:[#allocation19_spill] sm:$0xff] %v17336_v33  ;;  %v3855_v10 = vsub.f32 %v17316_v61, %v19960_v22  ;;  %v19959_v19 = vand.u32 4294901760, %v17336_v33  ;;  %v17343_v46 = vpack.c.bf16 %v4462_v44, %v4455_v63  ;;  %v20582_v63 = vand.u32 4294901760, %v17040_v2 }
 0x29c   :  { %v17345_v47 = vpack.c.bf16 %v3849_v43, %v3842_v52  ;;  %20581 = vst [vmem:[#allocation30_spill] sm:$0xff] %v17350_v28  ;;  %v3862_v37 = vsub.f32 %v17331_v5, %v19958_v53  ;;  %v19963_v0 = vand.u32 4294901760, %v17350_v28  ;;  %v20584_v52 = vand.u32 4294901760, %v17045_v4 }
 0x29d   :  { %20579 = vst [vmem:[#allocation28_spill] sm:$0xff] %v17343_v46  ;;  %v3856_v38 = vand.u32 4294901760, %v3855_v10  ;;  %v4482_v36 = vsub.f32 %v17336_v33, %v19959_v19  ;;  %v17362_v43 = vsub.f32 %v17040_v2, %v20582_v63  ;;  %v20586_v10 = vand.u32 4294901760, %v17050_v3 }
 0x29e   :  { %v17367_v8 = vsub.f32 %v17045_v4, %v20584_v52  ;;  %v3863_v29 = vand.u32 4294901760, %v3862_v37  ;;  %v20588_v19 = vand.u32 4294901760, %v17058_v34  ;;  %v4489_v2 = vsub.f32 %v17350_v28, %v19963_v0 }
 0x29f   :  { %20583 = vst [vmem:[#allocation33_spill] sm:$0xff] %v17362_v43  ;;  %v17372_v44 = vsub.f32 %v17050_v3, %v20586_v10  ;;  %v4483_v53 = vand.u32 4294901760, %v4482_v36  ;;  %v19964_v63 = vand.u32 4294901760, %v17362_v43  ;;  %v20591_v37 = vand.u32 4294901760, %v17091_v56 }
 0x2a0   :  { %20585 = vst [vmem:[#allocation36_spill] sm:$0xff] %v17367_v8  ;;  %v17377_v22 = vsub.f32 %v17058_v34, %v20588_v19  ;;  %v19965_v4 = vand.u32 4294901760, %v17367_v8  ;;  %v17385_v25 = vpack.c.bf16 %v3863_v29, %v3856_v38  ;;  %v20593_v34 = vand.u32 4294901760, %v17096_v54 }
 0x2a1   :  { %20587 = vst [vmem:[#allocation38_spill] sm:$0xff] %v17372_v44  ;;  %v19972_v52 = vand.u32 4294901760, %v17372_v44  ;;  %v17391_v36 = vsub.f32 %v17091_v56, %v20591_v37  ;;  %v4490_v10 = vand.u32 4294901760, %v4489_v2  ;;  %v3869_v0 = vsub.f32 %v17362_v43, %v19964_v63 }
 0x2a2   :  { %20589 = vst [vmem:[#allocation41_spill] sm:$0xff] %v17377_v22  ;;  %20590 = vst [vmem:[#allocation3_spill] sm:$0xff] %v17385_v25  ;;  %v19973_v3 = vand.u32 4294901760, %v17377_v22  ;;  %v17396_v19 = vsub.f32 %v17096_v54, %v20593_v34  ;;  %v3876_v38 = vsub.f32 %v17367_v8, %v19965_v4  ;;  %v20595_v37 = vand.u32 4294901760, %v17101_v59 }
 0x2a3   :  { %20592 = vst [vmem:[#allocation44_spill] sm:$0xff] %v17391_v36  ;;  %v4496_v29 = vsub.f32 %v17372_v44, %v19972_v52  ;;  %v19982_v54 = vand.u32 4294901760, %v17391_v36  ;;  %v17417_v63 = vpack.c.bf16 %v4490_v10, %v4483_v53  ;;  %v3870_v4 = vand.u32 4294901760, %v3869_v0 }
 0x2a4   :  { %20594 = vst [vmem:[#allocation47_spill] sm:$0xff] %v17396_v19  ;;  %v4503_v56 = vsub.f32 %v17377_v22, %v19973_v3  ;;  %v19977_v2 = vand.u32 4294901760, %v17396_v19  ;;  %v17415_v34 = vsub.f32 %v17101_v59, %v20595_v37  ;;  %v3877_v42 = vand.u32 4294901760, %v3876_v38 }
 0x2a5   :  { %20597 = vst [vmem:[#allocation51_spill] sm:$0xff] %v17417_v63  ;;  %v4497_v7 = vand.u32 4294901760, %v4496_v29  ;;  %v3883_v52 = vsub.f32 %v17391_v36, %v19982_v54  ;;  %v20598_v59 = vand.u32 4294901760, %v17109_v31  ;;  %v20600_v0 = vand.u32 4294901760, %v17156_v23 }
 0x2a6   :  { %20596 = vst [vmem:[#allocation5_spill] sm:$0xff] %v17415_v34  ;;  %v4504_v13 = vand.u32 4294901760, %v4503_v56  ;;  %v3890_v3 = vsub.f32 %v17396_v19, %v19977_v2  ;;  %v19979_v50 = vand.u32 4294901760, %v17415_v34  ;;  %v17426_v25 = vpack.c.bf16 %v3877_v42, %v3870_v4 }
 0x2a7   :  { %v17431_v53 = vsub.f32 %v17109_v31, %v20598_v59  ;;  %v17436_v10 = vsub.f32 %v17156_v23, %v20600_v0  ;;  %v20602_v38 = vand.u32 4294901760, %v17161_v60  ;;  %v3884_v37 = vand.u32 4294901760, %v3883_v52 }
 0x2a8   :  { %v17443_v56 = vpack.c.bf16 %v4504_v13, %v4497_v7  ;;  %v3891_v42 = vand.u32 4294901760, %v3890_v3  ;;  %v4510_v4 = vsub.f32 %v17415_v34, %v19979_v50  ;;  %v17458_v13 = vpack.c.bf16 %v17080_v45, %v17075_v27 }
 0x2a9   :  { %20599 = vst [vmem:[#allocation54_spill] sm:$0xff] %v17431_v53  ;;  %20601 = vst [vmem:[#allocation57_spill] sm:$0xff] %v17436_v10  ;;  %v17441_v29 = vsub.f32 %v17161_v60, %v20602_v38  ;;  %v19978_v31 = vand.u32 4294901760, %v17431_v53  ;;  %v19980_v59 = vand.u32 4294901760, %v17436_v10  ;;  %v17476_v50 = vpack.c.bf16 %v17196_v55, %v17166_v16 }
 0x2aa   :  { %20604 = vst [vmem:[#allocation61_spill] sm:$0xff] %v17443_v56  ;;  %v17451_v0 = vpack.c.bf16 %v3891_v42, %v3884_v37  ;;  %v4511_v2 = vand.u32 4294901760, %v4510_v4  ;;  %v17516_v54 = vpack.c.bf16 %v17396_v19, %v17391_v36 }
 0x2ab   :  { %20603 = vst [vmem:[#allocation8_spill] sm:$0xff] %v17441_v29  ;;  %v19981_v23 = vand.u32 4294901760, %v17441_v29  ;;  %v4517_v7 = vsub.f32 %v17431_v53, %v19978_v31  ;;  %v4524_v60 = vsub.f32 %v17436_v10, %v19980_v59  ;;  %v17472_v31 = vpack.c.bf16 %v17147_v32, %v17142_v51  ;;  %20607 = vst [vmem:[#allocation66_spill] sm:$0xff] %v17476_v50 }
 0x2ac   :  { %v17480_v59 = vpack.c.bf16 %v17222_v62, %v17217_v18 }
 0x2ad   :  { %v4531_v52 = vsub.f32 %v17441_v29, %v19981_v23  ;;  %v4518_v3 = vand.u32 4294901760, %v4517_v7  ;;  %v4525_v38 = vand.u32 4294901760, %v4524_v60  ;;  %v17484_v7 = vpack.c.bf16 %v17236_v48, %v17227_v49 }
 0x2ae   :  { %v17492_v60 = vpack.c.bf16 %v17291_v57, %v17275_v6  ;;  %v17512_v23 = vpack.c.bf16 %v17377_v22, %v17372_v44  ;;  %v31_v22 = vshra.s32 %v20523_v11, 3 }
 0x2af   :  { %v4532_v37 = vand.u32 4294901760, %v4531_v52  ;;  %v17466_v42 = vpack.c.bf16 %v4518_v3, %v4511_v2  ;;  %20608 = vst [vmem:[#allocation69_spill] sm:$0xff] %v17484_v7  ;;  %v17488_v2 = vpack.c.bf16 %v17256_v20, %v17251_v9  ;;  %v17496_v52 = vpack.c.bf16 %v17301_v41, %v17296_v26 }
 0x2b0   :  { %20609 = vst [vmem:[#allocation11_spill] sm:$0xff] %v17492_v60  ;;  %v17500_v3 = vpack.c.bf16 %v17331_v5, %v17316_v61  ;;  %20611 = vst [vmem:[#allocation76_spill] sm:$0xff] %v17512_v23  ;;  %v17520_v5 = vpack.c.bf16 %v17431_v53, %v17415_v34  ;;  %v17533_v44 = vand.u32 1, %v31_v22 }
 0x2b1   :  { %20605 = vst [vmem:[#allocation63_spill] sm:$0xff] %v17466_v42  ;;  %v17468_v4 = vpack.c.bf16 %v4532_v37, %v4525_v38  ;;  %v17504_v38 = vpack.c.bf16 %v17350_v28, %v17336_v33  ;;  %v17508_v37 = vpack.c.bf16 %v17367_v8, %v17362_v43  ;;  %v17524_v28 = vpack.c.bf16 %v17441_v29, %v17436_v10 }
 0x2b2   :  { %20612 = vst [vmem:[#allocation13_spill] sm:$0xff] %v17520_v5  ;;  %20616 = vst [vmem:[#allocation17_spill] sm:$0xff] %v17533_v44  ;;  %vm33_vm4 = vcmp.eq.s32.totalorder %v17533_v44, 1  ;;  %v20628_v44 = vld [vmem:[#allocation80_spill] sm:$0xff] }
 0x2b3   :  { %20606 = vst [vmem:[#allocation10_spill] sm:$0xff] %v17468_v4  ;;  %20610 = vst [vmem:[#allocation73_spill] sm:$0xff] %v17504_v38 }
 0x2b4   :  { %20613 = vst [vmem:[#allocation79_spill] sm:$0xff] %v17524_v28 }
 0x2c8   :  { %v17526_v33 = vpop.f32.mrb[4].mxu1 }
 0x2c9   :  { %20614 = vst [vmem:[#allocation82_spill] sm:$0xff] %v17526_v33  ;;  %v3651_v8 = vmul.f32 %v17199_v58, %v17526_v33  ;;  %v17530_v43 = vpop.f32.mrb[5].mxu1  ;;  %v3654_v11 = vmul.f32 %v17150_v24, %v17526_v33  ;;  %v20618_v24 = vand.u32 4294901760, %v16931_v35  ;;  %v20629_v33 = vld [vmem:[#allocation77_spill] sm:$0xff] }
 0x2ca   :  { %20615 = vst [vmem:[#allocation15_spill] sm:$0xff] %v17530_v43 }
 0x2f8   :  { %v3649_v19 = vpop.permute.xlu1 %3648  ;;  %v3647_v53 = vpop.permute.xlu0 %3646 }
 0x2f9   :  { %v3650_v34 = vsel %vm33_vm4, %v3649_v19, %v3647_v53  ;;  %v20619_v53 = vand.u32 4294901760, %v16936_v30 }
 0x2fa   :  { %v3652_v29 = vmul.f32 %v3650_v34, %v17530_v43 }
 0x2fc   :  { %v3653_v10 = vadd.f32 %v3652_v29, %v3651_v8  ;;  %v3644_v36 = vpop.permute.xlu1 %3643  ;;  %v3642_v61 = vpop.permute.xlu0 %3641 }
 0x2fd   :  { %v3645_v58 = vsel %vm33_vm4, %v3644_v36, %v3642_v61  ;;  %v17562_v36 = vsub.f32 %v16931_v35, %v20618_v24 }
 0x2fe   :  { %v17543_v22 = vand.u32 4294901760, %v3653_v10  ;;  %v3655_v41 = vmul.f32 %v3645_v58, %v17530_v43  ;;  %v20627_v43 = vld [vmem:[#allocation74_spill] sm:$0xff] }
 0x2ff   :  { %v20001_v35 = vand.u32 4294901760, %v17562_v36 }
 0x300   :  { %v17547_v26 = vsub.f32 %v3653_v10, %v17543_v22  ;;  %v3656_v57 = vsub.f32 %v3654_v11, %v3655_v41  ;;  %v17567_v41 = vsub.f32 %v16936_v30, %v20619_v53 }
 0x301   :  { %v4468_v11 = vsub.f32 %v17562_v36, %v20001_v35  ;;  %v20626_v35 = vld [vmem:[#allocation75_spill] sm:$0xff] }
 0x302   :  { %20617 = vst [vmem:[#allocation89_spill] sm:$0xff] %v17547_v26  ;;  %v17549_v19 = vand.u32 4294901760, %v3656_v57  ;;  %v17552_v8 = vand.u32 4294901760, %v17547_v26  ;;  %v20000_v58 = vand.u32 4294901760, %v17567_v41 }
 0x303   :  { %v4469_v24 = vand.u32 4294901760, %v4468_v11  ;;  %v20621_v11 = vld [vmem:[#allocation3_spill] sm:$0xff] }
 0x304   :  { %v17555_v34 = vsub.f32 %v3656_v57, %v17549_v19  ;;  %v3774_v61 = vsub.f32 %v17547_v26, %v17552_v8 }
 0x306   :  { %v17569_v10 = vand.u32 4294901760, %v3774_v61  ;;  %v17572_v29 = vand.u32 4294901760, %v17555_v34  ;;  %v4475_v61 = vsub.f32 %v17567_v41, %v20000_v58  ;;  %v20625_v58 = vld [vmem:[#allocation70_spill] sm:$0xff] }
 0x308   :  { %10586 = vmatmul.mubr.f32.vlgmr.msra.gmra.mrb[4].mxu0 %v17569_v10  ;;  %v4415_v57 = vsub.f32 %v17555_v34, %v17572_v29  ;;  %v4476_v53 = vand.u32 4294901760, %v4475_v61  ;;  %v17646_v61 = vpack.c.bf16 %v17567_v41, %v17562_v36 }
 0x309   :  { %13237 = vmatpush3.bf16.msra.mxu0 %v17185_v39  ;;  %10620 = vmatprep.mubr.msk.f32.mxu0 %vm14663_vm3, %v20067_v14 }
 0x30a   :  { %13238 = vmatprep.subr.bf16.mxu0 %v20551_v17  ;;  %v17583_v30 = vand.u32 4294901760, %v4415_v57  ;;  %v17604_v57 = vpack.c.bf16 %v4476_v53, %v4469_v24  ;;  %20622 = vst [vmem:[#allocation94_spill] sm:$0xff] %v17646_v61  ;;  %v20623_v24 = vld [vmem:[#allocation67_spill] sm:$0xff] }
 0x30b   :  { %v20624_v53 = vld [vmem:[#allocation71_spill] sm:$0xff] }
 0x30c   :  { %10796 = vmatmul.mubr.f32.vlgmr.msra.gmra.mrb[6].mxu1 %v17583_v30  ;;  %20620 = vst [vmem:[#allocation18_spill] sm:$0xff] %v17604_v57 }
 0x30d   :  { %13240 = vmatpush3.bf16.msra.mxu0 %v17245_v15  ;;  %13381 = vmatpush3.bf16.msra.mxu1 %v17277_v1 }
 0x30e   :  { %13241 = vmatprep.subr.bf16.mxu0 %v20551_v17  ;;  %13382 = vmatprep.subr.bf16.mxu1 %v20551_v17 }
 0x30f   :  { %10830 = vmatprep.mubr.msk.f32.mxu1 %vm14663_vm3, %v20067_v14 }
 0x311   :  { %13243 = vmatpush3.bf16.msra.mxu0 %v17286_v12  ;;  %13384 = vmatpush3.bf16.msra.mxu1 %v17303_v40 }
 0x312   :  { %13244 = vmatprep.subr.bf16.mxu0 %v20551_v17  ;;  %13385 = vmatprep.subr.bf16.mxu1 %v20551_v17 }
 0x315   :  { %13246 = vmatpush3.bf16.msra.mxu0 %v17311_v21  ;;  %13387 = vmatpush3.bf16.msra.mxu1 %v17343_v46 }
 0x316   :  { %13247 = vmatprep.subr.bf16.mxu0 %v20551_v17  ;;  %13388 = vmatprep.subr.bf16.mxu1 %v20551_v17 }
 0x319   :  { %13249 = vmatpush3.bf16.msra.mxu0 %v17345_v47  ;;  %13390 = vmatpush3.bf16.msra.mxu1 %v17604_v57  ;;  %v20642_v57 = vand.u32 4294901760, %v17147_v32  ;;  %v20646_v32 = vand.u32 4294901760, %v17222_v62  ;;  %v20650_v62 = vand.u32 4294901760, %v17256_v20 }
 0x31a   :  { %13250 = vmatprep.subr.bf16.mxu0 %v20551_v17  ;;  %13391 = vmatprep.subr.bf16.mxu1 %v20551_v17 }
 0x31d   :  { %13252 = vmatpush3.bf16.msra.mxu0 %v20621_v11  ;;  %13393 = vmatpush3.bf16.msra.mxu1 %v17417_v63  ;;  %v20641_v63 = vand.u32 4294901760, %v17142_v51  ;;  %v20645_v51 = vand.u32 4294901760, %v17217_v18  ;;  %v20649_v18 = vand.u32 4294901760, %v17251_v9 }
 0x31e   :  { %13253 = vmatprep.subr.bf16.mxu0 %v20551_v17  ;;  %13394 = vmatprep.subr.bf16.mxu1 %v20551_v17 }
 0x31f   :  { %v17717_v46 = vpack.c.bf16 %v20642_v57, %v20641_v63  ;;  %v20648_v63 = vand.u32 4294901760, %v17236_v48  ;;  %v20651_v48 = vand.u32 4294901760, %v17275_v6  ;;  %v20652_v57 = vld [vmem:[#allocation93_spill] sm:$0xff]  ;;  %v20659_v6 = vand.u32 4294901760, %v17562_v36 }
 0x321   :  { %13255 = vmatpush3.bf16.msra.mxu0 %v17426_v25  ;;  %13396 = vmatpush3.bf16.msra.mxu1 %v17443_v56  ;;  %v20640_v56 = vld [vmem:[#allocation92_spill] sm:$0xff] }
 0x322   :  { %13256 = vmatprep.subr.bf16.mxu0 %v20551_v17  ;;  %13397 = vmatprep.subr.bf16.mxu1 %v20551_v17 }
 0x325   :  { %13258 = vmatpush3.bf16.msra.mxu0 %v17451_v0  ;;  %13399 = vmatpush3.bf16.msra.mxu1 %v17466_v42 }
 0x326   :  { %13259 = vmatprep.subr.bf16.mxu0 %v20551_v17  ;;  %13400 = vmatprep.subr.bf16.mxu1 %v20551_v17 }
 0x328   :  { %10621 = vmatmul.mubr.f32.vlgmr.msra.gmra.mrb[4].mxu0 %v17543_v22 }
 0x329   :  { %13261 = vmatpush3.bf16.msra.mxu0 %v17458_v13  ;;  %13402 = vmatpush3.bf16.msra.mxu1 %v17468_v4  ;;  %v20639_v4 = vand.u32 4294901760, %v17080_v45  ;;  %v20643_v45 = vand.u32 4294901760, %v17166_v16  ;;  %v17736_v16 = vpack.c.bf16 %v20646_v32, %v20645_v51  ;;  %v20655_v51 = vld [vmem:[#allocation95_spill] sm:$0xff]  ;;  %v20657_v32 = vld [vmem:[#allocation96_spill] sm:$0xff] }
 0x32a   :  { %13262 = vmatprep.subr.bf16.mxu0 %v20551_v17  ;;  %13403 = vmatprep.subr.bf16.mxu1 %v20551_v17  ;;  %v20656_v9 = vand.u32 4294901760, %v20655_v51  ;;  %v20658_v20 = vand.u32 4294901760, %v20657_v32  ;;  %v20668_v32 = vld [vmem:[#allocation30_spill] sm:$0xff] }
 0x32b   :  { %10655 = vmatprep.mubr.msk.f32.mxu0 %vm14663_vm3, %v20067_v14 }
 0x32c   :  { %10831 = vmatmul.mubr.f32.vlgmr.msra.gmra.mrb[6].mxu1 %v17549_v19 }
 0x32d   :  { %13264 = vmatpush3.bf16.msra.mxu0 %v17472_v31  ;;  %13405 = vmatpush3.bf16.msra.mxu1 %v17476_v50  ;;  %v20638_v50 = vand.u32 4294901760, %v17075_v27 }
 0x32e   :  { %13265 = vmatprep.subr.bf16.mxu0 %v20551_v17  ;;  %13406 = vmatprep.subr.bf16.mxu1 %v20551_v17 }
 0x32f   :  { %10865 = vmatprep.mubr.msk.f32.mxu1 %vm14663_vm3, %v20067_v14  ;;  %v17706_v42 = vpack.c.bf16 %v20639_v4, %v20638_v50  ;;  %v20644_v50 = vand.u32 4294901760, %v17196_v55  ;;  %v20647_v55 = vand.u32 4294901760, %v17227_v49  ;;  %v17754_v49 = vpack.c.bf16 %v20650_v62, %v20649_v18  ;;  %v20662_v62 = vld [vmem:[#allocation22_spill] sm:$0xff] }
 0x331   :  { %13267 = vmatpush3.bf16.msra.mxu0 %v17480_v59  ;;  %13408 = vmatpush3.bf16.msra.mxu1 %v17484_v7  ;;  %v20637_v7 = vld [vmem:[#allocation91_spill] sm:$0xff]  ;;  %v17723_v27 = vpack.c.bf16 %v20644_v50, %v20643_v45  ;;  %v17742_v4 = vpack.c.bf16 %v20648_v63, %v20647_v55  ;;  %v20653_v45 = vand.u32 4294901760, %v20652_v57  ;;  %v17770_v55 = vpack.c.bf16 %v20658_v20, %v20656_v9  ;;  %v20664_v57 = vld [vmem:[#allocation25_spill] sm:$0xff] }
 0x332   :  { %13268 = vmatprep.subr.bf16.mxu0 %v20551_v17  ;;  %13409 = vmatprep.subr.bf16.mxu1 %v20551_v17  ;;  %v20660_v63 = vand.u32 4294901760, %v17567_v41  ;;  %v20666_v9 = vld [vmem:[#allocation19_spill] sm:$0xff]  ;;  %v20669_v41 = vand.u32 4294901760, %v20668_v32 }
 0x333   :  { %v17760_v50 = vpack.c.bf16 %v20653_v45, %v20651_v48  ;;  %v20663_v48 = vand.u32 4294901760, %v20662_v62  ;;  %v20665_v45 = vand.u32 4294901760, %v20664_v57  ;;  %v20667_v36 = vand.u32 4294901760, %v20666_v9  ;;  %v20673_v62 = vld [vmem:[#allocation36_spill] sm:$0xff] }
 0x334   :  { %v17776_v18 = vpack.c.bf16 %v20660_v63, %v20659_v6  ;;  %v20671_v6 = vld [vmem:[#allocation33_spill] sm:$0xff]  ;;  %v20674_v57 = vand.u32 4294901760, %v20673_v62 }
 0x335   :  { %13270 = vmatpush3.bf16.msra.mxu0 %v17488_v2  ;;  %13411 = vmatpush3.bf16.msra.mxu1 %v17492_v60  ;;  %v20636_v60 = vld [vmem:[#allocation90_spill] sm:$0xff]  ;;  %20654 = vst [vmem:[#allocation37_spill] sm:$0xff] %v17760_v50  ;;  %v17786_v51 = vpack.c.bf16 %v20665_v45, %v20663_v48  ;;  %v17792_v20 = vpack.c.bf16 %v20669_v41, %v20667_v36  ;;  %v20672_v63 = vand.u32 4294901760, %v20671_v6  ;;  %v20680_v41 = vld [vmem:[#allocation44_spill] sm:$0xff] }
 0x336   :  { %13271 = vmatprep.subr.bf16.mxu0 %v20551_v17  ;;  %13412 = vmatprep.subr.bf16.mxu1 %v20551_v17  ;;  %20661 = vst [vmem:[#allocation2_spill] sm:$0xff] %v17776_v18  ;;  %v20675_v45 = vld [vmem:[#allocation38_spill] sm:$0xff]  ;;  %v20681_v6 = vand.u32 4294901760, %v20680_v41 }
 0x337   :  { %20670 = vst [vmem:[#allocation39_spill] sm:$0xff] %v17792_v20  ;;  %v17802_v48 = vpack.c.bf16 %v20674_v57, %v20672_v63  ;;  %v20676_v9 = vand.u32 4294901760, %v20675_v45  ;;  %v20684_v57 = vld [vmem:[#allocation5_spill] sm:$0xff] }
 0x338   :  { %v20685_v45 = vand.u32 4294901760, %v20684_v57  ;;  %v18166_v57 = vld [vmem:[%s19598_s3 + $0x128] sm:$0xff] }
 0x339   :  { %13273 = vmatpush3.bf16.msra.mxu0 %v17496_v52  ;;  %13414 = vmatpush3.bf16.msra.mxu1 %v17646_v61  ;;  %v20635_v61 = vld [vmem:[#allocation88_spill] sm:$0xff] }
 0x33a   :  { %13274 = vmatprep.subr.bf16.mxu0 %v20551_v17  ;;  %13415 = vmatprep.subr.bf16.mxu1 %v20551_v17 }
 0x33d   :  { %13276 = vmatpush3.bf16.msra.mxu0 %v17500_v3  ;;  %13417 = vmatpush3.bf16.msra.mxu1 %v17504_v38  ;;  %v20634_v38 = vld [vmem:[#allocation87_spill] sm:$0xff] }
 0x33e   :  { %13277 = vmatprep.subr.bf16.mxu0 %v20551_v17  ;;  %13418 = vmatprep.subr.bf16.mxu1 %v20551_v17 }
 0x341   :  { %13279 = vmatpush3.bf16.msra.mxu0 %v17508_v37  ;;  %13420 = vmatpush3.bf16.msra.mxu1 %v17512_v23  ;;  %v20633_v23 = vld [vmem:[#allocation86_spill] sm:$0xff] }
 0x342   :  { %13280 = vmatprep.subr.bf16.mxu0 %v20551_v17  ;;  %13421 = vmatprep.subr.bf16.mxu1 %v20551_v17 }
 0x345   :  { %13282 = vmatpush3.bf16.msra.mxu0 %v17516_v54  ;;  %13423 = vmatpush3.bf16.msra.mxu1 %v17520_v5  ;;  %v20632_v5 = vld [vmem:[#allocation85_spill] sm:$0xff] }
 0x346   :  { %13283 = vmatprep.subr.bf16.mxu0 %v20551_v17  ;;  %13424 = vmatprep.subr.bf16.mxu1 %v20551_v17 }
 0x348   :  { %10656 = vmatmul.mubr.f32.vlgmr.msra.gmra.mrb[4].mxu0 %v17547_v26  ;;  %v20630_v26 = vld [vmem:[#allocation83_spill] sm:$0xff] }
 0x349   :  { %13285 = vmatpush3.bf16.msra.mxu0 %v20623_v24  ;;  %13426 = vmatpush3.bf16.msra.mxu1 %v17524_v28  ;;  %v20631_v28 = vld [vmem:[#allocation81_spill] sm:$0xff] }
 0x34a   :  { %13286 = vmatprep.subr.bf16.mxu0 %v20551_v17  ;;  %13427 = vmatprep.subr.bf16.mxu1 %v20551_v17 }
 0x34b   :  { %10690 = vmatprep.mubr.msk.f32.mxu0 %vm14663_vm3, %v20067_v14 }
 0x34c   :  { %10866 = vmatmul.mubr.f32.vlgmr.msra.gmra.mrb[6].mxu1 %v17555_v34 }
 0x34d   :  { %13288 = vmatpush3.bf16.msra.mxu0 %v20624_v53  ;;  %13429 = vmatpush3.bf16.msra.mxu1 %v20625_v58 }
 0x34e   :  { %13289 = vmatprep.subr.bf16.mxu0 %v20551_v17  ;;  %13430 = vmatprep.subr.bf16.mxu1 %v20551_v17 }
 0x34f   :  { %10900 = vmatprep.mubr.msk.f32.mxu1 %vm14663_vm3, %v20067_v14 }
 0x351   :  { %13291 = vmatpush3.bf16.msra.mxu0 %v20626_v35  ;;  %13432 = vmatpush3.bf16.msra.mxu1 %v20627_v43 }
 0x352   :  { %13292 = vmatprep.subr.bf16.mxu0 %v20551_v17  ;;  %13433 = vmatprep.subr.bf16.mxu1 %v20551_v17 }
 0x355   :  { %13294 = vmatpush3.bf16.msra.mxu0 %v20628_v44  ;;  %13435 = vmatpush3.bf16.msra.mxu1 %v20629_v33 }
 0x356   :  { %13295 = vmatprep.subr.bf16.mxu0 %v20551_v17  ;;  %13436 = vmatprep.subr.bf16.mxu1 %v20551_v17 }
 0x359   :  { %13297 = vmatpush3.bf16.msra.mxu0 %v20630_v26  ;;  %13438 = vmatpush3.bf16.msra.mxu1 %v20631_v28 }
 0x35a   :  { %13298 = vmatprep.subr.bf16.mxu0 %v20551_v17  ;;  %13439 = vmatprep.subr.bf16.mxu1 %v20551_v17 }
 0x35d   :  { %13300 = vmatpush3.bf16.msra.mxu0 %v20632_v5  ;;  %13441 = vmatpush3.bf16.msra.mxu1 %v20633_v23 }
 0x35e   :  { %13301 = vmatprep.subr.bf16.mxu0 %v20551_v17  ;;  %13442 = vmatprep.subr.bf16.mxu1 %v20551_v17 }
 0x361   :  { %13303 = vmatpush3.bf16.msra.mxu0 %v20634_v38  ;;  %13444 = vmatpush3.bf16.msra.mxu1 %v20635_v61 }
 0x362   :  { %13304 = vmatprep.subr.bf16.mxu0 %v20551_v17  ;;  %13445 = vmatprep.subr.bf16.mxu1 %v20551_v17 }
 0x365   :  { %13306 = vmatpush3.bf16.msra.mxu0 %v20636_v60  ;;  %13447 = vmatpush3.bf16.msra.mxu1 %v20637_v7 }
 0x366   :  { %13307 = vmatprep.subr.bf16.mxu0 %v20551_v17  ;;  %13448 = vmatprep.subr.bf16.mxu1 %v20551_v17 }
 0x368   :  { %10691 = vmatmul.mubr.f32.vlgmr.msra.gmra.mrb[4].mxu0 %v17552_v8 }
 0x369   :  { %13309 = vmatpush3.bf16.msra.mxu0 %v17706_v42  ;;  %13450 = vmatpush3.bf16.msra.mxu1 %v20640_v56 }
 0x36a   :  { %13310 = vmatprep.subr.bf16.mxu0 %v20551_v17  ;;  %13451 = vmatprep.subr.bf16.mxu1 %v20551_v17 }
 0x36b   :  { %10725 = vmatprep.mubr.msk.f32.mxu0 %vm14663_vm3, %v20067_v14 }
 0x36c   :  { %10901 = vmatmul.mubr.f32.vlgmr.msra.gmra.mrb[6].mxu1 %v17572_v29 }
 0x36d   :  { %13312 = vmatpush3.bf16.msra.mxu0 %v17717_v46  ;;  %13453 = vmatpush3.bf16.msra.mxu1 %v17723_v27 }
 0x36e   :  { %13313 = vmatprep.subr.bf16.mxu0 %v20551_v17  ;;  %13454 = vmatprep.subr.bf16.mxu1 %v20551_v17 }
 0x36f   :  { %10935 = vmatprep.mubr.msk.f32.mxu1 %vm14663_vm3, %v20067_v14 }
 0x371   :  { %13315 = vmatpush3.bf16.msra.mxu0 %v17736_v16  ;;  %13456 = vmatpush3.bf16.msra.mxu1 %v17742_v4 }
 0x372   :  { %13316 = vmatprep.subr.bf16.mxu0 %v20551_v17  ;;  %13457 = vmatprep.subr.bf16.mxu1 %v20551_v17 }
 0x375   :  { %13318 = vmatpush3.bf16.msra.mxu0 %v17754_v49  ;;  %13459 = vmatpush3.bf16.msra.mxu1 %v17760_v50  ;;  %v20686_v50 = vld [vmem:[#allocation54_spill] sm:$0xff] }
 0x376   :  { %13319 = vmatprep.subr.bf16.mxu0 %v20551_v17  ;;  %13460 = vmatprep.subr.bf16.mxu1 %v20551_v17 }
 0x379   :  { %13321 = vmatpush3.bf16.msra.mxu0 %v17770_v55  ;;  %13462 = vmatpush3.bf16.msra.mxu1 %v17776_v18  ;;  %v20677_v18 = vld [vmem:[#allocation41_spill] sm:$0xff] }
 0x37a   :  { %13322 = vmatprep.subr.bf16.mxu0 %v20551_v17  ;;  %13463 = vmatprep.subr.bf16.mxu1 %v20551_v17  ;;  %v20678_v32 = vand.u32 4294901760, %v20677_v18  ;;  %v20687_v18 = vand.u32 4294901760, %v20686_v50  ;;  %v18154_v50 = vld [vmem:[%s19598_s3 + $0x118] sm:$0xff] }
 0x37c   :  { %v17808_v36 = vpack.c.bf16 %v20678_v32, %v20676_v9  ;;  %v17824_v9 = vpack.c.bf16 %v20687_v18, %v20685_v45  ;;  %v20688_v32 = vld [vmem:[#allocation57_spill] sm:$0xff] }
 0x37d   :  { %13324 = vmatpush3.bf16.msra.mxu0 %v17786_v51  ;;  %13465 = vmatpush3.bf16.msra.mxu1 %v17792_v20  ;;  %v20682_v20 = vld [vmem:[#allocation47_spill] sm:$0xff]  ;;  %v20689_v41 = vand.u32 4294901760, %v20688_v32  ;;  %v20716_v32 = vld [vmem:[#allocation9_spill] sm:$0xff] }
 0x37e   :  { %20679 = vst [vmem:[#allocation40_spill] sm:$0xff] %v17808_v36  ;;  %13325 = vmatprep.subr.bf16.mxu0 %v20551_v17  ;;  %13466 = vmatprep.subr.bf16.mxu1 %v20551_v17  ;;  %v20683_v62 = vand.u32 4294901760, %v20682_v20 }
 0x380   :  { %v17818_v63 = vpack.c.bf16 %v20683_v62, %v20681_v6  ;;  %v6363_v62 = vand.u32 4294901760, %v18154_v50 }
 0x381   :  { %13327 = vmatpush3.bf16.msra.mxu0 %v17802_v48  ;;  %13468 = vmatpush3.bf16.msra.mxu1 %v17808_v36  ;;  %v20690_v36 = vld [vmem:[#allocation8_spill] sm:$0xff] }
 0x382   :  { %13328 = vmatprep.subr.bf16.mxu0 %v20551_v17  ;;  %13469 = vmatprep.subr.bf16.mxu1 %v20551_v17  ;;  %v20691_v20 = vand.u32 4294901760, %v20690_v36 }
 0x384   :  { %v17834_v6 = vpack.c.bf16 %v20691_v20, %v20689_v41 }
 0x385   :  { %13330 = vmatpush3.bf16.msra.mxu0 %v17818_v63  ;;  %13471 = vmatpush3.bf16.msra.mxu1 %v17824_v9 }
 0x386   :  { %13331 = vmatprep.subr.bf16.mxu0 %v20551_v17  ;;  %13472 = vmatprep.subr.bf16.mxu1 %v20551_v17 }
 0x388   :  { %10726 = vmatmul.mubr.f32.vlgmr.msra.gmra.mrb[4].mxu0 %v17543_v22 }
 0x389   :  { %13333 = vmatpush3.bf16.msra.mxu0 %v20623_v24  ;;  %13474 = vmatpush3.bf16.msra.mxu1 %v17834_v6 }
 0x38a   :  { %13334 = vmatprep.subr.bf16.mxu0 %v20551_v17  ;;  %13475 = vmatprep.subr.bf16.mxu1 %v20551_v17 }
 0x38b   :  { %10760 = vmatprep.mubr.msk.f32.mxu0 %vm14663_vm3, %v20067_v14 }
 0x38c   :  { %10936 = vmatmul.mubr.f32.vlgmr.msra.gmra.mrb[6].mxu1 %v17549_v19 }
 0x38d   :  { %13336 = vmatpush3.bf16.msra.mxu0 %v20624_v53  ;;  %13477 = vmatpush3.bf16.msra.mxu1 %v20625_v58 }
 0x38e   :  { %13337 = vmatprep.subr.bf16.mxu0 %v20551_v17  ;;  %13478 = vmatprep.subr.bf16.mxu1 %v20551_v17 }
 0x38f   :  { %10970 = vmatprep.mubr.msk.f32.mxu1 %vm14663_vm3, %v20067_v14 }
 0x391   :  { %13339 = vmatpush3.bf16.msra.mxu0 %v20626_v35  ;;  %13480 = vmatpush3.bf16.msra.mxu1 %v20627_v43 }
 0x392   :  { %13340 = vmatprep.subr.bf16.mxu0 %v20551_v17  ;;  %13481 = vmatprep.subr.bf16.mxu1 %v20551_v17 }
 0x395   :  { %13342 = vmatpush3.bf16.msra.mxu0 %v20628_v44  ;;  %13483 = vmatpush3.bf16.msra.mxu1 %v20629_v33 }
 0x396   :  { %13343 = vmatprep.subr.bf16.mxu0 %v20551_v17  ;;  %13484 = vmatprep.subr.bf16.mxu1 %v20551_v17 }
 0x399   :  { %13345 = vmatpush3.bf16.msra.mxu0 %v20630_v26  ;;  %13486 = vmatpush3.bf16.msra.mxu1 %v20631_v28 }
 0x39a   :  { %13346 = vmatprep.subr.bf16.mxu0 %v20551_v17  ;;  %13487 = vmatprep.subr.bf16.mxu1 %v20551_v17 }
 0x39d   :  { %13348 = vmatpush3.bf16.msra.mxu0 %v20632_v5  ;;  %13489 = vmatpush3.bf16.msra.mxu1 %v20633_v23 }
 0x39e   :  { %13349 = vmatprep.subr.bf16.mxu0 %v20551_v17  ;;  %13490 = vmatprep.subr.bf16.mxu1 %v20551_v17 }
 0x3a1   :  { %13351 = vmatpush3.bf16.msra.mxu0 %v20634_v38  ;;  %13492 = vmatpush3.bf16.msra.mxu1 %v20635_v61 }
 0x3a2   :  { %13352 = vmatprep.subr.bf16.mxu0 %v20551_v17  ;;  %13493 = vmatprep.subr.bf16.mxu1 %v20551_v17 }
 0x3a5   :  { %13354 = vmatpush3.bf16.msra.mxu0 %v20636_v60  ;;  %13495 = vmatpush3.bf16.msra.mxu1 %v20637_v7 }
 0x3a6   :  { %13496 = vmatprep.subr.bf16.mxu1 %v20551_v17  ;;  %13499 = vmatprep.subr.bf16.mxu0 %v20551_v17 }
 0x3a8   :  { %10761 = vmatmul.mubr.f32.vlgmr.msra.gmra.mrb[4].mxu0 %v17543_v22 }
 0x3a9   :  { %13498 = vmatpush3.bf16.msra.mxu1 %v20640_v56  ;;  %13501 = vmatpush3.bf16.msra.mxu0 %v20623_v24 }
 0x3aa   :  { %13502 = vmatprep.subr.bf16.mxu0 %v20551_v17  ;;  %11005 = vmatprep.mubr.msk.f32.mxu0 %vm14663_vm3, %v20067_v14 }
 0x3ab   :  { %13787 = vmatprep.subr.bf16.mxu1 %v20551_v17 }
 0x3ac   :  { %10971 = vmatmul.mubr.f32.vlgmr.msra.gmra.mrb[6].mxu1 %v17549_v19 }
 0x3ad   :  { %13504 = vmatpush3.bf16.msra.mxu0 %v20624_v53  ;;  %11425 = vmatprep.mubr.msk.f32.mxu1 %vm14663_vm3, %v20067_v14 }
 0x3ae   :  { %13505 = vmatprep.subr.bf16.mxu0 %v20551_v17 }
 0x3b1   :  { %13507 = vmatpush3.bf16.msra.mxu0 %v20626_v35 }
 0x3b2   :  { %13508 = vmatprep.subr.bf16.mxu0 %v20551_v17 }
 0x3b5   :  { %13510 = vmatpush3.bf16.msra.mxu0 %v20628_v44 }
 0x3b6   :  { %13511 = vmatprep.subr.bf16.mxu0 %v20551_v17 }
 0x3b9   :  { %13513 = vmatpush3.bf16.msra.mxu0 %v20630_v26 }
 0x3ba   :  { %13514 = vmatprep.subr.bf16.mxu0 %v20551_v17 }
 0x3bd   :  { %13516 = vmatpush3.bf16.msra.mxu0 %v20632_v5 }
 0x3be   :  { %13517 = vmatprep.subr.bf16.mxu0 %v20551_v17 }
 0x3c1   :  { %13519 = vmatpush3.bf16.msra.mxu0 %v20634_v38 }
 0x3c2   :  { %13520 = vmatprep.subr.bf16.mxu0 %v20551_v17 }
 0x3c5   :  { %13522 = vmatpush3.bf16.msra.mxu0 %v20636_v60 }
 0x3c6   :  { %13523 = vmatprep.subr.bf16.mxu0 %v20551_v17 }
 0x3c8   :  { %11006 = vmatmul.mubr.f32.vlgmr.msra.gmra.mrb[6].mxu0 %v17583_v30 }
 0x3c9   :  { %13525 = vmatpush3.bf16.msra.mxu0 %v17185_v39  ;;  %11040 = vmatprep.mubr.msk.f32.mxu0 %vm14663_vm3, %v20067_v14 }
 0x3ca   :  { %13526 = vmatprep.subr.bf16.mxu0 %v20551_v17 }
 0x3cd   :  { %13528 = vmatpush3.bf16.msra.mxu0 %v17245_v15 }
 0x3ce   :  { %13529 = vmatprep.subr.bf16.mxu0 %v20551_v17 }
 0x3d1   :  { %13531 = vmatpush3.bf16.msra.mxu0 %v17286_v12 }
 0x3d2   :  { %13532 = vmatprep.subr.bf16.mxu0 %v20551_v17 }
 0x3d5   :  { %13534 = vmatpush3.bf16.msra.mxu0 %v17311_v21  ;;  %v20693_v21 = vld [vmem:[#allocation18_spill] sm:$0xff] }
 0x3d6   :  { %13535 = vmatprep.subr.bf16.mxu0 %v20551_v17 }
 0x3d9   :  { %13537 = vmatpush3.bf16.msra.mxu0 %v17345_v47  ;;  %v20696_v47 = vld [vmem:[#allocation63_spill] sm:$0xff] }
 0x3da   :  { %13538 = vmatprep.subr.bf16.mxu0 %v20551_v17 }
 0x3dd   :  { %13540 = vmatpush3.bf16.msra.mxu0 %v20621_v11 }
 0x3de   :  { %13541 = vmatprep.subr.bf16.mxu0 %v20551_v17 }
 0x3e1   :  { %13543 = vmatpush3.bf16.msra.mxu0 %v17426_v25 }
 0x3e2   :  { %13544 = vmatprep.subr.bf16.mxu0 %v20551_v17 }
 0x3e5   :  { %13546 = vmatpush3.bf16.msra.mxu0 %v17451_v0  ;;  %v20702_v0 = vld [vmem:[#allocation73_spill] sm:$0xff] }
 0x3e6   :  { %13547 = vmatprep.subr.bf16.mxu0 %v20551_v17 }
 0x3e8   :  { %11041 = vmatmul.mubr.f32.vlgmr.msra.gmra.mrb[6].mxu0 %v17549_v19 }
 0x3e9   :  { %13549 = vmatpush3.bf16.msra.mxu0 %v17458_v13  ;;  %11075 = vmatprep.mubr.msk.f32.mxu0 %vm14663_vm3, %v20067_v14  ;;  %v20703_v13 = vld [vmem:[#allocation76_spill] sm:$0xff] }
 0x3ea   :  { %13550 = vmatprep.subr.bf16.mxu0 %v20551_v17 }
 0x3ed   :  { %13552 = vmatpush3.bf16.msra.mxu0 %v17472_v31  ;;  %v20700_v31 = vld [vmem:[#allocation11_spill] sm:$0xff] }
 0x3ee   :  { %13553 = vmatprep.subr.bf16.mxu0 %v20551_v17 }
 0x3f1   :  { %13555 = vmatpush3.bf16.msra.mxu0 %v17480_v59  ;;  %v20701_v59 = vld [vmem:[#allocation94_spill] sm:$0xff] }
 0x3f2   :  { %13556 = vmatprep.subr.bf16.mxu0 %v20551_v17 }
 0x3f5   :  { %13558 = vmatpush3.bf16.msra.mxu0 %v17488_v2  ;;  %v20705_v2 = vld [vmem:[#allocation79_spill] sm:$0xff] }
 0x3f6   :  { %13559 = vmatprep.subr.bf16.mxu0 %v20551_v17 }
 0x3f9   :  { %13561 = vmatpush3.bf16.msra.mxu0 %v17496_v52  ;;  %v20707_v52 = vld [vmem:[#allocation37_spill] sm:$0xff] }
 0x3fa   :  { %13562 = vmatprep.subr.bf16.mxu0 %v20551_v17 }
 0x3fd   :  { %13564 = vmatpush3.bf16.msra.mxu0 %v17500_v3  ;;  %v20708_v3 = vld [vmem:[#allocation2_spill] sm:$0xff] }
 0x3fe   :  { %13565 = vmatprep.subr.bf16.mxu0 %v20551_v17 }
 0x401   :  { %13567 = vmatpush3.bf16.msra.mxu0 %v17508_v37  ;;  %v20710_v37 = vld [vmem:[#allocation40_spill] sm:$0xff] }
 0x402   :  { %13568 = vmatprep.subr.bf16.mxu0 %v20551_v17 }
 0x405   :  { %13570 = vmatpush3.bf16.msra.mxu0 %v17516_v54  ;;  %v20699_v54 = vld [vmem:[#allocation69_spill] sm:$0xff] }
 0x406   :  { %13571 = vmatprep.subr.bf16.mxu0 %v20551_v17 }
 0x408   :  { %11076 = vmatmul.mubr.f32.vlgmr.msra.gmra.mrb[6].mxu0 %v17555_v34 }
 0x409   :  { %13573 = vmatpush3.bf16.msra.mxu0 %v20623_v24  ;;  %11110 = vmatprep.mubr.msk.f32.mxu0 %vm14663_vm3, %v20067_v14 }
 0x40a   :  { %13574 = vmatprep.subr.bf16.mxu0 %v20551_v17 }
 0x40d   :  { %13576 = vmatpush3.bf16.msra.mxu0 %v20624_v53 }
 0x40e   :  { %13577 = vmatprep.subr.bf16.mxu0 %v20551_v17 }
 0x411   :  { %13579 = vmatpush3.bf16.msra.mxu0 %v20626_v35 }
 0x412   :  { %13580 = vmatprep.subr.bf16.mxu0 %v20551_v17 }
 0x415   :  { %13582 = vmatpush3.bf16.msra.mxu0 %v20628_v44 }
 0x416   :  { %13583 = vmatprep.subr.bf16.mxu0 %v20551_v17 }
 0x419   :  { %13585 = vmatpush3.bf16.msra.mxu0 %v20630_v26 }
 0x41a   :  { %13586 = vmatprep.subr.bf16.mxu0 %v20551_v17 }
 0x41d   :  { %13588 = vmatpush3.bf16.msra.mxu0 %v20632_v5 }
 0x41e   :  { %13589 = vmatprep.subr.bf16.mxu0 %v20551_v17 }
 0x421   :  { %13591 = vmatpush3.bf16.msra.mxu0 %v20634_v38 }
 0x422   :  { %13592 = vmatprep.subr.bf16.mxu0 %v20551_v17 }
 0x425   :  { %13594 = vmatpush3.bf16.msra.mxu0 %v20636_v60 }
 0x426   :  { %13595 = vmatprep.subr.bf16.mxu0 %v20551_v17 }
 0x428   :  { %11111 = vmatmul.mubr.f32.vlgmr.msra.gmra.mrb[6].mxu0 %v17572_v29 }
 0x429   :  { %13597 = vmatpush3.bf16.msra.mxu0 %v17706_v42  ;;  %11145 = vmatprep.mubr.msk.f32.mxu0 %vm14663_vm3, %v20067_v14  ;;  %v20704_v42 = vld [vmem:[#allocation13_spill] sm:$0xff] }
 0x42a   :  { %13598 = vmatprep.subr.bf16.mxu0 %v20551_v17 }
 0x42d   :  { %13600 = vmatpush3.bf16.msra.mxu0 %v17717_v46 }
 0x42e   :  { %13601 = vmatprep.subr.bf16.mxu0 %v20551_v17 }
 0x431   :  { %13603 = vmatpush3.bf16.msra.mxu0 %v17736_v16  ;;  %v18147_v16 = vld [vmem:[%s19598_s3 + $0x110] sm:$0xff] }
 0x432   :  { %13604 = vmatprep.subr.bf16.mxu0 %v20551_v17 }
 0x435   :  { %13606 = vmatpush3.bf16.msra.mxu0 %v17754_v49 }
 0x436   :  { %13607 = vmatprep.subr.bf16.mxu0 %v20551_v17 }
 0x439   :  { %13609 = vmatpush3.bf16.msra.mxu0 %v17770_v55  ;;  %v6360_v55 = vand.u32 4294901760, %v18147_v16 }
 0x43a   :  { %13610 = vmatprep.subr.bf16.mxu0 %v20551_v17 }
 0x43d   :  { %13612 = vmatpush3.bf16.msra.mxu0 %v17786_v51 }
 0x43e   :  { %13613 = vmatprep.subr.bf16.mxu0 %v20551_v17 }
 0x441   :  { %13615 = vmatpush3.bf16.msra.mxu0 %v17802_v48 }
 0x442   :  { %13616 = vmatprep.subr.bf16.mxu0 %v20551_v17 }
 0x445   :  { %13618 = vmatpush3.bf16.msra.mxu0 %v17818_v63  ;;  %v18161_v63 = vld [vmem:[%s19598_s3 + $0x120] sm:$0xff] }
 0x446   :  { %13619 = vmatprep.subr.bf16.mxu0 %v20551_v17 }
 0x448   :  { %11146 = vmatmul.mubr.f32.vlgmr.msra.gmra.mrb[6].mxu0 %v17549_v19 }
 0x449   :  { %13621 = vmatpush3.bf16.msra.mxu0 %v20623_v24  ;;  %11180 = vmatprep.mubr.msk.f32.mxu0 %vm14663_vm3, %v20067_v14 }
 0x44a   :  { %13622 = vmatprep.subr.bf16.mxu0 %v20551_v17 }
 0x44d   :  { %13624 = vmatpush3.bf16.msra.mxu0 %v20624_v53  ;;  %v18137_v53 = vld [vmem:[%s19598_s3 + $0x100] sm:$0xff] }
 0x44e   :  { %13625 = vmatprep.subr.bf16.mxu0 %v20551_v17 }
 0x451   :  { %13627 = vmatpush3.bf16.msra.mxu0 %v20626_v35 }
 0x452   :  { %13628 = vmatprep.subr.bf16.mxu0 %v20551_v17 }
 0x455   :  { %13630 = vmatpush3.bf16.msra.mxu0 %v20628_v44  ;;  %v20698_v44 = vld [vmem:[#allocation66_spill] sm:$0xff] }
 0x456   :  { %13631 = vmatprep.subr.bf16.mxu0 %v20551_v17 }
 0x459   :  { %13633 = vmatpush3.bf16.msra.mxu0 %v20630_v26  ;;  %v20692_v26 = vld [vmem:[#allocation28_spill] sm:$0xff] }
 0x45a   :  { %13634 = vmatprep.subr.bf16.mxu0 %v20551_v17 }
 0x45d   :  { %13636 = vmatpush3.bf16.msra.mxu0 %v20632_v5  ;;  %v20694_v5 = vld [vmem:[#allocation51_spill] sm:$0xff] }
 0x45e   :  { %13637 = vmatprep.subr.bf16.mxu0 %v20551_v17 }
 0x461   :  { %13639 = vmatpush3.bf16.msra.mxu0 %v20634_v38  ;;  %v20709_v38 = vld [vmem:[#allocation39_spill] sm:$0xff] }
 0x462   :  { %13640 = vmatprep.subr.bf16.mxu0 %v20551_v17 }
 0x465   :  { %13642 = vmatpush3.bf16.msra.mxu0 %v20636_v60  ;;  %v20706_v60 = vld [vmem:[#allocation89_spill] sm:$0xff] }
 0x466   :  { %13643 = vmatprep.subr.bf16.mxu0 %v20551_v17 }
 0x468   :  { %11181 = vmatmul.mubr.f32.vlgmr.msra.gmra.mrb[6].mxu0 %v17549_v19 }
 0x469   :  { %13645 = vmatpush3.bf16.msra.mxu0 %v20625_v58  ;;  %11215 = vmatprep.mubr.msk.f32.mxu0 %vm14663_vm3, %v20067_v14 }
 0x46a   :  { %13646 = vmatprep.subr.bf16.mxu0 %v20551_v17 }
 0x46d   :  { %13648 = vmatpush3.bf16.msra.mxu0 %v20627_v43 }
 0x46e   :  { %13649 = vmatprep.subr.bf16.mxu0 %v20551_v17 }
 0x471   :  { %13651 = vmatpush3.bf16.msra.mxu0 %v20629_v33 }
 0x472   :  { %13652 = vmatprep.subr.bf16.mxu0 %v20551_v17 }
 0x475   :  { %13654 = vmatpush3.bf16.msra.mxu0 %v20631_v28 }
 0x476   :  { %13655 = vmatprep.subr.bf16.mxu0 %v20551_v17 }
 0x479   :  { %13657 = vmatpush3.bf16.msra.mxu0 %v20633_v23 }
 0x47a   :  { %13658 = vmatprep.subr.bf16.mxu0 %v20551_v17 }
 0x47b   :  { %v4327_v25 = vpop.f32.mrb[4].mxu0 }
 0x47c   :  { %v10762_v12 = vpop.f32.mrb[5].mxu0 }
 0x47d   :  { %13660 = vmatpush3.bf16.msra.mxu0 %v20635_v61  ;;  %v6369_v12 = vand.u32 4294901760, %v18166_v57 }
 0x47e   :  { %13661 = vmatprep.subr.bf16.mxu0 %v20551_v17 }
 0x47f   :  { %v4968_v46 = vpop.f32.mrb[6].mxu1 }
 0x480   :  { %v18010_v39 = vsub.f32 %v4327_v25, %v4968_v46  ;;  %v10972_v15 = vpop.f32.mrb[7].mxu1  ;;  %v6366_v25 = vand.u32 4294901760, %v18161_v63 }
 0x481   :  { %13663 = vmatpush3.bf16.msra.mxu0 %v20637_v7  ;;  %v18199_v15 = vld [vmem:[%s19598_s3 + $0x138] sm:$0xff] }
 0x482   :  { %6257 = vrot.lane.b32.xlu1 %v18010_v39, %s14657_s21  ;;  %6255 = vrot.lane.b32.xlu0 %v18010_v39, %s14656_s7 }
 0x483   :  { %13664 = vmatprep.subr.bf16.mxu0 %v20551_v17 }
 0x485   :  { %13666 = vmatpush3.bf16.msra.mxu0 %v20640_v56 }
 0x486   :  { %13667 = vmatprep.subr.bf16.mxu0 %v20551_v17 }
 0x488   :  { %11216 = vmatmul.mubr.f32.vlgmr.msra.gmra.mrb[6].mxu0 %v17569_v10 }
 0x489   :  { %13669 = vmatpush3.bf16.msra.mxu0 %v17277_v1  ;;  %11250 = vmatprep.mubr.msk.f32.mxu0 %vm14663_vm3, %v20067_v14  ;;  %v20695_v1 = vld [vmem:[#allocation61_spill] sm:$0xff] }
 0x48a   :  { %13670 = vmatprep.subr.bf16.mxu0 %v20551_v17 }
 0x48d   :  { %13672 = vmatpush3.bf16.msra.mxu0 %v17303_v40  ;;  %v20697_v40 = vld [vmem:[#allocation10_spill] sm:$0xff] }
 0x48e   :  { %13673 = vmatprep.subr.bf16.mxu0 %v20551_v17 }
 0x491   :  { %13675 = vmatpush3.bf16.msra.mxu0 %v20692_v26  ;;  %v20717_v26 = vld [vmem:[#allocation62_spill] sm:$0xff] }
 0x492   :  { %13676 = vmatprep.subr.bf16.mxu0 %v20551_v17 }
 0x495   :  { %13678 = vmatpush3.bf16.msra.mxu0 %v20693_v21 }
 0x496   :  { %13679 = vmatprep.subr.bf16.mxu0 %v20551_v17 }
 0x499   :  { %13681 = vmatpush3.bf16.msra.mxu0 %v20694_v5  ;;  %v18212_v5 = vpack.c.bf16 %v6369_v12, %v6366_v25 }
 0x49a   :  { %13682 = vmatprep.subr.bf16.mxu0 %v20551_v17 }
 0x49d   :  { %13684 = vmatpush3.bf16.msra.mxu0 %v20695_v1 }
 0x49e   :  { %13685 = vmatprep.subr.bf16.mxu0 %v20551_v17 }
 0x4a1   :  { %13687 = vmatpush3.bf16.msra.mxu0 %v20696_v47  ;;  %v6375_v47 = vand.u32 4294901760, %v18199_v15 }
 0x4a2   :  { %13688 = vmatprep.subr.bf16.mxu0 %v20551_v17 }
 0x4a5   :  { %13690 = vmatpush3.bf16.msra.mxu0 %v20697_v40 }
 0x4a6   :  { %13691 = vmatprep.subr.bf16.mxu0 %v20551_v17 }
 0x4a8   :  { %11251 = vmatmul.mubr.f32.vlgmr.msra.gmra.mrb[6].mxu0 %v17543_v22 }
 0x4a9   :  { %13693 = vmatpush3.bf16.msra.mxu0 %v20698_v44  ;;  %11285 = vmatprep.mubr.msk.f32.mxu0 %vm14663_vm3, %v20067_v14  ;;  %v9611_v44 = vld [vmem:[%s19598_s3 + $0x140] sm:$0xff] }
 0x4aa   :  { %13694 = vmatprep.subr.bf16.mxu0 %v20551_v17 }
 0x4ad   :  { %13696 = vmatpush3.bf16.msra.mxu0 %v20699_v54  ;;  %v9612_v54 = vld [vmem:[%s19598_s3 + $0x148] sm:$0xff] }
 0x4ae   :  { %13697 = vmatprep.subr.bf16.mxu0 %v20551_v17 }
 0x4b1   :  { %13699 = vmatpush3.bf16.msra.mxu0 %v20700_v31  ;;  %v6378_v31 = vand.u32 4294901760, %v9611_v44 }
 0x4b2   :  { %13700 = vmatprep.subr.bf16.mxu0 %v20551_v17 }
 0x4b5   :  { %13702 = vmatpush3.bf16.msra.mxu0 %v20701_v59  ;;  %v6381_v59 = vand.u32 4294901760, %v9612_v54 }
 0x4b6   :  { %13703 = vmatprep.subr.bf16.mxu0 %v20551_v17 }
 0x4b9   :  { %13705 = vmatpush3.bf16.msra.mxu0 %v20702_v0  ;;  %v18239_v0 = vpack.c.bf16 %v6381_v59, %v6378_v31 }
 0x4ba   :  { %13706 = vmatprep.subr.bf16.mxu0 %v20551_v17 }
 0x4bd   :  { %13708 = vmatpush3.bf16.msra.mxu0 %v20703_v13  ;;  %v9613_v13 = vld [vmem:[%s19598_s3 + $0x150] sm:$0xff] }
 0x4be   :  { %13709 = vmatprep.subr.bf16.mxu0 %v20551_v17 }
 0x4c1   :  { %13711 = vmatpush3.bf16.msra.mxu0 %v20704_v42  ;;  %v9614_v42 = vld [vmem:[%s19598_s3 + $0x158] sm:$0xff] }
 0x4c2   :  { %13712 = vmatprep.subr.bf16.mxu0 %v20551_v17 }
 0x4c5   :  { %13714 = vmatpush3.bf16.msra.mxu0 %v20705_v2  ;;  %v6384_v2 = vand.u32 4294901760, %v9613_v13 }
 0x4c6   :  { %13715 = vmatprep.subr.bf16.mxu0 %v20551_v17 }
 0x4c8   :  { %11286 = vmatmul.mubr.f32.vlgmr.msra.gmra.mrb[6].mxu0 %v20706_v60  ;;  %v6387_v60 = vand.u32 4294901760, %v9614_v42 }
 0x4c9   :  { %13717 = vmatpush3.bf16.msra.mxu0 %v20625_v58  ;;  %11320 = vmatprep.mubr.msk.f32.mxu0 %vm14663_vm3, %v20067_v14 }
 0x4ca   :  { %13718 = vmatprep.subr.bf16.mxu0 %v20551_v17 }
 0x4cd   :  { %13720 = vmatpush3.bf16.msra.mxu0 %v20627_v43 }
 0x4ce   :  { %13721 = vmatprep.subr.bf16.mxu0 %v20551_v17 }
 0x4d1   :  { %13723 = vmatpush3.bf16.msra.mxu0 %v20629_v33 }
 0x4d2   :  { %13724 = vmatprep.subr.bf16.mxu0 %v20551_v17 }
 0x4d5   :  { %13726 = vmatpush3.bf16.msra.mxu0 %v20631_v28 }
 0x4d6   :  { %13727 = vmatprep.subr.bf16.mxu0 %v20551_v17 }
 0x4d9   :  { %13729 = vmatpush3.bf16.msra.mxu0 %v20633_v23 }
 0x4da   :  { %13730 = vmatprep.subr.bf16.mxu0 %v20551_v17 }
 0x4dd   :  { %13732 = vmatpush3.bf16.msra.mxu0 %v20635_v61 }
 0x4de   :  { %13733 = vmatprep.subr.bf16.mxu0 %v20551_v17 }
 0x4e1   :  { %13735 = vmatpush3.bf16.msra.mxu0 %v20637_v7 }
 0x4e2   :  { %13736 = vmatprep.subr.bf16.mxu0 %v20551_v17 }
 0x4e5   :  { %13738 = vmatpush3.bf16.msra.mxu0 %v20640_v56 }
 0x4e6   :  { %13739 = vmatprep.subr.bf16.mxu0 %v20551_v17 }
 0x4e8   :  { %11321 = vmatmul.mubr.f32.vlgmr.msra.gmra.mrb[6].mxu0 %v17552_v8  ;;  %v20712_v8 = vld [vmem:[#allocation49_spill] sm:$0xff] }
 0x4e9   :  { %13741 = vmatpush3.bf16.msra.mxu0 %v17723_v27  ;;  %11355 = vmatprep.mubr.msk.f32.mxu0 %vm14663_vm3, %v20067_v14  ;;  %v18142_v27 = vld [vmem:[%s19598_s3 + $0x108] sm:$0xff] }
 0x4ea   :  { %13742 = vmatprep.subr.bf16.mxu0 %v20551_v17  ;;  %v6357_v49 = vand.u32 4294901760, %v18142_v27 }
 0x4ed   :  { %13744 = vmatpush3.bf16.msra.mxu0 %v17742_v4  ;;  %v6354_v4 = vand.u32 4294901760, %v18137_v53 }
 0x4ee   :  { %13745 = vmatprep.subr.bf16.mxu0 %v20551_v17 }
 0x4f1   :  { %13747 = vmatpush3.bf16.msra.mxu0 %v20707_v52  ;;  %v18251_v52 = vpack.c.bf16 %v6387_v60, %v6384_v2 }
 0x4f2   :  { %13748 = vmatprep.subr.bf16.mxu0 %v20551_v17 }
 0x4f5   :  { %13750 = vmatpush3.bf16.msra.mxu0 %v20708_v3  ;;  %v9615_v3 = vld [vmem:[%s19598_s3 + $0x160] sm:$0xff] }
 0x4f6   :  { %13751 = vmatprep.subr.bf16.mxu0 %v20551_v17 }
 0x4f9   :  { %13753 = vmatpush3.bf16.msra.mxu0 %v20709_v38  ;;  %v9616_v38 = vld [vmem:[%s19598_s3 + $0x168] sm:$0xff] }
 0x4fa   :  { %13754 = vmatprep.subr.bf16.mxu0 %v20551_v17 }
 0x4fd   :  { %13756 = vmatpush3.bf16.msra.mxu0 %v20710_v37 }
 0x4fe   :  { %13757 = vmatprep.subr.bf16.mxu0 %v20551_v17 }
 0x501   :  { %13759 = vmatpush3.bf16.msra.mxu0 %v17824_v9  ;;  %v18174_v9 = vpack.c.bf16 %v6357_v49, %v6354_v4 }
 0x502   :  { %13760 = vmatprep.subr.bf16.mxu0 %v20551_v17 }
 0x503   :  { %13789 = vmatpush3.bf16.msra.mxu1 %v18174_v9 }
 0x504   :  { %13790 = vmatprep.subr.bf16.mxu1 %v20551_v17 }
 0x505   :  { %13762 = vmatpush3.bf16.msra.mxu0 %v17834_v6  ;;  %v18185_v6 = vpack.c.bf16 %v6363_v62, %v6360_v55 }
 0x506   :  { %13763 = vmatprep.subr.bf16.mxu0 %v20551_v17 }
 0x507   :  { %13792 = vmatpush3.bf16.msra.mxu1 %v18185_v6 }
 0x508   :  { %11356 = vmatmul.mubr.f32.vlgmr.msra.gmra.mrb[6].mxu0 %v17543_v22  ;;  %13793 = vmatprep.subr.bf16.mxu1 %v20551_v17 }
 0x509   :  { %13765 = vmatpush3.bf16.msra.mxu0 %v20625_v58  ;;  %11390 = vmatprep.mubr.msk.f32.mxu0 %vm14663_vm3, %v20067_v14 }
 0x50a   :  { %13766 = vmatprep.subr.bf16.mxu0 %v20551_v17 }
 0x50b   :  { %13795 = vmatpush3.bf16.msra.mxu1 %v18212_v5 }
 0x50c   :  { %13796 = vmatprep.subr.bf16.mxu1 %v20551_v17 }
 0x50d   :  { %13768 = vmatpush3.bf16.msra.mxu0 %v20627_v43  ;;  %v6393_v43 = vand.u32 4294901760, %v9616_v38 }
 0x50e   :  { %13769 = vmatprep.subr.bf16.mxu0 %v20551_v17 }
 0x511   :  { %13771 = vmatpush3.bf16.msra.mxu0 %v20629_v33  ;;  %v6258_v33 = vpop.permute.xlu1 %6257 }
 0x512   :  { %13772 = vmatprep.subr.bf16.mxu0 %v20551_v17 }
 0x515   :  { %13774 = vmatpush3.bf16.msra.mxu0 %v20631_v28  ;;  %v6256_v28 = vpop.permute.xlu0 %6255 }
 0x516   :  { %13775 = vmatprep.subr.bf16.mxu0 %v20551_v17 }
 0x519   :  { %13777 = vmatpush3.bf16.msra.mxu0 %v20633_v23  ;;  %v6259_v23 = vsel %vm16430_vm0, %v6258_v33, %v6256_v28  ;;  %v6390_v28 = vand.u32 4294901760, %v9615_v3 }
 0x51a   :  { %13778 = vmatprep.subr.bf16.mxu0 %v20551_v17  ;;  %v6269_v34 = vmul.f32 %v20712_v8, %v6259_v23 }
 0x51d   :  { %13780 = vmatpush3.bf16.msra.mxu0 %v20635_v61 }
 0x51e   :  { %13781 = vmatprep.subr.bf16.mxu0 %v20551_v17 }
 0x521   :  { %13783 = vmatpush3.bf16.msra.mxu0 %v20637_v7  ;;  %v20713_v7 = vld [vmem:[#allocation46_spill] sm:$0xff] }
 0x522   :  { %13784 = vmatprep.subr.bf16.mxu0 %v20551_v17  ;;  %v6265_v61 = vmul.f32 %v20713_v7, %v18010_v39  ;;  %v18194_v39 = vld [vmem:[%s19598_s3 + $0x130] sm:$0xff] }
 0x523   :  { %v6372_v1 = vand.u32 4294901760, %v18194_v39 }
 0x525   :  { %13786 = vmatpush3.bf16.msra.mxu0 %v20640_v56  ;;  %v18224_v40 = vpack.c.bf16 %v6375_v47, %v6372_v1 }
 0x526   :  { %14075 = vmatprep.subr.bf16.mxu0 %v20551_v17 }
 0x527   :  { %13798 = vmatpush3.bf16.msra.mxu1 %v18224_v40 }
 0x528   :  { %11391 = vmatmul.mubr.f32.vlgmr.msra.gmra.mrb[6].mxu0 %v17543_v22  ;;  %v20714_v22 = vld [vmem:[#allocation7_spill] sm:$0xff]  ;;  %13799 = vmatprep.subr.bf16.mxu1 %v20551_v17 }
 0x529   :  { %11845 = vmatprep.mubr.msk.f32.mxu0 %vm14663_vm3, %v20067_v14  ;;  %14077 = vmatpush3.bf16.msra.mxu0 %v18174_v9 }
 0x52a   :  { %14078 = vmatprep.subr.bf16.mxu0 %v20551_v17 }
 0x52b   :  { %13801 = vmatpush3.bf16.msra.mxu1 %v18239_v0 }
 0x52c   :  { %13802 = vmatprep.subr.bf16.mxu1 %v20551_v17 }
 0x52d   :  { %14080 = vmatpush3.bf16.msra.mxu0 %v18185_v6 }
 0x52e   :  { %14081 = vmatprep.subr.bf16.mxu0 %v20551_v17 }
 0x52f   :  { %13804 = vmatpush3.bf16.msra.mxu1 %v18251_v52 }
 0x530   :  { %13805 = vmatprep.subr.bf16.mxu1 %v20551_v17 }
 0x531   :  { %14083 = vmatpush3.bf16.msra.mxu0 %v18212_v5 }
 0x532   :  { %14084 = vmatprep.subr.bf16.mxu0 %v20551_v17 }
 0x535   :  { %14086 = vmatpush3.bf16.msra.mxu0 %v18224_v40 }
 0x536   :  { %14087 = vmatprep.subr.bf16.mxu0 %v20551_v17 }
 0x539   :  { %14089 = vmatpush3.bf16.msra.mxu0 %v18239_v0 }
 0x53a   :  { %14090 = vmatprep.subr.bf16.mxu0 %v20551_v17 }
 0x53d   :  { %14092 = vmatpush3.bf16.msra.mxu0 %v18251_v52 }
 0x53e   :  { %14093 = vmatprep.subr.bf16.mxu0 %v20551_v17 }
 0x5fb   :  { %v6251_v19 = vpop.f32.mrb[6].mxu0 }
 0x5fc   :  { %v6268_v10 = vmul.f32 %v20713_v7, %v6251_v19  ;;  %6262 = vrot.lane.b32.xlu1 %v6251_v19, %s14657_s21  ;;  %6260 = vrot.lane.b32.xlu0 %v6251_v19, %s14656_s7  ;;  %v11392_v56 = vpop.f32.mrb[7].mxu0  ;;  %v9618_v7 = vld [vmem:[%s19598_s3 + $0x178] sm:$0xff] }
 0x5fe   :  { %v6270_v29 = vsub.f32 %v6268_v10, %v6269_v34  ;;  %v9617_v34 = vld [vmem:[%s19598_s3 + $0x170] sm:$0xff] }
 0x600   :  { %6278 = vrot.lane.b32.xlu1 %v6270_v29, %s14658_s12  ;;  %6276 = vrot.lane.b32.xlu0 %v6270_v29, %s14659_s2  ;;  %v18127_v35 = vmul.f32 %v6270_v29, %v20714_v22 }
 0x66e   :  { %v6263_v58 = vpop.permute.xlu1 %6262  ;;  %v6261_v30 = vpop.permute.xlu0 %6260 }
 0x66f   :  { %v6264_v11 = vsel %vm16430_vm0, %v6263_v58, %v6261_v30  ;;  %v6399_v58 = vand.u32 4294901760, %v9618_v7 }
 0x670   :  { %v6266_v24 = vmul.f32 %v20712_v8, %v6264_v11  ;;  %v18266_v8 = vpack.c.bf16 %v6393_v43, %v6390_v28 }
 0x672   :  { %v6279_v51 = vpop.permute.xlu1 %6278  ;;  %v6277_v48 = vpop.permute.xlu0 %6276  ;;  %v6267_v36 = vadd.f32 %v6266_v24, %v6265_v61  ;;  %13807 = vmatpush3.bf16.msra.mxu1 %v18266_v8  ;;  %14095 = vmatpush3.bf16.msra.mxu0 %v18266_v8  ;;  %v20719_v61 = vld [vmem:[#allocation65_spill] sm:$0xff] }
 0x673   :  { %v6280_v18 = vsel %vm27_vm1, %v6279_v51, %v6277_v48  ;;  %13808 = vmatprep.subr.bf16.mxu1 %v20551_v17  ;;  %14096 = vmatprep.subr.bf16.mxu0 %v20551_v17 }
 0x674   :  { %v6282_v41 = vmul.f32 %v6280_v18, %v20716_v32  ;;  %6273 = vrot.lane.b32.xlu1 %v6267_v36, %s14658_s12  ;;  %6271 = vrot.lane.b32.xlu0 %v6267_v36, %s14659_s2  ;;  %v6281_v20 = vmul.f32 %v6267_v36, %v20714_v22  ;;  %v6396_v22 = vand.u32 4294901760, %v9617_v34  ;;  %v20720_v36 = vld [vmem:[#allocation82_spill] sm:$0xff]  ;;  %v18296_v18 = vsub.f32 %v9611_v44, %v6378_v31 }
 0x676   :  { %v6283_v46 = vadd.f32 %v6282_v41, %v6281_v20  ;;  %v18285_v51 = vpack.c.bf16 %v6399_v58, %v6396_v22  ;;  %v6503_v41 = vand.u32 4294901760, %v18296_v18 }
 0x678   :  { %6289 = vrot.lane.b32.xlu1 %v6283_v46, %s14660_s13  ;;  %6287 = vrot.lane.b32.xlu0 %v6283_v46, %s14661_s14  ;;  %v18205_v21 = vmul.f32 %v6283_v46, %v20717_v26  ;;  %v6504_v46 = vsub.f32 %v18296_v18, %v6503_v41 }
 0x679   :  { %13810 = vmatpush3.bf16.msra.mxu1 %v18285_v51  ;;  %14098 = vmatpush3.bf16.msra.mxu0 %v18285_v51 }
 0x67a   :  { %13811 = vmatprep.subr.bf16.mxu1 %v20551_v17  ;;  %14099 = vmatprep.subr.bf16.mxu0 %v20551_v17  ;;  %v6505_v44 = vand.u32 4294901760, %v6504_v46 }
 0x6e6   :  { %v6274_v37 = vpop.permute.xlu1 %6273  ;;  %v6272_v33 = vpop.permute.xlu0 %6271 }
 0x6e7   :  { %v6275_v23 = vsel %vm27_vm1, %v6274_v37, %v6272_v33  ;;  %v18308_v37 = vsub.f32 %v9613_v13, %v6384_v2  ;;  %v18310_v33 = vsub.f32 %v9614_v42, %v6387_v60 }
 0x6e8   :  { %v6285_v19 = vmul.f32 %v6275_v23, %v20716_v32  ;;  %v18298_v32 = vsub.f32 %v9612_v54, %v6381_v59 }
 0x6e9   :  { %v6517_v54 = vand.u32 4294901760, %v18308_v37  ;;  %v6524_v59 = vand.u32 4294901760, %v18310_v33 }
 0x6ea   :  { %v6290_v10 = vpop.permute.xlu1 %6289  ;;  %v6288_v56 = vpop.permute.xlu0 %6287  ;;  %v6286_v29 = vsub.f32 %v18127_v35, %v6285_v19  ;;  %v6510_v20 = vand.u32 4294901760, %v18298_v32 }
 0x6eb   :  { %v6291_v11 = vsel %vm30_vm2, %v6290_v10, %v6288_v56  ;;  %v6518_v19 = vsub.f32 %v18308_v37, %v6517_v54  ;;  %v18319_v10 = vsub.f32 %v9615_v3, %v6390_v28  ;;  %v18321_v56 = vsub.f32 %v9616_v38, %v6393_v43 }
 0x6ec   :  { %v6301_v24 = vmul.f32 %v6291_v11, %v20719_v61  ;;  %6294 = vrot.lane.b32.xlu1 %v6286_v29, %s14660_s13  ;;  %6292 = vrot.lane.b32.xlu0 %v6286_v29, %s14661_s14  ;;  %v6300_v35 = vmul.f32 %v6286_v29, %v20717_v26  ;;  %v6511_v26 = vsub.f32 %v18298_v32, %v6510_v20 }
 0x6ed   :  { %v6525_v13 = vsub.f32 %v18310_v33, %v6524_v59  ;;  %v6519_v42 = vand.u32 4294901760, %v6518_v19  ;;  %v20030_v2 = vand.u32 4294901760, %v18319_v10  ;;  %v20029_v60 = vand.u32 4294901760, %v18321_v56 }
 0x6ee   :  { %v6302_v48 = vsub.f32 %v6300_v35, %v6301_v24  ;;  %v6512_v31 = vand.u32 4294901760, %v6511_v26  ;;  %v18334_v38 = vsub.f32 %v9617_v34, %v6396_v22  ;;  %v18336_v28 = vsub.f32 %v9618_v7, %v6399_v58 }
 0x6ef   :  { %v6526_v29 = vand.u32 4294901760, %v6525_v13  ;;  %v6532_v11 = vsub.f32 %v18319_v10, %v20030_v2  ;;  %v6539_v3 = vsub.f32 %v18321_v56, %v20029_v60  ;;  %v18358_v19 = vpack.c.bf16 %v18310_v33, %v18308_v37 }
 0x6f0   :  { %6310 = vrot.lane.b32.xlu1 %v6302_v48, %s14664_s10  ;;  %6308 = vrot.lane.b32.xlu0 %v6302_v48, %s14665_s11  ;;  %v18294_v45 = vmul.f32 %v6302_v48, %v20720_v36  ;;  %v18314_v23 = vpack.c.bf16 %v6512_v31, %v6505_v44  ;;  %v20028_v48 = vand.u32 4294901760, %v18334_v38  ;;  %v20027_v46 = vand.u32 4294901760, %v18336_v28 }
 0x6f1   :  { %v18338_v43 = vpack.c.bf16 %v6526_v29, %v6519_v42  ;;  %v6533_v24 = vand.u32 4294901760, %v6532_v11  ;;  %v6540_v35 = vand.u32 4294901760, %v6539_v3  ;;  %v18354_v31 = vpack.c.bf16 %v18298_v32, %v18296_v18 }
 0x6f2   :  { %v6546_v44 = vsub.f32 %v18334_v38, %v20028_v48  ;;  %v6553_v34 = vsub.f32 %v18336_v28, %v20027_v46  ;;  %v18362_v13 = vpack.c.bf16 %v18321_v56, %v18319_v10  ;;  %v18366_v42 = vpack.c.bf16 %v18336_v28, %v18334_v38 }
 0x6f3   :  { %v18342_v26 = vpack.c.bf16 %v6540_v35, %v6533_v24  ;;  %v18371_v29 = vsub.f32 %v18137_v53, %v6354_v4  ;;  %v18376_v24 = vsub.f32 %v18142_v27, %v6357_v49  ;;  %v18387_v4 = vsub.f32 %v18147_v16, %v6360_v55 }
 0x6f4   :  { %v6547_v7 = vand.u32 4294901760, %v6546_v44  ;;  %v6554_v22 = vand.u32 4294901760, %v6553_v34  ;;  %v18392_v27 = vsub.f32 %v18154_v50, %v6363_v62  ;;  %v20725_v32 = vand.u32 4294901760, %v18319_v10 }
 0x6f5   :  { %v6447_v34 = vand.u32 4294901760, %v18371_v29  ;;  %v6454_v53 = vand.u32 4294901760, %v18376_v24  ;;  %v6461_v62 = vand.u32 4294901760, %v18387_v4  ;;  %v20727_v37 = vand.u32 4294901760, %v18334_v38  ;;  %v9621_v38 = vld [vmem:[%s19598_s3 + $0x190] sm:$0xff] }
 0x6f6   :  { %v18350_v58 = vpack.c.bf16 %v6554_v22, %v6547_v7  ;;  %v20728_v33 = vand.u32 4294901760, %v18336_v28  ;;  %v9622_v28 = vld [vmem:[%s19598_s3 + $0x198] sm:$0xff] }
 0x6f7   :  { %v6448_v16 = vsub.f32 %v18371_v29, %v6447_v34  ;;  %v6455_v50 = vsub.f32 %v18376_v24, %v6454_v53 }
 0x75e   :  { %v6295_v11 = vpop.permute.xlu1 %6294  ;;  %v6293_v3 = vpop.permute.xlu0 %6292 }
 0x75f   :  { %v6296_v35 = vsel %vm30_vm2, %v6295_v11, %v6293_v3 }
 0x760   :  { %v6298_v44 = vmul.f32 %v6296_v35, %v20719_v61  ;;  %v20722_v61 = vld [vmem:[#allocation15_spill] sm:$0xff] }
 0x762   :  { %v6311_v7 = vpop.permute.xlu1 %6310  ;;  %v6309_v22 = vpop.permute.xlu0 %6308  ;;  %v6299_v46 = vadd.f32 %v6298_v44, %v18205_v21  ;;  %v6468_v21 = vand.u32 4294901760, %v18392_v27  ;;  %v6449_v44 = vand.u32 4294901760, %v6448_v16 }
 0x763   :  { %v6312_v30 = vsel %vm33_vm4, %v6311_v7, %v6309_v22  ;;  %v6456_v22 = vand.u32 4294901760, %v6455_v50 }
 0x764   :  { %v6314_v11 = vmul.f32 %v6312_v30, %v20722_v61  ;;  %v6313_v3 = vmul.f32 %v6299_v46, %v20720_v36  ;;  %6305 = vrot.lane.b32.xlu1 %v6299_v46, %s14664_s10  ;;  %6303 = vrot.lane.b32.xlu0 %v6299_v46, %s14665_s11  ;;  %v18411_v36 = vsub.f32 %v18161_v63, %v6366_v25 }
 0x765   :  { %v18416_v46 = vsub.f32 %v18166_v57, %v6369_v12  ;;  %v6462_v30 = vsub.f32 %v18387_v4, %v6461_v62  ;;  %v6469_v63 = vsub.f32 %v18392_v27, %v6468_v21  ;;  %v18434_v12 = vsub.f32 %v18194_v39, %v6372_v1 }
 0x766   :  { %v6315_v55 = vadd.f32 %v6314_v11, %v6313_v3  ;;  %v6475_v25 = vand.u32 4294901760, %v18411_v36  ;;  %v18439_v11 = vsub.f32 %v18199_v15, %v6375_v47 }
 0x767   :  { %v6482_v57 = vand.u32 4294901760, %v18416_v46  ;;  %v6463_v50 = vand.u32 4294901760, %v6462_v30  ;;  %v6470_v48 = vand.u32 4294901760, %v6469_v63  ;;  %v6489_v15 = vand.u32 4294901760, %v18434_v12 }
 0x768   :  { %v18418_v35 = vand.u32 4294901760, %v6315_v55  ;;  %v6476_v39 = vsub.f32 %v18411_v36, %v6475_v25  ;;  %v6496_v47 = vand.u32 4294901760, %v18439_v11 }
 0x769   :  { %v6483_v1 = vsub.f32 %v18416_v46, %v6482_v57  ;;  %v6490_v63 = vsub.f32 %v18434_v12, %v6489_v15 }
 0x76a   :  { %v18421_v7 = vsub.f32 %v6315_v55, %v18418_v35  ;;  %v18446_v55 = vpack.c.bf16 %v6456_v22, %v6449_v44  ;;  %v18459_v44 = vpack.c.bf16 %v6470_v48, %v6463_v50  ;;  %v6477_v22 = vand.u32 4294901760, %v6476_v39 }
 0x76b   :  { %v6484_v30 = vand.u32 4294901760, %v6483_v1  ;;  %v6497_v2 = vsub.f32 %v18439_v11, %v6496_v47  ;;  %v18497_v1 = vpack.c.bf16 %v18392_v27, %v18387_v4  ;;  %v18577_v49 = vpack.c.bf16 %v6496_v47, %v6489_v15  ;;  %v9625_v15 = vld [vmem:[%s19598_s3 + $0x1b0] sm:$0xff]  ;;  %v9626_v47 = vld [vmem:[%s19598_s3 + $0x1b8] sm:$0xff] }
 0x76c   :  { %20723 = vst [vmem:[#allocation45_spill] sm:$0xff] %v18421_v7  ;;  %v18442_v3 = vand.u32 4294901760, %v18421_v7 }
 0x76d   :  { %v18472_v48 = vpack.c.bf16 %v6484_v30, %v6477_v22  ;;  %v6498_v50 = vand.u32 4294901760, %v6497_v2  ;;  %v18490_v2 = vpack.c.bf16 %v18376_v24, %v18371_v29  ;;  %v18505_v22 = vpack.c.bf16 %v18416_v46, %v18411_v36 }
 0x76e   :  { %20724 = vst [vmem:[#allocation48_spill] sm:$0xff] %v18442_v3  ;;  %v6437_v16 = vsub.f32 %v18421_v7, %v18442_v3  ;;  %v18511_v30 = vpack.c.bf16 %v18439_v11, %v18434_v12  ;;  %v18603_v46 = vpack.c.bf16 %v6524_v59, %v6517_v54  ;;  %v18627_v54 = vpack.c.bf16 %v20728_v33, %v20727_v37  ;;  %v9619_v59 = vld [vmem:[%s19598_s3 + $0x180] sm:$0xff] }
 0x76f   :  { %v6995_v10 = vand.u32 4294901760, %v9619_v59 }
 0x770   :  { %v18456_v60 = vand.u32 4294901760, %v6437_v16  ;;  %v6491_v16 = vand.u32 4294901760, %v6490_v63  ;;  %v18546_v63 = vpack.c.bf16 %v6454_v53, %v6447_v34  ;;  %v18567_v53 = vpack.c.bf16 %v6482_v57, %v6475_v25  ;;  %v18690_v25 = vld [vmem:[%s19598_s3 + $0x1a0] sm:$0xff]  ;;  %v18695_v57 = vld [vmem:[%s19598_s3 + $0x1a8] sm:$0xff] }
 0x771   :  { %v7007_v11 = vand.u32 4294901760, %v18690_v25 }
 0x772   :  { %11426 = vmatmul.mubr.f32.vlgmr.msra.gmra.mrb[8].mxu1 %v18456_v60  ;;  %v18476_v39 = vpack.c.bf16 %v6498_v50, %v6491_v16  ;;  %v18555_v16 = vpack.c.bf16 %v6468_v21, %v6461_v62  ;;  %v7016_v50 = vand.u32 4294901760, %v9626_v47 }
 0x773   :  { %13813 = vmatpush3.bf16.msra.mxu1 %v18446_v55  ;;  %11460 = vmatprep.mubr.msk.f32.mxu1 %vm14663_vm3, %v20067_v14 }
 0x774   :  { %13814 = vmatprep.subr.bf16.mxu1 %v20551_v17 }
 0x777   :  { %13816 = vmatpush3.bf16.msra.mxu1 %v18459_v44 }
 0x778   :  { %13817 = vmatprep.subr.bf16.mxu1 %v20551_v17 }
 0x77b   :  { %13819 = vmatpush3.bf16.msra.mxu1 %v18472_v48 }
 0x77c   :  { %13820 = vmatprep.subr.bf16.mxu1 %v20551_v17 }
 0x77f   :  { %13822 = vmatpush3.bf16.msra.mxu1 %v18476_v39 }
 0x780   :  { %13823 = vmatprep.subr.bf16.mxu1 %v20551_v17 }
 0x783   :  { %13825 = vmatpush3.bf16.msra.mxu1 %v18314_v23 }
 0x784   :  { %13826 = vmatprep.subr.bf16.mxu1 %v20551_v17 }
 0x787   :  { %13828 = vmatpush3.bf16.msra.mxu1 %v18338_v43 }
 0x788   :  { %13829 = vmatprep.subr.bf16.mxu1 %v20551_v17 }
 0x78b   :  { %13831 = vmatpush3.bf16.msra.mxu1 %v18342_v26 }
 0x78c   :  { %13832 = vmatprep.subr.bf16.mxu1 %v20551_v17 }
 0x78f   :  { %13834 = vmatpush3.bf16.msra.mxu1 %v18350_v58 }
 0x790   :  { %13835 = vmatprep.subr.bf16.mxu1 %v20551_v17 }
 0x792   :  { %11461 = vmatmul.mubr.f32.vlgmr.msra.gmra.mrb[8].mxu1 %v18418_v35 }
 0x793   :  { %13837 = vmatpush3.bf16.msra.mxu1 %v18490_v2  ;;  %11495 = vmatprep.mubr.msk.f32.mxu1 %vm14663_vm3, %v20067_v14 }
 0x794   :  { %13838 = vmatprep.subr.bf16.mxu1 %v20551_v17 }
 0x797   :  { %13840 = vmatpush3.bf16.msra.mxu1 %v18497_v1 }
 0x798   :  { %13841 = vmatprep.subr.bf16.mxu1 %v20551_v17 }
 0x79b   :  { %13843 = vmatpush3.bf16.msra.mxu1 %v18505_v22 }
 0x79c   :  { %13844 = vmatprep.subr.bf16.mxu1 %v20551_v17 }
 0x79f   :  { %13846 = vmatpush3.bf16.msra.mxu1 %v18511_v30 }
 0x7a0   :  { %13847 = vmatprep.subr.bf16.mxu1 %v20551_v17 }
 0x7a3   :  { %13849 = vmatpush3.bf16.msra.mxu1 %v18354_v31 }
 0x7a4   :  { %13850 = vmatprep.subr.bf16.mxu1 %v20551_v17 }
 0x7a7   :  { %13852 = vmatpush3.bf16.msra.mxu1 %v18358_v19 }
 0x7a8   :  { %13853 = vmatprep.subr.bf16.mxu1 %v20551_v17 }
 0x7ab   :  { %13855 = vmatpush3.bf16.msra.mxu1 %v18362_v13 }
 0x7ac   :  { %13856 = vmatprep.subr.bf16.mxu1 %v20551_v17 }
 0x7af   :  { %13858 = vmatpush3.bf16.msra.mxu1 %v18366_v42 }
 0x7b0   :  { %13859 = vmatprep.subr.bf16.mxu1 %v20551_v17 }
 0x7b2   :  { %11496 = vmatmul.mubr.f32.vlgmr.msra.gmra.mrb[8].mxu1 %v18421_v7 }
 0x7b3   :  { %13861 = vmatpush3.bf16.msra.mxu1 %v18174_v9  ;;  %11530 = vmatprep.mubr.msk.f32.mxu1 %vm14663_vm3, %v20067_v14 }
 0x7b4   :  { %13862 = vmatprep.subr.bf16.mxu1 %v20551_v17 }
 0x7b7   :  { %13864 = vmatpush3.bf16.msra.mxu1 %v18185_v6 }
 0x7b8   :  { %13865 = vmatprep.subr.bf16.mxu1 %v20551_v17 }
 0x7bb   :  { %13867 = vmatpush3.bf16.msra.mxu1 %v18212_v5 }
 0x7bc   :  { %13868 = vmatprep.subr.bf16.mxu1 %v20551_v17 }
 0x7bf   :  { %13870 = vmatpush3.bf16.msra.mxu1 %v18224_v40 }
 0x7c0   :  { %13871 = vmatprep.subr.bf16.mxu1 %v20551_v17 }
 0x7c3   :  { %13873 = vmatpush3.bf16.msra.mxu1 %v18239_v0 }
 0x7c4   :  { %13874 = vmatprep.subr.bf16.mxu1 %v20551_v17 }
 0x7c7   :  { %13876 = vmatpush3.bf16.msra.mxu1 %v18251_v52 }
 0x7c8   :  { %13877 = vmatprep.subr.bf16.mxu1 %v20551_v17 }
 0x7cb   :  { %13879 = vmatpush3.bf16.msra.mxu1 %v18266_v8 }
 0x7cc   :  { %13880 = vmatprep.subr.bf16.mxu1 %v20551_v17 }
 0x7cf   :  { %13882 = vmatpush3.bf16.msra.mxu1 %v18285_v51 }
 0x7d0   :  { %13883 = vmatprep.subr.bf16.mxu1 %v20551_v17 }
 0x7d2   :  { %11531 = vmatmul.mubr.f32.vlgmr.msra.gmra.mrb[8].mxu1 %v18442_v3 }
 0x7d3   :  { %13885 = vmatpush3.bf16.msra.mxu1 %v18546_v63  ;;  %11565 = vmatprep.mubr.msk.f32.mxu1 %vm14663_vm3, %v20067_v14 }
 0x7d4   :  { %13886 = vmatprep.subr.bf16.mxu1 %v20551_v17 }
 0x7d6   :  { %v6306_v29 = vpop.permute.xlu1 %6305  ;;  %v6304_v24 = vpop.permute.xlu0 %6303 }
 0x7d7   :  { %13888 = vmatpush3.bf16.msra.mxu1 %v18555_v16  ;;  %v6307_v34 = vsel %vm33_vm4, %v6306_v29, %v6304_v24  ;;  %v18746_v29 = vld [vmem:[%s19598_s3 + $0x1d8] sm:$0xff]  ;;  %v18756_v24 = vld [vmem:[%s19598_s3 + $0x1e8] sm:$0xff] }
 0x7d8   :  { %v6317_v4 = vmul.f32 %v6307_v34, %v20722_v61  ;;  %13889 = vmatprep.subr.bf16.mxu1 %v20551_v17  ;;  %v18758_v34 = vsub.f32 %v9619_v59, %v6995_v10  ;;  %v20033_v37 = vand.u32 4294901760, %v18756_v24 }
 0x7da   :  { %v6318_v27 = vsub.f32 %v18294_v45, %v6317_v4  ;;  %v18590_v45 = vpack.c.bf16 %v6510_v20, %v6503_v41  ;;  %v20726_v41 = vand.u32 4294901760, %v18321_v56  ;;  %v20035_v33 = vand.u32 4294901760, %v18758_v34 }
 0x7db   :  { %13891 = vmatpush3.bf16.msra.mxu1 %v18567_v53 }
 0x7dc   :  { %v18579_v62 = vand.u32 4294901760, %v6318_v27  ;;  %13892 = vmatprep.subr.bf16.mxu1 %v20551_v17  ;;  %v18615_v20 = vpack.c.bf16 %v20726_v41, %v20725_v32  ;;  %v20031_v32 = vand.u32 4294901760, %v18746_v29 }
 0x7de   :  { %v18583_v21 = vsub.f32 %v6318_v27, %v18579_v62 }
 0x7df   :  { %13894 = vmatpush3.bf16.msra.mxu1 %v18577_v49 }
 0x7e0   :  { %13895 = vmatprep.subr.bf16.mxu1 %v20551_v17  ;;  %v18594_v61 = vand.u32 4294901760, %v18583_v21 }
 0x7e2   :  { %v7078_v36 = vsub.f32 %v18583_v21, %v18594_v61 }
 0x7e3   :  { %13897 = vmatpush3.bf16.msra.mxu1 %v18590_v45 }
 0x7e4   :  { %13898 = vmatprep.subr.bf16.mxu1 %v20551_v17  ;;  %v18606_v18 = vand.u32 4294901760, %v7078_v36 }
 0x7e6   :  { %11846 = vmatmul.mubr.f32.vlgmr.msra.gmra.mrb[8].mxu0 %v18606_v18 }
 0x7e7   :  { %13900 = vmatpush3.bf16.msra.mxu1 %v18603_v46  ;;  %14101 = vmatpush3.bf16.msra.mxu0 %v18446_v55  ;;  %v7010_v55 = vand.u32 4294901760, %v18695_v57 }
 0x7e8   :  { %13901 = vmatprep.subr.bf16.mxu1 %v20551_v17  ;;  %14102 = vmatprep.subr.bf16.mxu0 %v20551_v17 }
 0x7e9   :  { %11880 = vmatprep.mubr.msk.f32.mxu0 %vm14663_vm3, %v20067_v14 }
 0x7eb   :  { %13903 = vmatpush3.bf16.msra.mxu1 %v18615_v20  ;;  %14104 = vmatpush3.bf16.msra.mxu0 %v18459_v44  ;;  %v18716_v44 = vpack.c.bf16 %v7010_v55, %v7007_v11 }
 0x7ec   :  { %13904 = vmatprep.subr.bf16.mxu1 %v20551_v17  ;;  %14105 = vmatprep.subr.bf16.mxu0 %v20551_v17 }
 0x7ef   :  { %13906 = vmatpush3.bf16.msra.mxu1 %v18627_v54  ;;  %14107 = vmatpush3.bf16.msra.mxu0 %v18472_v48  ;;  %v7013_v48 = vand.u32 4294901760, %v9625_v15 }
 0x7f0   :  { %13907 = vmatprep.subr.bf16.mxu1 %v20551_v17  ;;  %14108 = vmatprep.subr.bf16.mxu0 %v20551_v17 }
 0x7f2   :  { %11566 = vmatmul.mubr.f32.vlgmr.msra.gmra.mrb[8].mxu1 %v18418_v35 }
 0x7f3   :  { %13909 = vmatpush3.bf16.msra.mxu1 %v18174_v9  ;;  %14110 = vmatpush3.bf16.msra.mxu0 %v18476_v39  ;;  %v18723_v39 = vld [vmem:[%s19598_s3 + $0x1c0] sm:$0xff] }
 0x7f4   :  { %13910 = vmatprep.subr.bf16.mxu1 %v20551_v17  ;;  %14111 = vmatprep.subr.bf16.mxu0 %v20551_v17 }
 0x7f5   :  { %11600 = vmatprep.mubr.msk.f32.mxu1 %vm14663_vm3, %v20067_v14 }
 0x7f7   :  { %13912 = vmatpush3.bf16.msra.mxu1 %v18185_v6  ;;  %14113 = vmatpush3.bf16.msra.mxu0 %v18314_v23  ;;  %v9620_v23 = vld [vmem:[%s19598_s3 + $0x188] sm:$0xff] }
 0x7f8   :  { %13913 = vmatprep.subr.bf16.mxu1 %v20551_v17  ;;  %14114 = vmatprep.subr.bf16.mxu0 %v20551_v17  ;;  %v6998_v56 = vand.u32 4294901760, %v9620_v23 }
 0x7fa   :  { %v18760_v4 = vsub.f32 %v9620_v23, %v6998_v56  ;;  %v18785_v23 = vld [vmem:[%s19598_s3 + $0x1f0] sm:$0xff] }
 0x7fb   :  { %13915 = vmatpush3.bf16.msra.mxu1 %v18212_v5  ;;  %14116 = vmatpush3.bf16.msra.mxu0 %v18338_v43  ;;  %v18683_v43 = vpack.c.bf16 %v6998_v56, %v6995_v10  ;;  %v18790_v10 = vld [vmem:[%s19598_s3 + $0x1f8] sm:$0xff] }
 0x7fc   :  { %13916 = vmatprep.subr.bf16.mxu1 %v20551_v17  ;;  %14117 = vmatprep.subr.bf16.mxu0 %v20551_v17 }
 0x7ff   :  { %13918 = vmatpush3.bf16.msra.mxu1 %v18224_v40  ;;  %14119 = vmatpush3.bf16.msra.mxu0 %v18342_v26  ;;  %v7001_v26 = vand.u32 4294901760, %v9621_v38 }
 0x800   :  { %13919 = vmatprep.subr.bf16.mxu1 %v20551_v17  ;;  %14120 = vmatprep.subr.bf16.mxu0 %v20551_v17 }
 0x801   :  { %v18792_v56 = vsub.f32 %v9621_v38, %v7001_v26  ;;  %v7089_v38 = vsub.f32 %v18758_v34, %v20035_v33  ;;  %v18825_v33 = vsub.f32 %v9625_v15, %v7013_v48 }
 0x803   :  { %13921 = vmatpush3.bf16.msra.mxu1 %v18239_v0  ;;  %14122 = vmatpush3.bf16.msra.mxu0 %v18350_v58  ;;  %v7004_v58 = vand.u32 4294901760, %v9622_v28 }
 0x804   :  { %13922 = vmatprep.subr.bf16.mxu1 %v20551_v17  ;;  %14123 = vmatprep.subr.bf16.mxu0 %v20551_v17 }
 0x805   :  { %v18700_v12 = vpack.c.bf16 %v7004_v58, %v7001_v26  ;;  %v18794_v59 = vsub.f32 %v9622_v28, %v7004_v58  ;;  %v20729_v28 = vand.u32 4294901760, %v18760_v4  ;;  %v20036_v58 = vand.u32 4294901760, %v18792_v56 }
 0x806   :  { %11881 = vmatmul.mubr.f32.vlgmr.msra.gmra.mrb[8].mxu0 %v18579_v62 }
 0x807   :  { %13924 = vmatpush3.bf16.msra.mxu1 %v18251_v52  ;;  %14125 = vmatpush3.bf16.msra.mxu0 %v18490_v2  ;;  %v18728_v2 = vld [vmem:[%s19598_s3 + $0x1c8] sm:$0xff]  ;;  %v7096_v26 = vsub.f32 %v18760_v4, %v20729_v28  ;;  %v18827_v28 = vsub.f32 %v9626_v47, %v7016_v50  ;;  %v20731_v15 = vand.u32 4294901760, %v18794_v59 }
 0x808   :  { %13925 = vmatprep.subr.bf16.mxu1 %v20551_v17  ;;  %14126 = vmatprep.subr.bf16.mxu0 %v20551_v17 }
 0x809   :  { %11915 = vmatprep.mubr.msk.f32.mxu0 %vm14663_vm3, %v20067_v14  ;;  %v7110_v47 = vsub.f32 %v18794_v59, %v20731_v15 }
 0x80b   :  { %13927 = vmatpush3.bf16.msra.mxu1 %v18266_v8  ;;  %14128 = vmatpush3.bf16.msra.mxu0 %v18497_v1  ;;  %v7019_v1 = vand.u32 4294901760, %v18723_v39 }
 0x80c   :  { %13928 = vmatprep.subr.bf16.mxu1 %v20551_v17  ;;  %14129 = vmatprep.subr.bf16.mxu0 %v20551_v17 }
 0x80f   :  { %13930 = vmatpush3.bf16.msra.mxu1 %v18285_v51  ;;  %14131 = vmatpush3.bf16.msra.mxu0 %v18505_v22  ;;  %v7022_v22 = vand.u32 4294901760, %v18728_v2 }
 0x810   :  { %13931 = vmatprep.subr.bf16.mxu1 %v20551_v17  ;;  %14132 = vmatprep.subr.bf16.mxu0 %v20551_v17 }
 0x811   :  { %v18764_v27 = vpack.c.bf16 %v7022_v22, %v7019_v1 }
 0x812   :  { %11601 = vmatmul.mubr.f32.vlgmr.msra.gmra.mrb[8].mxu1 %v18418_v35 }
 0x813   :  { %13933 = vmatpush3.bf16.msra.mxu1 %v18683_v43  ;;  %14134 = vmatpush3.bf16.msra.mxu0 %v18511_v30  ;;  %v18741_v30 = vld [vmem:[%s19598_s3 + $0x1d0] sm:$0xff] }
 0x814   :  { %13934 = vmatprep.subr.bf16.mxu1 %v20551_v17  ;;  %14135 = vmatprep.subr.bf16.mxu0 %v20551_v17  ;;  %v20032_v36 = vand.u32 4294901760, %v18741_v30 }
 0x815   :  { %11635 = vmatprep.mubr.msk.f32.mxu1 %vm14663_vm3, %v20067_v14 }
 0x817   :  { %13936 = vmatpush3.bf16.msra.mxu1 %v18700_v12  ;;  %14137 = vmatpush3.bf16.msra.mxu0 %v18354_v31  ;;  %v18732_v31 = vpack.c.bf16 %v7016_v50, %v7013_v48  ;;  %v7111_v50 = vand.u32 4294901760, %v7110_v47  ;;  %v20735_v47 = vand.u32 4294901760, %v18741_v30 }
 0x818   :  { %13937 = vmatprep.subr.bf16.mxu1 %v20551_v17  ;;  %14138 = vmatprep.subr.bf16.mxu0 %v20551_v17 }
 0x81b   :  { %13939 = vmatpush3.bf16.msra.mxu1 %v18716_v44  ;;  %14140 = vmatpush3.bf16.msra.mxu0 %v18358_v19  ;;  %v18751_v19 = vld [vmem:[%s19598_s3 + $0x1e0] sm:$0xff] }
 0x81c   :  { %13940 = vmatprep.subr.bf16.mxu1 %v20551_v17  ;;  %14141 = vmatprep.subr.bf16.mxu0 %v20551_v17  ;;  %v20034_v41 = vand.u32 4294901760, %v18751_v19 }
 0x81f   :  { %13942 = vmatpush3.bf16.msra.mxu1 %v18732_v31  ;;  %14143 = vmatpush3.bf16.msra.mxu0 %v18362_v13  ;;  %v18780_v13 = vpack.c.bf16 %v20031_v32, %v20032_v36  ;;  %v20037_v32 = vand.u32 4294901760, %v18785_v23  ;;  %v18821_v36 = vsub.f32 %v18695_v57, %v7010_v55  ;;  %v7097_v57 = vand.u32 4294901760, %v7096_v26 }
 0x820   :  { %13943 = vmatprep.subr.bf16.mxu1 %v20551_v17  ;;  %14144 = vmatprep.subr.bf16.mxu0 %v20551_v17  ;;  %v7103_v55 = vsub.f32 %v18792_v56, %v20036_v58  ;;  %v18854_v58 = vsub.f32 %v18723_v39, %v7019_v1  ;;  %v20733_v39 = vand.u32 4294901760, %v18825_v33  ;;  %v20734_v1 = vand.u32 4294901760, %v18827_v28 }
 0x822   :  { %v7104_v15 = vand.u32 4294901760, %v7103_v55 }
 0x823   :  { %13945 = vmatpush3.bf16.msra.mxu1 %v18764_v27  ;;  %14146 = vmatpush3.bf16.msra.mxu0 %v18366_v42  ;;  %v18802_v42 = vpack.c.bf16 %v20033_v37, %v20034_v41  ;;  %v18818_v41 = vsub.f32 %v18690_v25, %v7007_v11  ;;  %v20730_v37 = vand.u32 4294901760, %v18790_v10  ;;  %v7090_v11 = vand.u32 4294901760, %v7089_v38 }
 0x824   :  { %13946 = vmatprep.subr.bf16.mxu1 %v20551_v17  ;;  %14147 = vmatprep.subr.bf16.mxu0 %v20551_v17  ;;  %v20732_v38 = vand.u32 4294901760, %v18821_v36 }
 0x825   :  { %v18835_v25 = vpack.c.bf16 %v20730_v37, %v20037_v32  ;;  %v20038_v48 = vand.u32 4294901760, %v18818_v41  ;;  %v18851_v26 = vpack.c.bf16 %v7097_v57, %v7090_v11  ;;  %v18857_v32 = vsub.f32 %v18728_v2, %v7022_v22 }
 0x826   :  { %11916 = vmatmul.mubr.f32.vlgmr.msra.gmra.mrb[8].mxu0 %v18583_v21  ;;  %v7124_v11 = vsub.f32 %v18821_v36, %v20732_v38  ;;  %v7131_v2 = vsub.f32 %v18825_v33, %v20733_v39  ;;  %v7138_v22 = vsub.f32 %v18827_v28, %v20734_v1  ;;  %v20040_v57 = vand.u32 4294901760, %v18854_v58 }
 0x827   :  { %13948 = vmatpush3.bf16.msra.mxu1 %v18780_v13  ;;  %14149 = vmatpush3.bf16.msra.mxu0 %v18174_v9  ;;  %v7117_v37 = vsub.f32 %v18818_v41, %v20038_v48  ;;  %v18881_v38 = vsub.f32 %v18741_v30, %v20735_v47  ;;  %v20736_v48 = vand.u32 4294901760, %v18746_v29  ;;  %v18890_v39 = vpack.c.bf16 %v7111_v50, %v7104_v15 }
 0x828   :  { %13949 = vmatprep.subr.bf16.mxu1 %v20551_v17  ;;  %14150 = vmatprep.subr.bf16.mxu0 %v20551_v17  ;;  %v7125_v1 = vand.u32 4294901760, %v7124_v11  ;;  %v7132_v55 = vand.u32 4294901760, %v7131_v2  ;;  %v7139_v30 = vand.u32 4294901760, %v7138_v22  ;;  %v20738_v2 = vand.u32 4294901760, %v18751_v19 }
 0x829   :  { %11950 = vmatprep.mubr.msk.f32.mxu0 %vm14663_vm3, %v20067_v14  ;;  %v18886_v3 = vsub.f32 %v18746_v29, %v20736_v48  ;;  %v7145_v29 = vsub.f32 %v18854_v58, %v20040_v57  ;;  %v20737_v48 = vand.u32 4294901760, %v18857_v32  ;;  %v20739_v47 = vand.u32 4294901760, %v18756_v24 }
 0x82a   :  { %v18911_v22 = vsub.f32 %v18751_v19, %v20738_v2 }
 0x82b   :  { %13951 = vmatpush3.bf16.msra.mxu1 %v18802_v42  ;;  %14152 = vmatpush3.bf16.msra.mxu0 %v18185_v6  ;;  %v7152_v50 = vsub.f32 %v18857_v32, %v20737_v48  ;;  %v18916_v57 = vsub.f32 %v18756_v24, %v20739_v47  ;;  %v18920_v48 = vpack.c.bf16 %v7139_v30, %v7132_v55  ;;  %v7146_v15 = vand.u32 4294901760, %v7145_v29 }
 0x82c   :  { %13952 = vmatprep.subr.bf16.mxu1 %v20551_v17  ;;  %14153 = vmatprep.subr.bf16.mxu0 %v20551_v17  ;;  %v20741_v19 = vand.u32 4294901760, %v18886_v3  ;;  %v20742_v55 = vand.u32 4294901760, %v18785_v23  ;;  %v20743_v29 = vand.u32 4294901760, %v18790_v10 }
 0x82d   :  { %v7179_v47 = vand.u32 4294901760, %v18916_v57 }
 0x82e   :  { %v7166_v2 = vsub.f32 %v18886_v3, %v20741_v19  ;;  %v18935_v30 = vsub.f32 %v18785_v23, %v20742_v55  ;;  %v20744_v23 = vand.u32 4294901760, %v18911_v22 }
 0x82f   :  { %13954 = vmatpush3.bf16.msra.mxu1 %v18835_v25  ;;  %14155 = vmatpush3.bf16.msra.mxu0 %v18212_v5 }
 0x830   :  { %13955 = vmatprep.subr.bf16.mxu1 %v20551_v17  ;;  %14156 = vmatprep.subr.bf16.mxu0 %v20551_v17  ;;  %v7167_v24 = vand.u32 4294901760, %v7166_v2  ;;  %v7173_v55 = vsub.f32 %v18911_v22, %v20744_v23 }
 0x832   :  { %11636 = vmatmul.mubr.f32.vlgmr.msra.gmra.mrb[10].mxu1 %v18606_v18  ;;  %v7118_v18 = vand.u32 4294901760, %v7117_v37  ;;  %v7153_v37 = vand.u32 4294901760, %v7152_v50  ;;  %v18940_v50 = vsub.f32 %v18790_v10, %v20743_v29  ;;  %v7180_v10 = vsub.f32 %v18916_v57, %v7179_v47 }
 0x833   :  { %13957 = vmatpush3.bf16.msra.mxu1 %v18851_v26  ;;  %14158 = vmatpush3.bf16.msra.mxu0 %v18224_v40  ;;  %v7186_v29 = vand.u32 4294901760, %v18935_v30 }
 0x834   :  { %13958 = vmatprep.subr.bf16.mxu1 %v20551_v17  ;;  %14159 = vmatprep.subr.bf16.mxu0 %v20551_v17  ;;  %v18906_v11 = vpack.c.bf16 %v7125_v1, %v7118_v18  ;;  %v20740_v18 = vand.u32 4294901760, %v18881_v38  ;;  %v7193_v7 = vand.u32 4294901760, %v18940_v50 }
 0x835   :  { %11670 = vmatprep.mubr.msk.f32.mxu1 %vm14663_vm3, %v20067_v14  ;;  %v7187_v2 = vsub.f32 %v18935_v30, %v7186_v29 }
 0x836   :  { %v7159_v1 = vsub.f32 %v18881_v38, %v20740_v18  ;;  %v18944_v18 = vpack.c.bf16 %v7153_v37, %v7146_v15  ;;  %v7174_v15 = vand.u32 4294901760, %v7173_v55  ;;  %v7194_v23 = vsub.f32 %v18940_v50, %v7193_v7 }
 0x837   :  { %13960 = vmatpush3.bf16.msra.mxu1 %v18890_v39  ;;  %14161 = vmatpush3.bf16.msra.mxu0 %v18239_v0 }
 0x838   :  { %13961 = vmatprep.subr.bf16.mxu1 %v20551_v17  ;;  %14162 = vmatprep.subr.bf16.mxu0 %v20551_v17  ;;  %v7160_v19 = vand.u32 4294901760, %v7159_v1  ;;  %v7181_v1 = vand.u32 4294901760, %v7180_v10  ;;  %v7195_v55 = vand.u32 4294901760, %v7194_v23 }
 0x83a   :  { %v18958_v37 = vpack.c.bf16 %v7167_v24, %v7160_v19  ;;  %v18973_v24 = vpack.c.bf16 %v7181_v1, %v7174_v15  ;;  %v7188_v19 = vand.u32 4294901760, %v7187_v2  ;;  %v8928_v15 = vld [vmem:[%s19599_s4 + $0x38] sm:$0xff]  ;;  %v8929_v1 = vld [vmem:[%s19599_s4 + $0x40] sm:$0xff] }
 0x83b   :  { %13963 = vmatpush3.bf16.msra.mxu1 %v18906_v11  ;;  %14164 = vmatpush3.bf16.msra.mxu0 %v18251_v52 }
 0x83c   :  { %13964 = vmatprep.subr.bf16.mxu1 %v20551_v17  ;;  %14165 = vmatprep.subr.bf16.mxu0 %v20551_v17  ;;  %v18981_v10 = vpack.c.bf16 %v7195_v55, %v7188_v19  ;;  %v8930_v19 = vld [vmem:[%s19599_s4 + $0x48] sm:$0xff] }
 0x83f   :  { %13966 = vmatpush3.bf16.msra.mxu1 %v18920_v48  ;;  %14167 = vmatpush3.bf16.msra.mxu0 %v18266_v8 }
 0x840   :  { %13967 = vmatprep.subr.bf16.mxu1 %v20551_v17  ;;  %14168 = vmatprep.subr.bf16.mxu0 %v20551_v17 }
 0x843   :  { %13969 = vmatpush3.bf16.msra.mxu1 %v18944_v18  ;;  %14170 = vmatpush3.bf16.msra.mxu0 %v18285_v51 }
 0x844   :  { %13970 = vmatprep.subr.bf16.mxu1 %v20551_v17  ;;  %14171 = vmatprep.subr.bf16.mxu0 %v20551_v17 }
 0x846   :  { %11951 = vmatmul.mubr.f32.vlgmr.msra.gmra.mrb[8].mxu0 %v18594_v61 }
 0x847   :  { %13972 = vmatpush3.bf16.msra.mxu1 %v18958_v37  ;;  %14173 = vmatpush3.bf16.msra.mxu0 %v18546_v63  ;;  %v18989_v63 = vpack.c.bf16 %v18760_v4, %v18758_v34 }
 0x848   :  { %13973 = vmatprep.subr.bf16.mxu1 %v20551_v17  ;;  %14174 = vmatprep.subr.bf16.mxu0 %v20551_v17 }
 0x849   :  { %11985 = vmatprep.mubr.msk.f32.mxu0 %vm14663_vm3, %v20067_v14 }
 0x84b   :  { %13975 = vmatpush3.bf16.msra.mxu1 %v18973_v24  ;;  %14176 = vmatpush3.bf16.msra.mxu0 %v18555_v16  ;;  %v18998_v16 = vpack.c.bf16 %v18794_v59, %v18792_v56 }
 0x84c   :  { %13976 = vmatprep.subr.bf16.mxu1 %v20551_v17  ;;  %14177 = vmatprep.subr.bf16.mxu0 %v20551_v17 }
 0x84f   :  { %13978 = vmatpush3.bf16.msra.mxu1 %v18981_v10  ;;  %14179 = vmatpush3.bf16.msra.mxu0 %v18567_v53  ;;  %v19008_v53 = vpack.c.bf16 %v18821_v36, %v18818_v41 }
 0x850   :  { %13979 = vmatprep.subr.bf16.mxu1 %v20551_v17  ;;  %14180 = vmatprep.subr.bf16.mxu0 %v20551_v17 }
 0x852   :  { %11671 = vmatmul.mubr.f32.vlgmr.msra.gmra.mrb[10].mxu1 %v18579_v62 }
 0x853   :  { %13981 = vmatpush3.bf16.msra.mxu1 %v18989_v63  ;;  %14182 = vmatpush3.bf16.msra.mxu0 %v18577_v49  ;;  %v19016_v49 = vpack.c.bf16 %v18827_v28, %v18825_v33 }
 0x854   :  { %13982 = vmatprep.subr.bf16.mxu1 %v20551_v17  ;;  %14183 = vmatprep.subr.bf16.mxu0 %v20551_v17 }
 0x855   :  { %11705 = vmatprep.mubr.msk.f32.mxu1 %vm14663_vm3, %v20067_v14 }
 0x857   :  { %13984 = vmatpush3.bf16.msra.mxu1 %v18998_v16  ;;  %14185 = vmatpush3.bf16.msra.mxu0 %v18590_v45  ;;  %v19024_v45 = vpack.c.bf16 %v18857_v32, %v18854_v58 }
 0x858   :  { %13985 = vmatprep.subr.bf16.mxu1 %v20551_v17  ;;  %14186 = vmatprep.subr.bf16.mxu0 %v20551_v17 }
 0x85b   :  { %13987 = vmatpush3.bf16.msra.mxu1 %v19008_v53  ;;  %14188 = vmatpush3.bf16.msra.mxu0 %v18603_v46  ;;  %v19032_v46 = vpack.c.bf16 %v18886_v3, %v18881_v38 }
 0x85c   :  { %13988 = vmatprep.subr.bf16.mxu1 %v20551_v17  ;;  %14189 = vmatprep.subr.bf16.mxu0 %v20551_v17 }
 0x85f   :  { %13990 = vmatpush3.bf16.msra.mxu1 %v19016_v49  ;;  %14191 = vmatpush3.bf16.msra.mxu0 %v18615_v20  ;;  %v19041_v20 = vpack.c.bf16 %v18916_v57, %v18911_v22  ;;  %v8921_v57 = vld [vmem:[%s19599_s4] sm:$0xff] }
 0x860   :  { %13991 = vmatprep.subr.bf16.mxu1 %v20551_v17  ;;  %14192 = vmatprep.subr.bf16.mxu0 %v20551_v17 }
 0x863   :  { %13993 = vmatpush3.bf16.msra.mxu1 %v19024_v45  ;;  %14194 = vmatpush3.bf16.msra.mxu0 %v18627_v54  ;;  %v19051_v54 = vpack.c.bf16 %v18940_v50, %v18935_v30  ;;  %v8926_v30 = vld [vmem:[%s19599_s4 + $0x28] sm:$0xff] }
 0x864   :  { %13994 = vmatprep.subr.bf16.mxu1 %v20551_v17  ;;  %14195 = vmatprep.subr.bf16.mxu0 %v20551_v17 }
 0x866   :  { %11986 = vmatmul.mubr.f32.vlgmr.msra.gmra.mrb[8].mxu0 %v18579_v62 }
 0x867   :  { %13996 = vmatpush3.bf16.msra.mxu1 %v19032_v46  ;;  %14197 = vmatpush3.bf16.msra.mxu0 %v18174_v9  ;;  %v20745_v9 = vand.u32 4294901760, %v18758_v34  ;;  %v20752_v34 = vand.u32 4294901760, %v18827_v28 }
 0x868   :  { %13997 = vmatprep.subr.bf16.mxu1 %v20551_v17  ;;  %14198 = vmatprep.subr.bf16.mxu0 %v20551_v17 }
 0x869   :  { %12020 = vmatprep.mubr.msk.f32.mxu0 %vm14663_vm3, %v20067_v14 }
 0x86b   :  { %13999 = vmatpush3.bf16.msra.mxu1 %v19041_v20  ;;  %14200 = vmatpush3.bf16.msra.mxu0 %v18185_v6  ;;  %v20746_v6 = vand.u32 4294901760, %v18760_v4 }
 0x86c   :  { %14000 = vmatprep.subr.bf16.mxu1 %v20551_v17  ;;  %14201 = vmatprep.subr.bf16.mxu0 %v20551_v17 }
 0x86f   :  { %14002 = vmatpush3.bf16.msra.mxu1 %v19051_v54  ;;  %14203 = vmatpush3.bf16.msra.mxu0 %v18212_v5  ;;  %v19099_v5 = vpack.c.bf16 %v20746_v6, %v20745_v9 }
 0x870   :  { %14003 = vmatprep.subr.bf16.mxu1 %v20551_v17  ;;  %14204 = vmatprep.subr.bf16.mxu0 %v20551_v17 }
 0x872   :  { %11706 = vmatmul.mubr.f32.vlgmr.msra.gmra.mrb[10].mxu1 %v18583_v21 }
 0x873   :  { %14005 = vmatpush3.bf16.msra.mxu1 %v18683_v43  ;;  %14206 = vmatpush3.bf16.msra.mxu0 %v18224_v40  ;;  %v20747_v40 = vand.u32 4294901760, %v18792_v56  ;;  %v20756_v56 = vand.u32 4294901760, %v18886_v3 }
 0x874   :  { %14006 = vmatprep.subr.bf16.mxu1 %v20551_v17  ;;  %14207 = vmatprep.subr.bf16.mxu0 %v20551_v17 }
 0x875   :  { %11740 = vmatprep.mubr.msk.f32.mxu1 %vm14663_vm3, %v20067_v14 }
 0x877   :  { %14008 = vmatpush3.bf16.msra.mxu1 %v18700_v12  ;;  %14209 = vmatpush3.bf16.msra.mxu0 %v18239_v0  ;;  %v20748_v0 = vand.u32 4294901760, %v18794_v59 }
 0x878   :  { %14009 = vmatprep.subr.bf16.mxu1 %v20551_v17  ;;  %14210 = vmatprep.subr.bf16.mxu0 %v20551_v17 }
 0x87b   :  { %14011 = vmatpush3.bf16.msra.mxu1 %v18716_v44  ;;  %14212 = vmatpush3.bf16.msra.mxu0 %v18251_v52  ;;  %v19110_v52 = vpack.c.bf16 %v20748_v0, %v20747_v40 }
 0x87c   :  { %14012 = vmatprep.subr.bf16.mxu1 %v20551_v17  ;;  %14213 = vmatprep.subr.bf16.mxu0 %v20551_v17 }
 0x87f   :  { %14014 = vmatpush3.bf16.msra.mxu1 %v18732_v31  ;;  %14215 = vmatpush3.bf16.msra.mxu0 %v18266_v8  ;;  %v20749_v8 = vand.u32 4294901760, %v18818_v41  ;;  %v20754_v41 = vand.u32 4294901760, %v18857_v32  ;;  %v20757_v32 = vand.u32 4294901760, %v18911_v22 }
 0x880   :  { %14015 = vmatprep.subr.bf16.mxu1 %v20551_v17  ;;  %14216 = vmatprep.subr.bf16.mxu0 %v20551_v17 }
 0x883   :  { %14017 = vmatpush3.bf16.msra.mxu1 %v18764_v27  ;;  %14218 = vmatpush3.bf16.msra.mxu0 %v18285_v51  ;;  %v20750_v51 = vand.u32 4294901760, %v18821_v36  ;;  %v20753_v36 = vand.u32 4294901760, %v18854_v58  ;;  %v19163_v58 = vpack.c.bf16 %v7179_v47, %v20757_v32  ;;  %v8925_v47 = vld [vmem:[%s19599_s4 + $0x20] sm:$0xff] }
 0x884   :  { %14018 = vmatprep.subr.bf16.mxu1 %v20551_v17  ;;  %14219 = vmatprep.subr.bf16.mxu0 %v20551_v17 }
 0x885   :  { %v19122_v21 = vpack.c.bf16 %v20750_v51, %v20749_v8  ;;  %v19142_v59 = vpack.c.bf16 %v20754_v41, %v20753_v36 }
 0x886   :  { %12021 = vmatmul.mubr.f32.vlgmr.msra.gmra.mrb[8].mxu0 %v18579_v62 }
 0x887   :  { %14020 = vmatpush3.bf16.msra.mxu1 %v18780_v13  ;;  %14221 = vmatpush3.bf16.msra.mxu0 %v18683_v43 }
 0x888   :  { %14021 = vmatprep.subr.bf16.mxu1 %v20551_v17  ;;  %14222 = vmatprep.subr.bf16.mxu0 %v20551_v17 }
 0x889   :  { %12055 = vmatprep.mubr.msk.f32.mxu0 %vm14663_vm3, %v20067_v14 }
 0x88b   :  { %14023 = vmatpush3.bf16.msra.mxu1 %v18802_v42  ;;  %14224 = vmatpush3.bf16.msra.mxu0 %v18700_v12 }
 0x88c   :  { %14024 = vmatprep.subr.bf16.mxu1 %v20551_v17  ;;  %14225 = vmatprep.subr.bf16.mxu0 %v20551_v17 }
 0x88f   :  { %14026 = vmatpush3.bf16.msra.mxu1 %v18835_v25  ;;  %14227 = vmatpush3.bf16.msra.mxu0 %v18716_v44 }
 0x890   :  { %14027 = vmatprep.subr.bf16.mxu1 %v20551_v17  ;;  %14228 = vmatprep.subr.bf16.mxu0 %v20551_v17 }
 0x892   :  { %11741 = vmatmul.mubr.f32.vlgmr.msra.gmra.mrb[10].mxu1 %v18594_v61  ;;  %v20751_v61 = vand.u32 4294901760, %v18825_v33  ;;  %v20755_v33 = vand.u32 4294901760, %v18881_v38  ;;  %v8922_v38 = vld [vmem:[%s19599_s4 + $0x8] sm:$0xff] }
 0x893   :  { %14029 = vmatpush3.bf16.msra.mxu1 %v19099_v5  ;;  %14230 = vmatpush3.bf16.msra.mxu0 %v18732_v31  ;;  %v8941_v22 = vand.u32 4294901760, %v8922_v38 }
 0x894   :  { %14030 = vmatprep.subr.bf16.mxu1 %v20551_v17  ;;  %14231 = vmatprep.subr.bf16.mxu0 %v20551_v17  ;;  %v19132_v4 = vpack.c.bf16 %v20752_v34, %v20751_v61  ;;  %v19152_v28 = vpack.c.bf16 %v20756_v56, %v20755_v33  ;;  %v8936_v61 = vld [vmem:[%s19599_s4 + $0x78] sm:$0xff] }
 0x895   :  { %11775 = vmatprep.mubr.msk.f32.mxu1 %vm14663_vm3, %v20067_v14  ;;  %v19312_v23 = vsub.f32 %v8922_v38, %v8941_v22 }
 0x897   :  { %14032 = vmatpush3.bf16.msra.mxu1 %v19110_v52  ;;  %14233 = vmatpush3.bf16.msra.mxu0 %v18764_v27  ;;  %v9038_v41 = vand.u32 4294901760, %v19312_v23 }
 0x898   :  { %14033 = vmatprep.subr.bf16.mxu1 %v20551_v17  ;;  %14234 = vmatprep.subr.bf16.mxu0 %v20551_v17 }
 0x89b   :  { %14035 = vmatpush3.bf16.msra.mxu1 %v19122_v21  ;;  %14236 = vmatpush3.bf16.msra.mxu0 %v18780_v13 }
 0x89c   :  { %14036 = vmatprep.subr.bf16.mxu1 %v20551_v17  ;;  %14237 = vmatprep.subr.bf16.mxu0 %v20551_v17 }
 0x89f   :  { %14038 = vmatpush3.bf16.msra.mxu1 %v19132_v4  ;;  %14239 = vmatpush3.bf16.msra.mxu0 %v18802_v42 }
 0x8a0   :  { %14039 = vmatprep.subr.bf16.mxu1 %v20551_v17  ;;  %14240 = vmatprep.subr.bf16.mxu0 %v20551_v17 }
 0x8a3   :  { %14041 = vmatpush3.bf16.msra.mxu1 %v19142_v59  ;;  %14242 = vmatpush3.bf16.msra.mxu0 %v18835_v25 }
 0x8a4   :  { %14042 = vmatprep.subr.bf16.mxu1 %v20551_v17  ;;  %14243 = vmatprep.subr.bf16.mxu0 %v20551_v17 }
 0x8a6   :  { %12056 = vmatmul.mubr.f32.vlgmr.msra.gmra.mrb[8].mxu0 %v18456_v60  ;;  %v19175_v60 = vpack.c.bf16 %v7193_v7, %v7186_v29  ;;  %v8953_v29 = vand.u32 4294901760, %v8926_v30 }
 0x8a7   :  { %14044 = vmatpush3.bf16.msra.mxu1 %v19152_v28  ;;  %14245 = vmatpush3.bf16.msra.mxu0 %v18851_v26  ;;  %v20759_v26 = vld [vmem:[#allocation48_spill] sm:$0xff] }
 0x8a8   :  { %14045 = vmatprep.subr.bf16.mxu1 %v20551_v17  ;;  %14246 = vmatprep.subr.bf16.mxu0 %v20551_v17 }
 0x8a9   :  { %12090 = vmatprep.mubr.msk.f32.mxu0 %vm14663_vm3, %v20067_v14 }
 0x8ab   :  { %14047 = vmatpush3.bf16.msra.mxu1 %v19163_v58  ;;  %14248 = vmatpush3.bf16.msra.mxu0 %v18890_v39  ;;  %v8923_v39 = vld [vmem:[%s19599_s4 + $0x10] sm:$0xff] }
 0x8ac   :  { %14048 = vmatprep.subr.bf16.mxu1 %v20551_v17  ;;  %14249 = vmatprep.subr.bf16.mxu0 %v20551_v17 }
 0x8af   :  { %14050 = vmatpush3.bf16.msra.mxu1 %v19175_v60  ;;  %14251 = vmatpush3.bf16.msra.mxu0 %v18906_v11  ;;  %v8938_v11 = vand.u32 4294901760, %v8921_v57 }
 0x8b0   :  { %14051 = vmatprep.subr.bf16.mxu1 %v20551_v17  ;;  %14252 = vmatprep.subr.bf16.mxu0 %v20551_v17 }
 0x8b1   :  { %v19308_v2 = vpack.c.bf16 %v8941_v22, %v8938_v11 }
 0x8b2   :  { %11776 = vmatmul.mubr.f32.vlgmr.msra.gmra.mrb[10].mxu1 %v18579_v62 }
 0x8b3   :  { %14053 = vmatpush3.bf16.msra.mxu1 %v18683_v43  ;;  %14254 = vmatpush3.bf16.msra.mxu0 %v18920_v48  ;;  %v8944_v48 = vand.u32 4294901760, %v8923_v39 }
 0x8b4   :  { %14054 = vmatprep.subr.bf16.mxu1 %v20551_v17  ;;  %14255 = vmatprep.subr.bf16.mxu0 %v20551_v17 }
 0x8b5   :  { %11810 = vmatprep.mubr.msk.f32.mxu1 %vm14663_vm3, %v20067_v14 }
 0x8b7   :  { %14056 = vmatpush3.bf16.msra.mxu1 %v18700_v12  ;;  %14257 = vmatpush3.bf16.msra.mxu0 %v18944_v18  ;;  %v8950_v18 = vand.u32 4294901760, %v8925_v47 }
 0x8b8   :  { %14057 = vmatprep.subr.bf16.mxu1 %v20551_v17  ;;  %14258 = vmatprep.subr.bf16.mxu0 %v20551_v17 }
 0x8bb   :  { %14059 = vmatpush3.bf16.msra.mxu1 %v18716_v44  ;;  %14260 = vmatpush3.bf16.msra.mxu0 %v18958_v37  ;;  %v8927_v37 = vld [vmem:[%s19599_s4 + $0x30] sm:$0xff] }
 0x8bc   :  { %14060 = vmatprep.subr.bf16.mxu1 %v20551_v17  ;;  %14261 = vmatprep.subr.bf16.mxu0 %v20551_v17 }
 0x8bf   :  { %14062 = vmatpush3.bf16.msra.mxu1 %v18732_v31  ;;  %14263 = vmatpush3.bf16.msra.mxu0 %v18973_v24  ;;  %v19314_v24 = vsub.f32 %v8923_v39, %v8944_v48 }
 0x8c0   :  { %14063 = vmatprep.subr.bf16.mxu1 %v20551_v17  ;;  %14264 = vmatprep.subr.bf16.mxu0 %v20551_v17 }
 0x8c1   :  { %v9045_v38 = vand.u32 4294901760, %v19314_v24 }
 0x8c3   :  { %14065 = vmatpush3.bf16.msra.mxu1 %v18764_v27  ;;  %14266 = vmatpush3.bf16.msra.mxu0 %v18981_v10 }
 0x8c4   :  { %14066 = vmatprep.subr.bf16.mxu1 %v20551_v17  ;;  %14267 = vmatprep.subr.bf16.mxu0 %v20551_v17 }
 0x8c6   :  { %12091 = vmatmul.mubr.f32.vlgmr.msra.gmra.mrb[8].mxu0 %v18418_v35 }
 0x8c7   :  { %14068 = vmatpush3.bf16.msra.mxu1 %v18780_v13  ;;  %14269 = vmatpush3.bf16.msra.mxu0 %v18989_v63  ;;  %v19323_v63 = vsub.f32 %v8925_v47, %v8950_v18 }
 0x8c8   :  { %14069 = vmatprep.subr.bf16.mxu1 %v20551_v17  ;;  %14270 = vmatprep.subr.bf16.mxu0 %v20551_v17 }
 0x8c9   :  { %12125 = vmatprep.mubr.msk.f32.mxu0 %vm14663_vm3, %v20067_v14 }
 0x8cb   :  { %14071 = vmatpush3.bf16.msra.mxu1 %v18802_v42  ;;  %14272 = vmatpush3.bf16.msra.mxu0 %v18998_v16  ;;  %v19326_v16 = vsub.f32 %v8926_v30, %v8953_v29 }
 0x8cc   :  { %14072 = vmatprep.subr.bf16.mxu1 %v20551_v17  ;;  %14273 = vmatprep.subr.bf16.mxu0 %v20551_v17 }
 0x8cf   :  { %14074 = vmatpush3.bf16.msra.mxu1 %v18835_v25  ;;  %14275 = vmatpush3.bf16.msra.mxu0 %v19008_v53  ;;  %v8956_v53 = vand.u32 4294901760, %v8927_v37 }
 0x8d0   :  { %14276 = vmatprep.subr.bf16.mxu0 %v20551_v17  ;;  %14363 = vmatprep.subr.bf16.mxu1 %v20551_v17 }
 0x8d2   :  { %11811 = vmatmul.mubr.f32.vlgmr.msra.gmra.mrb[10].mxu1 %v18579_v62  ;;  %v20758_v62 = vld [vmem:[#allocation45_spill] sm:$0xff] }
 0x8d3   :  { %14278 = vmatpush3.bf16.msra.mxu0 %v19016_v49  ;;  %12265 = vmatprep.mubr.msk.f32.mxu1 %vm14663_vm3, %v20067_v14  ;;  %v8959_v49 = vand.u32 4294901760, %v8928_v15 }
 0x8d4   :  { %14279 = vmatprep.subr.bf16.mxu0 %v20551_v17  ;;  %14365 = vmatpush3.bf16.msra.mxu1 %v19308_v2 }
 0x8d5   :  { %14366 = vmatprep.subr.bf16.mxu1 %v20551_v17 }
 0x8d7   :  { %14281 = vmatpush3.bf16.msra.mxu0 %v19024_v45  ;;  %v8962_v45 = vand.u32 4294901760, %v8929_v1 }
 0x8d8   :  { %14282 = vmatprep.subr.bf16.mxu0 %v20551_v17 }
 0x8d9   :  { %v19335_v9 = vsub.f32 %v8929_v1, %v8962_v45 }
 0x8db   :  { %14284 = vmatpush3.bf16.msra.mxu0 %v19032_v46  ;;  %v8965_v46 = vand.u32 4294901760, %v8930_v19 }
 0x8dc   :  { %14285 = vmatprep.subr.bf16.mxu0 %v20551_v17 }
 0x8dd   :  { %v19337_v6 = vsub.f32 %v8930_v19, %v8965_v46  ;;  %v19352_v40 = vpack.c.bf16 %v8965_v46, %v8962_v45 }
 0x8df   :  { %14287 = vmatpush3.bf16.msra.mxu0 %v19041_v20  ;;  %v19331_v20 = vsub.f32 %v8927_v37, %v8956_v53 }
 0x8e0   :  { %14288 = vmatprep.subr.bf16.mxu0 %v20551_v17 }
 0x8e3   :  { %14290 = vmatpush3.bf16.msra.mxu0 %v19051_v54  ;;  %v19333_v54 = vsub.f32 %v8928_v15, %v8959_v49 }
 0x8e4   :  { %14291 = vmatprep.subr.bf16.mxu0 %v20551_v17 }
 0x8e5   :  { %v19234_v7 = vpop.f32.mrb[8].mxu1  ;;  %v9080_v45 = vand.u32 4294901760, %v19333_v54 }
 0x8e6   :  { %v11602_v3 = vpop.f32.mrb[9].mxu1  ;;  %12126 = vmatmul.mubr.f32.vlgmr.msra.gmra.mrb[8].mxu0 %v20758_v62  ;;  %v9039_v62 = vsub.f32 %v19312_v23, %v9038_v41 }
 0x8e7   :  { %14293 = vmatpush3.bf16.msra.mxu0 %v18683_v43  ;;  %12160 = vmatprep.mubr.msk.f32.mxu0 %vm14663_vm3, %v20067_v14 }
 0x8e8   :  { %14294 = vmatprep.subr.bf16.mxu0 %v20551_v17 }
 0x8eb   :  { %14296 = vmatpush3.bf16.msra.mxu0 %v18700_v12 }
 0x8ec   :  { %14297 = vmatprep.subr.bf16.mxu0 %v20551_v17 }
 0x8ef   :  { %14299 = vmatpush3.bf16.msra.mxu0 %v18716_v44 }
 0x8f0   :  { %14300 = vmatprep.subr.bf16.mxu0 %v20551_v17 }
 0x8f3   :  { %14302 = vmatpush3.bf16.msra.mxu0 %v18732_v31 }
 0x8f4   :  { %14303 = vmatprep.subr.bf16.mxu0 %v20551_v17 }
 0x8f7   :  { %14305 = vmatpush3.bf16.msra.mxu0 %v18764_v27 }
 0x8f8   :  { %14306 = vmatprep.subr.bf16.mxu0 %v20551_v17 }
 0x8fb   :  { %14308 = vmatpush3.bf16.msra.mxu0 %v18780_v13 }
 0x8fc   :  { %14309 = vmatprep.subr.bf16.mxu0 %v20551_v17 }
 0x8ff   :  { %14311 = vmatpush3.bf16.msra.mxu0 %v18802_v42 }
 0x900   :  { %14312 = vmatprep.subr.bf16.mxu0 %v20551_v17 }
 0x903   :  { %14314 = vmatpush3.bf16.msra.mxu0 %v18835_v25 }
 0x904   :  { %14315 = vmatprep.subr.bf16.mxu0 %v20551_v17 }
 0x906   :  { %12161 = vmatmul.mubr.f32.vlgmr.msra.gmra.mrb[8].mxu0 %v20759_v26 }
 0x907   :  { %14317 = vmatpush3.bf16.msra.mxu0 %v19099_v5  ;;  %12195 = vmatprep.mubr.msk.f32.mxu0 %vm14663_vm3, %v20067_v14  ;;  %v19340_v5 = vpack.c.bf16 %v8953_v29, %v8950_v18  ;;  %v9059_v29 = vand.u32 4294901760, %v19323_v63 }
 0x908   :  { %14318 = vmatprep.subr.bf16.mxu0 %v20551_v17 }
 0x909   :  { %v9060_v15 = vsub.f32 %v19323_v63, %v9059_v29 }
 0x90b   :  { %14320 = vmatpush3.bf16.msra.mxu0 %v19110_v52  ;;  %v9061_v19 = vand.u32 4294901760, %v9060_v15 }
 0x90c   :  { %14321 = vmatprep.subr.bf16.mxu0 %v20551_v17 }
 0x90f   :  { %14323 = vmatpush3.bf16.msra.mxu0 %v19122_v21  ;;  %v8935_v21 = vld [vmem:[%s19599_s4 + $0x70] sm:$0xff] }
 0x910   :  { %14324 = vmatprep.subr.bf16.mxu0 %v20551_v17  ;;  %v8980_v34 = vand.u32 4294901760, %v8935_v21 }
 0x913   :  { %14326 = vmatpush3.bf16.msra.mxu0 %v19132_v4  ;;  %v8983_v4 = vand.u32 4294901760, %v8936_v61 }
 0x914   :  { %14327 = vmatprep.subr.bf16.mxu0 %v20551_v17 }
 0x915   :  { %v19399_v32 = vpack.c.bf16 %v8983_v4, %v8980_v34 }
 0x917   :  { %14329 = vmatpush3.bf16.msra.mxu0 %v19142_v59 }
 0x918   :  { %14330 = vmatprep.subr.bf16.mxu0 %v20551_v17 }
 0x91b   :  { %14332 = vmatpush3.bf16.msra.mxu0 %v19152_v28 }
 0x91c   :  { %14333 = vmatprep.subr.bf16.mxu0 %v20551_v17 }
 0x91f   :  { %14335 = vmatpush3.bf16.msra.mxu0 %v19163_v58  ;;  %v19401_v58 = vsub.f32 %v8935_v21, %v8980_v34 }
 0x920   :  { %14336 = vmatprep.subr.bf16.mxu0 %v20551_v17 }
 0x923   :  { %14338 = vmatpush3.bf16.msra.mxu0 %v19175_v60  ;;  %v19403_v60 = vsub.f32 %v8936_v61, %v8983_v4 }
 0x924   :  { %14339 = vmatprep.subr.bf16.mxu0 %v20551_v17 }
 0x926   :  { %12196 = vmatmul.mubr.f32.vlgmr.msra.gmra.mrb[8].mxu0 %v18418_v35 }
 0x927   :  { %14341 = vmatpush3.bf16.msra.mxu0 %v18683_v43  ;;  %12230 = vmatprep.mubr.msk.f32.mxu0 %vm14663_vm3, %v20067_v14  ;;  %v8924_v43 = vld [vmem:[%s19599_s4 + $0x18] sm:$0xff] }
 0x928   :  { %14342 = vmatprep.subr.bf16.mxu0 %v20551_v17  ;;  %v8947_v50 = vand.u32 4294901760, %v8924_v43 }
 0x92a   :  { %v19319_v55 = vpack.c.bf16 %v8947_v50, %v8944_v48  ;;  %v19321_v10 = vsub.f32 %v8924_v43, %v8947_v50  ;;  %v9040_v43 = vand.u32 4294901760, %v9039_v62  ;;  %v9046_v48 = vsub.f32 %v19314_v24, %v9045_v38 }
 0x92b   :  { %14344 = vmatpush3.bf16.msra.mxu0 %v18700_v12  ;;  %v19310_v12 = vsub.f32 %v8921_v57, %v8938_v11 }
 0x92c   :  { %14345 = vmatprep.subr.bf16.mxu0 %v20551_v17  ;;  %14368 = vmatpush3.bf16.msra.mxu1 %v19319_v55  ;;  %v9052_v39 = vand.u32 4294901760, %v19321_v10  ;;  %v9047_v50 = vand.u32 4294901760, %v9046_v48 }
 0x92d   :  { %14369 = vmatprep.subr.bf16.mxu1 %v20551_v17  ;;  %v9031_v36 = vand.u32 4294901760, %v19310_v12 }
 0x92e   :  { %v9053_v47 = vsub.f32 %v19321_v10, %v9052_v39 }
 0x92f   :  { %14347 = vmatpush3.bf16.msra.mxu0 %v18716_v44  ;;  %v19346_v44 = vpack.c.bf16 %v8959_v49, %v8956_v53  ;;  %v9032_v3 = vsub.f32 %v19310_v12, %v9031_v36  ;;  %v9073_v49 = vand.u32 4294901760, %v19331_v20 }
 0x930   :  { %14348 = vmatprep.subr.bf16.mxu0 %v20551_v17  ;;  %14371 = vmatpush3.bf16.msra.mxu1 %v19340_v5  ;;  %v9054_v18 = vand.u32 4294901760, %v9053_v47 }
 0x931   :  { %14372 = vmatprep.subr.bf16.mxu1 %v20551_v17  ;;  %v9033_v57 = vand.u32 4294901760, %v9032_v3 }
 0x932   :  { %v14391_v37 = vpack.c.bf16 %v9054_v18, %v9047_v50 }
 0x933   :  { %14350 = vmatpush3.bf16.msra.mxu0 %v18732_v31  ;;  %v8931_v31 = vld [vmem:[%s19599_s4 + $0x50] sm:$0xff]  ;;  %v19422_v30 = vpack.c.bf16 %v9040_v43, %v9033_v57 }
 0x934   :  { %14351 = vmatprep.subr.bf16.mxu0 %v20551_v17  ;;  %14374 = vmatpush3.bf16.msra.mxu1 %v19346_v44 }
 0x935   :  { %14375 = vmatprep.subr.bf16.mxu1 %v20551_v17 }
 0x937   :  { %14353 = vmatpush3.bf16.msra.mxu0 %v18764_v27  ;;  %v8932_v27 = vld [vmem:[%s19599_s4 + $0x58] sm:$0xff] }
 0x938   :  { %14354 = vmatprep.subr.bf16.mxu0 %v20551_v17  ;;  %14377 = vmatpush3.bf16.msra.mxu1 %v19352_v40  ;;  %v8971_v0 = vand.u32 4294901760, %v8932_v27 }
 0x939   :  { %14378 = vmatprep.subr.bf16.mxu1 %v20551_v17 }
 0x93a   :  { %v19393_v33 = vsub.f32 %v8932_v27, %v8971_v0  ;;  %v9081_v27 = vsub.f32 %v19333_v54, %v9080_v45 }
 0x93b   :  { %14356 = vmatpush3.bf16.msra.mxu0 %v18780_v13  ;;  %v8968_v13 = vand.u32 4294901760, %v8931_v31 }
 0x93c   :  { %14357 = vmatprep.subr.bf16.mxu0 %v20551_v17  ;;  %v20046_v3 = vand.u32 4294901760, %v19393_v33 }
 0x93d   :  { %v19369_v52 = vpack.c.bf16 %v8971_v0, %v8968_v13  ;;  %v19391_v59 = vsub.f32 %v8931_v31, %v8968_v13  ;;  %v9074_v31 = vsub.f32 %v19331_v20, %v9073_v49  ;;  %v9082_v0 = vand.u32 4294901760, %v9081_v27 }
 0x93e   :  { %v9109_v57 = vsub.f32 %v19393_v33, %v20046_v3 }
 0x93f   :  { %14359 = vmatpush3.bf16.msra.mxu0 %v18802_v42  ;;  %v8933_v42 = vld [vmem:[%s19599_s4 + $0x60] sm:$0xff]  ;;  %14380 = vmatpush3.bf16.msra.mxu1 %v19369_v52  ;;  %v9075_v13 = vand.u32 4294901760, %v9074_v31  ;;  %v9101_v4 = vand.u32 4294901760, %v19391_v59  ;;  %v20042_v31 = vand.u32 4294901760, %v19403_v60 }
 0x940   :  { %14360 = vmatprep.subr.bf16.mxu0 %v20551_v17  ;;  %14381 = vmatprep.subr.bf16.mxu1 %v20551_v17  ;;  %v9110_v43 = vand.u32 4294901760, %v9109_v57  ;;  %v14418_v57 = vpack.c.bf16 %v19326_v16, %v19323_v63 }
 0x943   :  { %14362 = vmatpush3.bf16.msra.mxu0 %v18835_v25  ;;  %v8974_v25 = vand.u32 4294901760, %v8933_v42 }
 0x945   :  { %v19395_v56 = vsub.f32 %v8933_v42, %v8974_v25  ;;  %v9087_v42 = vand.u32 4294901760, %v19335_v9 }
 0x946   :  { %12231 = vmatmul.mubr.f32.vlgmr.msra.gmra.mrb[8].mxu0 %v18418_v35  ;;  %v8934_v35 = vld [vmem:[%s19599_s4 + $0x68] sm:$0xff] }
 0x947   :  { %v8977_v8 = vand.u32 4294901760, %v8934_v35  ;;  %v20045_v48 = vand.u32 4294901760, %v19395_v56 }
 0x949   :  { %v19379_v51 = vpack.c.bf16 %v8977_v8, %v8974_v25  ;;  %v19397_v28 = vsub.f32 %v8934_v35, %v8977_v8  ;;  %v9094_v35 = vand.u32 4294901760, %v19337_v6  ;;  %v14397_v25 = vpack.c.bf16 %v9082_v0, %v9075_v13 }
 0x94a   :  { %v9088_v8 = vsub.f32 %v19335_v9, %v9087_v42  ;;  %v9116_v18 = vsub.f32 %v19395_v56, %v20045_v48  ;;  %v9137_v0 = vsub.f32 %v19403_v60, %v20042_v31 }
 0x94b   :  { %14383 = vmatpush3.bf16.msra.mxu1 %v19379_v51  ;;  %v9095_v21 = vsub.f32 %v19337_v6, %v9094_v35  ;;  %v20044_v47 = vand.u32 4294901760, %v19397_v28 }
 0x94c   :  { %14384 = vmatprep.subr.bf16.mxu1 %v20551_v17  ;;  %v9089_v61 = vand.u32 4294901760, %v9088_v8 }
 0x94d   :  { %v9096_v34 = vand.u32 4294901760, %v9095_v21  ;;  %v9123_v15 = vsub.f32 %v19397_v28, %v20044_v47  ;;  %v9138_v21 = vand.u32 4294901760, %v9137_v0 }
 0x94f   :  { %14386 = vmatpush3.bf16.msra.mxu1 %v19399_v32  ;;  %v14400_v62 = vpack.c.bf16 %v9096_v34, %v9089_v61  ;;  %v14412_v34 = vpack.c.bf16 %v19312_v23, %v19310_v12  ;;  %v14469_v23 = vpack.c.bf16 %v9080_v45, %v9073_v49 }
 0x950   :  { %14387 = vmatprep.subr.bf16.mxu1 %v20551_v17 }
 0x9a5   :  { %v7631_v26 = vpop.f32.mrb[10].mxu1 }
 0x9a6   :  { %v7635_v11 = vsub.f32 %v19234_v7, %v7631_v26  ;;  %v11812_v22 = vpop.f32.mrb[11].mxu1  ;;  %v9066_v7 = vand.u32 4294901760, %v19326_v16  ;;  %v9102_v26 = vsub.f32 %v19391_v59, %v9101_v4 }
 0x9a8   :  { %v9067_v1 = vsub.f32 %v19326_v16, %v9066_v7  ;;  %v9103_v22 = vand.u32 4294901760, %v9102_v26  ;;  %v14415_v26 = vpack.c.bf16 %v19321_v10, %v19314_v24  ;;  %v14466_v12 = vpack.c.bf16 %v9066_v7, %v9059_v29 }
 0x9a9   :  { %v14472_v24 = vpack.c.bf16 %v9094_v35, %v9087_v42  ;;  %v20760_v10 = vand.u32 4294901760, %v19393_v33  ;;  %v20761_v16 = vand.u32 4294901760, %v19395_v56 }
 0x9aa   :  { %v9068_v53 = vand.u32 4294901760, %v9067_v1  ;;  %v14403_v50 = vpack.c.bf16 %v9110_v43, %v9103_v22  ;;  %v9117_v1 = vand.u32 4294901760, %v9116_v18  ;;  %v14421_v22 = vpack.c.bf16 %v19333_v54, %v19331_v20 }
 0x9ab   :  { %v14424_v43 = vpack.c.bf16 %v19337_v6, %v19335_v9  ;;  %v14427_v18 = vpack.c.bf16 %v19393_v33, %v19391_v59  ;;  %v14475_v63 = vpack.c.bf16 %v20760_v10, %v9101_v4  ;;  %v20762_v20 = vand.u32 4294901760, %v19397_v28 }
 0x9ac   :  { %v14394_v46 = vpack.c.bf16 %v9068_v53, %v9061_v19  ;;  %v9124_v19 = vand.u32 4294901760, %v9123_v15  ;;  %v20043_v53 = vand.u32 4294901760, %v19401_v58  ;;  %v14430_v15 = vpack.c.bf16 %v19397_v28, %v19395_v56 }
 0x9ad   :  { %v14478_v54 = vpack.c.bf16 %v20762_v20, %v20761_v16  ;;  %v20763_v9 = vand.u32 4294901760, %v19401_v58  ;;  %v20764_v6 = vand.u32 4294901760, %v19403_v60 }
 0x9ae   :  { %v14406_v27 = vpack.c.bf16 %v9124_v19, %v9117_v1  ;;  %v9130_v13 = vsub.f32 %v19401_v58, %v20043_v53  ;;  %v14433_v1 = vpack.c.bf16 %v19403_v60, %v19401_v58 }
 0x9b0   :  { %v9131_v8 = vand.u32 4294901760, %v9130_v13  ;;  %v8918_v13 = vmul.f32 %v7635_v11, %v7635_v11  ;;  %v14460_v11 = vpack.c.bf16 %v9038_v41, %v9031_v36  ;;  %v14481_v36 = vpack.c.bf16 %v20764_v6, %v20763_v9 }
 0x9b2   :  { %v14409_v61 = vpack.c.bf16 %v9138_v21, %v9131_v8 }
 0xa19   :  { %v8914_v19 = vpop.f32.mrb[8].mxu0 }
 0xa1a   :  { %v8919_v0 = vmul.f32 %v8914_v19, %v8914_v19  ;;  %v12232_v8 = vpop.f32.mrb[9].mxu0 }
 0xa1c   :  { %v8920_v21 = vadd.f32 %v8919_v0, %v8918_v13 }
 0xa1e   :  { %v19488_v31 = vand.u32 4294901760, %v8920_v21 }
 0xa20   :  { %v9019_v53 = vsub.f32 %v8920_v21, %v19488_v31 }
 0xa22   :  { %v9020_v47 = vand.u32 4294901760, %v9019_v53 }
 0xa24   :  { %v9021_v48 = vsub.f32 %v9019_v53, %v9020_v47 }
 0xa26   :  { %v9022_v3 = vand.u32 4294901760, %v9021_v48 }
 0xa28   :  { %12266 = vmatmul.mubr.f32.vlgmr.msra.gmra.mrb[12].mxu1 %v9022_v3 }
 0xa29   :  { %14389 = vmatpush3.bf16.msra.mxu1 %v19422_v30  ;;  %12300 = vmatprep.mubr.msk.f32.mxu1 %vm14663_vm3, %v20067_v14  ;;  %v14463_v30 = vpack.c.bf16 %v9052_v39, %v9045_v38 }
 0xa2a   :  { %14390 = vmatprep.subr.bf16.mxu1 %v20551_v17 }
 0xa2d   :  { %14392 = vmatpush3.bf16.msra.mxu1 %v14391_v37 }
 0xa2e   :  { %14393 = vmatprep.subr.bf16.mxu1 %v20551_v17 }
 0xa31   :  { %14395 = vmatpush3.bf16.msra.mxu1 %v14394_v46 }
 0xa32   :  { %14396 = vmatprep.subr.bf16.mxu1 %v20551_v17 }
 0xa35   :  { %14398 = vmatpush3.bf16.msra.mxu1 %v14397_v25 }
 0xa36   :  { %14399 = vmatprep.subr.bf16.mxu1 %v20551_v17 }
 0xa39   :  { %14401 = vmatpush3.bf16.msra.mxu1 %v14400_v62 }
 0xa3a   :  { %14402 = vmatprep.subr.bf16.mxu1 %v20551_v17 }
 0xa3d   :  { %14404 = vmatpush3.bf16.msra.mxu1 %v14403_v50 }
 0xa3e   :  { %14405 = vmatprep.subr.bf16.mxu1 %v20551_v17 }
 0xa41   :  { %14407 = vmatpush3.bf16.msra.mxu1 %v14406_v27 }
 0xa42   :  { %14408 = vmatprep.subr.bf16.mxu1 %v20551_v17 }
 0xa45   :  { %14410 = vmatpush3.bf16.msra.mxu1 %v14409_v61 }
 0xa46   :  { %14411 = vmatprep.subr.bf16.mxu1 %v20551_v17 }
 0xa48   :  { %12301 = vmatmul.mubr.f32.vlgmr.msra.gmra.mrb[12].mxu1 %v19488_v31 }
 0xa49   :  { %14413 = vmatpush3.bf16.msra.mxu1 %v14412_v34  ;;  %12335 = vmatprep.mubr.msk.f32.mxu1 %vm14663_vm3, %v20067_v14 }
 0xa4a   :  { %14414 = vmatprep.subr.bf16.mxu1 %v20551_v17 }
 0xa4d   :  { %14416 = vmatpush3.bf16.msra.mxu1 %v14415_v26 }
 0xa4e   :  { %14417 = vmatprep.subr.bf16.mxu1 %v20551_v17 }
 0xa51   :  { %14419 = vmatpush3.bf16.msra.mxu1 %v14418_v57 }
 0xa52   :  { %14420 = vmatprep.subr.bf16.mxu1 %v20551_v17 }
 0xa55   :  { %14422 = vmatpush3.bf16.msra.mxu1 %v14421_v22 }
 0xa56   :  { %14423 = vmatprep.subr.bf16.mxu1 %v20551_v17 }
 0xa59   :  { %14425 = vmatpush3.bf16.msra.mxu1 %v14424_v43 }
 0xa5a   :  { %14426 = vmatprep.subr.bf16.mxu1 %v20551_v17 }
 0xa5d   :  { %14428 = vmatpush3.bf16.msra.mxu1 %v14427_v18 }
 0xa5e   :  { %14429 = vmatprep.subr.bf16.mxu1 %v20551_v17 }
 0xa61   :  { %14431 = vmatpush3.bf16.msra.mxu1 %v14430_v15 }
 0xa62   :  { %14432 = vmatprep.subr.bf16.mxu1 %v20551_v17 }
 0xa65   :  { %14434 = vmatpush3.bf16.msra.mxu1 %v14433_v1 }
 0xa66   :  { %14435 = vmatprep.subr.bf16.mxu1 %v20551_v17 }
 0xa68   :  { %12336 = vmatmul.mubr.f32.vlgmr.msra.gmra.mrb[12].mxu1 %v9019_v53 }
 0xa69   :  { %14437 = vmatpush3.bf16.msra.mxu1 %v19308_v2  ;;  %12370 = vmatprep.mubr.msk.f32.mxu1 %vm14663_vm3, %v20067_v14 }
 0xa6a   :  { %14438 = vmatprep.subr.bf16.mxu1 %v20551_v17 }
 0xa6d   :  { %14440 = vmatpush3.bf16.msra.mxu1 %v19319_v55 }
 0xa6e   :  { %14441 = vmatprep.subr.bf16.mxu1 %v20551_v17 }
 0xa71   :  { %14443 = vmatpush3.bf16.msra.mxu1 %v19340_v5 }
 0xa72   :  { %14444 = vmatprep.subr.bf16.mxu1 %v20551_v17 }
 0xa75   :  { %14446 = vmatpush3.bf16.msra.mxu1 %v19346_v44 }
 0xa76   :  { %14447 = vmatprep.subr.bf16.mxu1 %v20551_v17 }
 0xa79   :  { %14449 = vmatpush3.bf16.msra.mxu1 %v19352_v40 }
 0xa7a   :  { %14450 = vmatprep.subr.bf16.mxu1 %v20551_v17 }
 0xa7d   :  { %14452 = vmatpush3.bf16.msra.mxu1 %v19369_v52 }
 0xa7e   :  { %14453 = vmatprep.subr.bf16.mxu1 %v20551_v17 }
 0xa81   :  { %14455 = vmatpush3.bf16.msra.mxu1 %v19379_v51 }
 0xa82   :  { %14456 = vmatprep.subr.bf16.mxu1 %v20551_v17 }
 0xa85   :  { %14458 = vmatpush3.bf16.msra.mxu1 %v19399_v32 }
 0xa86   :  { %14459 = vmatprep.subr.bf16.mxu1 %v20551_v17 }
 0xa88   :  { %12371 = vmatmul.mubr.f32.vlgmr.msra.gmra.mrb[12].mxu1 %v9020_v47 }
 0xa89   :  { %14461 = vmatpush3.bf16.msra.mxu1 %v14460_v11  ;;  %12405 = vmatprep.mubr.msk.f32.mxu1 %vm14663_vm3, %v20067_v14 }
 0xa8a   :  { %14462 = vmatprep.subr.bf16.mxu1 %v20551_v17 }
 0xa8d   :  { %14464 = vmatpush3.bf16.msra.mxu1 %v14463_v30 }
 0xa8e   :  { %14465 = vmatprep.subr.bf16.mxu1 %v20551_v17 }
 0xa91   :  { %14467 = vmatpush3.bf16.msra.mxu1 %v14466_v12 }
 0xa92   :  { %14468 = vmatprep.subr.bf16.mxu1 %v20551_v17 }
 0xa95   :  { %14470 = vmatpush3.bf16.msra.mxu1 %v14469_v23 }
 0xa96   :  { %14471 = vmatprep.subr.bf16.mxu1 %v20551_v17 }
 0xa99   :  { %14473 = vmatpush3.bf16.msra.mxu1 %v14472_v24 }
 0xa9a   :  { %14474 = vmatprep.subr.bf16.mxu1 %v20551_v17 }
 0xa9d   :  { %14476 = vmatpush3.bf16.msra.mxu1 %v14475_v63 }
 0xa9e   :  { %14477 = vmatprep.subr.bf16.mxu1 %v20551_v17 }
 0xaa1   :  { %14479 = vmatpush3.bf16.msra.mxu1 %v14478_v54 }
 0xaa2   :  { %14480 = vmatprep.subr.bf16.mxu1 %v20551_v17 }
 0xaa5   :  { %14482 = vmatpush3.bf16.msra.mxu1 %v14481_v36 }
 0xaa6   :  { %14483 = vmatprep.subr.bf16.mxu1 %v20551_v17 }
 0xaa8   :  { %12406 = vmatmul.mubr.f32.vlgmr.msra.gmra.mrb[12].mxu1 %v19488_v31 }
 0xaa9   :  { %14485 = vmatpush3.bf16.msra.mxu1 %v19308_v2  ;;  %12440 = vmatprep.mubr.msk.f32.mxu1 %vm14663_vm3, %v20067_v14 }
 0xaaa   :  { %14486 = vmatprep.subr.bf16.mxu1 %v20551_v17 }
 0xaad   :  { %14488 = vmatpush3.bf16.msra.mxu1 %v19319_v55 }
 0xaae   :  { %14489 = vmatprep.subr.bf16.mxu1 %v20551_v17 }
 0xab1   :  { %14491 = vmatpush3.bf16.msra.mxu1 %v19340_v5 }
 0xab2   :  { %14492 = vmatprep.subr.bf16.mxu1 %v20551_v17 }
 0xab5   :  { %14494 = vmatpush3.bf16.msra.mxu1 %v19346_v44 }
 0xab6   :  { %14495 = vmatprep.subr.bf16.mxu1 %v20551_v17 }
 0xab9   :  { %14497 = vmatpush3.bf16.msra.mxu1 %v19352_v40 }
 0xaba   :  { %14498 = vmatprep.subr.bf16.mxu1 %v20551_v17 }
 0xabd   :  { %14500 = vmatpush3.bf16.msra.mxu1 %v19369_v52 }
 0xabe   :  { %14501 = vmatprep.subr.bf16.mxu1 %v20551_v17 }
 0xac1   :  { %14503 = vmatpush3.bf16.msra.mxu1 %v19379_v51 }
 0xac2   :  { %14504 = vmatprep.subr.bf16.mxu1 %v20551_v17 }
 0xac5   :  { %14506 = vmatpush3.bf16.msra.mxu1 %v19399_v32 }
 0xac8   :  { %12441 = vmatmul.mubr.f32.vlgmr.msra.gmra.mrb[12].mxu1 %v19488_v31 }
 0xb9b   :  { %v9574_v14 = vpop.f32.mrb[12].mxu1 }
 0xb9c   :  { %v14509_v2 = vadd.f32 1.0, %v9574_v14  ;;  %v12442_v55 = vpop.f32.mrb[13].mxu1 }
 0xb9e   :  { %v9578_v5 = vmul.f32 0.5, %v14509_v2 }
 0xba0   :  { %9580 = vst.msk [vmem:[%s19600_s5] sm:$0xff] %vm9579_vm5, %v9578_v5 }

</bundles_post_ra>
